<compile_context>
chip_gen: v7x
topology: tpu7x:2x2x1
jax: 0.10.0
libtpu: 0.0.40
codegen_flags: <defaults>
</compile_context>

<pallas_src>
import jax
import jax.numpy as jnp
from jax.experimental import pallas as pl
from jax.experimental.pallas import tpu as pltpu


def _mlblock_kernel(m_ref, p_ref,
                    w1a_ref, b1a_ref, w1b_ref, b1b_ref,
                    w2a_ref, b2a_ref, w2b_ref, b2b_ref,
                    m_out_ref, p_out_ref, f_out_ref,
                    pad_m_ref, pad_p_ref, pad_h_ref):
    """One batch element of the full MLBlock.

    m_ref / p_ref : (1, H, W, Cin)        NHWC input tiles (VMEM)
    w*_ref        : (9*Cin, Cout)         im2col-reshaped conv weights
    b*_ref        : (1, Cout)             biases
    *_out_ref     : (1, H, W, Cout)       outputs (m, p, f = m + p)
    pad_*_ref     : (H+2, W+2, C) VMEM scratch used as zero-bordered halo bufs
    """
    _, H, W, _ = m_ref.shape
    cmid = w1b_ref.shape[-1]

    # Zero the halo buffers (borders stay zero; only interiors are rewritten).
    pad_m_ref[...] = jnp.zeros_like(pad_m_ref)
    pad_p_ref[...] = jnp.zeros_like(pad_p_ref)
    pad_h_ref[...] = jnp.zeros_like(pad_h_ref)

    def conv3x3(pad_ref, x_hwc, w_ref, b_ref, relu):
        """3x3 / stride 1 / pad 1 conv as a single im2col MXU matmul.

        Returns (H*W, Cout) float32.
        """
        cin = x_hwc.shape[-1]
        # Write the activation into the interior of the zero-bordered buffer.
        pad_ref[1:H + 1, 1:W + 1, :] = x_hwc.astype(pad_ref.dtype)
        xp = pad_ref[...]                                   # (H+2, W+2, Cin)
        # im2col: tap order (dy, dx) outer, cin inner -- matches the
        # (3, 3, Cin, Cout) -> (9*Cin, Cout) weight reshape in the wrapper.
        cols = [
            xp[dy:dy + H, dx:dx + W, :].reshape(H * W, cin)
            for dy in range(3) for dx in range(3)
        ]
        patches = jnp.concatenate(cols, axis=-1)            # (H*W, 9*Cin)
        # TODO(synk): on v6e/v7x cast patches/weights to bf16 (keep f32
        # accumulate) for 2x MXU rate + half the DMA bytes; kept f32 here to
        # match PyTorch f32 conv numerics.
        acc = jnp.dot(patches, w_ref[...],
                      preferred_element_type=jnp.float32)   # (H*W, Cout)
        acc = acc + b_ref[...]
        if relu:
            acc = jnp.maximum(acc, 0.0)
        return acc

    # ---- branch 1: m -> conv1a -> ReLU -> conv1b ----
    h1 = conv3x3(pad_m_ref, m_ref[0], w1a_ref, b1a_ref, relu=True)
    m_val = conv3x3(pad_h_ref, h1.reshape(H, W, cmid),
                    w1b_ref, b1b_ref, relu=False)
    m_out_ref[0] = m_val.reshape(H, W, cmid).astype(m_out_ref.dtype)

    # ---- branch 2: p -> conv2a -> ReLU -> conv2b ----
    h2 = conv3x3(pad_p_ref, p_ref[0], w2a_ref, b2a_ref, relu=True)
    p_val = conv3x3(pad_h_ref, h2.reshape(H, W, cmid),
                    w2b_ref, b2b_ref, relu=False)
    p_out_ref[0] = p_val.reshape(H, W, cmid).astype(p_out_ref.dtype)

    # ---- fused elementwise sum (no separate add kernel / HBM round trip) ----
    f_out_ref[0] = (m_val + p_val).reshape(H, W, cmid).astype(f_out_ref.dtype)


def _prep_conv(w, b):
    """(3,3,Cin,Cout) weight -> (9*Cin, Cout) im2col matrix; bias -> (1,Cout)."""
    kh, kw, cin, cout = w.shape
    return w.reshape(kh * kw * cin, cout), b.reshape(1, cout)


def init_mlblock_params(key, in_channels_m, in_channels_p, inter_channels):
    """Deterministic parameter init. Weights stored as (kh, kw, Cin, Cout)."""
    keys = jax.random.split(key, 8)

    def conv_params(kw_key, kb_key, cin, cout):
        fan_in = cin * 9
        bound = 1.0 / jnp.sqrt(fan_in)
        w = jax.random.uniform(kw_key, (3, 3, cin, cout),
                               minval=-bound, maxval=bound, dtype=jnp.float32)
        b = jax.random.uniform(kb_key, (cout,),
                               minval=-bound, maxval=bound, dtype=jnp.float32)
        return w, b

    return {
        "conv1a": conv_params(keys[0], keys[1], in_channels_m, inter_channels),
        "conv1b": conv_params(keys[2], keys[3], inter_channels, inter_channels),
        "conv2a": conv_params(keys[4], keys[5], in_channels_p, inter_channels),
        "conv2b": conv_params(keys[6], keys[7], inter_channels, inter_channels),
    }


@jax.jit
def ml_block_forward(params, m_nchw, p_nchw):
    """MLBlock.forward: m, p are NCHW (like PyTorch); returns (m, p, f) in NCHW."""
    # NCHW -> NHWC for the kernel (boundary transposes on the tiny inputs).
    m = jnp.transpose(m_nchw, (0, 2, 3, 1))
    p = jnp.transpose(p_nchw, (0, 2, 3, 1))
    B, H, W, cin_m = m.shape
    cin_p = p.shape[-1]

    w1a, b1a = _prep_conv(*params["conv1a"])
    w1b, b1b = _prep_conv(*params["conv1b"])
    w2a, b2a = _prep_conv(*params["conv2a"])
    w2b, b2b = _prep_conv(*params["conv2b"])
    cmid = w1a.shape[-1]

    # Weights/biases use constant index_maps -> DMA'd once, stay resident.
    def full(shape):
        return pl.BlockSpec(shape, lambda bi: (0,) * len(shape))

    def act_spec(c):
        return pl.BlockSpec((1, H, W, c), lambda bi: (bi, 0, 0, 0))

    out_sds = jax.ShapeDtypeStruct((B, H, W, cmid), m.dtype)

    m_o, p_o, f_o = pl.pallas_call(
        _mlblock_kernel,
        out_shape=(out_sds, out_sds, out_sds),
        grid_spec=pltpu.PrefetchScalarGridSpec(
            num_scalar_prefetch=0,
            grid=(B,),
            in_specs=[
                act_spec(cin_m),                    # m
                act_spec(cin_p),                    # p
                full(w1a.shape), full(b1a.shape),   # conv1a
                full(w1b.shape), full(b1b.shape),   # conv1b
                full(w2a.shape), full(b2a.shape),   # conv2a
                full(w2b.shape), full(b2b.shape),   # conv2b
            ],
            out_specs=(act_spec(cmid), act_spec(cmid), act_spec(cmid)),
            scratch_shapes=[
                pltpu.VMEM((H + 2, W + 2, cin_m), jnp.float32),  # halo for m
                pltpu.VMEM((H + 2, W + 2, cin_p), jnp.float32),  # halo for p
                pltpu.VMEM((H + 2, W + 2, cmid), jnp.float32),   # halo for hidden
            ],
        ),
        compiler_params=pltpu.CompilerParams(
            dimension_semantics=("parallel",)),
    )(m, p, w1a, b1a, w1b, b1b, w2a, b2a, w2b, b2b)

    # NHWC -> NCHW to match PyTorch output convention.
    to_nchw = lambda t: jnp.transpose(t, (0, 3, 1, 2))
    return to_nchw(m_o), to_nchw(p_o), to_nchw(f_o)


if __name__ == "__main__":
    key = jax.random.PRNGKey(0)
    k_params, k_m, k_p = jax.random.split(key, 3)

    B, H, W = 2, 16, 16
    in_channels_m, in_channels_p, inter_channels = 4, 3, 32

    params = init_mlblock_params(k_params, in_channels_m, in_channels_p,
                                 inter_channels)
    m_in = jax.random.normal(k_m, (B, in_channels_m, H, W), dtype=jnp.float32)
    p_in = jax.random.normal(k_p, (B, in_channels_p, H, W), dtype=jnp.float32)

    m_out, p_out, f_out = ml_block_forward(params, m_in, p_in)
    jax.block_until_ready((m_out, p_out, f_out))

    assert m_out.shape == (B, inter_channels, H, W)
    assert p_out.shape == (B, inter_channels, H, W)
    assert f_out.shape == (B, inter_channels, H, W)
    assert bool(jnp.all(jnp.isfinite(f_out)))
    # f must equal m + p by construction of the fused kernel.
    assert bool(jnp.allclose(f_out, m_out + p_out, atol=1e-5))
    print("KERNEL_OK")
</pallas_src>

<mosaic_0001>
module attributes {stable_mosaic.version = 11 : i64} {
  func.func @_mlblock_kernel(%arg0: i32, %arg1: memref<1x16x16x4xf32, #tpu.memory_space<vmem>>, %arg2: memref<1x16x16x3xf32, #tpu.memory_space<vmem>>, %arg3: memref<36x32xf32, #tpu.memory_space<vmem>>, %arg4: memref<1x32xf32, #tpu.memory_space<vmem>>, %arg5: memref<288x32xf32, #tpu.memory_space<vmem>>, %arg6: memref<1x32xf32, #tpu.memory_space<vmem>>, %arg7: memref<27x32xf32, #tpu.memory_space<vmem>>, %arg8: memref<1x32xf32, #tpu.memory_space<vmem>>, %arg9: memref<288x32xf32, #tpu.memory_space<vmem>>, %arg10: memref<1x32xf32, #tpu.memory_space<vmem>>, %arg11: memref<1x16x16x32xf32, #tpu.memory_space<vmem>>, %arg12: memref<1x16x16x32xf32, #tpu.memory_space<vmem>>, %arg13: memref<1x16x16x32xf32, #tpu.memory_space<vmem>>, %arg14: memref<18x18x4xf32, #tpu.memory_space<vmem>>, %arg15: memref<18x18x3xf32, #tpu.memory_space<vmem>>, %arg16: memref<18x18x32xf32, #tpu.memory_space<vmem>>) attributes {dimension_semantics = [#tpu.dimension_semantics<parallel>], iteration_bounds = array<i64: 2>, scalar_prefetch = 0 : i64, scratch_operands = 3 : i64, tpu.core_type = #tpu.core_type<tc>, window_params = [{transform_indices = @transform_0, window_bounds = array<i64: 1, 16, 16, 4>}, {transform_indices = @transform_1, window_bounds = array<i64: 1, 16, 16, 3>}, {pipeline_mode = #tpu.pipeline_mode<synchronous>, transform_indices = @transform_2, window_bounds = array<i64: 36, 32>}, {pipeline_mode = #tpu.pipeline_mode<synchronous>, transform_indices = @transform_3, window_bounds = array<i64: 1, 32>}, {pipeline_mode = #tpu.pipeline_mode<synchronous>, transform_indices = @transform_4, window_bounds = array<i64: 288, 32>}, {pipeline_mode = #tpu.pipeline_mode<synchronous>, transform_indices = @transform_5, window_bounds = array<i64: 1, 32>}, {pipeline_mode = #tpu.pipeline_mode<synchronous>, transform_indices = @transform_6, window_bounds = array<i64: 27, 32>}, {pipeline_mode = #tpu.pipeline_mode<synchronous>, transform_indices = @transform_7, window_bounds = array<i64: 1, 32>}, {pipeline_mode = #tpu.pipeline_mode<synchronous>, transform_indices = @transform_8, window_bounds = array<i64: 288, 32>}, {pipeline_mode = #tpu.pipeline_mode<synchronous>, transform_indices = @transform_9, window_bounds = array<i64: 1, 32>}, {transform_indices = @transform_10, window_bounds = array<i64: 1, 16, 16, 32>}, {transform_indices = @transform_11, window_bounds = array<i64: 1, 16, 16, 32>}, {transform_indices = @transform_12, window_bounds = array<i64: 1, 16, 16, 32>}]} {
    %cst = arith.constant 0.000000e+00 : f32
    %0 = vector.broadcast %cst : f32 to vector<18x18x4xf32>
    %c0 = arith.constant 0 : index
    %c0_0 = arith.constant 0 : index
    %c0_1 = arith.constant 0 : index
    %1 = vector.load %arg14[%c0, %c0_0, %c0_1] : memref<18x18x4xf32, #tpu.memory_space<vmem>>, vector<18x18x4xf32>
    tpu.vector_store %arg14[%c0, %c0_0, %c0_1], %0 {strides = array<i32>} : memref<18x18x4xf32, #tpu.memory_space<vmem>>, vector<18x18x4xf32>,
    %cst_2 = arith.constant 0.000000e+00 : f32
    %2 = vector.broadcast %cst_2 : f32 to vector<18x18x3xf32>
    %c0_3 = arith.constant 0 : index
    %c0_4 = arith.constant 0 : index
    %c0_5 = arith.constant 0 : index
    %3 = vector.load %arg15[%c0_3, %c0_4, %c0_5] : memref<18x18x3xf32, #tpu.memory_space<vmem>>, vector<18x18x3xf32>
    tpu.vector_store %arg15[%c0_3, %c0_4, %c0_5], %2 {strides = array<i32>} : memref<18x18x3xf32, #tpu.memory_space<vmem>>, vector<18x18x3xf32>,
    %cst_6 = arith.constant 0.000000e+00 : f32
    %4 = vector.broadcast %cst_6 : f32 to vector<18x18x32xf32>
    %c0_7 = arith.constant 0 : index
    %c0_8 = arith.constant 0 : index
    %c0_9 = arith.constant 0 : index
    %5 = vector.load %arg16[%c0_7, %c0_8, %c0_9] : memref<18x18x32xf32, #tpu.memory_space<vmem>>, vector<18x18x32xf32>
    tpu.vector_store %arg16[%c0_7, %c0_8, %c0_9], %4 {strides = array<i32>} : memref<18x18x32xf32, #tpu.memory_space<vmem>>, vector<18x18x32xf32>,
    %c0_10 = arith.constant 0 : index
    %c0_11 = arith.constant 0 : index
    %c0_12 = arith.constant 0 : index
    %c0_13 = arith.constant 0 : index
    %6 = vector.load %arg1[%c0_10, %c0_11, %c0_12, %c0_13] : memref<1x16x16x4xf32, #tpu.memory_space<vmem>>, vector<1x16x16x4xf32>
    %7 = vector.shape_cast %6 : vector<1x16x16x4xf32> to vector<16x16x4xf32>
    %c1 = arith.constant 1 : index
    %c1_14 = arith.constant 1 : index
    %c0_15 = arith.constant 0 : index
    %8 = vector.load %arg14[%c1, %c1_14, %c0_15] : memref<18x18x4xf32, #tpu.memory_space<vmem>>, vector<16x16x4xf32>
    tpu.vector_store %arg14[%c1, %c1_14, %c0_15], %7 {strides = array<i32>} : memref<18x18x4xf32, #tpu.memory_space<vmem>>, vector<16x16x4xf32>,
    %c0_16 = arith.constant 0 : index
    %c0_17 = arith.constant 0 : index
    %c0_18 = arith.constant 0 : index
    %9 = vector.load %arg14[%c0_16, %c0_17, %c0_18] : memref<18x18x4xf32, #tpu.memory_space<vmem>>, vector<18x18x4xf32>
    %10 = vector.extract_strided_slice %9 {offsets = [0, 0, 0], sizes = [16, 16, 4], strides = [1, 1, 1]} : vector<18x18x4xf32> to vector<16x16x4xf32>
    %11 = vector.shape_cast %10 : vector<16x16x4xf32> to vector<256x4xf32>
    %12 = vector.extract_strided_slice %9 {offsets = [0, 1, 0], sizes = [16, 16, 4], strides = [1, 1, 1]} : vector<18x18x4xf32> to vector<16x16x4xf32>
    %13 = vector.shape_cast %12 : vector<16x16x4xf32> to vector<256x4xf32>
    %14 = vector.extract_strided_slice %9 {offsets = [0, 2, 0], sizes = [16, 16, 4], strides = [1, 1, 1]} : vector<18x18x4xf32> to vector<16x16x4xf32>
    %15 = vector.shape_cast %14 : vector<16x16x4xf32> to vector<256x4xf32>
    %16 = vector.extract_strided_slice %9 {offsets = [1, 0, 0], sizes = [16, 16, 4], strides = [1, 1, 1]} : vector<18x18x4xf32> to vector<16x16x4xf32>
    %17 = vector.shape_cast %16 : vector<16x16x4xf32> to vector<256x4xf32>
    %18 = vector.extract_strided_slice %9 {offsets = [1, 1, 0], sizes = [16, 16, 4], strides = [1, 1, 1]} : vector<18x18x4xf32> to vector<16x16x4xf32>
    %19 = vector.shape_cast %18 : vector<16x16x4xf32> to vector<256x4xf32>
    %20 = vector.extract_strided_slice %9 {offsets = [1, 2, 0], sizes = [16, 16, 4], strides = [1, 1, 1]} : vector<18x18x4xf32> to vector<16x16x4xf32>
    %21 = vector.shape_cast %20 : vector<16x16x4xf32> to vector<256x4xf32>
    %22 = vector.extract_strided_slice %9 {offsets = [2, 0, 0], sizes = [16, 16, 4], strides = [1, 1, 1]} : vector<18x18x4xf32> to vector<16x16x4xf32>
    %23 = vector.shape_cast %22 : vector<16x16x4xf32> to vector<256x4xf32>
    %24 = vector.extract_strided_slice %9 {offsets = [2, 1, 0], sizes = [16, 16, 4], strides = [1, 1, 1]} : vector<18x18x4xf32> to vector<16x16x4xf32>
    %25 = vector.shape_cast %24 : vector<16x16x4xf32> to vector<256x4xf32>
    %26 = vector.extract_strided_slice %9 {offsets = [2, 2, 0], sizes = [16, 16, 4], strides = [1, 1, 1]} : vector<18x18x4xf32> to vector<16x16x4xf32>
    %27 = vector.shape_cast %26 : vector<16x16x4xf32> to vector<256x4xf32>
    %28 = tpu.concatenate %11, %13, %15, %17, %19, %21, %23, %25, %27 in 1 : vector<256x4xf32>, vector<256x4xf32>, vector<256x4xf32>, vector<256x4xf32>, vector<256x4xf32>, vector<256x4xf32>, vector<256x4xf32>, vector<256x4xf32>, vector<256x4xf32> -> vector<256x36xf32>
    %c0_19 = arith.constant 0 : index
    %c0_20 = arith.constant 0 : index
    %29 = vector.load %arg3[%c0_19, %c0_20] : memref<36x32xf32, #tpu.memory_space<vmem>>, vector<36x32xf32>
    %cst_21 = arith.constant dense<0.000000e+00> : vector<256x32xf32>
    %30 = tpu.matmul %28, %29, %cst_21 {dimension_numbers = #tpu.dot_dimension_numbers<[1], [0], [0], [1], [0, 0, 1, 1], [], []>} : vector<256x36xf32>, vector<36x32xf32>, vector<256x32xf32> -> vector<256x32xf32>
    %c0_22 = arith.constant 0 : index
    %c0_23 = arith.constant 0 : index
    %31 = vector.load %arg4[%c0_22, %c0_23] : memref<1x32xf32, #tpu.memory_space<vmem>>, vector<1x32xf32>
    %32 = vector.broadcast %31 : vector<1x32xf32> to vector<256x32xf32>
    %33 = arith.addf %30, %32 : vector<256x32xf32>
    %cst_24 = arith.constant 0.000000e+00 : f32
    %34 = vector.broadcast %cst_24 : f32 to vector<256x32xf32>
    %35 = arith.maximumf %33, %34 : vector<256x32xf32>
    %36 = vector.shape_cast %35 : vector<256x32xf32> to vector<16x16x32xf32>
    %c1_25 = arith.constant 1 : index
    %c1_26 = arith.constant 1 : index
    %c0_27 = arith.constant 0 : index
    %37 = vector.load %arg16[%c1_25, %c1_26, %c0_27] : memref<18x18x32xf32, #tpu.memory_space<vmem>>, vector<16x16x32xf32>
    tpu.vector_store %arg16[%c1_25, %c1_26, %c0_27], %36 {strides = array<i32>} : memref<18x18x32xf32, #tpu.memory_space<vmem>>, vector<16x16x32xf32>,
    %c0_28 = arith.constant 0 : index
    %c0_29 = arith.constant 0 : index
    %c0_30 = arith.constant 0 : index
    %38 = vector.load %arg16[%c0_28, %c0_29, %c0_30] : memref<18x18x32xf32, #tpu.memory_space<vmem>>, vector<18x18x32xf32>
    %39 = vector.extract_strided_slice %38 {offsets = [0, 0, 0], sizes = [16, 16, 32], strides = [1, 1, 1]} : vector<18x18x32xf32> to vector<16x16x32xf32>
    %40 = vector.shape_cast %39 : vector<16x16x32xf32> to vector<256x32xf32>
    %41 = vector.extract_strided_slice %38 {offsets = [0, 1, 0], sizes = [16, 16, 32], strides = [1, 1, 1]} : vector<18x18x32xf32> to vector<16x16x32xf32>
    %42 = vector.shape_cast %41 : vector<16x16x32xf32> to vector<256x32xf32>
    %43 = vector.extract_strided_slice %38 {offsets = [0, 2, 0], sizes = [16, 16, 32], strides = [1, 1, 1]} : vector<18x18x32xf32> to vector<16x16x32xf32>
    %44 = vector.shape_cast %43 : vector<16x16x32xf32> to vector<256x32xf32>
    %45 = vector.extract_strided_slice %38 {offsets = [1, 0, 0], sizes = [16, 16, 32], strides = [1, 1, 1]} : vector<18x18x32xf32> to vector<16x16x32xf32>
    %46 = vector.shape_cast %45 : vector<16x16x32xf32> to vector<256x32xf32>
    %47 = vector.extract_strided_slice %38 {offsets = [1, 1, 0], sizes = [16, 16, 32], strides = [1, 1, 1]} : vector<18x18x32xf32> to vector<16x16x32xf32>
    %48 = vector.shape_cast %47 : vector<16x16x32xf32> to vector<256x32xf32>
    %49 = vector.extract_strided_slice %38 {offsets = [1, 2, 0], sizes = [16, 16, 32], strides = [1, 1, 1]} : vector<18x18x32xf32> to vector<16x16x32xf32>
    %50 = vector.shape_cast %49 : vector<16x16x32xf32> to vector<256x32xf32>
    %51 = vector.extract_strided_slice %38 {offsets = [2, 0, 0], sizes = [16, 16, 32], strides = [1, 1, 1]} : vector<18x18x32xf32> to vector<16x16x32xf32>
    %52 = vector.shape_cast %51 : vector<16x16x32xf32> to vector<256x32xf32>
    %53 = vector.extract_strided_slice %38 {offsets = [2, 1, 0], sizes = [16, 16, 32], strides = [1, 1, 1]} : vector<18x18x32xf32> to vector<16x16x32xf32>
    %54 = vector.shape_cast %53 : vector<16x16x32xf32> to vector<256x32xf32>
    %55 = vector.extract_strided_slice %38 {offsets = [2, 2, 0], sizes = [16, 16, 32], strides = [1, 1, 1]} : vector<18x18x32xf32> to vector<16x16x32xf32>
    %56 = vector.shape_cast %55 : vector<16x16x32xf32> to vector<256x32xf32>
    %57 = tpu.concatenate %40, %42, %44, %46, %48, %50, %52, %54, %56 in 1 : vector<256x32xf32>, vector<256x32xf32>, vector<256x32xf32>, vector<256x32xf32>, vector<256x32xf32>, vector<256x32xf32>, vector<256x32xf32>, vector<256x32xf32>, vector<256x32xf32> -> vector<256x288xf32>
    %c0_31 = arith.constant 0 : index
    %c0_32 = arith.constant 0 : index
    %58 = vector.load %arg5[%c0_31, %c0_32] : memref<288x32xf32, #tpu.memory_space<vmem>>, vector<288x32xf32>
    %cst_33 = arith.constant dense<0.000000e+00> : vector<256x32xf32>
    %59 = tpu.matmul %57, %58, %cst_33 {dimension_numbers = #tpu.dot_dimension_numbers<[1], [0], [0], [1], [0, 0, 1, 1], [], []>} : vector<256x288xf32>, vector<288x32xf32>, vector<256x32xf32> -> vector<256x32xf32>
    %c0_34 = arith.constant 0 : index
    %c0_35 = arith.constant 0 : index
    %60 = vector.load %arg6[%c0_34, %c0_35] : memref<1x32xf32, #tpu.memory_space<vmem>>, vector<1x32xf32>
    %61 = vector.broadcast %60 : vector<1x32xf32> to vector<256x32xf32>
    %62 = arith.addf %59, %61 : vector<256x32xf32>
    %63 = vector.shape_cast %62 : vector<256x32xf32> to vector<16x16x32xf32>
    %c0_36 = arith.constant 0 : index
    %c0_37 = arith.constant 0 : index
    %c0_38 = arith.constant 0 : index
    %c0_39 = arith.constant 0 : index
    %64 = vector.load %arg11[%c0_36, %c0_37, %c0_38, %c0_39] : memref<1x16x16x32xf32, #tpu.memory_space<vmem>>, vector<1x16x16x32xf32>
    %65 = vector.shape_cast %64 : vector<1x16x16x32xf32> to vector<16x16x32xf32>
    %66 = vector.shape_cast %63 : vector<16x16x32xf32> to vector<1x16x16x32xf32>
    tpu.vector_store %arg11[%c0_36, %c0_37, %c0_38, %c0_39], %66 {strides = array<i32>} : memref<1x16x16x32xf32, #tpu.memory_space<vmem>>, vector<1x16x16x32xf32>,
    %c0_40 = arith.constant 0 : index
    %c0_41 = arith.constant 0 : index
    %c0_42 = arith.constant 0 : index
    %c0_43 = arith.constant 0 : index
    %67 = vector.load %arg2[%c0_40, %c0_41, %c0_42, %c0_43] : memref<1x16x16x3xf32, #tpu.memory_space<vmem>>, vector<1x16x16x3xf32>
    %68 = vector.shape_cast %67 : vector<1x16x16x3xf32> to vector<16x16x3xf32>
    %c1_44 = arith.constant 1 : index
    %c1_45 = arith.constant 1 : index
    %c0_46 = arith.constant 0 : index
    %69 = vector.load %arg15[%c1_44, %c1_45, %c0_46] : memref<18x18x3xf32, #tpu.memory_space<vmem>>, vector<16x16x3xf32>
    tpu.vector_store %arg15[%c1_44, %c1_45, %c0_46], %68 {strides = array<i32>} : memref<18x18x3xf32, #tpu.memory_space<vmem>>, vector<16x16x3xf32>,
    %c0_47 = arith.constant 0 : index
    %c0_48 = arith.constant 0 : index
    %c0_49 = arith.constant 0 : index
    %70 = vector.load %arg15[%c0_47, %c0_48, %c0_49] : memref<18x18x3xf32, #tpu.memory_space<vmem>>, vector<18x18x3xf32>
    %71 = vector.extract_strided_slice %70 {offsets = [0, 0, 0], sizes = [16, 16, 3], strides = [1, 1, 1]} : vector<18x18x3xf32> to vector<16x16x3xf32>
    %72 = vector.shape_cast %71 : vector<16x16x3xf32> to vector<256x3xf32>
    %73 = vector.extract_strided_slice %70 {offsets = [0, 1, 0], sizes = [16, 16, 3], strides = [1, 1, 1]} : vector<18x18x3xf32> to vector<16x16x3xf32>
    %74 = vector.shape_cast %73 : vector<16x16x3xf32> to vector<256x3xf32>
    %75 = vector.extract_strided_slice %70 {offsets = [0, 2, 0], sizes = [16, 16, 3], strides = [1, 1, 1]} : vector<18x18x3xf32> to vector<16x16x3xf32>
    %76 = vector.shape_cast %75 : vector<16x16x3xf32> to vector<256x3xf32>
    %77 = vector.extract_strided_slice %70 {offsets = [1, 0, 0], sizes = [16, 16, 3], strides = [1, 1, 1]} : vector<18x18x3xf32> to vector<16x16x3xf32>
    %78 = vector.shape_cast %77 : vector<16x16x3xf32> to vector<256x3xf32>
    %79 = vector.extract_strided_slice %70 {offsets = [1, 1, 0], sizes = [16, 16, 3], strides = [1, 1, 1]} : vector<18x18x3xf32> to vector<16x16x3xf32>
    %80 = vector.shape_cast %79 : vector<16x16x3xf32> to vector<256x3xf32>
    %81 = vector.extract_strided_slice %70 {offsets = [1, 2, 0], sizes = [16, 16, 3], strides = [1, 1, 1]} : vector<18x18x3xf32> to vector<16x16x3xf32>
    %82 = vector.shape_cast %81 : vector<16x16x3xf32> to vector<256x3xf32>
    %83 = vector.extract_strided_slice %70 {offsets = [2, 0, 0], sizes = [16, 16, 3], strides = [1, 1, 1]} : vector<18x18x3xf32> to vector<16x16x3xf32>
    %84 = vector.shape_cast %83 : vector<16x16x3xf32> to vector<256x3xf32>
    %85 = vector.extract_strided_slice %70 {offsets = [2, 1, 0], sizes = [16, 16, 3], strides = [1, 1, 1]} : vector<18x18x3xf32> to vector<16x16x3xf32>
    %86 = vector.shape_cast %85 : vector<16x16x3xf32> to vector<256x3xf32>
    %87 = vector.extract_strided_slice %70 {offsets = [2, 2, 0], sizes = [16, 16, 3], strides = [1, 1, 1]} : vector<18x18x3xf32> to vector<16x16x3xf32>
    %88 = vector.shape_cast %87 : vector<16x16x3xf32> to vector<256x3xf32>
    %89 = tpu.concatenate %72, %74, %76, %78, %80, %82, %84, %86, %88 in 1 : vector<256x3xf32>, vector<256x3xf32>, vector<256x3xf32>, vector<256x3xf32>, vector<256x3xf32>, vector<256x3xf32>, vector<256x3xf32>, vector<256x3xf32>, vector<256x3xf32> -> vector<256x27xf32>
    %c0_50 = arith.constant 0 : index
    %c0_51 = arith.constant 0 : index
    %90 = vector.load %arg7[%c0_50, %c0_51] : memref<27x32xf32, #tpu.memory_space<vmem>>, vector<27x32xf32>
    %cst_52 = arith.constant dense<0.000000e+00> : vector<256x32xf32>
    %91 = tpu.matmul %89, %90, %cst_52 {dimension_numbers = #tpu.dot_dimension_numbers<[1], [0], [0], [1], [0, 0, 1, 1], [], []>} : vector<256x27xf32>, vector<27x32xf32>, vector<256x32xf32> -> vector<256x32xf32>
    %c0_53 = arith.constant 0 : index
    %c0_54 = arith.constant 0 : index
    %92 = vector.load %arg8[%c0_53, %c0_54] : memref<1x32xf32, #tpu.memory_space<vmem>>, vector<1x32xf32>
    %93 = vector.broadcast %92 : vector<1x32xf32> to vector<256x32xf32>
    %94 = arith.addf %91, %93 : vector<256x32xf32>
    %cst_55 = arith.constant 0.000000e+00 : f32
    %95 = vector.broadcast %cst_55 : f32 to vector<256x32xf32>
    %96 = arith.maximumf %94, %95 : vector<256x32xf32>
    %97 = vector.shape_cast %96 : vector<256x32xf32> to vector<16x16x32xf32>
    %c1_56 = arith.constant 1 : index
    %c1_57 = arith.constant 1 : index
    %c0_58 = arith.constant 0 : index
    %98 = vector.load %arg16[%c1_56, %c1_57, %c0_58] : memref<18x18x32xf32, #tpu.memory_space<vmem>>, vector<16x16x32xf32>
    tpu.vector_store %arg16[%c1_56, %c1_57, %c0_58], %97 {strides = array<i32>} : memref<18x18x32xf32, #tpu.memory_space<vmem>>, vector<16x16x32xf32>,
    %c0_59 = arith.constant 0 : index
    %c0_60 = arith.constant 0 : index
    %c0_61 = arith.constant 0 : index
    %99 = vector.load %arg16[%c0_59, %c0_60, %c0_61] : memref<18x18x32xf32, #tpu.memory_space<vmem>>, vector<18x18x32xf32>
    %100 = vector.extract_strided_slice %99 {offsets = [0, 0, 0], sizes = [16, 16, 32], strides = [1, 1, 1]} : vector<18x18x32xf32> to vector<16x16x32xf32>
    %101 = vector.shape_cast %100 : vector<16x16x32xf32> to vector<256x32xf32>
    %102 = vector.extract_strided_slice %99 {offsets = [0, 1, 0], sizes = [16, 16, 32], strides = [1, 1, 1]} : vector<18x18x32xf32> to vector<16x16x32xf32>
    %103 = vector.shape_cast %102 : vector<16x16x32xf32> to vector<256x32xf32>
    %104 = vector.extract_strided_slice %99 {offsets = [0, 2, 0], sizes = [16, 16, 32], strides = [1, 1, 1]} : vector<18x18x32xf32> to vector<16x16x32xf32>
    %105 = vector.shape_cast %104 : vector<16x16x32xf32> to vector<256x32xf32>
    %106 = vector.extract_strided_slice %99 {offsets = [1, 0, 0], sizes = [16, 16, 32], strides = [1, 1, 1]} : vector<18x18x32xf32> to vector<16x16x32xf32>
    %107 = vector.shape_cast %106 : vector<16x16x32xf32> to vector<256x32xf32>
    %108 = vector.extract_strided_slice %99 {offsets = [1, 1, 0], sizes = [16, 16, 32], strides = [1, 1, 1]} : vector<18x18x32xf32> to vector<16x16x32xf32>
    %109 = vector.shape_cast %108 : vector<16x16x32xf32> to vector<256x32xf32>
    %110 = vector.extract_strided_slice %99 {offsets = [1, 2, 0], sizes = [16, 16, 32], strides = [1, 1, 1]} : vector<18x18x32xf32> to vector<16x16x32xf32>
    %111 = vector.shape_cast %110 : vector<16x16x32xf32> to vector<256x32xf32>
    %112 = vector.extract_strided_slice %99 {offsets = [2, 0, 0], sizes = [16, 16, 32], strides = [1, 1, 1]} : vector<18x18x32xf32> to vector<16x16x32xf32>
    %113 = vector.shape_cast %112 : vector<16x16x32xf32> to vector<256x32xf32>
    %114 = vector.extract_strided_slice %99 {offsets = [2, 1, 0], sizes = [16, 16, 32], strides = [1, 1, 1]} : vector<18x18x32xf32> to vector<16x16x32xf32>
    %115 = vector.shape_cast %114 : vector<16x16x32xf32> to vector<256x32xf32>
    %116 = vector.extract_strided_slice %99 {offsets = [2, 2, 0], sizes = [16, 16, 32], strides = [1, 1, 1]} : vector<18x18x32xf32> to vector<16x16x32xf32>
    %117 = vector.shape_cast %116 : vector<16x16x32xf32> to vector<256x32xf32>
    %118 = tpu.concatenate %101, %103, %105, %107, %109, %111, %113, %115, %117 in 1 : vector<256x32xf32>, vector<256x32xf32>, vector<256x32xf32>, vector<256x32xf32>, vector<256x32xf32>, vector<256x32xf32>, vector<256x32xf32>, vector<256x32xf32>, vector<256x32xf32> -> vector<256x288xf32>
    %c0_62 = arith.constant 0 : index
    %c0_63 = arith.constant 0 : index
    %119 = vector.load %arg9[%c0_62, %c0_63] : memref<288x32xf32, #tpu.memory_space<vmem>>, vector<288x32xf32>
    %cst_64 = arith.constant dense<0.000000e+00> : vector<256x32xf32>
    %120 = tpu.matmul %118, %119, %cst_64 {dimension_numbers = #tpu.dot_dimension_numbers<[1], [0], [0], [1], [0, 0, 1, 1], [], []>} : vector<256x288xf32>, vector<288x32xf32>, vector<256x32xf32> -> vector<256x32xf32>
    %c0_65 = arith.constant 0 : index
    %c0_66 = arith.constant 0 : index
    %121 = vector.load %arg10[%c0_65, %c0_66] : memref<1x32xf32, #tpu.memory_space<vmem>>, vector<1x32xf32>
    %122 = vector.broadcast %121 : vector<1x32xf32> to vector<256x32xf32>
    %123 = arith.addf %120, %122 : vector<256x32xf32>
    %124 = vector.shape_cast %123 : vector<256x32xf32> to vector<16x16x32xf32>
    %c0_67 = arith.constant 0 : index
    %c0_68 = arith.constant 0 : index
    %c0_69 = arith.constant 0 : index
    %c0_70 = arith.constant 0 : index
    %125 = vector.load %arg12[%c0_67, %c0_68, %c0_69, %c0_70] : memref<1x16x16x32xf32, #tpu.memory_space<vmem>>, vector<1x16x16x32xf32>
    %126 = vector.shape_cast %125 : vector<1x16x16x32xf32> to vector<16x16x32xf32>
    %127 = vector.shape_cast %124 : vector<16x16x32xf32> to vector<1x16x16x32xf32>
    tpu.vector_store %arg12[%c0_67, %c0_68, %c0_69, %c0_70], %127 {strides = array<i32>} : memref<1x16x16x32xf32, #tpu.memory_space<vmem>>, vector<1x16x16x32xf32>,
    %128 = arith.addf %62, %123 : vector<256x32xf32>
    %129 = vector.shape_cast %128 : vector<256x32xf32> to vector<16x16x32xf32>
    %c0_71 = arith.constant 0 : index
    %c0_72 = arith.constant 0 : index
    %c0_73 = arith.constant 0 : index
    %c0_74 = arith.constant 0 : index
    %130 = vector.load %arg13[%c0_71, %c0_72, %c0_73, %c0_74] : memref<1x16x16x32xf32, #tpu.memory_space<vmem>>, vector<1x16x16x32xf32>
    %131 = vector.shape_cast %130 : vector<1x16x16x32xf32> to vector<16x16x32xf32>
    %132 = vector.shape_cast %129 : vector<16x16x32xf32> to vector<1x16x16x32xf32>
    tpu.vector_store %arg13[%c0_71, %c0_72, %c0_73, %c0_74], %132 {strides = array<i32>} : memref<1x16x16x32xf32, #tpu.memory_space<vmem>>, vector<1x16x16x32xf32>,
    return
  }
  func.func @transform_0(%arg0: i32) -> (i32, i32, i32, i32) {
    %c0_i32 = arith.constant 0 : i32
    %c0_i32_0 = arith.constant 0 : i32
    %c0_i32_1 = arith.constant 0 : i32
    %c0_i32_2 = arith.constant 0 : i32
    return %arg0, %c0_i32, %c0_i32_0, %c0_i32_1 : i32, i32, i32, i32
  }
  func.func @transform_1(%arg0: i32) -> (i32, i32, i32, i32) {
    %c0_i32 = arith.constant 0 : i32
    %c0_i32_0 = arith.constant 0 : i32
    %c0_i32_1 = arith.constant 0 : i32
    %c0_i32_2 = arith.constant 0 : i32
    return %arg0, %c0_i32, %c0_i32_0, %c0_i32_1 : i32, i32, i32, i32
  }
  func.func @transform_2(%arg0: i32) -> (i32, i32) {
    %c0_i32 = arith.constant 0 : i32
    %c0_i32_0 = arith.constant 0 : i32
    %c0_i32_1 = arith.constant 0 : i32
    return %c0_i32, %c0_i32_0 : i32, i32
  }
  func.func @transform_3(%arg0: i32) -> (i32, i32) {
    %c0_i32 = arith.constant 0 : i32
    %c0_i32_0 = arith.constant 0 : i32
    %c0_i32_1 = arith.constant 0 : i32
    return %c0_i32, %c0_i32_0 : i32, i32
  }
  func.func @transform_4(%arg0: i32) -> (i32, i32) {
    %c0_i32 = arith.constant 0 : i32
    %c0_i32_0 = arith.constant 0 : i32
    %c0_i32_1 = arith.constant 0 : i32
    return %c0_i32, %c0_i32_0 : i32, i32
  }
  func.func @transform_5(%arg0: i32) -> (i32, i32) {
    %c0_i32 = arith.constant 0 : i32
    %c0_i32_0 = arith.constant 0 : i32
    %c0_i32_1 = arith.constant 0 : i32
    return %c0_i32, %c0_i32_0 : i32, i32
  }
  func.func @transform_6(%arg0: i32) -> (i32, i32) {
    %c0_i32 = arith.constant 0 : i32
    %c0_i32_0 = arith.constant 0 : i32
    %c0_i32_1 = arith.constant 0 : i32
    return %c0_i32, %c0_i32_0 : i32, i32
  }
  func.func @transform_7(%arg0: i32) -> (i32, i32) {
    %c0_i32 = arith.constant 0 : i32
    %c0_i32_0 = arith.constant 0 : i32
    %c0_i32_1 = arith.constant 0 : i32
    return %c0_i32, %c0_i32_0 : i32, i32
  }
  func.func @transform_8(%arg0: i32) -> (i32, i32) {
    %c0_i32 = arith.constant 0 : i32
    %c0_i32_0 = arith.constant 0 : i32
    %c0_i32_1 = arith.constant 0 : i32
    return %c0_i32, %c0_i32_0 : i32, i32
  }
  func.func @transform_9(%arg0: i32) -> (i32, i32) {
    %c0_i32 = arith.constant 0 : i32
    %c0_i32_0 = arith.constant 0 : i32
    %c0_i32_1 = arith.constant 0 : i32
    return %c0_i32, %c0_i32_0 : i32, i32
  }
  func.func @transform_10(%arg0: i32) -> (i32, i32, i32, i32) {
    %c0_i32 = arith.constant 0 : i32
    %c0_i32_0 = arith.constant 0 : i32
    %c0_i32_1 = arith.constant 0 : i32
    %c0_i32_2 = arith.constant 0 : i32
    return %arg0, %c0_i32, %c0_i32_0, %c0_i32_1 : i32, i32, i32, i32
  }
  func.func @transform_11(%arg0: i32) -> (i32, i32, i32, i32) {
    %c0_i32 = arith.constant 0 : i32
    %c0_i32_0 = arith.constant 0 : i32
    %c0_i32_1 = arith.constant 0 : i32
    %c0_i32_2 = arith.constant 0 : i32
    return %arg0, %c0_i32, %c0_i32_0, %c0_i32_1 : i32, i32, i32, i32
  }
  func.func @transform_12(%arg0: i32) -> (i32, i32, i32, i32) {
    %c0_i32 = arith.constant 0 : i32
    %c0_i32_0 = arith.constant 0 : i32
    %c0_i32_1 = arith.constant 0 : i32
    %c0_i32_2 = arith.constant 0 : i32
    return %arg0, %c0_i32, %c0_i32_0, %c0_i32_1 : i32, i32, i32, i32
  }
}

</mosaic_0001>

<bundles_post_ra>
// kernel: ml_block_forward.1
= control target key start
LH: loop header
LB: loop body
LE: loop exit
PB: predicated region body
PF: predicated region fallthrough
CT: control target
= control target key end

     0   :  { %s17332_s0 = inlined_call_operand.vmem [shape: f32[2,16,16,4], index: 0, kind: input, shape index: {}]   ;;  %s17333_s1 = inlined_call_operand.vmem [shape: f32[2,16,16,3], index: 1, kind: input, shape index: {}]   ;;  %s17334_s2 = inlined_call_operand.vmem [shape: f32[36,32], index: 2, kind: input, shape index: {}]   ;;  %s17335_s3 = inlined_call_operand.vmem [shape: f32[1,32], index: 3, kind: input, shape index: {}]   ;;  %s17336_s4 = inlined_call_operand.vmem [shape: f32[288,32], index: 4, kind: input, shape index: {}]   ;;  %s17337_s5 = inlined_call_operand.vmem [shape: f32[1,32], index: 5, kind: input, shape index: {}]   ;;  %s17338_s6 = inlined_call_operand.vmem [shape: f32[27,32], index: 6, kind: input, shape index: {}]   ;;  %s17339_s7 = inlined_call_operand.vmem [shape: f32[1,32], index: 7, kind: input, shape index: {}]   ;;  %s17340_s8 = inlined_call_operand.vmem [shape: f32[288,32], index: 8, kind: input, shape index: {}]   ;;  %s17341_s9 = inlined_call_operand.vmem [shape: f32[1,32], index: 9, kind: input, shape index: {}]   ;;  %s17342_s10 = inlined_call_operand.hbm [shape: f32[2,16,16,32], index: 10, kind: output, shape index: {0}]   ;;  %s17343_s11 = inlined_call_operand.hbm [shape: f32[2,16,16,32], index: 11, kind: output, shape index: {1}]   ;;  %s17344_s12 = inlined_call_operand.hbm [shape: f32[2,16,16,32], index: 12, kind: output, shape index: {2}]  }
   0x1   :  { %17728 = sst [smem:[#allocation193_spill]] %s17332_s0 }
   0x2   :  { %17729 = sst [smem:[#allocation194_spill]] %s17333_s1 }
   0x3   :  { %17730 = sst [smem:[#allocation195_spill]] %s17334_s2 }
   0x4   :  { %17731 = sst [smem:[#allocation196_spill]] %s17335_s3 }
   0x5   :  { %17732 = sst [smem:[#allocation197_spill]] %s17336_s4 }
   0x6   :  { %18 = vsyncpa [#allocation6], 0 }
   0x7   :  { %20 = vsyncpa [#allocation6 + $0x1], 0 }
   0x8   :  { %21 = vsyncpa [#allocation8], 0 }
   0x9   :  { %23 = vsyncpa [#allocation8 + $0x1], 0  ;;  %s9892_s21 = smov 0   ;;  %s9894_s22 = smov 0  }
   0xa   :  { %s9896_s23 = smov 0   ;;  %s9898_s24 = smov 0  }
   0xb LB: > { %s9913_s25 = sadd.s32 4294967295, %s9802_s24   ;;  %s17429_s26 = sadd.s32 4294967294, %s9802_s24   ;;  %s9802_s24 = sphi %s9898_s24, %s18823_s24   ;;  %s9798_s23 = sphi %s9896_s23, %s18822_s23   ;;  %s9794_s22 = sphi %s9894_s22, %s18821_s22   ;;  %s9790_s21 = sphi %s9892_s21, %s18820_s21  }
   0xc   : > { %s9917_s27 = sadd.s32 1, %s9802_s24   ;;  %s256_s28 = sadd.s32 1, %s9798_s23 }
   0xd   : > { %s253_s29 = ssub.s32 %s9802_s24, %s9917_s27  ;;  %p266_p0 = scmp.ne.s32.totalorder %s9798_s23, %s9794_s22 }
   0xe   : > { %p254_p1 = scmp.eq.s32.totalorder %s253_s29, 0  ;;  %p267_p2 = scmp.eq.s32.totalorder %s9913_s25, 1 }
   0xf   : > { %p272_p3 = scmp.ne.s32.totalorder %s9794_s22, %s9790_s21  ;;  %p273_p4 = scmp.eq.s32.totalorder %s17429_s26, 1 }
  0x10   : > { %s9930_s30 = scalar_select %p254_p1, %s9798_s23, %s256_s28  }
  0x11   : > { %p9932_p5 = por %p267_p2, %p266_p0  ;;  %p9936_p6 = por %p273_p4, %p272_p3 }
  0x12   : > { %p7803_p7 = scmp.ge.s32.totalorder %s9802_s24, 1  ;;  %p383_p8 = scmp.lt.s32.totalorder %s9802_s24, 3 }
  0x14   : > { %p384_p9 = pnand %p7803_p7, %p383_p8 }
  0x16   : > { %387 = sbr.rel (%p384_p9) target bundleno = 2338 (0x922), region = 60 }
  0x1d   : > { %vm450_vm0 = vcmask 31744   ;;  %vm453_vm1 = vcmask 25600   ;;  %p440_p10 = scmp.lt.s32.totalorder %s9913_s25, 1  ;;  %v17345_v0 = vmov 0.0   ;;  %s17735_s0 = sld [smem:[#allocation193_spill]]  ;;  %vm785_vm2 = vcmask 1046528  }
  0x1e   : > { %451 = vst.msk [vmem:[#allocation2] sm:$0xff] %vm450_vm0, %v17345_v0  ;;  %452 = vst.msk [vmem:[#allocation2 + $0x8] sm:$0xff] %vm450_vm0, %v17345_v0  ;;  %s9805_s20 = smov 4   ;;  %vm866_vm3 = vcmask 1045504   ;;  %s17430_s28 = smov 8   ;;  %vm562_vm4 = vcmask 261120  }
  0x1f   : > { %455 = vst.msk [vmem:[#allocation2 + $0x18] sm:$0xff] %vm450_vm0, %v17345_v0  ;;  %456 = vst.msk [vmem:[#allocation2 + $0x20] sm:$0xff] %vm450_vm0, %v17345_v0  ;;  %s10054_s15 = scalar_select %p440_p10, %s9913_s25, 1  ;;  %vm2112_vm5 = vcmask 1043456   ;;  %vm565_vm6 = vcmask 254976   ;;  %vm1773_vm7 = vcmask 64512  }
  0x20   : > { %458 = vst.msk [vmem:[#allocation2 + $0x30] sm:$0xff] %vm450_vm0, %v17345_v0  ;;  %459 = vst.msk [vmem:[#allocation2 + $0x38] sm:$0xff] %vm450_vm0, %v17345_v0  ;;  %s9807_s29 = smov 12   ;;  %s9808_s17 = smov 16   ;;  %vm1806_vm8 = vcmask 97280   ;;  %vm1839_vm9 = vcmask 130048  }
  0x21   : > { %461 = vst.msk [vmem:[#allocation2 + $0x48] sm:$0xff] %vm450_vm0, %v17345_v0  ;;  %462 = vst.msk [vmem:[#allocation2 + $0x50] sm:$0xff] %vm450_vm0, %v17345_v0  ;;  %s7956_s16 = sshll.u32 %s10054_s15, 8  ;;  %s9809_s18 = smov 20   ;;  %vm1872_vm10 = vcmask 162816   ;;  %vm1905_vm11 = vcmask 195584  }
  0x22   : > { %464 = vst.msk [vmem:[#allocation2 + $0x60] sm:$0xff] %vm450_vm0, %v17345_v0  ;;  %465 = vst.msk [vmem:[#allocation2 + $0x68] sm:$0xff] %vm450_vm0, %v17345_v0  ;;  %s17968_s2 = sld [smem:[#allocation195_spill]]  ;;  %vm1938_vm12 = vcmask 228352   ;;  %vm2015_vm13 = vcmask 293888   ;;  %s18199_s3 = sld [smem:[#allocation196_spill]] }
  0x23   : > { %467 = vst.msk [vmem:[#allocation2 + $0x78] sm:$0xff] %vm450_vm0, %v17345_v0  ;;  %468 = vst.msk [vmem:[#allocation2 + $0x80] sm:$0xff] %vm450_vm0, %v17345_v0  ;;  %s10062_s19 = scalar_lea.vmem %s17735_s0, %s7956_s16  ;;  %s17691_s26 = smov 64   ;;  %vm506_vm14 = vcmask 23552   ;;  %vm509_vm15 = vcmask 17408  }
  0x24   : > { %470 = vst.msk [vmem:[#allocation2 + $0x90] sm:$0xff] %vm450_vm0, %v17345_v0  ;;  %471 = vst.msk [vmem:[#allocation2 + $0x98] sm:$0xff] %vm450_vm0, %v17345_v0  ;;  %v618_v1 = vld [vmem:[%s10062_s19] sm:$0xff]  ;;  %v619_v2 = vld [vmem:[%s10062_s19 + $0x8] sm:$0xff]  ;;  %s18269_s1 = sld [smem:[#allocation194_spill]]  ;;  %s18271_s4 = sld [smem:[#allocation197_spill]] }
  0x25   : > { %473 = vst.msk [vmem:[#allocation2 + $0xa8] sm:$0xff] %vm450_vm0, %v17345_v0  ;;  %474 = vst.msk [vmem:[#allocation2 + $0xb0] sm:$0xff] %vm450_vm0, %v17345_v0  ;;  %v620_v3 = vld [vmem:[%s10062_s19 + $0x10] sm:$0xff]  ;;  %v621_v4 = vld [vmem:[%s10062_s19 + $0x18] sm:$0xff]  ;;  %s9816_s15 = smov 3  }
  0x26   : > { %476 = vst.msk [vmem:[#allocation2 + $0xc0] sm:$0xff] %vm450_vm0, %v17345_v0  ;;  %477 = vst.msk [vmem:[#allocation2 + $0xc8] sm:$0xff] %vm450_vm0, %v17345_v0  ;;  %v622_v5 = vld [vmem:[%s10062_s19 + $0x20] sm:$0xff]  ;;  %v623_v6 = vld [vmem:[%s10062_s19 + $0x28] sm:$0xff] }
  0x27   : > { %479 = vst.msk [vmem:[#allocation2 + $0xd8] sm:$0xff] %vm450_vm0, %v17345_v0  ;;  %480 = vst.msk [vmem:[#allocation2 + $0xe0] sm:$0xff] %vm450_vm0, %v17345_v0  ;;  %v10073_v7 = vld [vmem:[#allocation2] sm:$0xff]  ;;  %v10075_v8 = vld [vmem:[#allocation2 + $0x8] sm:$0xff] }
  0x28   : > { %482 = vst.msk [vmem:[#allocation2 + $0xf0] sm:$0xff] %vm450_vm0, %v17345_v0  ;;  %483 = vst.msk [vmem:[#allocation2 + $0xf8] sm:$0xff] %vm450_vm0, %v17345_v0  ;;  %v786_v10 = vrot.slane %v10073_v7, 1  ;;  %v787_v11 = vrot.slane %v10075_v8, 1  ;;  %v624_v13 = vld [vmem:[%s10062_s19 + $0x30] sm:$0xff]  ;;  %v625_v14 = vld [vmem:[%s10062_s19 + $0x38] sm:$0xff] }
  0x29   : > { %485 = vst.msk [vmem:[#allocation2 + $0x108] sm:$0xff] %vm450_vm0, %v17345_v0  ;;  %486 = vst.msk [vmem:[#allocation2 + $0x110] sm:$0xff] %vm450_vm0, %v17345_v0  ;;  %v626_v15 = vld [vmem:[%s10062_s19 + $0x40] sm:$0xff]  ;;  %v627_v16 = vld [vmem:[%s10062_s19 + $0x48] sm:$0xff] }
  0x2a   : > { %488 = vst.msk [vmem:[#allocation2 + $0x120] sm:$0xff] %vm450_vm0, %v17345_v0  ;;  %489 = vst.msk [vmem:[#allocation2 + $0x128] sm:$0xff] %vm450_vm0, %v17345_v0  ;;  %v628_v17 = vld [vmem:[%s10062_s19 + $0x50] sm:$0xff]  ;;  %v629_v18 = vld [vmem:[%s10062_s19 + $0x58] sm:$0xff]  ;;  %v788_v19 = vsel %vm785_vm2, %v786_v10, %v787_v11 }
  0x2b   : > { %491 = vst.msk [vmem:[#allocation2 + $0x138] sm:$0xff] %vm450_vm0, %v17345_v0  ;;  %492 = vst.msk [vmem:[#allocation2 + $0x140] sm:$0xff] %vm450_vm0, %v17345_v0  ;;  %v630_v20 = vld [vmem:[%s10062_s19 + $0x60] sm:$0xff]  ;;  %v631_v21 = vld [vmem:[%s10062_s19 + $0x68] sm:$0xff]  ;;  %973 = vrot.lane.b32.xlu0 %v788_v19, %s9805_s20 }
  0x2c   : > { %494 = vst.msk [vmem:[#allocation2 + $0x150] sm:$0xff] %vm450_vm0, %v17345_v0  ;;  %495 = vst.msk [vmem:[#allocation2 + $0x158] sm:$0xff] %vm450_vm0, %v17345_v0  ;;  %v632_v22 = vld [vmem:[%s10062_s19 + $0x70] sm:$0xff]  ;;  %v633_v23 = vld [vmem:[%s10062_s19 + $0x78] sm:$0xff] }
  0x2d   : > { %497 = vst.msk [vmem:[#allocation2 + $0x168] sm:$0xff] %vm450_vm0, %v17345_v0  ;;  %498 = vst.msk [vmem:[#allocation2 + $0x170] sm:$0xff] %vm450_vm0, %v17345_v0  ;;  %v634_v24 = vld [vmem:[%s10062_s19 + $0x80] sm:$0xff]  ;;  %v635_v25 = vld [vmem:[%s10062_s19 + $0x88] sm:$0xff] }
  0x2e   : > { %500 = vst.msk [vmem:[#allocation2 + $0x180] sm:$0xff] %vm450_vm0, %v17345_v0  ;;  %501 = vst.msk [vmem:[#allocation2 + $0x188] sm:$0xff] %vm450_vm0, %v17345_v0  ;;  %v636_v27 = vld [vmem:[%s10062_s19 + $0x90] sm:$0xff]  ;;  %v637_v28 = vld [vmem:[%s10062_s19 + $0x98] sm:$0xff] }
  0x2f   : > { %503 = vst.msk [vmem:[#allocation2 + $0x198] sm:$0xff] %vm450_vm0, %v17345_v0  ;;  %504 = vst.msk [vmem:[#allocation2 + $0x1a0] sm:$0xff] %vm450_vm0, %v17345_v0  ;;  %v638_v29 = vld [vmem:[%s10062_s19 + $0xa0] sm:$0xff]  ;;  %v639_v60 = vld [vmem:[%s10062_s19 + $0xa8] sm:$0xff] }
  0x30   : > { %454 = vst.msk [vmem:[#allocation2 + $0x10] sm:$0x3] %vm453_vm1, %v17345_v0  ;;  %457 = vst.msk [vmem:[#allocation2 + $0x28] sm:$0x3] %vm453_vm1, %v17345_v0 }
  0x31   : > { %460 = vst.msk [vmem:[#allocation2 + $0x40] sm:$0x3] %vm453_vm1, %v17345_v0  ;;  %463 = vst.msk [vmem:[#allocation2 + $0x58] sm:$0x3] %vm453_vm1, %v17345_v0 }
  0x32   : > { %466 = vst.msk [vmem:[#allocation2 + $0x70] sm:$0x3] %vm453_vm1, %v17345_v0  ;;  %469 = vst.msk [vmem:[#allocation2 + $0x88] sm:$0x3] %vm453_vm1, %v17345_v0 }
  0x33   : > { %472 = vst.msk [vmem:[#allocation2 + $0xa0] sm:$0x3] %vm453_vm1, %v17345_v0  ;;  %475 = vst.msk [vmem:[#allocation2 + $0xb8] sm:$0x3] %vm453_vm1, %v17345_v0 }
  0x34   : > { %478 = vst.msk [vmem:[#allocation2 + $0xd0] sm:$0x3] %vm453_vm1, %v17345_v0  ;;  %481 = vst.msk [vmem:[#allocation2 + $0xe8] sm:$0x3] %vm453_vm1, %v17345_v0 }
  0x35   : > { %484 = vst.msk [vmem:[#allocation2 + $0x100] sm:$0x3] %vm453_vm1, %v17345_v0  ;;  %487 = vst.msk [vmem:[#allocation2 + $0x118] sm:$0x3] %vm453_vm1, %v17345_v0 }
  0x36   : > { %490 = vst.msk [vmem:[#allocation2 + $0x130] sm:$0x3] %vm453_vm1, %v17345_v0  ;;  %493 = vst.msk [vmem:[#allocation2 + $0x148] sm:$0x3] %vm453_vm1, %v17345_v0 }
  0x37   : > { %496 = vst.msk [vmem:[#allocation2 + $0x160] sm:$0x3] %vm453_vm1, %v17345_v0  ;;  %499 = vst.msk [vmem:[#allocation2 + $0x178] sm:$0x3] %vm453_vm1, %v17345_v0  ;;  %v10077_v9 = vld [vmem:[#allocation2 + $0x10] sm:$0x3] }
  0x38   : > { %502 = vst.msk [vmem:[#allocation2 + $0x190] sm:$0x3] %vm453_vm1, %v17345_v0  ;;  %505 = vst.msk [vmem:[#allocation2 + $0x1a8] sm:$0x3] %vm453_vm1, %v17345_v0  ;;  %v789_v12 = vrot.slane %v10077_v9, 1  ;;  %vm3367_vm1 = vcmask 785408  }
  0x39   : > { %651 = vst.msk [vmem:[#allocation2 + $0x19] sm:$0xff] %vm450_vm0, %v618_v1  ;;  %652 = vst.msk [vmem:[#allocation2 + $0x21] sm:$0xff] %vm450_vm0, %v619_v2 }
  0x3a   : > { %653 = vst.msk [vmem:[#allocation2 + $0x31] sm:$0xff] %vm450_vm0, %v620_v3  ;;  %654 = vst.msk [vmem:[#allocation2 + $0x39] sm:$0xff] %vm450_vm0, %v621_v4  ;;  %v790_v26 = vsel %vm785_vm2, %v787_v11, %v789_v12  ;;  %v640_v3 = vld [vmem:[%s10062_s19 + $0xb0] sm:$0xff]  ;;  %v641_v4 = vld [vmem:[%s10062_s19 + $0xb8] sm:$0xff] }
  0x3b   : > { %655 = vst.msk [vmem:[#allocation2 + $0x49] sm:$0xff] %vm450_vm0, %v622_v5  ;;  %656 = vst.msk [vmem:[#allocation2 + $0x51] sm:$0xff] %vm450_vm0, %v623_v6  ;;  %975 = vrot.lane.b32.xlu0 %v790_v26, %s9805_s20  ;;  %v642_v5 = vld [vmem:[%s10062_s19 + $0xc0] sm:$0xff]  ;;  %v643_v11 = vld [vmem:[%s10062_s19 + $0xc8] sm:$0xff] }
  0x3c   : > { %657 = vst.msk [vmem:[#allocation2 + $0x61] sm:$0xff] %vm450_vm0, %v624_v13  ;;  %658 = vst.msk [vmem:[#allocation2 + $0x69] sm:$0xff] %vm450_vm0, %v625_v14  ;;  %v644_v12 = vld [vmem:[%s10062_s19 + $0xd0] sm:$0xff]  ;;  %v645_v13 = vld [vmem:[%s10062_s19 + $0xd8] sm:$0xff] }
  0x3d   : > { %659 = vst.msk [vmem:[#allocation2 + $0x79] sm:$0xff] %vm450_vm0, %v626_v15  ;;  %660 = vst.msk [vmem:[#allocation2 + $0x81] sm:$0xff] %vm450_vm0, %v627_v16  ;;  %v646_v15 = vld [vmem:[%s10062_s19 + $0xe0] sm:$0xff]  ;;  %v647_v16 = vld [vmem:[%s10062_s19 + $0xe8] sm:$0xff] }
  0x3e   : > { %661 = vst.msk [vmem:[#allocation2 + $0x91] sm:$0xff] %vm450_vm0, %v628_v17  ;;  %662 = vst.msk [vmem:[#allocation2 + $0x99] sm:$0xff] %vm450_vm0, %v629_v18 }
  0x3f   : > { %663 = vst.msk [vmem:[#allocation2 + $0xa9] sm:$0xff] %vm450_vm0, %v630_v20  ;;  %664 = vst.msk [vmem:[#allocation2 + $0xb1] sm:$0xff] %vm450_vm0, %v631_v21 }
  0x40   : > { %665 = vst.msk [vmem:[#allocation2 + $0xc1] sm:$0xff] %vm450_vm0, %v632_v22  ;;  %666 = vst.msk [vmem:[#allocation2 + $0xc9] sm:$0xff] %vm450_vm0, %v633_v23  ;;  %v10115_v30 = vld [vmem:[#allocation2 + $0x18] sm:$0xff]  ;;  %v10117_v31 = vld [vmem:[#allocation2 + $0x20] sm:$0xff] }
  0x41   : > { %667 = vst.msk [vmem:[#allocation2 + $0xd9] sm:$0xff] %vm450_vm0, %v634_v24  ;;  %668 = vst.msk [vmem:[#allocation2 + $0xe1] sm:$0xff] %vm450_vm0, %v635_v25  ;;  %v10119_v32 = vld [vmem:[#allocation2 + $0x30] sm:$0xff]  ;;  %v791_v33 = vrot.slane %v10115_v30, 1  ;;  %v792_v34 = vrot.slane %v10117_v31, 1  ;;  %v10126_v35 = vld [vmem:[#allocation2 + $0x38] sm:$0xff] }
  0x42   : > { %669 = vst.msk [vmem:[#allocation2 + $0xf1] sm:$0xff] %vm450_vm0, %v636_v27  ;;  %670 = vst.msk [vmem:[#allocation2 + $0xf9] sm:$0xff] %vm450_vm0, %v637_v28  ;;  %v796_v36 = vrot.slane %v10119_v32, 1  ;;  %v10129_v37 = vld [vmem:[#allocation2 + $0x28] sm:$0x3]  ;;  %v797_v38 = vrot.slane %v10126_v35, 1 }
  0x43   : > { %671 = vst.msk [vmem:[#allocation2 + $0x109] sm:$0xff] %vm450_vm0, %v638_v29  ;;  %v794_v39 = vrot.slane %v10129_v37, 1  ;;  %v10134_v40 = vld [vmem:[#allocation2 + $0x48] sm:$0xff]  ;;  %v10136_v41 = vld [vmem:[#allocation2 + $0x50] sm:$0xff]  ;;  %v10138_v42 = vld [vmem:[#allocation2 + $0x40] sm:$0x3]  ;;  %v10141_v43 = vsel %vm785_vm2, %v791_v33, %v792_v34 }
  0x44   : > { %v801_v44 = vrot.slane %v10134_v40, 1  ;;  %v802_v45 = vrot.slane %v10136_v41, 1  ;;  %977 = vrot.lane.b32.xlu1 %v10141_v43, %s9805_s20  ;;  %v10148_v46 = vsel %vm785_vm2, %v796_v36, %v797_v38  ;;  %v10150_v47 = vld [vmem:[#allocation2 + $0x60] sm:$0xff]  ;;  %v10152_v48 = vld [vmem:[#allocation2 + $0x68] sm:$0xff]  ;;  %v799_v50 = vrot.slane %v10138_v42, 1  ;;  %v10169_v55 = vld [vmem:[#allocation2 + $0x78] sm:$0xff] }
  0x45   : > { %v10155_v49 = vsel %vm785_vm2, %v792_v34, %v794_v39  ;;  %981 = vrot.lane.b32.xlu0 %v10148_v46, %s9805_s20  ;;  %v10160_v51 = vld [vmem:[#allocation2 + $0x58] sm:$0x3]  ;;  %v806_v53 = vrot.slane %v10150_v47, 1  ;;  %v807_v54 = vrot.slane %v10152_v48, 1  ;;  %v10171_v56 = vld [vmem:[#allocation2 + $0x80] sm:$0xff]  ;;  %v811_v62 = vrot.slane %v10169_v55, 1 }
  0x46   : > { %v10163_v52 = vsel %vm785_vm2, %v801_v44, %v802_v45  ;;  %v10174_v57 = vsel %vm785_vm2, %v797_v38, %v799_v50  ;;  %v804_v58 = vrot.slane %v10160_v51, 1  ;;  %v10179_v59 = vld [vmem:[#allocation2 + $0x70] sm:$0x3]  ;;  %v812_v63 = vrot.slane %v10171_v56, 1  ;;  %v10189_v2 = vld [vmem:[#allocation2 + $0x98] sm:$0xff]  ;;  %672 = vst.msk [vmem:[#allocation2 + $0x111] sm:$0xff] %vm450_vm0, %v639_v60 }
  0x47   : > { %17736 = vst [vmem:[#allocation12_spill] sm:$0xff] %v10163_v52  ;;  %17737 = vst [vmem:[#allocation13_spill] sm:$0xff] %v10174_v57  ;;  %v10183_v61 = vsel %vm785_vm2, %v806_v53, %v807_v54  ;;  %v10187_v1 = vld [vmem:[#allocation2 + $0x90] sm:$0xff]  ;;  %v809_v10 = vrot.slane %v10179_v59, 1  ;;  %v10209_v14 = vld [vmem:[#allocation2 + $0x88] sm:$0x3] }
  0x48   : > { %979 = vrot.lane.b32.xlu1 %v10155_v49, %s9805_s20  ;;  %17738 = vst [vmem:[#allocation14_spill] sm:$0xff] %v10183_v61  ;;  %v10198_v6 = vsel %vm785_vm2, %v802_v45, %v804_v58  ;;  %673 = vst.msk [vmem:[#allocation2 + $0x121] sm:$0xff] %vm450_vm0, %v640_v3  ;;  %v10217_v17 = vsel %vm785_vm2, %v811_v62, %v812_v63  ;;  %v816_v18 = vrot.slane %v10187_v1, 1  ;;  %v817_v19 = vrot.slane %v10189_v2, 1  ;;  %v10225_v20 = vld [vmem:[#allocation2 + $0xa8] sm:$0xff]  ;;  %v10227_v21 = vld [vmem:[#allocation2 + $0xb0] sm:$0xff] }
  0x49   : > { %985 = vrot.lane.b32.xlu0 %v10163_v52, %s9805_s20  ;;  %17739 = vst [vmem:[#allocation15_spill] sm:$0xff] %v10198_v6  ;;  %674 = vst.msk [vmem:[#allocation2 + $0x129] sm:$0xff] %vm450_vm0, %v641_v4  ;;  %v10230_v22 = vsel %vm785_vm2, %v807_v54, %v809_v10  ;;  %v814_v23 = vrot.slane %v10209_v14, 1  ;;  %v10235_v24 = vld [vmem:[#allocation2 + $0xa0] sm:$0x3]  ;;  %v821_v26 = vrot.slane %v10225_v20, 1 }
  0x4a   : > { %675 = vst.msk [vmem:[#allocation2 + $0x139] sm:$0xff] %vm450_vm0, %v642_v5  ;;  %676 = vst.msk [vmem:[#allocation2 + $0x141] sm:$0xff] %vm450_vm0, %v643_v11  ;;  %v10238_v25 = vsel %vm785_vm2, %v816_v18, %v817_v19  ;;  %v822_v27 = vrot.slane %v10227_v21, 1  ;;  %v10244_v28 = vld [vmem:[#allocation2 + $0xc0] sm:$0xff]  ;;  %v10246_v29 = vld [vmem:[#allocation2 + $0xc8] sm:$0xff]  ;;  %v819_v34 = vrot.slane %v10235_v24, 1 }
  0x4b   : > { %677 = vst.msk [vmem:[#allocation2 + $0x151] sm:$0xff] %vm450_vm0, %v644_v12  ;;  %678 = vst.msk [vmem:[#allocation2 + $0x159] sm:$0xff] %vm450_vm0, %v645_v13  ;;  %v10249_v33 = vsel %vm785_vm2, %v812_v63, %v814_v23  ;;  %v10254_v36 = vld [vmem:[#allocation2 + $0xb8] sm:$0x3]  ;;  %v826_v39 = vrot.slane %v10244_v28, 1  ;;  %v827_v44 = vrot.slane %v10246_v29, 1 }
  0x4c   : > { %983 = vrot.lane.b32.xlu1 %v10174_v57, %s9805_s20  ;;  %17740 = vst [vmem:[#allocation16_spill] sm:$0xff] %v10217_v17  ;;  %679 = vst.msk [vmem:[#allocation2 + $0x169] sm:$0xff] %vm450_vm0, %v646_v15  ;;  %v10257_v38 = vsel %vm785_vm2, %v821_v26, %v822_v27  ;;  %v10263_v45 = vld [vmem:[#allocation2 + $0xd8] sm:$0xff]  ;;  %v10265_v50 = vld [vmem:[#allocation2 + $0xe0] sm:$0xff]  ;;  %v10268_v53 = vsel %vm785_vm2, %v817_v19, %v819_v34  ;;  %v824_v54 = vrot.slane %v10254_v36, 1  ;;  %v868_v57 = vrot.slane %v10075_v8, 2 }
  0x4d   : > { %989 = vrot.lane.b32.xlu0 %v10183_v61, %s9805_s20  ;;  %680 = vst.msk [vmem:[#allocation2 + $0x171] sm:$0xff] %vm450_vm0, %v647_v16  ;;  %17741 = vst [vmem:[#allocation17_spill] sm:$0xff] %v10230_v22  ;;  %v10273_v58 = vld [vmem:[#allocation2 + $0xd0] sm:$0x3]  ;;  %v10276_v60 = vsel %vm785_vm2, %v826_v39, %v827_v44  ;;  %v831_v62 = vrot.slane %v10263_v45, 1  ;;  %v832_v63 = vrot.slane %v10265_v50, 1 }
  0x4e   : > { %17742 = vst [vmem:[#allocation18_spill] sm:$0xff] %v10238_v25  ;;  %17743 = vst [vmem:[#allocation19_spill] sm:$0xff] %v10249_v33  ;;  %v10282_v3 = vld [vmem:[#allocation2 + $0xf0] sm:$0xff]  ;;  %v10284_v4 = vld [vmem:[#allocation2 + $0xf8] sm:$0xff]  ;;  %v10287_v5 = vsel %vm785_vm2, %v822_v27, %v824_v54  ;;  %v829_v10 = vrot.slane %v10273_v58, 1  ;;  %v873_v8 = vrot.slane %v10117_v31, 2 }
  0x4f   : > { %17744 = vst [vmem:[#allocation20_spill] sm:$0xff] %v10257_v38  ;;  %17745 = vst [vmem:[#allocation21_spill] sm:$0xff] %v10268_v53  ;;  %v10292_v11 = vld [vmem:[#allocation2 + $0xe8] sm:$0x3]  ;;  %v10295_v12 = vsel %vm785_vm2, %v831_v62, %v832_v63  ;;  %v836_v13 = vrot.slane %v10282_v3, 1  ;;  %v837_v15 = vrot.slane %v10284_v4, 1 }
  0x50   : > { %987 = vrot.lane.b32.xlu1 %v10198_v6, %s9805_s20  ;;  %17746 = vst [vmem:[#allocation22_spill] sm:$0xff] %v10276_v60  ;;  %17747 = vst [vmem:[#allocation23_spill] sm:$0xff] %v10287_v5  ;;  %v10301_v16 = vld [vmem:[#allocation2 + $0x108] sm:$0xff]  ;;  %v10303_v18 = vld [vmem:[#allocation2 + $0x110] sm:$0xff]  ;;  %v10306_v19 = vsel %vm785_vm2, %v827_v44, %v829_v10  ;;  %v834_v23 = vrot.slane %v10292_v11, 1 }
  0x51   : > { %993 = vrot.lane.b32.xlu0 %v10217_v17, %s9805_s20  ;;  %17748 = vst [vmem:[#allocation24_spill] sm:$0xff] %v10295_v12  ;;  %17749 = vst [vmem:[#allocation25_spill] sm:$0xff] %v10306_v19  ;;  %v10311_v26 = vld [vmem:[#allocation2 + $0x100] sm:$0x3]  ;;  %v10314_v27 = vsel %vm785_vm2, %v836_v13, %v837_v15  ;;  %v841_v34 = vrot.slane %v10301_v16, 1  ;;  %v842_v39 = vrot.slane %v10303_v18, 1 }
  0x52   : > { %17750 = vst [vmem:[#allocation26_spill] sm:$0xff] %v10314_v27  ;;  %v10320_v54 = vld [vmem:[#allocation2 + $0x120] sm:$0xff]  ;;  %v10322_v44 = vld [vmem:[#allocation2 + $0x128] sm:$0xff]  ;;  %v10325_v62 = vsel %vm785_vm2, %v832_v63, %v834_v23  ;;  %v839_v10 = vrot.slane %v10311_v26, 1  ;;  %v10330_v13 = vld [vmem:[#allocation2 + $0x118] sm:$0x3] }
  0x53   : > { %17751 = vst [vmem:[#allocation27_spill] sm:$0xff] %v10325_v62  ;;  %v10333_v0 = vsel %vm785_vm2, %v841_v34, %v842_v39  ;;  %v10341_v63 = vld [vmem:[#allocation2 + $0x140] sm:$0xff]  ;;  %v10349_v34 = vld [vmem:[#allocation2 + $0x130] sm:$0x3]  ;;  %v649_v52 = vld [vmem:[%s10062_s19 + $0xf8] sm:$0xff] }
  0x54   : > { %991 = vrot.lane.b32.xlu1 %v10230_v22, %s9805_s20  ;;  %17752 = vst [vmem:[#allocation28_spill] sm:$0xff] %v10333_v0  ;;  %v10344_v23 = vsel %vm785_vm2, %v837_v15, %v839_v10  ;;  %v10358_v15 = vld [vmem:[#allocation2 + $0x150] sm:$0xff]  ;;  %v10360_v10 = vld [vmem:[#allocation2 + $0x158] sm:$0xff]  ;;  %v10377_v22 = vld [vmem:[#allocation2 + $0x168] sm:$0xff] }
  0x55   : > { %997 = vrot.lane.b32.xlu0 %v10238_v25, %s9805_s20  ;;  %17753 = vst [vmem:[#allocation29_spill] sm:$0xff] %v10344_v23  ;;  %v856_v25 = vrot.slane %v10358_v15, 1  ;;  %v648_v17 = vld [vmem:[%s10062_s19 + $0xf0] sm:$0xff]  ;;  %v861_v6 = vrot.slane %v10377_v22, 1  ;;  %682 = vst.msk [vmem:[#allocation2 + $0x189] sm:$0xff] %vm450_vm0, %v649_v52  ;;  %v870_v52 = vrot.slane %v10077_v9, 2 }
  0x56   : > { %681 = vst.msk [vmem:[#allocation2 + $0x181] sm:$0xff] %vm450_vm0, %v648_v17  ;;  %s17432_s19 = smov 24  }
  0x58   : > { %995 = vrot.lane.b32.xlu1 %v10249_v33, %s9805_s20 }
  0x59   : > { %1001 = vrot.lane.b32.xlu0 %v10257_v38, %s9805_s20 }
  0x5c   : > { %999 = vrot.lane.b32.xlu1 %v10268_v53, %s9805_s20 }
  0x5d   : > { %1005 = vrot.lane.b32.xlu0 %v10276_v60, %s9805_s20 }
  0x60   : > { %1003 = vrot.lane.b32.xlu1 %v10287_v5, %s9805_s20  ;;  %v10339_v5 = vld [vmem:[#allocation2 + $0x138] sm:$0xff] }
  0x61   : > { %1009 = vrot.lane.b32.xlu0 %v10295_v12, %s9805_s20  ;;  %v846_v12 = vrot.slane %v10320_v54, 1  ;;  %v851_v53 = vrot.slane %v10339_v5, 1 }
  0x64   : > { %1007 = vrot.lane.b32.xlu1 %v10306_v19, %s9805_s20  ;;  %v847_v19 = vrot.slane %v10322_v44, 1 }
  0x65   : > { %1013 = vrot.lane.b32.xlu0 %v10314_v27, %s9805_s20  ;;  %v844_v27 = vrot.slane %v10330_v13, 1 }
  0x66   : > { %v10352_v60 = vsel %vm785_vm2, %v846_v12, %v847_v19  ;;  %v10368_v12 = vld [vmem:[#allocation2 + $0x148] sm:$0x3] }
  0x67   : > { %17754 = vst [vmem:[#allocation30_spill] sm:$0xff] %v10352_v60  ;;  %v10363_v38 = vsel %vm785_vm2, %v842_v39, %v844_v27  ;;  %v10379_v27 = vld [vmem:[#allocation2 + $0x170] sm:$0xff] }
  0x68   : > { %1011 = vrot.lane.b32.xlu1 %v10325_v62, %s9805_s20  ;;  %v852_v62 = vrot.slane %v10341_v63, 1  ;;  %17755 = vst [vmem:[#allocation31_spill] sm:$0xff] %v10363_v38  ;;  %v862_v61 = vrot.slane %v10379_v27, 1 }
  0x69   : > { %1017 = vrot.lane.b32.xlu0 %v10333_v0, %s9805_s20  ;;  %v849_v0 = vrot.slane %v10349_v34, 1 }
  0x6a   : > { %v10371_v33 = vsel %vm785_vm2, %v851_v53, %v852_v62  ;;  %v10388_v53 = vld [vmem:[#allocation2 + $0x160] sm:$0x3]  ;;  %v10407_v17 = vsel %vm785_vm2, %v861_v6, %v862_v61 }
  0x6b   : > { %17756 = vst [vmem:[#allocation32_spill] sm:$0xff] %v10371_v33  ;;  %v10382_v39 = vsel %vm785_vm2, %v847_v19, %v849_v0  ;;  %v859_v19 = vrot.slane %v10388_v53, 1  ;;  %17760 = vst [vmem:[#allocation36_spill] sm:$0xff] %v10407_v17 }
  0x6c   : > { %1015 = vrot.lane.b32.xlu1 %v10344_v23, %s9805_s20  ;;  %v857_v23 = vrot.slane %v10360_v10, 1  ;;  %17757 = vst [vmem:[#allocation33_spill] sm:$0xff] %v10382_v39 }
  0x6d   : > { %1021 = vrot.lane.b32.xlu0 %v10352_v60, %s9805_s20  ;;  %v854_v60 = vrot.slane %v10368_v12, 1 }
  0x6f   : > { %v10399_v0 = vsel %vm785_vm2, %v852_v62, %v854_v60  ;;  %v10416_v60 = vsel %vm785_vm2, %v857_v23, %v859_v19  ;;  %v877_v19 = vrot.slane %v10119_v32, 2 }
  0x70   : > { %1019 = vrot.lane.b32.xlu1 %v10363_v38, %s9805_s20  ;;  %v10392_v38 = vsel %vm785_vm2, %v856_v25, %v857_v23  ;;  %17759 = vst [vmem:[#allocation35_spill] sm:$0xff] %v10399_v0  ;;  %v867_v25 = vrot.slane %v10073_v7, 2  ;;  %17761 = vst [vmem:[#allocation37_spill] sm:$0xff] %v10416_v60  ;;  %v872_v7 = vrot.slane %v10115_v30, 2 }
  0x71   : > { %1025 = vrot.lane.b32.xlu0 %v10371_v33, %s9805_s20  ;;  %17758 = vst [vmem:[#allocation34_spill] sm:$0xff] %v10392_v38  ;;  %v10404_v33 = vld [vmem:[#allocation2 + $0x178] sm:$0x3] }
  0x72   : > { %v864_v62 = vrot.slane %v10404_v33, 1  ;;  %v869_v6 = vsel %vm866_vm3, %v867_v25, %v868_v57  ;;  %v10432_v23 = vsel %vm866_vm3, %v872_v7, %v873_v8  ;;  %v878_v25 = vrot.slane %v10126_v35, 2 }
  0x74   : > { %1023 = vrot.lane.b32.xlu1 %v10382_v39, %s9805_s20  ;;  %v10443_v9 = vsel %vm866_vm3, %v877_v19, %v878_v25  ;;  %v892_v19 = vrot.slane %v10169_v55, 2 }
  0x75   : > { %1029 = vrot.lane.b32.xlu0 %v10392_v38, %s9805_s20 }
  0x78   : > { %1027 = vrot.lane.b32.xlu1 %v10399_v0, %s9805_s20  ;;  %v10427_v0 = vsel %vm785_vm2, %v862_v61, %v864_v62  ;;  %v875_v61 = vrot.slane %v10129_v37, 2  ;;  %v882_v62 = vrot.slane %v10134_v40, 2 }
  0x79   : > { %1033 = vrot.lane.b32.xlu0 %v10407_v17, %s9805_s20  ;;  %17762 = vst [vmem:[#allocation38_spill] sm:$0xff] %v10427_v0 }
  0x7a   : > { %v10449_v7 = vsel %vm866_vm3, %v873_v8, %v875_v61  ;;  %v885_v8 = vrot.slane %v10160_v51, 2  ;;  %v893_v61 = vrot.slane %v10171_v56, 2 }
  0x7c   : > { %1031 = vrot.lane.b32.xlu1 %v10416_v60, %s9805_s20  ;;  %v871_v60 = vsel %vm866_vm3, %v868_v57, %v870_v52  ;;  %v887_v57 = vrot.slane %v10150_v47, 2  ;;  %v888_v52 = vrot.slane %v10152_v48, 2  ;;  %v10481_v51 = vsel %vm866_vm3, %v892_v19, %v893_v61 }
  0x7d   : > { %1069 = vrot.lane.b32.xlu0 %v869_v6, %s17430_s28  ;;  %v883_v6 = vrot.slane %v10136_v41, 2  ;;  %17765 = vst [vmem:[#allocation41_spill] sm:$0xff] %v10481_v51  ;;  %v903_v19 = vrot.slane %v10227_v21, 2 }
  0x7f   : > { %v10455_v37 = vsel %vm866_vm3, %v882_v62, %v883_v6  ;;  %v10475_v62 = vsel %vm866_vm3, %v883_v6, %v885_v8  ;;  %v895_v6 = vrot.slane %v10209_v14, 2  ;;  %v902_v8 = vrot.slane %v10225_v20, 2 }
  0x80   : > { %1035 = vrot.lane.b32.xlu1 %v10427_v0, %s9805_s20  ;;  %v880_v0 = vrot.slane %v10138_v42, 2  ;;  %v10468_v42 = vsel %vm866_vm3, %v887_v57, %v888_v52  ;;  %17764 = vst [vmem:[#allocation40_spill] sm:$0xff] %v10475_v62  ;;  %v898_v57 = vrot.slane %v10189_v2, 2  ;;  %s9811_s20 = smov 28  }
  0x81   : > { %1073 = vrot.lane.b32.xlu0 %v10432_v23, %s17430_s28  ;;  %v10507_v14 = vsel %vm866_vm3, %v902_v8, %v903_v19  ;;  %v913_v8 = vrot.slane %v10265_v50, 2 }
  0x82   : > { %17769 = vst [vmem:[#allocation45_spill] sm:$0xff] %v10507_v14 }
  0x84   : > { %1071 = vrot.lane.b32.xlu1 %v871_v60, %s17430_s28  ;;  %v10462_v60 = vsel %vm866_vm3, %v878_v25, %v880_v0  ;;  %v890_v0 = vrot.slane %v10179_v59, 2  ;;  %v897_v25 = vrot.slane %v10187_v1, 2 }
  0x85   : > { %1077 = vrot.lane.b32.xlu0 %v10443_v9, %s17430_s28  ;;  %17763 = vst [vmem:[#allocation39_spill] sm:$0xff] %v10462_v60 }
  0x86   : > { %v10494_v59 = vsel %vm866_vm3, %v897_v25, %v898_v57  ;;  %v908_v25 = vrot.slane %v10246_v29, 2 }
  0x87   : > { %17767 = vst [vmem:[#allocation43_spill] sm:$0xff] %v10494_v59 }
  0x88   : > { %1075 = vrot.lane.b32.xlu1 %v10449_v7, %s17430_s28 }
  0x89   : > { %1081 = vrot.lane.b32.xlu0 %v10455_v37, %s17430_s28 }
  0x8c   : > { %1079 = vrot.lane.b32.xlu1 %v10462_v60, %s17430_s28  ;;  %v10488_v60 = vsel %vm866_vm3, %v888_v52, %v890_v0  ;;  %v900_v52 = vrot.slane %v10235_v24, 2  ;;  %v907_v0 = vrot.slane %v10244_v28, 2 }
  0x8d   : > { %1085 = vrot.lane.b32.xlu0 %v10468_v42, %s17430_s28  ;;  %17766 = vst [vmem:[#allocation42_spill] sm:$0xff] %v10488_v60 }
  0x8e   : > { %v10520_v24 = vsel %vm866_vm3, %v907_v0, %v908_v25  ;;  %v918_v0 = vrot.slane %v10284_v4, 2 }
  0x8f   : > { %17771 = vst [vmem:[#allocation47_spill] sm:$0xff] %v10520_v24 }
  0x90   : > { %1083 = vrot.lane.b32.xlu1 %v10475_v62, %s17430_s28  ;;  %v10501_v62 = vsel %vm866_vm3, %v893_v61, %v895_v6  ;;  %v905_v61 = vrot.slane %v10254_v36, 2  ;;  %v912_v6 = vrot.slane %v10263_v45, 2 }
  0x91   : > { %1089 = vrot.lane.b32.xlu0 %v10481_v51, %s17430_s28  ;;  %17768 = vst [vmem:[#allocation44_spill] sm:$0xff] %v10501_v62 }
  0x92   : > { %v10533_v36 = vsel %vm866_vm3, %v912_v6, %v913_v8  ;;  %v923_v6 = vrot.slane %v10303_v18, 2 }
  0x93   : > { %17773 = vst [vmem:[#allocation49_spill] sm:$0xff] %v10533_v36 }
  0x94   : > { %1087 = vrot.lane.b32.xlu1 %v10488_v60, %s17430_s28  ;;  %v10514_v60 = vsel %vm866_vm3, %v898_v57, %v900_v52  ;;  %v910_v57 = vrot.slane %v10273_v58, 2  ;;  %v917_v52 = vrot.slane %v10282_v3, 2 }
  0x95   : > { %1093 = vrot.lane.b32.xlu0 %v10494_v59, %s17430_s28  ;;  %17770 = vst [vmem:[#allocation46_spill] sm:$0xff] %v10514_v60 }
  0x96   : > { %v10546_v58 = vsel %vm866_vm3, %v917_v52, %v918_v0  ;;  %v928_v52 = vrot.slane %v10322_v44, 2 }
  0x97   : > { %17775 = vst [vmem:[#allocation51_spill] sm:$0xff] %v10546_v58 }
  0x98   : > { %1091 = vrot.lane.b32.xlu1 %v10501_v62, %s17430_s28  ;;  %v10527_v62 = vsel %vm866_vm3, %v903_v19, %v905_v61  ;;  %v915_v19 = vrot.slane %v10292_v11, 2  ;;  %v922_v61 = vrot.slane %v10301_v16, 2 }
  0x99   : > { %1097 = vrot.lane.b32.xlu0 %v10507_v14, %s17430_s28  ;;  %17772 = vst [vmem:[#allocation48_spill] sm:$0xff] %v10527_v62 }
  0x9a   : > { %v10559_v11 = vsel %vm866_vm3, %v922_v61, %v923_v6  ;;  %v933_v61 = vrot.slane %v10341_v63, 2 }
  0x9b   : > { %17777 = vst [vmem:[#allocation53_spill] sm:$0xff] %v10559_v11 }
  0x9c   : > { %1095 = vrot.lane.b32.xlu1 %v10514_v60, %s17430_s28  ;;  %v10540_v60 = vsel %vm866_vm3, %v908_v25, %v910_v57  ;;  %v920_v25 = vrot.slane %v10311_v26, 2  ;;  %v927_v57 = vrot.slane %v10320_v54, 2 }
  0x9d   : > { %1101 = vrot.lane.b32.xlu0 %v10520_v24, %s17430_s28  ;;  %17774 = vst [vmem:[#allocation50_spill] sm:$0xff] %v10540_v60 }
  0x9e   : > { %v10572_v26 = vsel %vm866_vm3, %v927_v57, %v928_v52  ;;  %v938_v57 = vrot.slane %v10360_v10, 2 }
  0x9f   : > { %17779 = vst [vmem:[#allocation55_spill] sm:$0xff] %v10572_v26 }
  0xa0   : > { %1099 = vrot.lane.b32.xlu1 %v10527_v62, %s17430_s28  ;;  %v10553_v62 = vsel %vm866_vm3, %v913_v8, %v915_v19  ;;  %v925_v8 = vrot.slane %v10330_v13, 2  ;;  %v932_v19 = vrot.slane %v10339_v5, 2 }
  0xa1   : > { %1105 = vrot.lane.b32.xlu0 %v10533_v36, %s17430_s28  ;;  %17776 = vst [vmem:[#allocation52_spill] sm:$0xff] %v10553_v62 }
  0xa2   : > { %v10585_v13 = vsel %vm866_vm3, %v932_v19, %v933_v61  ;;  %v942_v19 = vrot.slane %v10377_v22, 2 }
  0xa4   : > { %1103 = vrot.lane.b32.xlu1 %v10540_v60, %s17430_s28  ;;  %v10566_v60 = vsel %vm866_vm3, %v918_v0, %v920_v25  ;;  %v930_v0 = vrot.slane %v10349_v34, 2  ;;  %v937_v25 = vrot.slane %v10358_v15, 2  ;;  %v935_v34 = vrot.slane %v10368_v12, 2 }
  0xa5   : > { %1109 = vrot.lane.b32.xlu0 %v10546_v58, %s17430_s28  ;;  %17778 = vst [vmem:[#allocation54_spill] sm:$0xff] %v10566_v60  ;;  %v940_v12 = vrot.slane %v10388_v53, 2 }
  0xa8   : > { %1107 = vrot.lane.b32.xlu1 %v10553_v62, %s17430_s28  ;;  %v10579_v62 = vsel %vm866_vm3, %v923_v6, %v925_v8  ;;  %v10594_v6 = vsel %vm866_vm3, %v928_v52, %v930_v0  ;;  %v10600_v8 = vsel %vm866_vm3, %v937_v25, %v938_v57  ;;  %v10609_v52 = vsel %vm866_vm3, %v933_v61, %v935_v34 }
  0xa9   : > { %1113 = vrot.lane.b32.xlu0 %v10559_v11, %s17430_s28  ;;  %17780 = vst [vmem:[#allocation56_spill] sm:$0xff] %v10579_v62  ;;  %v10589_v11 = vpop.permute.xlu0 %973  ;;  %17782 = vst [vmem:[#allocation58_spill] sm:$0xff] %v10600_v8  ;;  %v945_v61 = vrot.slane %v10404_v33, 2 }
  0xaa   : > { %17781 = vst [vmem:[#allocation57_spill] sm:$0xff] %v10589_v11  ;;  %17784 = vst [vmem:[#allocation60_spill] sm:$0xff] %v10609_v52 }
  0xac   : > { %1111 = vrot.lane.b32.xlu1 %v10566_v60, %s17430_s28 }
  0xad   : > { %1117 = vrot.lane.b32.xlu0 %v10572_v26, %s17430_s28  ;;  %v943_v26 = vrot.slane %v10379_v27, 2  ;;  %v10604_v60 = vpop.permute.xlu0 %975 }
  0xae   : > { %17783 = vst [vmem:[#allocation59_spill] sm:$0xff] %v10604_v60  ;;  %v10624_v60 = vsel %vm866_vm3, %v938_v57, %v940_v12 }
  0xaf   : > { %v10617_v25 = vsel %vm866_vm3, %v942_v19, %v943_v26  ;;  %v10636_v19 = vsel %vm866_vm3, %v943_v26, %v945_v61 }
  0xb0   : > { %1115 = vrot.lane.b32.xlu1 %v10579_v62, %s17430_s28 }
  0xb1   : > { %1121 = vrot.lane.b32.xlu0 %v10585_v13, %s17430_s28 }
  0xb4   : > { %1119 = vrot.lane.b32.xlu1 %v10594_v6, %s17430_s28 }
  0xb5   : > { %1125 = vrot.lane.b32.xlu0 %v10600_v8, %s17430_s28 }
  0xb6   : > { %v10614_v0 = vpop.permute.xlu1 %977 }
  0xb7   : > { %17785 = vst [vmem:[#allocation61_spill] sm:$0xff] %v10614_v0  ;;  %v10619_v11 = vpop.permute.xlu0 %981 }
  0xb8   : > { %17786 = vst [vmem:[#allocation62_spill] sm:$0xff] %v10619_v11  ;;  %1123 = vrot.lane.b32.xlu1 %v10609_v52, %s17430_s28 }
  0xb9   : > { %1129 = vrot.lane.b32.xlu0 %v10617_v25, %s17430_s28 }
  0xba   : > { %v10629_v53 = vpop.permute.xlu1 %979 }
  0xbb   : > { %17787 = vst [vmem:[#allocation63_spill] sm:$0xff] %v10629_v53  ;;  %v10631_v34 = vpop.permute.xlu0 %985  ;;  %v17825_v53 = vld [vmem:[#allocation12_spill] sm:$0xff] }
  0xbc   : > { %17788 = vst [vmem:[#allocation64_spill] sm:$0xff] %v10631_v34  ;;  %1127 = vrot.lane.b32.xlu1 %v10624_v60, %s17430_s28 }
  0xbd   : > { %1165 = vrot.lane.b32.xlu0 %v10115_v30, %s9807_s29 }
  0xbe   : > { %v10640_v57 = vpop.permute.xlu1 %983 }
  0xbf   : > { %17789 = vst [vmem:[#allocation65_spill] sm:$0xff] %v10640_v57  ;;  %v10642_v33 = vpop.permute.xlu0 %989  ;;  %v10768_v57 = vld [vmem:[#allocation2 + $0x188] sm:$0xff] }
  0xc0   : > { %17790 = vst [vmem:[#allocation66_spill] sm:$0xff] %v10642_v33  ;;  %1131 = vrot.lane.b32.xlu1 %v10636_v19, %s17430_s28  ;;  %s17689_s28 = smov 96  }
  0xc1   : > { %1169 = vrot.lane.b32.xlu0 %v10119_v32, %s9807_s29 }
  0xc2   : > { %v10648_v12 = vpop.permute.xlu1 %987 }
  0xc3   : > { %17791 = vst [vmem:[#allocation67_spill] sm:$0xff] %v10648_v12  ;;  %v10650_v34 = vpop.permute.xlu0 %993 }
  0xc4   : > { %17792 = vst [vmem:[#allocation68_spill] sm:$0xff] %v10650_v34  ;;  %1167 = vrot.lane.b32.xlu1 %v10117_v31, %s9807_s29 }
  0xc5   : > { %1173 = vrot.lane.b32.xlu0 %v10134_v40, %s9807_s29 }
  0xc6   : > { %v10656_v30 = vpop.permute.xlu1 %991 }
  0xc7   : > { %17793 = vst [vmem:[#allocation69_spill] sm:$0xff] %v10656_v30  ;;  %v10658_v26 = vpop.permute.xlu0 %997 }
  0xc8   : > { %17794 = vst [vmem:[#allocation70_spill] sm:$0xff] %v10658_v26  ;;  %1171 = vrot.lane.b32.xlu1 %v10126_v35, %s9807_s29 }
  0xc9   : > { %1177 = vrot.lane.b32.xlu0 %v10150_v47, %s9807_s29 }
  0xca   : > { %v10664_v61 = vpop.permute.xlu1 %995 }
  0xcb   : > { %17795 = vst [vmem:[#allocation71_spill] sm:$0xff] %v10664_v61  ;;  %v10666_v33 = vpop.permute.xlu0 %1001 }
  0xcc   : > { %17796 = vst [vmem:[#allocation72_spill] sm:$0xff] %v10666_v33  ;;  %1175 = vrot.lane.b32.xlu1 %v10136_v41, %s9807_s29 }
  0xcd   : > { %1181 = vrot.lane.b32.xlu0 %v10169_v55, %s9807_s29 }
  0xce   : > { %v10672_v31 = vpop.permute.xlu1 %999 }
  0xcf   : > { %17797 = vst [vmem:[#allocation73_spill] sm:$0xff] %v10672_v31  ;;  %v10674_v34 = vpop.permute.xlu0 %1005 }
  0xd0   : > { %17798 = vst [vmem:[#allocation74_spill] sm:$0xff] %v10674_v34  ;;  %1179 = vrot.lane.b32.xlu1 %v10152_v48, %s9807_s29 }
  0xd1   : > { %1185 = vrot.lane.b32.xlu0 %v10187_v1, %s9807_s29 }
  0xd2   : > { %v10680_v26 = vpop.permute.xlu1 %1003 }
  0xd3   : > { %17799 = vst [vmem:[#allocation75_spill] sm:$0xff] %v10680_v26  ;;  %v10682_v61 = vpop.permute.xlu0 %1009 }
  0xd4   : > { %17800 = vst [vmem:[#allocation76_spill] sm:$0xff] %v10682_v61  ;;  %1183 = vrot.lane.b32.xlu1 %v10171_v56, %s9807_s29 }
  0xd5   : > { %1189 = vrot.lane.b32.xlu0 %v10225_v20, %s9807_s29 }
  0xd6   : > { %v10688_v33 = vpop.permute.xlu1 %1007 }
  0xd7   : > { %17801 = vst [vmem:[#allocation77_spill] sm:$0xff] %v10688_v33  ;;  %v10690_v31 = vpop.permute.xlu0 %1013 }
  0xd8   : > { %17802 = vst [vmem:[#allocation78_spill] sm:$0xff] %v10690_v31  ;;  %1187 = vrot.lane.b32.xlu1 %v10189_v2, %s9807_s29 }
  0xd9   : > { %1193 = vrot.lane.b32.xlu0 %v10244_v28, %s9807_s29 }
  0xda   : > { %v10696_v34 = vpop.permute.xlu1 %1011 }
  0xdb   : > { %17803 = vst [vmem:[#allocation79_spill] sm:$0xff] %v10696_v34  ;;  %v10698_v26 = vpop.permute.xlu0 %1017 }
  0xdc   : > { %17804 = vst [vmem:[#allocation80_spill] sm:$0xff] %v10698_v26  ;;  %1191 = vrot.lane.b32.xlu1 %v10227_v21, %s9807_s29 }
  0xdd   : > { %1197 = vrot.lane.b32.xlu0 %v10263_v45, %s9807_s29 }
  0xde   : > { %v10704_v61 = vpop.permute.xlu1 %1015 }
  0xdf   : > { %17805 = vst [vmem:[#allocation81_spill] sm:$0xff] %v10704_v61  ;;  %v10706_v33 = vpop.permute.xlu0 %1021 }
  0xe0   : > { %17806 = vst [vmem:[#allocation82_spill] sm:$0xff] %v10706_v33  ;;  %1195 = vrot.lane.b32.xlu1 %v10246_v29, %s9807_s29 }
  0xe1   : > { %1201 = vrot.lane.b32.xlu0 %v10282_v3, %s9807_s29 }
  0xe2   : > { %v10712_v31 = vpop.permute.xlu1 %1019 }
  0xe3   : > { %17807 = vst [vmem:[#allocation83_spill] sm:$0xff] %v10712_v31  ;;  %v10714_v34 = vpop.permute.xlu0 %1025 }
  0xe4   : > { %17808 = vst [vmem:[#allocation84_spill] sm:$0xff] %v10714_v34  ;;  %1199 = vrot.lane.b32.xlu1 %v10265_v50, %s9807_s29 }
  0xe5   : > { %1205 = vrot.lane.b32.xlu0 %v10301_v16, %s9807_s29 }
  0xe6   : > { %v10720_v26 = vpop.permute.xlu1 %1023 }
  0xe7   : > { %17809 = vst [vmem:[#allocation85_spill] sm:$0xff] %v10720_v26  ;;  %v10722_v61 = vpop.permute.xlu0 %1029 }
  0xe8   : > { %17810 = vst [vmem:[#allocation86_spill] sm:$0xff] %v10722_v61  ;;  %1203 = vrot.lane.b32.xlu1 %v10284_v4, %s9807_s29 }
  0xe9   : > { %1209 = vrot.lane.b32.xlu0 %v10320_v54, %s9807_s29 }
  0xea   : > { %v10728_v33 = vpop.permute.xlu1 %1027 }
  0xeb   : > { %17811 = vst [vmem:[#allocation87_spill] sm:$0xff] %v10728_v33  ;;  %v10730_v31 = vpop.permute.xlu0 %1033 }
  0xec   : > { %17812 = vst [vmem:[#allocation88_spill] sm:$0xff] %v10730_v31  ;;  %1207 = vrot.lane.b32.xlu1 %v10303_v18, %s9807_s29 }
  0xed   : > { %1213 = vrot.lane.b32.xlu0 %v10339_v5, %s9807_s29 }
  0xee   : > { %v10736_v34 = vpop.permute.xlu1 %1031 }
  0xef   : > { %17813 = vst [vmem:[#allocation89_spill] sm:$0xff] %v10736_v34  ;;  %v10738_v26 = vpop.permute.xlu0 %1069  ;;  %v10754_v34 = vld [vmem:[#allocation2 + $0x180] sm:$0xff] }
  0xf0   : > { %17814 = vst [vmem:[#allocation90_spill] sm:$0xff] %v10738_v26  ;;  %1211 = vrot.lane.b32.xlu1 %v10322_v44, %s9807_s29  ;;  %v17837_v26 = vld [vmem:[#allocation18_spill] sm:$0xff] }
  0xf1   : > { %1217 = vrot.lane.b32.xlu0 %v10358_v15, %s9807_s29 }
  0xf2   : > { %v10744_v61 = vpop.permute.xlu1 %1035 }
  0xf3   : > { %17815 = vst [vmem:[#allocation91_spill] sm:$0xff] %v10744_v61  ;;  %v10746_v33 = vpop.permute.xlu0 %1073 }
  0xf4   : > { %17816 = vst [vmem:[#allocation92_spill] sm:$0xff] %v10746_v33  ;;  %1215 = vrot.lane.b32.xlu1 %v10341_v63, %s9807_s29  ;;  %v17829_v33 = vld [vmem:[#allocation14_spill] sm:$0xff] }
  0xf5   : > { %1221 = vrot.lane.b32.xlu0 %v10377_v22, %s9807_s29 }
  0xf6   : > { %v10752_v31 = vpop.permute.xlu1 %1071 }
  0xf7   : > { %17817 = vst [vmem:[#allocation93_spill] sm:$0xff] %v10752_v31  ;;  %v10756_v30 = vpop.permute.xlu0 %1077 }
  0xf8   : > { %17818 = vst [vmem:[#allocation94_spill] sm:$0xff] %v10756_v30  ;;  %1219 = vrot.lane.b32.xlu1 %v10360_v10, %s9807_s29 }
  0xf9   : > { %1225 = vrot.lane.b32.xlu0 %v10754_v34, %s9807_s29 }
  0xfa   : > { %v10762_v61 = vpop.permute.xlu1 %1075 }
  0xfb   : > { %17819 = vst [vmem:[#allocation95_spill] sm:$0xff] %v10762_v61  ;;  %v10764_v12 = vpop.permute.xlu0 %1081 }
  0xfc   : > { %17820 = vst [vmem:[#allocation96_spill] sm:$0xff] %v10764_v12  ;;  %1223 = vrot.lane.b32.xlu1 %v10379_v27, %s9807_s29 }
  0xfd   : > { %1261 = vrot.lane.b32.xlu0 %v10141_v43, %s9808_s17 }
  0xfe   : > { %v10772_v30 = vpop.permute.xlu1 %1079 }
  0xff   : > { %17821 = vst [vmem:[#allocation97_spill] sm:$0xff] %v10772_v30  ;;  %v10774_v11 = vpop.permute.xlu0 %1085 }
 0x100   : > { %17822 = vst [vmem:[#allocation98_spill] sm:$0xff] %v10774_v11  ;;  %1227 = vrot.lane.b32.xlu1 %v10768_v57, %s9807_s29  ;;  %v17828_v11 = vld [vmem:[#allocation13_spill] sm:$0xff] }
 0x101   : > { %1265 = vrot.lane.b32.xlu0 %v10148_v46, %s9808_s17 }
 0x102   : > { %v10780_v12 = vpop.permute.xlu1 %1083 }
 0x103   : > { %17823 = vst [vmem:[#allocation99_spill] sm:$0xff] %v10780_v12  ;;  %v10782_v61 = vpop.permute.xlu0 %1089 }
 0x104   : > { %17824 = vst [vmem:[#allocation100_spill] sm:$0xff] %v10782_v61  ;;  %1263 = vrot.lane.b32.xlu1 %v10155_v49, %s9808_s17  ;;  %v17832_v61 = vld [vmem:[#allocation15_spill] sm:$0xff]  ;;  %v17833_v49 = vld [vmem:[#allocation16_spill] sm:$0xff] }
 0x105   : > { %1269 = vrot.lane.b32.xlu0 %v17825_v53, %s9808_s17 }
 0x106   : > { %v10788_v43 = vpop.permute.xlu1 %1087 }
 0x107   : > { %17826 = vst [vmem:[#allocation12_spill] sm:$0xff] %v10788_v43  ;;  %v10790_v30 = vpop.permute.xlu0 %1093 }
 0x108   : > { %17827 = vst [vmem:[#allocation101_spill] sm:$0xff] %v10790_v30  ;;  %1267 = vrot.lane.b32.xlu1 %v17828_v11, %s9808_s17  ;;  %v17836_v30 = vld [vmem:[#allocation17_spill] sm:$0xff] }
 0x109   : > { %1273 = vrot.lane.b32.xlu0 %v17829_v33, %s9808_s17 }
 0x10a   : > { %v10796_v31 = vpop.permute.xlu1 %1091 }
 0x10b   : > { %17830 = vst [vmem:[#allocation13_spill] sm:$0xff] %v10796_v31  ;;  %v10798_v12 = vpop.permute.xlu0 %1097 }
 0x10c   : > { %17831 = vst [vmem:[#allocation102_spill] sm:$0xff] %v10798_v12  ;;  %1271 = vrot.lane.b32.xlu1 %v17832_v61, %s9808_s17  ;;  %v17840_v12 = vld [vmem:[#allocation19_spill] sm:$0xff]  ;;  %v17841_v61 = vld [vmem:[#allocation20_spill] sm:$0xff] }
 0x10d   : > { %1277 = vrot.lane.b32.xlu0 %v17833_v49, %s9808_s17 }
 0x10e   : > { %v10804_v0 = vpop.permute.xlu1 %1095 }
 0x10f   : > { %17834 = vst [vmem:[#allocation103_spill] sm:$0xff] %v10804_v0  ;;  %v10806_v43 = vpop.permute.xlu0 %1101 }
 0x110   : > { %17835 = vst [vmem:[#allocation104_spill] sm:$0xff] %v10806_v43  ;;  %1275 = vrot.lane.b32.xlu1 %v17836_v30, %s9808_s17  ;;  %v17844_v43 = vld [vmem:[#allocation21_spill] sm:$0xff]  ;;  %v17845_v30 = vld [vmem:[#allocation22_spill] sm:$0xff] }
 0x111   : > { %1281 = vrot.lane.b32.xlu0 %v17837_v26, %s9808_s17 }
 0x112   : > { %v10812_v33 = vpop.permute.xlu1 %1099 }
 0x113   : > { %17838 = vst [vmem:[#allocation105_spill] sm:$0xff] %v10812_v33  ;;  %v10814_v31 = vpop.permute.xlu0 %1105 }
 0x114   : > { %17839 = vst [vmem:[#allocation106_spill] sm:$0xff] %v10814_v31  ;;  %1279 = vrot.lane.b32.xlu1 %v17840_v12, %s9808_s17  ;;  %v17848_v31 = vld [vmem:[#allocation23_spill] sm:$0xff]  ;;  %v17849_v12 = vld [vmem:[#allocation24_spill] sm:$0xff] }
 0x115   : > { %1285 = vrot.lane.b32.xlu0 %v17841_v61, %s9808_s17 }
 0x116   : > { %v10820_v49 = vpop.permute.xlu1 %1103 }
 0x117   : > { %17842 = vst [vmem:[#allocation107_spill] sm:$0xff] %v10820_v49  ;;  %v10822_v0 = vpop.permute.xlu0 %1109 }
 0x118   : > { %17843 = vst [vmem:[#allocation108_spill] sm:$0xff] %v10822_v0  ;;  %1283 = vrot.lane.b32.xlu1 %v17844_v43, %s9808_s17  ;;  %v17852_v0 = vld [vmem:[#allocation25_spill] sm:$0xff]  ;;  %v17853_v43 = vld [vmem:[#allocation26_spill] sm:$0xff] }
 0x119   : > { %1289 = vrot.lane.b32.xlu0 %v17845_v30, %s9808_s17 }
 0x11a   : > { %v10828_v26 = vpop.permute.xlu1 %1107 }
 0x11b   : > { %17846 = vst [vmem:[#allocation109_spill] sm:$0xff] %v10828_v26  ;;  %v10830_v33 = vpop.permute.xlu0 %1113 }
 0x11c   : > { %17847 = vst [vmem:[#allocation110_spill] sm:$0xff] %v10830_v33  ;;  %1287 = vrot.lane.b32.xlu1 %v17848_v31, %s9808_s17  ;;  %v17856_v33 = vld [vmem:[#allocation27_spill] sm:$0xff]  ;;  %v17857_v31 = vld [vmem:[#allocation28_spill] sm:$0xff] }
 0x11d   : > { %1293 = vrot.lane.b32.xlu0 %v17849_v12, %s9808_s17 }
 0x11e   : > { %v10836_v61 = vpop.permute.xlu1 %1111 }
 0x11f   : > { %17850 = vst [vmem:[#allocation111_spill] sm:$0xff] %v10836_v61  ;;  %v10838_v49 = vpop.permute.xlu0 %1117 }
 0x120   : > { %17851 = vst [vmem:[#allocation112_spill] sm:$0xff] %v10838_v49  ;;  %1291 = vrot.lane.b32.xlu1 %v17852_v0, %s9808_s17  ;;  %v17860_v49 = vld [vmem:[#allocation29_spill] sm:$0xff]  ;;  %v17861_v0 = vld [vmem:[#allocation30_spill] sm:$0xff] }
 0x121   : > { %1297 = vrot.lane.b32.xlu0 %v17853_v43, %s9808_s17 }
 0x122   : > { %v10844_v30 = vpop.permute.xlu1 %1115 }
 0x123   : > { %17854 = vst [vmem:[#allocation113_spill] sm:$0xff] %v10844_v30  ;;  %v10846_v26 = vpop.permute.xlu0 %1121 }
 0x124   : > { %17855 = vst [vmem:[#allocation114_spill] sm:$0xff] %v10846_v26  ;;  %1295 = vrot.lane.b32.xlu1 %v17856_v33, %s9808_s17  ;;  %v17864_v26 = vld [vmem:[#allocation31_spill] sm:$0xff]  ;;  %v17865_v33 = vld [vmem:[#allocation32_spill] sm:$0xff] }
 0x125   : > { %1301 = vrot.lane.b32.xlu0 %v17857_v31, %s9808_s17 }
 0x126   : > { %v10852_v12 = vpop.permute.xlu1 %1119 }
 0x127   : > { %17858 = vst [vmem:[#allocation115_spill] sm:$0xff] %v10852_v12  ;;  %v10854_v61 = vpop.permute.xlu0 %1125 }
 0x128   : > { %17859 = vst [vmem:[#allocation116_spill] sm:$0xff] %v10854_v61  ;;  %1299 = vrot.lane.b32.xlu1 %v17860_v49, %s9808_s17 }
 0x129   : > { %1305 = vrot.lane.b32.xlu0 %v17861_v0, %s9808_s17 }
 0x12a   : > { %v10860_v43 = vpop.permute.xlu1 %1123 }
 0x12b   : > { %17862 = vst [vmem:[#allocation29_spill] sm:$0xff] %v10860_v43  ;;  %v10862_v30 = vpop.permute.xlu0 %1129  ;;  %v951_v43 = vrot.slane %v10768_v57, 1 }
 0x12c   : > { %17863 = vst [vmem:[#allocation30_spill] sm:$0xff] %v10862_v30  ;;  %1303 = vrot.lane.b32.xlu1 %v17864_v26, %s9808_s17  ;;  %v950_v30 = vrot.slane %v10754_v34, 1 }
 0x12d   : > { %1309 = vrot.lane.b32.xlu0 %v17865_v33, %s9808_s17  ;;  %v17870_v33 = vld [vmem:[#allocation35_spill] sm:$0xff] }
 0x12e   : > { %v10868_v31 = vpop.permute.xlu1 %1127 }
 0x12f   : > { %17866 = vst [vmem:[#allocation117_spill] sm:$0xff] %v10868_v31  ;;  %v10870_v12 = vpop.permute.xlu0 %1165 }
 0x130   : > { %17867 = vst [vmem:[#allocation118_spill] sm:$0xff] %v10870_v12  ;;  %1307 = vrot.lane.b32.xlu1 %v10382_v39, %s9808_s17  ;;  %v10888_v12 = vld [vmem:[#allocation2 + $0x190] sm:$0x3]  ;;  %v17873_v39 = vld [vmem:[#allocation37_spill] sm:$0xff] }
 0x131   : > { %1313 = vrot.lane.b32.xlu0 %v10392_v38, %s9808_s17  ;;  %v10891_v38 = vsel %vm785_vm2, %v950_v30, %v951_v43 }
 0x132   : > { %v10876_v61 = vpop.permute.xlu1 %1131 }
 0x133   : > { %17868 = vst [vmem:[#allocation119_spill] sm:$0xff] %v10876_v61  ;;  %v10880_v26 = vpop.permute.xlu0 %1169 }
 0x134   : > { %17869 = vst [vmem:[#allocation120_spill] sm:$0xff] %v10880_v26  ;;  %1311 = vrot.lane.b32.xlu1 %v17870_v33, %s9808_s17  ;;  %v953_v26 = vrot.slane %v10888_v12, 1 }
 0x135   : > { %1317 = vrot.lane.b32.xlu0 %v10407_v17, %s9808_s17 }
 0x136   : > { %v10886_v31 = vpop.permute.xlu1 %1167  ;;  %v10907_v30 = vsel %vm785_vm2, %v951_v43, %v953_v26  ;;  %v17883_v43 = vld [vmem:[#allocation39_spill] sm:$0xff] }
 0x137   : > { %17871 = vst [vmem:[#allocation121_spill] sm:$0xff] %v10886_v31  ;;  %v10893_v61 = vpop.permute.xlu0 %1173  ;;  %v17876_v31 = vld [vmem:[#allocation38_spill] sm:$0xff] }
 0x138   : > { %17872 = vst [vmem:[#allocation122_spill] sm:$0xff] %v10893_v61  ;;  %1315 = vrot.lane.b32.xlu1 %v17873_v39, %s9808_s17 }
 0x139   : > { %1321 = vrot.lane.b32.xlu0 %v10891_v38, %s9808_s17 }
 0x13a   : > { %v10900_v33 = vpop.permute.xlu1 %1171 }
 0x13b   : > { %17874 = vst [vmem:[#allocation123_spill] sm:$0xff] %v10900_v33  ;;  %v10902_v17 = vpop.permute.xlu0 %1177 }
 0x13c   : > { %17875 = vst [vmem:[#allocation124_spill] sm:$0xff] %v10902_v17  ;;  %1319 = vrot.lane.b32.xlu1 %v17876_v31, %s9808_s17 }
 0x13d   : > { %1357 = vrot.lane.b32.xlu0 %v10432_v23, %s9809_s18 }
 0x13e   : > { %v10911_v61 = vpop.permute.xlu1 %1175 }
 0x13f   : > { %17877 = vst [vmem:[#allocation38_spill] sm:$0xff] %v10911_v61  ;;  %v10913_v39 = vpop.permute.xlu0 %1181 }
 0x140   : > { %17878 = vst [vmem:[#allocation125_spill] sm:$0xff] %v10913_v39  ;;  %1323 = vrot.lane.b32.xlu1 %v10907_v30, %s9808_s17  ;;  %s17693_s17 = smov 32  }
 0x141   : > { %1361 = vrot.lane.b32.xlu0 %v10443_v9, %s9809_s18 }
 0x142   : > { %v10919_v17 = vpop.permute.xlu1 %1179 }
 0x143   : > { %17879 = vst [vmem:[#allocation126_spill] sm:$0xff] %v10919_v17  ;;  %v10921_v33 = vpop.permute.xlu0 %1185 }
 0x144   : > { %17880 = vst [vmem:[#allocation127_spill] sm:$0xff] %v10921_v33  ;;  %1359 = vrot.lane.b32.xlu1 %v10449_v7, %s9809_s18  ;;  %v17886_v33 = vld [vmem:[#allocation40_spill] sm:$0xff] }
 0x145   : > { %1365 = vrot.lane.b32.xlu0 %v10455_v37, %s9809_s18 }
 0x146   : > { %v10927_v23 = vpop.permute.xlu1 %1183 }
 0x147   : > { %17881 = vst [vmem:[#allocation128_spill] sm:$0xff] %v10927_v23  ;;  %v10929_v26 = vpop.permute.xlu0 %1189 }
 0x148   : > { %17882 = vst [vmem:[#allocation129_spill] sm:$0xff] %v10929_v26  ;;  %1363 = vrot.lane.b32.xlu1 %v17883_v43, %s9809_s18  ;;  %v17889_v26 = vld [vmem:[#allocation42_spill] sm:$0xff] }
 0x149   : > { %1369 = vrot.lane.b32.xlu0 %v10468_v42, %s9809_s18 }
 0x14a   : > { %v10935_v39 = vpop.permute.xlu1 %1187 }
 0x14b   : > { %17884 = vst [vmem:[#allocation39_spill] sm:$0xff] %v10935_v39  ;;  %v10937_v17 = vpop.permute.xlu0 %1193 }
 0x14c   : > { %17885 = vst [vmem:[#allocation130_spill] sm:$0xff] %v10937_v17  ;;  %1367 = vrot.lane.b32.xlu1 %v17886_v33, %s9809_s18  ;;  %v17892_v17 = vld [vmem:[#allocation44_spill] sm:$0xff] }
 0x14d   : > { %1373 = vrot.lane.b32.xlu0 %v10481_v51, %s9809_s18 }
 0x14e   : > { %v10943_v7 = vpop.permute.xlu1 %1191 }
 0x14f   : > { %17887 = vst [vmem:[#allocation40_spill] sm:$0xff] %v10943_v7  ;;  %v10945_v23 = vpop.permute.xlu0 %1197 }
 0x150   : > { %17888 = vst [vmem:[#allocation131_spill] sm:$0xff] %v10945_v23  ;;  %1371 = vrot.lane.b32.xlu1 %v17889_v26, %s9809_s18  ;;  %v17895_v23 = vld [vmem:[#allocation46_spill] sm:$0xff] }
 0x151   : > { %1377 = vrot.lane.b32.xlu0 %v10494_v59, %s9809_s18 }
 0x152   : > { %v10951_v61 = vpop.permute.xlu1 %1195 }
 0x153   : > { %17890 = vst [vmem:[#allocation42_spill] sm:$0xff] %v10951_v61  ;;  %v10953_v39 = vpop.permute.xlu0 %1201 }
 0x154   : > { %17891 = vst [vmem:[#allocation132_spill] sm:$0xff] %v10953_v39  ;;  %1375 = vrot.lane.b32.xlu1 %v17892_v17, %s9809_s18  ;;  %v17898_v39 = vld [vmem:[#allocation48_spill] sm:$0xff] }
 0x155   : > { %1381 = vrot.lane.b32.xlu0 %v10507_v14, %s9809_s18 }
 0x156   : > { %v10959_v51 = vpop.permute.xlu1 %1199 }
 0x157   : > { %17893 = vst [vmem:[#allocation44_spill] sm:$0xff] %v10959_v51  ;;  %v10961_v7 = vpop.permute.xlu0 %1205 }
 0x158   : > { %17894 = vst [vmem:[#allocation133_spill] sm:$0xff] %v10961_v7  ;;  %1379 = vrot.lane.b32.xlu1 %v17895_v23, %s9809_s18  ;;  %v17901_v7 = vld [vmem:[#allocation50_spill] sm:$0xff] }
 0x159   : > { %1385 = vrot.lane.b32.xlu0 %v10520_v24, %s9809_s18 }
 0x15a   : > { %v10967_v59 = vpop.permute.xlu1 %1203 }
 0x15b   : > { %17896 = vst [vmem:[#allocation46_spill] sm:$0xff] %v10967_v59  ;;  %v10969_v61 = vpop.permute.xlu0 %1209 }
 0x15c   : > { %17897 = vst [vmem:[#allocation134_spill] sm:$0xff] %v10969_v61  ;;  %1383 = vrot.lane.b32.xlu1 %v17898_v39, %s9809_s18  ;;  %v17904_v61 = vld [vmem:[#allocation52_spill] sm:$0xff]  ;;  %v17905_v39 = vld [vmem:[#allocation53_spill] sm:$0xff] }
 0x15d   : > { %1389 = vrot.lane.b32.xlu0 %v10533_v36, %s9809_s18 }
 0x15e   : > { %v10975_v14 = vpop.permute.xlu1 %1207 }
 0x15f   : > { %17899 = vst [vmem:[#allocation135_spill] sm:$0xff] %v10975_v14  ;;  %v10977_v51 = vpop.permute.xlu0 %1213 }
 0x160   : > { %17900 = vst [vmem:[#allocation136_spill] sm:$0xff] %v10977_v51  ;;  %1387 = vrot.lane.b32.xlu1 %v17901_v7, %s9809_s18  ;;  %v17908_v51 = vld [vmem:[#allocation54_spill] sm:$0xff]  ;;  %v17909_v7 = vld [vmem:[#allocation55_spill] sm:$0xff] }
 0x161   : > { %1393 = vrot.lane.b32.xlu0 %v10546_v58, %s9809_s18 }
 0x162   : > { %v10983_v24 = vpop.permute.xlu1 %1211 }
 0x163   : > { %17902 = vst [vmem:[#allocation137_spill] sm:$0xff] %v10983_v24  ;;  %v10985_v59 = vpop.permute.xlu0 %1217 }
 0x164   : > { %17903 = vst [vmem:[#allocation138_spill] sm:$0xff] %v10985_v59  ;;  %1391 = vrot.lane.b32.xlu1 %v17904_v61, %s9809_s18 }
 0x165   : > { %1397 = vrot.lane.b32.xlu0 %v17905_v39, %s9809_s18 }
 0x166   : > { %v10991_v36 = vpop.permute.xlu1 %1215 }
 0x167   : > { %17906 = vst [vmem:[#allocation52_spill] sm:$0xff] %v10991_v36  ;;  %v10993_v14 = vpop.permute.xlu0 %1221 }
 0x168   : > { %17907 = vst [vmem:[#allocation53_spill] sm:$0xff] %v10993_v14  ;;  %1395 = vrot.lane.b32.xlu1 %v17908_v51, %s9809_s18 }
 0x169   : > { %1401 = vrot.lane.b32.xlu0 %v17909_v7, %s9809_s18 }
 0x16a   : > { %v10999_v58 = vpop.permute.xlu1 %1219 }
 0x16b   : > { %17910 = vst [vmem:[#allocation54_spill] sm:$0xff] %v10999_v58  ;;  %v11001_v24 = vpop.permute.xlu0 %1225  ;;  %v956_v58 = vrot.slane %v10768_v57, 2 }
 0x16c   : > { %17911 = vst [vmem:[#allocation55_spill] sm:$0xff] %v11001_v24  ;;  %1399 = vrot.lane.b32.xlu1 %v10579_v62, %s9809_s18  ;;  %v955_v24 = vrot.slane %v10754_v34, 2 }
 0x16d   : > { %1405 = vrot.lane.b32.xlu0 %v10585_v13, %s9809_s18 }
 0x16e   : > { %v11007_v59 = vpop.permute.xlu1 %1223 }
 0x16f   : > { %17912 = vst [vmem:[#allocation139_spill] sm:$0xff] %v11007_v59  ;;  %v11009_v36 = vpop.permute.xlu0 %1261 }
 0x170   : > { %17913 = vst [vmem:[#allocation140_spill] sm:$0xff] %v11009_v36  ;;  %1403 = vrot.lane.b32.xlu1 %v10594_v6, %s9809_s18  ;;  %v11028_v36 = vsel %vm866_vm3, %v955_v24, %v956_v58 }
 0x171   : > { %1409 = vrot.lane.b32.xlu0 %v10600_v8, %s9809_s18 }
 0x172   : > { %v11015_v14 = vpop.permute.xlu1 %1227 }
 0x173   : > { %17914 = vst [vmem:[#allocation141_spill] sm:$0xff] %v11015_v14  ;;  %v11019_v62 = vpop.permute.xlu0 %1265  ;;  %v958_v14 = vrot.slane %v10888_v12, 2 }
 0x174   : > { %17915 = vst [vmem:[#allocation142_spill] sm:$0xff] %v11019_v62  ;;  %1407 = vrot.lane.b32.xlu1 %v10609_v52, %s9809_s18 }
 0x175   : > { %1413 = vrot.lane.b32.xlu0 %v10617_v25, %s9809_s18  ;;  %v11044_v24 = vsel %vm866_vm3, %v956_v58, %v958_v14 }
 0x176   : > { %v11025_v59 = vpop.permute.xlu1 %1263 }
 0x177   : > { %v11030_v8 = vpop.permute.xlu0 %1269 }
 0x178   : > { %17916 = vst [vmem:[#allocation143_spill] sm:$0xff] %v11030_v8  ;;  %1411 = vrot.lane.b32.xlu1 %v10624_v60, %s9809_s18 }
 0x179   : > { %1417 = vrot.lane.b32.xlu0 %v11028_v36, %s9809_s18 }
 0x17a   : > { %v11037_v62 = vpop.permute.xlu1 %1267 }
 0x17b   : > { %17917 = vst [vmem:[#allocation144_spill] sm:$0xff] %v11037_v62  ;;  %v11039_v52 = vpop.permute.xlu0 %1273 }
 0x17c   : > { %17918 = vst [vmem:[#allocation145_spill] sm:$0xff] %v11039_v52  ;;  %1415 = vrot.lane.b32.xlu1 %v10636_v19, %s9809_s18 }
 0x17d   : > { %1453 = vrot.lane.b32.xlu0 %v10119_v32, %s17432_s19 }
 0x17e   : > { %v11048_v8 = vpop.permute.xlu1 %1271 }
 0x17f   : > { %v11050_v12 = vpop.permute.xlu0 %1277 }
 0x180   : > { %1419 = vrot.lane.b32.xlu1 %v11044_v24, %s9809_s18  ;;  %s12757_s18 = scalar_lea.vmem %s18269_s1, %s7956_s16  ;;  %s9817_s16 = smov 6  }
 0x181   : > { %1457 = vrot.lane.b32.xlu0 %v10134_v40, %s17432_s19 }
 0x182   : > { %v11056_v52 = vpop.permute.xlu1 %1275 }
 0x183   : > { %v11058_v62 = vpop.permute.xlu0 %1281 }
 0x184   : > { %1455 = vrot.lane.b32.xlu1 %v10126_v35, %s17432_s19 }
 0x185   : > { %1461 = vrot.lane.b32.xlu0 %v10150_v47, %s17432_s19 }
 0x186   : > { %v11064_v32 = vpop.permute.xlu1 %1279 }
 0x187   : > { %v11066_v14 = vpop.permute.xlu0 %1285 }
 0x188   : > { %1459 = vrot.lane.b32.xlu1 %v10136_v41, %s17432_s19 }
 0x189   : > { %1465 = vrot.lane.b32.xlu0 %v10169_v55, %s17432_s19 }
 0x18a   : > { %v11072_v40 = vpop.permute.xlu1 %1283 }
 0x18b   : > { %v11074_v58 = vpop.permute.xlu0 %1289 }
 0x18c   : > { %1463 = vrot.lane.b32.xlu1 %v10152_v48, %s17432_s19 }
 0x18d   : > { %1469 = vrot.lane.b32.xlu0 %v10187_v1, %s17432_s19 }
 0x18e   : > { %v11080_v35 = vpop.permute.xlu1 %1287 }
 0x18f   : > { %v11082_v47 = vpop.permute.xlu0 %1293 }
 0x190   : > { %17919 = vst [vmem:[#allocation146_spill] sm:$0xff] %v11082_v47  ;;  %1467 = vrot.lane.b32.xlu1 %v10171_v56, %s17432_s19 }
 0x191   : > { %1473 = vrot.lane.b32.xlu0 %v10225_v20, %s17432_s19 }
 0x192   : > { %v11088_v41 = vpop.permute.xlu1 %1291 }
 0x193   : > { %17920 = vst [vmem:[#allocation147_spill] sm:$0xff] %v11088_v41  ;;  %v11090_v55 = vpop.permute.xlu0 %1297 }
 0x194   : > { %17921 = vst [vmem:[#allocation148_spill] sm:$0xff] %v11090_v55  ;;  %1471 = vrot.lane.b32.xlu1 %v10189_v2, %s17432_s19  ;;  %v17951_v55 = vld [vmem:[#allocation23_spill] sm:$0xff] }
 0x195   : > { %1477 = vrot.lane.b32.xlu0 %v10244_v28, %s17432_s19 }
 0x196   : > { %v11096_v48 = vpop.permute.xlu1 %1295 }
 0x197   : > { %17922 = vst [vmem:[#allocation149_spill] sm:$0xff] %v11096_v48  ;;  %v11098_v1 = vpop.permute.xlu0 %1301 }
 0x198   : > { %17923 = vst [vmem:[#allocation150_spill] sm:$0xff] %v11098_v1  ;;  %1475 = vrot.lane.b32.xlu1 %v10227_v21, %s17432_s19  ;;  %v17947_v1 = vld [vmem:[#allocation21_spill] sm:$0xff] }
 0x199   : > { %1481 = vrot.lane.b32.xlu0 %v10263_v45, %s17432_s19 }
 0x19a   : > { %v11104_v56 = vpop.permute.xlu1 %1299 }
 0x19b   : > { %17924 = vst [vmem:[#allocation151_spill] sm:$0xff] %v11104_v56  ;;  %v11106_v20 = vpop.permute.xlu0 %1305 }
 0x19c   : > { %17925 = vst [vmem:[#allocation152_spill] sm:$0xff] %v11106_v20  ;;  %1479 = vrot.lane.b32.xlu1 %v10246_v29, %s17432_s19  ;;  %v17943_v20 = vld [vmem:[#allocation19_spill] sm:$0xff] }
 0x19d   : > { %1485 = vrot.lane.b32.xlu0 %v10282_v3, %s17432_s19 }
 0x19e   : > { %v11112_v2 = vpop.permute.xlu1 %1303 }
 0x19f   : > { %17926 = vst [vmem:[#allocation153_spill] sm:$0xff] %v11112_v2  ;;  %v11114_v28 = vpop.permute.xlu0 %1309 }
 0x1a0   : > { %17927 = vst [vmem:[#allocation154_spill] sm:$0xff] %v11114_v28  ;;  %1483 = vrot.lane.b32.xlu1 %v10265_v50, %s17432_s19  ;;  %v17940_v28 = vld [vmem:[#allocation17_spill] sm:$0xff] }
 0x1a1   : > { %1489 = vrot.lane.b32.xlu0 %v10301_v16, %s17432_s19 }
 0x1a2   : > { %v11120_v21 = vpop.permute.xlu1 %1307 }
 0x1a3   : > { %17928 = vst [vmem:[#allocation155_spill] sm:$0xff] %v11120_v21  ;;  %v11122_v45 = vpop.permute.xlu0 %1313 }
 0x1a4   : > { %17929 = vst [vmem:[#allocation156_spill] sm:$0xff] %v11122_v45  ;;  %1487 = vrot.lane.b32.xlu1 %v10284_v4, %s17432_s19  ;;  %v17938_v45 = vld [vmem:[#allocation16_spill] sm:$0xff] }
 0x1a5   : > { %1493 = vrot.lane.b32.xlu0 %v10320_v54, %s17432_s19 }
 0x1a6   : > { %v11128_v29 = vpop.permute.xlu1 %1311 }
 0x1a7   : > { %17930 = vst [vmem:[#allocation157_spill] sm:$0xff] %v11128_v29  ;;  %v11130_v3 = vpop.permute.xlu0 %1317 }
 0x1a8   : > { %17931 = vst [vmem:[#allocation158_spill] sm:$0xff] %v11130_v3  ;;  %1491 = vrot.lane.b32.xlu1 %v10303_v18, %s17432_s19 }
 0x1a9   : > { %1497 = vrot.lane.b32.xlu0 %v10339_v5, %s17432_s19 }
 0x1aa   : > { %v11136_v50 = vpop.permute.xlu1 %1315 }
 0x1ab   : > { %17932 = vst [vmem:[#allocation159_spill] sm:$0xff] %v11136_v50  ;;  %v11138_v16 = vpop.permute.xlu0 %1321  ;;  %v17937_v50 = vld [vmem:[#allocation15_spill] sm:$0xff] }
 0x1ac   : > { %17933 = vst [vmem:[#allocation160_spill] sm:$0xff] %v11138_v16  ;;  %1495 = vrot.lane.b32.xlu1 %v10322_v44, %s17432_s19 }
 0x1ad   : > { %1501 = vrot.lane.b32.xlu0 %v10358_v15, %s17432_s19  ;;  %v11162_v15 = vld [vmem:[#allocation2 + $0x198] sm:$0xff] }
 0x1ae   : > { %v11144_v4 = vpop.permute.xlu1 %1319 }
 0x1af   : > { %17934 = vst [vmem:[#allocation161_spill] sm:$0xff] %v11144_v4  ;;  %v11146_v54 = vpop.permute.xlu0 %1357 }
 0x1b0   : > { %1499 = vrot.lane.b32.xlu1 %v10341_v63, %s17432_s19 }
 0x1b1   : > { %1505 = vrot.lane.b32.xlu0 %v10377_v22, %s17432_s19 }
 0x1b2   : > { %v11152_v5 = vpop.permute.xlu1 %1323 }
 0x1b3   : > { %17935 = vst [vmem:[#allocation162_spill] sm:$0xff] %v11152_v5  ;;  %v11154_v18 = vpop.permute.xlu0 %1361 }
 0x1b4   : > { %1503 = vrot.lane.b32.xlu1 %v10360_v10, %s17432_s19  ;;  %v11176_v10 = vld [vmem:[#allocation2 + $0x1a0] sm:$0xff] }
 0x1b5   : > { %1509 = vrot.lane.b32.xlu0 %v10754_v34, %s17432_s19 }
 0x1b6   : > { %v11160_v44 = vpop.permute.xlu1 %1359 }
 0x1b7   : > { %v11164_v16 = vpop.permute.xlu0 %1365 }
 0x1b8   : > { %1507 = vrot.lane.b32.xlu1 %v10379_v27, %s17432_s19 }
 0x1b9   : > { %1513 = vrot.lane.b32.xlu0 %v11162_v15, %s17432_s19 }
 0x1ba   : > { %v11170_v22 = vpop.permute.xlu1 %1363 }
 0x1bb   : > { %v11172_v63 = vpop.permute.xlu0 %1369 }
 0x1bc   : > { %1511 = vrot.lane.b32.xlu1 %v10768_v57, %s17432_s19  ;;  %v17936_v57 = vld [vmem:[#allocation14_spill] sm:$0xff] }
 0x1bd   : > { %1549 = vrot.lane.b32.xlu0 %v10148_v46, %s9811_s20 }
 0x1be   : > { %v11180_v34 = vpop.permute.xlu1 %1367 }
 0x1bf   : > { %v11182_v5 = vpop.permute.xlu0 %1373 }
 0x1c0   : > { %1515 = vrot.lane.b32.xlu1 %v11176_v10, %s17432_s19  ;;  %s18602_s19 = smov 24  }
 0x1c1   : > { %1553 = vrot.lane.b32.xlu0 %v17825_v53, %s9811_s20 }
 0x1c2   : > { %v11188_v27 = vpop.permute.xlu1 %1371 }
 0x1c3   : > { %v11190_v4 = vpop.permute.xlu0 %1377 }
 0x1c4   : > { %1551 = vrot.lane.b32.xlu1 %v17828_v11, %s9811_s20  ;;  %v17941_v11 = vld [vmem:[#allocation18_spill] sm:$0xff] }
 0x1c5   : > { %1557 = vrot.lane.b32.xlu0 %v17936_v57, %s9811_s20 }
 0x1c6   : > { %v11196_v46 = vpop.permute.xlu1 %1375 }
 0x1c7   : > { %v11198_v3 = vpop.permute.xlu0 %1381 }
 0x1c8   : > { %1555 = vrot.lane.b32.xlu1 %v17937_v50, %s9811_s20  ;;  %v17944_v50 = vld [vmem:[#allocation20_spill] sm:$0xff] }
 0x1c9   : > { %1561 = vrot.lane.b32.xlu0 %v17938_v45, %s9811_s20 }
 0x1ca   : > { %v11204_v53 = vpop.permute.xlu1 %1379 }
 0x1cb   : > { %v11206_v29 = vpop.permute.xlu0 %1385 }
 0x1cc   : > { %17939 = vst [vmem:[#allocation14_spill] sm:$0xff] %v11206_v29  ;;  %1559 = vrot.lane.b32.xlu1 %v17940_v28, %s9811_s20  ;;  %v17948_v28 = vld [vmem:[#allocation22_spill] sm:$0xff] }
 0x1cd   : > { %1565 = vrot.lane.b32.xlu0 %v17941_v11, %s9811_s20 }
 0x1ce   : > { %v11212_v57 = vpop.permute.xlu1 %1383 }
 0x1cf   : > { %v11214_v21 = vpop.permute.xlu0 %1389 }
 0x1d0   : > { %17942 = vst [vmem:[#allocation15_spill] sm:$0xff] %v11214_v21  ;;  %1563 = vrot.lane.b32.xlu1 %v17943_v20, %s9811_s20  ;;  %v17952_v20 = vld [vmem:[#allocation24_spill] sm:$0xff] }
 0x1d1   : > { %1569 = vrot.lane.b32.xlu0 %v17944_v50, %s9811_s20 }
 0x1d2   : > { %v11220_v45 = vpop.permute.xlu1 %1387 }
 0x1d3   : > { %17945 = vst [vmem:[#allocation16_spill] sm:$0xff] %v11220_v45  ;;  %v11222_v2 = vpop.permute.xlu0 %1393 }
 0x1d4   : > { %17946 = vst [vmem:[#allocation17_spill] sm:$0xff] %v11222_v2  ;;  %1567 = vrot.lane.b32.xlu1 %v17947_v1, %s9811_s20  ;;  %v17955_v2 = vld [vmem:[#allocation25_spill] sm:$0xff]  ;;  %v17956_v1 = vld [vmem:[#allocation26_spill] sm:$0xff] }
 0x1d5   : > { %1573 = vrot.lane.b32.xlu0 %v17948_v28, %s9811_s20 }
 0x1d6   : > { %v11228_v11 = vpop.permute.xlu1 %1391 }
 0x1d7   : > { %17949 = vst [vmem:[#allocation18_spill] sm:$0xff] %v11228_v11  ;;  %v11230_v56 = vpop.permute.xlu0 %1397 }
 0x1d8   : > { %17950 = vst [vmem:[#allocation19_spill] sm:$0xff] %v11230_v56  ;;  %1571 = vrot.lane.b32.xlu1 %v17951_v55, %s9811_s20  ;;  %v17959_v56 = vld [vmem:[#allocation27_spill] sm:$0xff]  ;;  %v17960_v55 = vld [vmem:[#allocation28_spill] sm:$0xff] }
 0x1d9   : > { %1577 = vrot.lane.b32.xlu0 %v17952_v20, %s9811_s20 }
 0x1da   : > { %v11236_v50 = vpop.permute.xlu1 %1395 }
 0x1db   : > { %17953 = vst [vmem:[#allocation20_spill] sm:$0xff] %v11236_v50  ;;  %v11238_v48 = vpop.permute.xlu0 %1401 }
 0x1dc   : > { %17954 = vst [vmem:[#allocation21_spill] sm:$0xff] %v11238_v48  ;;  %1575 = vrot.lane.b32.xlu1 %v17955_v2, %s9811_s20  ;;  %v2007_v48 = vld [vmem:[%s17968_s2 + $0x20] sm:$0xf] }
 0x1dd   : > { %1581 = vrot.lane.b32.xlu0 %v17956_v1, %s9811_s20 }
 0x1de   : > { %v11244_v28 = vpop.permute.xlu1 %1399 }
 0x1df   : > { %17957 = vst [vmem:[#allocation22_spill] sm:$0xff] %v11244_v28  ;;  %v11246_v11 = vpop.permute.xlu0 %1405 }
 0x1e0   : > { %17958 = vst [vmem:[#allocation23_spill] sm:$0xff] %v11246_v11  ;;  %1579 = vrot.lane.b32.xlu1 %v17959_v56, %s9811_s20  ;;  %v17965_v11 = vld [vmem:[#allocation31_spill] sm:$0xff]  ;;  %v17966_v56 = vld [vmem:[#allocation32_spill] sm:$0xff] }
 0x1e1   : > { %1585 = vrot.lane.b32.xlu0 %v17960_v55, %s9811_s20 }
 0x1e2   : > { %v11252_v20 = vpop.permute.xlu1 %1403 }
 0x1e3   : > { %17961 = vst [vmem:[#allocation24_spill] sm:$0xff] %v11252_v20  ;;  %v11254_v50 = vpop.permute.xlu0 %1409  ;;  %v2006_v20 = vld [vmem:[%s17968_s2 + $0x18] sm:$0xff] }
 0x1e4   : > { %17962 = vst [vmem:[#allocation25_spill] sm:$0xff] %v11254_v50  ;;  %1583 = vrot.lane.b32.xlu1 %v17860_v49, %s9811_s20  ;;  %v2003_v50 = vld [vmem:[%s17968_s2] sm:$0xff] }
 0x1e5   : > { %1589 = vrot.lane.b32.xlu0 %v17861_v0, %s9811_s20  ;;  %v2004_v0 = vld [vmem:[%s17968_s2 + $0x8] sm:$0xff] }
 0x1e6   : > { %v11260_v2 = vpop.permute.xlu1 %1407 }
 0x1e7   : > { %17963 = vst [vmem:[#allocation26_spill] sm:$0xff] %v11260_v2  ;;  %v11262_v1 = vpop.permute.xlu0 %1413  ;;  %v8332_v2 = vpack.c.bf16 %v2004_v0, %v2003_v50  ;;  %v17974_v0 = vmov 0.0  }
 0x1e8   : > { %17964 = vst [vmem:[#allocation27_spill] sm:$0xff] %v11262_v1  ;;  %1587 = vrot.lane.b32.xlu1 %v17965_v11, %s9811_s20  ;;  %v17970_v1 = vld [vmem:[#allocation33_spill] sm:$0xff]  ;;  %v17971_v11 = vld [vmem:[#allocation34_spill] sm:$0xff]  ;;  %563 = vst.msk [vmem:[#allocation4] sm:$0xff] %vm562_vm4, %v17974_v0 }
 0x1e9   : > { %1593 = vrot.lane.b32.xlu0 %v17966_v56, %s9811_s20  ;;  %8333 = vmatprep.subr.bf16.mxu0 %v8332_v2  ;;  %564 = vst.msk [vmem:[#allocation4 + $0x8] sm:$0xff] %vm562_vm4, %v17974_v0  ;;  %567 = vst.msk [vmem:[#allocation4 + $0x18] sm:$0xff] %vm562_vm4, %v17974_v0 }
 0x1ea   : > { %v11268_v55 = vpop.permute.xlu1 %1411  ;;  %8335 = vmatpush3.bf16.msra.mxu0 %v8332_v2  ;;  %568 = vst.msk [vmem:[#allocation4 + $0x20] sm:$0xff] %vm562_vm4, %v17974_v0  ;;  %570 = vst.msk [vmem:[#allocation4 + $0x30] sm:$0xff] %vm562_vm4, %v17974_v0 }
 0x1eb   : > { %17967 = vst [vmem:[#allocation28_spill] sm:$0xff] %v11268_v55  ;;  %v11276_v49 = vpop.permute.xlu0 %1417  ;;  %v2005_v55 = vld [vmem:[%s17968_s2 + $0x10] sm:$0xff]  ;;  %571 = vst.msk [vmem:[#allocation4 + $0x38] sm:$0xff] %vm562_vm4, %v17974_v0 }
 0x1ec   : > { %17969 = vst [vmem:[#allocation31_spill] sm:$0xff] %v11276_v49  ;;  %1591 = vrot.lane.b32.xlu1 %v17970_v1, %s9811_s20  ;;  %v17973_v1 = vld [vmem:[#allocation35_spill] sm:$0xff]  ;;  %v8336_v50 = vpack.c.bf16 %v2006_v20, %v2005_v55  ;;  %573 = vst.msk [vmem:[#allocation4 + $0x48] sm:$0xff] %vm562_vm4, %v17974_v0  ;;  %v17975_v20 = vld [vmem:[#allocation36_spill] sm:$0xff]  ;;  %v963_v55 = vrot.slane %v11162_v15, 1 }
 0x1ed   : > { %1597 = vrot.lane.b32.xlu0 %v17971_v11, %s9811_s20  ;;  %574 = vst.msk [vmem:[#allocation4 + $0x50] sm:$0xff] %vm562_vm4, %v17974_v0  ;;  %576 = vst.msk [vmem:[#allocation4 + $0x60] sm:$0xff] %vm562_vm4, %v17974_v0  ;;  %v964_v11 = vrot.slane %v11176_v10, 1 }
 0x1ee   : > { %v11282_v56 = vpop.permute.xlu1 %1415  ;;  %577 = vst.msk [vmem:[#allocation4 + $0x68] sm:$0xff] %vm562_vm4, %v17974_v0  ;;  %579 = vst.msk [vmem:[#allocation4 + $0x78] sm:$0xff] %vm562_vm4, %v17974_v0  ;;  %8337 = vmatprep.subr.bf16.mxu0 %v8336_v50 }
 0x1ef   : > { %17972 = vst [vmem:[#allocation32_spill] sm:$0xff] %v11282_v56  ;;  %v11290_v49 = vpop.permute.xlu0 %1453  ;;  %580 = vst.msk [vmem:[#allocation4 + $0x80] sm:$0xff] %vm562_vm4, %v17974_v0  ;;  %8339 = vmatpush3.bf16.msra.mxu0 %v8336_v50  ;;  %v17977_v56 = vld [vmem:[#allocation37_spill] sm:$0xff]  ;;  %v965_v50 = vsel %vm785_vm2, %v963_v55, %v964_v11 }
 0x1f0   : > { %1595 = vrot.lane.b32.xlu1 %v17973_v1, %s9811_s20  ;;  %582 = vst.msk [vmem:[#allocation4 + $0x90] sm:$0xff] %vm562_vm4, %v17974_v0  ;;  %583 = vst.msk [vmem:[#allocation4 + $0x98] sm:$0xff] %vm562_vm4, %v17974_v0  ;;  %8114 = vmatprep.subr.msk.mxu0 %vm2112_vm5, %v2007_v48 }
 0x1f1   : > { %585 = vst.msk [vmem:[#allocation4 + $0xa8] sm:$0xff] %vm562_vm4, %v17974_v0  ;;  %586 = vst.msk [vmem:[#allocation4 + $0xb0] sm:$0xff] %vm562_vm4, %v17974_v0  ;;  %1601 = vrot.lane.b32.xlu0 %v17975_v20, %s9811_s20 }
 0x1f2   : > { %588 = vst.msk [vmem:[#allocation4 + $0xc0] sm:$0xff] %vm562_vm4, %v17974_v0  ;;  %589 = vst.msk [vmem:[#allocation4 + $0xc8] sm:$0xff] %vm562_vm4, %v17974_v0  ;;  %v11368_v2 = vpop.permute.xlu1 %1419 }
 0x1f3   : > { %591 = vst.msk [vmem:[#allocation4 + $0xd8] sm:$0xff] %vm562_vm4, %v17974_v0  ;;  %592 = vst.msk [vmem:[#allocation4 + $0xe0] sm:$0xff] %vm562_vm4, %v17974_v0  ;;  %v11372_v1 = vpop.permute.xlu0 %1457  ;;  %8115 = vmatpush3.msk.msra.mxu0 %vm2112_vm5, %v2007_v48  ;;  %vm5575_vm5 = vcmask 1042432  }
 0x1f4   : > { %594 = vst.msk [vmem:[#allocation4 + $0xf0] sm:$0xff] %vm562_vm4, %v17974_v0  ;;  %595 = vst.msk [vmem:[#allocation4 + $0xf8] sm:$0xff] %vm562_vm4, %v17974_v0  ;;  %1599 = vrot.lane.b32.xlu1 %v17977_v56, %s9811_s20 }
 0x1f5   : > { %597 = vst.msk [vmem:[#allocation4 + $0x108] sm:$0xff] %vm562_vm4, %v17974_v0  ;;  %598 = vst.msk [vmem:[#allocation4 + $0x110] sm:$0xff] %vm562_vm4, %v17974_v0  ;;  %1605 = vrot.lane.b32.xlu0 %v10891_v38, %s9811_s20 }
 0x1f6   : > { %600 = vst.msk [vmem:[#allocation4 + $0x120] sm:$0xff] %vm562_vm4, %v17974_v0  ;;  %601 = vst.msk [vmem:[#allocation4 + $0x128] sm:$0xff] %vm562_vm4, %v17974_v0  ;;  %v11381_v20 = vpop.permute.xlu1 %1455 }
 0x1f7   : > { %603 = vst.msk [vmem:[#allocation4 + $0x138] sm:$0xff] %vm562_vm4, %v17974_v0  ;;  %604 = vst.msk [vmem:[#allocation4 + $0x140] sm:$0xff] %vm562_vm4, %v17974_v0  ;;  %v11386_v28 = vpop.permute.xlu0 %1461 }
 0x1f8   : > { %606 = vst.msk [vmem:[#allocation4 + $0x150] sm:$0xff] %vm562_vm4, %v17974_v0  ;;  %607 = vst.msk [vmem:[#allocation4 + $0x158] sm:$0xff] %vm562_vm4, %v17974_v0  ;;  %1603 = vrot.lane.b32.xlu1 %v17876_v31, %s9811_s20 }
 0x1f9   : > { %609 = vst.msk [vmem:[#allocation4 + $0x168] sm:$0xff] %vm562_vm4, %v17974_v0  ;;  %610 = vst.msk [vmem:[#allocation4 + $0x170] sm:$0xff] %vm562_vm4, %v17974_v0  ;;  %1609 = vrot.lane.b32.xlu0 %v965_v50, %s9811_s20 }
 0x1fa   : > { %612 = vst.msk [vmem:[#allocation4 + $0x180] sm:$0xff] %vm562_vm4, %v17974_v0  ;;  %613 = vst.msk [vmem:[#allocation4 + $0x188] sm:$0xff] %vm562_vm4, %v17974_v0  ;;  %v11392_v21 = vpop.permute.xlu1 %1459 }
 0x1fb   : > { %615 = vst.msk [vmem:[#allocation4 + $0x198] sm:$0xff] %vm562_vm4, %v17974_v0  ;;  %616 = vst.msk [vmem:[#allocation4 + $0x1a0] sm:$0xff] %vm562_vm4, %v17974_v0  ;;  %v11394_v38 = vpop.permute.xlu0 %1465 }
 0x1fc   : > { %17976 = vst [vmem:[#allocation33_spill] sm:$0xff] %v11368_v2  ;;  %v11383_v2 = vld [vmem:[#allocation2 + $0x1a8] sm:$0x3]  ;;  %1607 = vrot.lane.b32.xlu1 %v10907_v30, %s9811_s20  ;;  %569 = vst.msk [vmem:[#allocation4 + $0x28] sm:$0x3] %vm565_vm6, %v17974_v0 }
 0x1fd   : > { %v966_v56 = vrot.slane %v11383_v2, 1  ;;  %1645 = vrot.lane.b32.xlu0 %v10443_v9, %s17693_s17  ;;  %566 = vst.msk [vmem:[#allocation4 + $0x10] sm:$0x3] %vm565_vm6, %v17974_v0  ;;  %572 = vst.msk [vmem:[#allocation4 + $0x40] sm:$0x3] %vm565_vm6, %v17974_v0 }
 0x1fe   : > { %v11401_v48 = vpop.permute.xlu1 %1463  ;;  %575 = vst.msk [vmem:[#allocation4 + $0x58] sm:$0x3] %vm565_vm6, %v17974_v0  ;;  %578 = vst.msk [vmem:[#allocation4 + $0x70] sm:$0x3] %vm565_vm6, %v17974_v0 }
 0x1ff   : > { %v967_v45 = vsel %vm785_vm2, %v964_v11, %v966_v56  ;;  %v11403_v31 = vpop.permute.xlu0 %1469  ;;  %581 = vst.msk [vmem:[#allocation4 + $0x88] sm:$0x3] %vm565_vm6, %v17974_v0  ;;  %584 = vst.msk [vmem:[#allocation4 + $0xa0] sm:$0x3] %vm565_vm6, %v17974_v0 }
 0x200   : > { %1611 = vrot.lane.b32.xlu1 %v967_v45, %s9811_s20  ;;  %v17978_v45 = vld [vmem:[#allocation41_spill] sm:$0xff]  ;;  %587 = vst.msk [vmem:[#allocation4 + $0xb8] sm:$0x3] %vm565_vm6, %v17974_v0  ;;  %590 = vst.msk [vmem:[#allocation4 + $0xd0] sm:$0x3] %vm565_vm6, %v17974_v0  ;;  %s17698_s20 = sand.u32 1, %s9794_s22  }
 0x201   : > { %1649 = vrot.lane.b32.xlu0 %v10455_v37, %s17693_s17  ;;  %593 = vst.msk [vmem:[#allocation4 + $0xe8] sm:$0x3] %vm565_vm6, %v17974_v0  ;;  %596 = vst.msk [vmem:[#allocation4 + $0x100] sm:$0x3] %vm565_vm6, %v17974_v0 }
 0x202   : > { %v11408_v55 = vpop.permute.xlu1 %1467  ;;  %599 = vst.msk [vmem:[#allocation4 + $0x118] sm:$0x3] %vm565_vm6, %v17974_v0  ;;  %602 = vst.msk [vmem:[#allocation4 + $0x130] sm:$0x3] %vm565_vm6, %v17974_v0 }
 0x203   : > { %v11410_v50 = vpop.permute.xlu0 %1473  ;;  %605 = vst.msk [vmem:[#allocation4 + $0x148] sm:$0x3] %vm565_vm6, %v17974_v0  ;;  %608 = vst.msk [vmem:[#allocation4 + $0x160] sm:$0x3] %vm565_vm6, %v17974_v0 }
 0x204   : > { %1647 = vrot.lane.b32.xlu1 %v17883_v43, %s17693_s17  ;;  %v17980_v43 = vld [vmem:[#allocation43_spill] sm:$0xff]  ;;  %611 = vst.msk [vmem:[#allocation4 + $0x178] sm:$0x3] %vm565_vm6, %v17974_v0  ;;  %614 = vst.msk [vmem:[#allocation4 + $0x190] sm:$0x3] %vm565_vm6, %v17974_v0 }
 0x205   : > { %1653 = vrot.lane.b32.xlu0 %v10468_v42, %s17693_s17  ;;  %617 = vst.msk [vmem:[#allocation4 + $0x1a8] sm:$0x3] %vm565_vm6, %v17974_v0  ;;  %vm9821_vm6 = vmmov 1  }
 0x206   : > { %v11416_v9 = vpop.permute.xlu1 %1471 }
 0x207   : > { %v11418_v30 = vpop.permute.xlu0 %1477 }
 0x208   : > { %1651 = vrot.lane.b32.xlu1 %v17886_v33, %s17693_s17  ;;  %v17983_v33 = vld [vmem:[#allocation45_spill] sm:$0xff] }
 0x209   : > { %1657 = vrot.lane.b32.xlu0 %v17978_v45, %s17693_s17 }
 0x20a   : > { %v11424_v37 = vpop.permute.xlu1 %1475 }
 0x20b   : > { %v11426_v11 = vpop.permute.xlu0 %1481 }
 0x20c   : > { %17979 = vst [vmem:[#allocation34_spill] sm:$0xff] %v11426_v11  ;;  %1655 = vrot.lane.b32.xlu1 %v17889_v26, %s17693_s17  ;;  %v17986_v26 = vld [vmem:[#allocation47_spill] sm:$0xff]  ;;  %v9525_v11 = vld [vmem:[#allocation2 + $0x18] sm:$0xff] }
 0x20d   : > { %1661 = vrot.lane.b32.xlu0 %v17980_v43, %s17693_s17 }
 0x20e   : > { %v11432_v42 = vpop.permute.xlu1 %1479 }
 0x20f   : > { %17981 = vst [vmem:[#allocation35_spill] sm:$0xff] %v11432_v42  ;;  %v11434_v56 = vpop.permute.xlu0 %1485  ;;  %v18032_v42 = vld [vmem:[#allocation93_spill] sm:$0xff] }
 0x210   : > { %17982 = vst [vmem:[#allocation36_spill] sm:$0xff] %v11434_v56  ;;  %1659 = vrot.lane.b32.xlu1 %v17892_v17, %s17693_s17  ;;  %v17989_v56 = vld [vmem:[#allocation48_spill] sm:$0xff]  ;;  %v17990_v17 = vld [vmem:[#allocation49_spill] sm:$0xff] }
 0x211   : > { %1665 = vrot.lane.b32.xlu0 %v17983_v33, %s17693_s17 }
 0x212   : > { %v11440_v45 = vpop.permute.xlu1 %1483 }
 0x213   : > { %17984 = vst [vmem:[#allocation37_spill] sm:$0xff] %v11440_v45  ;;  %v11442_v47 = vpop.permute.xlu0 %1489 }
 0x214   : > { %17985 = vst [vmem:[#allocation41_spill] sm:$0xff] %v11442_v47  ;;  %1663 = vrot.lane.b32.xlu1 %v17895_v23, %s17693_s17  ;;  %v17993_v47 = vld [vmem:[#allocation50_spill] sm:$0xff]  ;;  %v17994_v23 = vld [vmem:[#allocation51_spill] sm:$0xff] }
 0x215   : > { %1669 = vrot.lane.b32.xlu0 %v17986_v26, %s17693_s17 }
 0x216   : > { %v11448_v43 = vpop.permute.xlu1 %1487 }
 0x217   : > { %17987 = vst [vmem:[#allocation43_spill] sm:$0xff] %v11448_v43  ;;  %v11450_v41 = vpop.permute.xlu0 %1493 }
 0x218   : > { %17988 = vst [vmem:[#allocation45_spill] sm:$0xff] %v11450_v41  ;;  %1667 = vrot.lane.b32.xlu1 %v17989_v56, %s17693_s17 }
 0x219   : > { %1673 = vrot.lane.b32.xlu0 %v17990_v17, %s17693_s17 }
 0x21a   : > { %v11456_v33 = vpop.permute.xlu1 %1491 }
 0x21b   : > { %17991 = vst [vmem:[#allocation47_spill] sm:$0xff] %v11456_v33  ;;  %v11458_v45 = vpop.permute.xlu0 %1497 }
 0x21c   : > { %17992 = vst [vmem:[#allocation48_spill] sm:$0xff] %v11458_v45  ;;  %1671 = vrot.lane.b32.xlu1 %v17993_v47, %s17693_s17 }
 0x21d   : > { %1677 = vrot.lane.b32.xlu0 %v17994_v23, %s17693_s17 }
 0x21e   : > { %v11464_v26 = vpop.permute.xlu1 %1495 }
 0x21f   : > { %17995 = vst [vmem:[#allocation49_spill] sm:$0xff] %v11464_v26  ;;  %v11466_v43 = vpop.permute.xlu0 %1501 }
 0x220   : > { %17996 = vst [vmem:[#allocation50_spill] sm:$0xff] %v11466_v43  ;;  %1675 = vrot.lane.b32.xlu1 %v17904_v61, %s17693_s17  ;;  %v18001_v43 = vld [vmem:[#allocation56_spill] sm:$0xff] }
 0x221   : > { %1681 = vrot.lane.b32.xlu0 %v17905_v39, %s17693_s17 }
 0x222   : > { %v11472_v56 = vpop.permute.xlu1 %1499 }
 0x223   : > { %17997 = vst [vmem:[#allocation51_spill] sm:$0xff] %v11472_v56  ;;  %v11474_v17 = vpop.permute.xlu0 %1505 }
 0x224   : > { %17998 = vst [vmem:[#allocation163_spill] sm:$0xff] %v11474_v17  ;;  %1679 = vrot.lane.b32.xlu1 %v17908_v51, %s17693_s17  ;;  %v18004_v51 = vld [vmem:[#allocation58_spill] sm:$0xff] }
 0x225   : > { %1685 = vrot.lane.b32.xlu0 %v17909_v7, %s17693_s17 }
 0x226   : > { %v11480_v47 = vpop.permute.xlu1 %1503 }
 0x227   : > { %17999 = vst [vmem:[#allocation164_spill] sm:$0xff] %v11480_v47  ;;  %v11482_v23 = vpop.permute.xlu0 %1509 }
 0x228   : > { %18000 = vst [vmem:[#allocation165_spill] sm:$0xff] %v11482_v23  ;;  %1683 = vrot.lane.b32.xlu1 %v18001_v43, %s17693_s17  ;;  %v18006_v23 = vld [vmem:[#allocation60_spill] sm:$0xff]  ;;  %v968_v43 = vrot.slane %v11162_v15, 2 }
 0x229   : > { %1689 = vrot.lane.b32.xlu0 %v10585_v13, %s17693_s17 }
 0x22a   : > { %v11488_v39 = vpop.permute.xlu1 %1507 }
 0x22b   : > { %18002 = vst [vmem:[#allocation56_spill] sm:$0xff] %v11488_v39  ;;  %v11490_v61 = vpop.permute.xlu0 %1513 }
 0x22c   : > { %18003 = vst [vmem:[#allocation166_spill] sm:$0xff] %v11490_v61  ;;  %1687 = vrot.lane.b32.xlu1 %v10594_v6, %s17693_s17  ;;  %v969_v61 = vrot.slane %v11176_v10, 2  ;;  %v971_v10 = vrot.slane %v11383_v2, 2 }
 0x22d   : > { %1693 = vrot.lane.b32.xlu0 %v18004_v51, %s17693_s17 }
 0x22e   : > { %v11496_v7 = vpop.permute.xlu1 %1511 }
 0x22f   : > { %18005 = vst [vmem:[#allocation58_spill] sm:$0xff] %v11496_v7  ;;  %v11498_v17 = vpop.permute.xlu0 %1549 }
 0x230   : > { %1691 = vrot.lane.b32.xlu1 %v18006_v23, %s17693_s17 }
 0x231   : > { %1697 = vrot.lane.b32.xlu0 %v10617_v25, %s17693_s17  ;;  %v970_v25 = vsel %vm866_vm3, %v968_v43, %v969_v61 }
 0x232   : > { %v11504_v13 = vpop.permute.xlu1 %1515 }
 0x233   : > { %18007 = vst [vmem:[#allocation60_spill] sm:$0xff] %v11504_v13  ;;  %v11508_v6 = vpop.permute.xlu0 %1553 }
 0x234   : > { %1695 = vrot.lane.b32.xlu1 %v10624_v60, %s17693_s17 }
 0x235   : > { %1701 = vrot.lane.b32.xlu0 %v11028_v36, %s17693_s17  ;;  %v972_v36 = vsel %vm866_vm3, %v969_v61, %v971_v10 }
 0x236   : > { %v11550_v60 = vpop.permute.xlu1 %1551 }
 0x237   : > { %v11553_v15 = vpop.permute.xlu0 %1557 }
 0x238   : > { %1699 = vrot.lane.b32.xlu1 %v10636_v19, %s17693_s17 }
 0x239   : > { %1705 = vrot.lane.b32.xlu0 %v970_v25, %s17693_s17 }
 0x23a   : > { %v11559_v23 = vpop.permute.xlu1 %1555 }
 0x23b   : > { %v11561_v51 = vpop.permute.xlu0 %1561 }
 0x23c   : > { %1703 = vrot.lane.b32.xlu1 %v11044_v24, %s17693_s17 }
 0x23e   : > { %v11566_v0 = vpop.permute.xlu1 %1559 }
 0x23f   : > { %v11568_v43 = vpop.permute.xlu0 %1565 }
 0x240   : > { %1707 = vrot.lane.b32.xlu1 %v972_v36, %s17693_s17 }
 0x242   : > { %v11571_v19 = vpop.permute.xlu1 %1563 }
 0x243   : > { %v11573_v2 = vpop.permute.xlu0 %1569 }
 0x246   : > { %v11575_v25 = vpop.permute.xlu1 %1567 }
 0x247   : > { %v11577_v13 = vpop.permute.xlu0 %1573 }
 0x24a   : > { %v11579_v7 = vpop.permute.xlu1 %1571 }
 0x24b   : > { %v11581_v39 = vpop.permute.xlu0 %1577 }
 0x24c   : > { %18008 = vst [vmem:[#allocation167_spill] sm:$0xff] %v11581_v39 }
 0x24e   : > { %v11583_v24 = vpop.permute.xlu1 %1575 }
 0x24f   : > { %18009 = vst [vmem:[#allocation168_spill] sm:$0xff] %v11583_v24  ;;  %v11585_v61 = vpop.permute.xlu0 %1581 }
 0x250   : > { %18010 = vst [vmem:[#allocation169_spill] sm:$0xff] %v11585_v61 }
 0x252   : > { %v11587_v10 = vpop.permute.xlu1 %1579 }
 0x253   : > { %18011 = vst [vmem:[#allocation170_spill] sm:$0xff] %v11587_v10  ;;  %v11589_v47 = vpop.permute.xlu0 %1585  ;;  %v18028_v10 = vld [vmem:[#allocation140_spill] sm:$0xff] }
 0x254   : > { %18012 = vst [vmem:[#allocation171_spill] sm:$0xff] %v11589_v47 }
 0x256   : > { %v11591_v36 = vpop.permute.xlu1 %1583 }
 0x257   : > { %18013 = vst [vmem:[#allocation172_spill] sm:$0xff] %v11591_v36  ;;  %v11593_v56 = vpop.permute.xlu0 %1589  ;;  %v9523_v36 = vld [vmem:[#allocation2] sm:$0xff] }
 0x258   : > { %18014 = vst [vmem:[#allocation173_spill] sm:$0xff] %v11593_v56  ;;  %v18023_v56 = vld [vmem:[#allocation57_spill] sm:$0xff] }
 0x25a   : > { %v11595_v45 = vpop.permute.xlu1 %1587 }
 0x25b   : > { %18015 = vst [vmem:[#allocation174_spill] sm:$0xff] %v11595_v45  ;;  %v11597_v26 = vpop.permute.xlu0 %1593  ;;  %v1741_v45 = vsel %vm450_vm0, %v9523_v36, %v18023_v56 }
 0x25c   : > { %18016 = vst [vmem:[#allocation175_spill] sm:$0xff] %v11597_v26 }
 0x25e   : > { %v11599_v41 = vpop.permute.xlu1 %1591 }
 0x25f   : > { %18017 = vst [vmem:[#allocation176_spill] sm:$0xff] %v11599_v41  ;;  %v11601_v33 = vpop.permute.xlu0 %1597  ;;  %v18025_v41 = vld [vmem:[#allocation90_spill] sm:$0xff] }
 0x260   : > { %18018 = vst [vmem:[#allocation177_spill] sm:$0xff] %v11601_v33  ;;  %v1774_v33 = vsel %vm1773_vm7, %v1741_v45, %v18025_v41  ;;  %v9524_v41 = vld [vmem:[#allocation2 + $0x8] sm:$0xff] }
 0x261   : > { %v18030_v45 = vld [vmem:[#allocation59_spill] sm:$0xff] }
 0x262   : > { %v11603_v39 = vpop.permute.xlu1 %1595 }
 0x263   : > { %18019 = vst [vmem:[#allocation178_spill] sm:$0xff] %v11603_v39  ;;  %v11605_v24 = vpop.permute.xlu0 %1601  ;;  %v18026_v39 = vld [vmem:[#allocation118_spill] sm:$0xff] }
 0x264   : > { %18020 = vst [vmem:[#allocation179_spill] sm:$0xff] %v11605_v24  ;;  %v1807_v24 = vsel %vm1806_vm8, %v1774_v33, %v18026_v39  ;;  %v1742_v33 = vsel %vm450_vm0, %v9524_v41, %v18030_v45  ;;  %v9526_v45 = vld [vmem:[#allocation2 + $0x20] sm:$0xff] }
 0x266   : > { %v11607_v61 = vpop.permute.xlu1 %1599 }
 0x267   : > { %18021 = vst [vmem:[#allocation180_spill] sm:$0xff] %v11607_v61  ;;  %v11609_v47 = vpop.permute.xlu0 %1605 }
 0x268   : > { %18022 = vst [vmem:[#allocation181_spill] sm:$0xff] %v11609_v47  ;;  %v1840_v47 = vsel %vm1839_vm9, %v1807_v24, %v18028_v10  ;;  %v18031_v24 = vld [vmem:[#allocation61_spill] sm:$0xff] }
 0x269   : > { %v1873_v56 = vsel %vm1872_vm10, %v1840_v47, %v11146_v54  ;;  %v1743_v10 = vsel %vm450_vm0, %v9525_v11, %v18031_v24  ;;  %v1775_v54 = vsel %vm1773_vm7, %v1742_v33, %v18032_v42  ;;  %v18036_v42 = vld [vmem:[#allocation63_spill] sm:$0xff]  ;;  %v18037_v33 = vld [vmem:[#allocation142_spill] sm:$0xff] }
 0x26a   : > { %v11613_v26 = vpop.permute.xlu1 %1603 }
 0x26b   : > { %18024 = vst [vmem:[#allocation57_spill] sm:$0xff] %v11613_v26  ;;  %v11619_v61 = vpop.permute.xlu0 %1609  ;;  %v1906_v26 = vsel %vm1905_vm11, %v1873_v56, %v11290_v49  ;;  %v18034_v56 = vld [vmem:[#allocation121_spill] sm:$0xff] }
 0x26c   : > { %18027 = vst [vmem:[#allocation90_spill] sm:$0xff] %v11619_v61  ;;  %v1939_v39 = vsel %vm1938_vm12, %v1906_v26, %v11498_v17  ;;  %v1808_v29 = vsel %vm1806_vm8, %v1775_v54, %v18034_v56  ;;  %v18035_v26 = vld [vmem:[#allocation120_spill] sm:$0xff]  ;;  %v18038_v54 = vld [vmem:[#allocation62_spill] sm:$0xff]  ;;  %v18039_v56 = vld [vmem:[#allocation95_spill] sm:$0xff] }
 0x26d   : > { %v1841_v11 = vsel %vm1839_vm9, %v1808_v29, %v11025_v59 }
 0x26e   : > { %v11625_v36 = vpop.permute.xlu1 %1607 }
 0x26f   : > { %18029 = vst [vmem:[#allocation118_spill] sm:$0xff] %v11625_v36  ;;  %v1646_v61 = vpop.permute.xlu0 %1645  ;;  %v18033_v36 = vld [vmem:[#allocation92_spill] sm:$0xff] }
 0x270   : > { %v1971_v47 = vsel %vm562_vm4, %v1939_v39, %v1646_v61  ;;  %v1776_v49 = vsel %vm1773_vm7, %v1743_v10, %v18033_v36  ;;  %v1744_v61 = vsel %vm450_vm0, %v9526_v45, %v18036_v42  ;;  %v1874_v39 = vsel %vm1872_vm10, %v1841_v11, %v11160_v44  ;;  %v9527_v10 = vld [vmem:[#allocation2 + $0x30] sm:$0xff]  ;;  %v18041_v45 = vld [vmem:[#allocation123_spill] sm:$0xff] }
 0x271   : > { %8116 = vmatprep.mubr.msk.f32.mxu0 %vm2015_vm13, %v1971_v47  ;;  %v1809_v17 = vsel %vm1806_vm8, %v1776_v49, %v18035_v26  ;;  %v1745_v47 = vsel %vm450_vm0, %v9527_v10, %v18038_v54  ;;  %v1777_v49 = vsel %vm1773_vm7, %v1744_v61, %v18039_v56  ;;  %v1907_v29 = vsel %vm1905_vm11, %v1874_v39, %v11381_v20  ;;  %v18040_v26 = vld [vmem:[#allocation94_spill] sm:$0xff]  ;;  %v9528_v54 = vld [vmem:[#allocation2 + $0x38] sm:$0xff] }
 0x272   : > { %v11643_v41 = vpop.permute.xlu1 %1611  ;;  %v1842_v36 = vsel %vm1839_vm9, %v1809_v17, %v18037_v33  ;;  %v1778_v17 = vsel %vm1773_vm7, %v1745_v47, %v18040_v26  ;;  %v1810_v44 = vsel %vm1806_vm8, %v1777_v49, %v18041_v45  ;;  %v1940_v42 = vsel %vm1938_vm12, %v1907_v29, %v11550_v60  ;;  %v18042_v61 = vld [vmem:[#allocation122_spill] sm:$0xff]  ;;  %v18044_v47 = vld [vmem:[#allocation65_spill] sm:$0xff]  ;;  %v9529_v26 = vld [vmem:[#allocation2 + $0x48] sm:$0xff] }
 0x273   : > { %v1650_v24 = vpop.permute.xlu0 %1649  ;;  %v1875_v59 = vsel %vm1872_vm10, %v1842_v36, %v11154_v18  ;;  %v1811_v10 = vsel %vm1806_vm8, %v1778_v17, %v18042_v61  ;;  %v18043_v18 = vld [vmem:[#allocation144_spill] sm:$0xff]  ;;  %v1746_v56 = vsel %vm450_vm0, %v9528_v54, %v18044_v47  ;;  %v18047_v45 = vld [vmem:[#allocation97_spill] sm:$0xff] }
 0x274   : > { %v1908_v11 = vsel %vm1905_vm11, %v1875_v59, %v11372_v1  ;;  %v1843_v36 = vsel %vm1839_vm9, %v1810_v44, %v18043_v18  ;;  %v18045_v1 = vld [vmem:[#allocation143_spill] sm:$0xff]  ;;  %v18046_v17 = vld [vmem:[#allocation64_spill] sm:$0xff]  ;;  %v1779_v44 = vsel %vm1773_vm7, %v1746_v56, %v18047_v45 }
 0x275   : > { %v1941_v20 = vsel %vm1938_vm12, %v1908_v11, %v11508_v6  ;;  %v1844_v49 = vsel %vm1839_vm9, %v1811_v10, %v18045_v1  ;;  %v1876_v60 = vsel %vm1872_vm10, %v1843_v36, %v11170_v22  ;;  %v1747_v6 = vsel %vm450_vm0, %v9529_v26, %v18046_v17  ;;  %v18048_v22 = vld [vmem:[#allocation96_spill] sm:$0xff]  ;;  %v18051_v56 = vld [vmem:[#allocation67_spill] sm:$0xff]  ;;  %v18053_v26 = vld [vmem:[#allocation66_spill] sm:$0xff] }
 0x276   : > { %v1648_v33 = vpop.permute.xlu1 %1647  ;;  %v1973_v59 = vsel %vm562_vm4, %v1941_v20, %v1650_v24  ;;  %v1877_v11 = vsel %vm1872_vm10, %v1844_v49, %v11164_v16  ;;  %v1780_v24 = vsel %vm1773_vm7, %v1747_v6, %v18048_v22  ;;  %v18050_v20 = vld [vmem:[#allocation124_spill] sm:$0xff]  ;;  %v18054_v17 = vld [vmem:[#allocation99_spill] sm:$0xff] }
 0x277   : > { %v1972_v39 = vsel %vm562_vm4, %v1940_v42, %v1648_v33  ;;  %v1654_v29 = vpop.permute.xlu0 %1653  ;;  %v1909_v42 = vsel %vm1905_vm11, %v1876_v60, %v11392_v21  ;;  %v18049_v33 = vld [vmem:[#allocation38_spill] sm:$0xff]  ;;  %v1910_v10 = vsel %vm1905_vm11, %v1877_v11, %v11386_v28  ;;  %v1813_v16 = vsel %vm1806_vm8, %v1780_v24, %v18050_v20  ;;  %v9530_v47 = vld [vmem:[#allocation2 + $0x50] sm:$0xff]  ;;  %v18052_v28 = vld [vmem:[#allocation145_spill] sm:$0xff] }
 0x278   : > { %8117 = vmatmul.mubr.msk.f32.vlgmr.msra.gmra.mrb[0].mxu0 %vm2015_vm13, %v1972_v39  ;;  %v1812_v61 = vsel %vm1806_vm8, %v1779_v44, %v18049_v33  ;;  %v1942_v18 = vsel %vm1938_vm12, %v1909_v42, %v11559_v23  ;;  %v1943_v39 = vsel %vm1938_vm12, %v1910_v10, %v11553_v15  ;;  %v1748_v1 = vsel %vm450_vm0, %v9530_v47, %v18051_v56  ;;  %v18056_v11 = vld [vmem:[#allocation126_spill] sm:$0xff]  ;;  %v18058_v20 = vld [vmem:[#allocation69_spill] sm:$0xff]  ;;  %v18060_v47 = vld [vmem:[#allocation12_spill] sm:$0xff] }
 0x279   : > { %8119 = vmatprep.mubr.msk.f32.mxu0 %vm2015_vm13, %v1973_v59  ;;  %v1845_v21 = vsel %vm1839_vm9, %v1812_v61, %v11048_v8  ;;  %v1846_v49 = vsel %vm1839_vm9, %v1813_v16, %v18052_v28  ;;  %v1975_v60 = vsel %vm562_vm4, %v1943_v39, %v1654_v29  ;;  %v9531_v8 = vld [vmem:[#allocation2 + $0x60] sm:$0xff]  ;;  %v1781_v6 = vsel %vm1773_vm7, %v1748_v1, %v18054_v17  ;;  %v18057_v61 = vld [vmem:[#allocation125_spill] sm:$0xff] }
 0x27a   : > { %v1652_v36 = vpop.permute.xlu1 %1651  ;;  %v1878_v23 = vsel %vm1872_vm10, %v1845_v21, %v11180_v34  ;;  %v1749_v15 = vsel %vm450_vm0, %v9531_v8, %v18053_v26  ;;  %v1879_v45 = vsel %vm1872_vm10, %v1846_v49, %v11172_v63  ;;  %v18055_v34 = vld [vmem:[#allocation98_spill] sm:$0xff]  ;;  %v1814_v42 = vsel %vm1806_vm8, %v1781_v6, %v18056_v11  ;;  %v18062_v49 = vld [vmem:[#allocation128_spill] sm:$0xff]  ;;  %v18063_v26 = vld [vmem:[#allocation127_spill] sm:$0xff] }
 0x27b   : > { %v1974_v54 = vsel %vm562_vm4, %v1942_v18, %v1652_v36  ;;  %v1658_v59 = vpop.permute.xlu0 %1657  ;;  %v1911_v44 = vsel %vm1905_vm11, %v1878_v23, %v11401_v48  ;;  %v1782_v29 = vsel %vm1773_vm7, %v1749_v15, %v18055_v34  ;;  %v1912_v22 = vsel %vm1905_vm11, %v1879_v45, %v11394_v38  ;;  %v9532_v36 = vld [vmem:[#allocation2 + $0x68] sm:$0xff]  ;;  %v9534_v6 = vld [vmem:[#allocation2 + $0x80] sm:$0xff] }
 0x27c   : > { %8120 = vmatmul.mubr.msk.f32.gmra.mrb[2].mxu0 %vm2015_vm13, %v1974_v54  ;;  %v1944_v24 = vsel %vm1938_vm12, %v1911_v44, %v11566_v0  ;;  %v1815_v63 = vsel %vm1806_vm8, %v1782_v29, %v18057_v61  ;;  %v1847_v48 = vsel %vm1839_vm9, %v1814_v42, %v11056_v52  ;;  %v1945_v10 = vsel %vm1938_vm12, %v1912_v22, %v11561_v51  ;;  %v9533_v52 = vld [vmem:[#allocation2 + $0x78] sm:$0xff]  ;;  %v18059_v54 = vld [vmem:[#allocation68_spill] sm:$0xff]  ;;  %v18064_v45 = vld [vmem:[#allocation71_spill] sm:$0xff] }
 0x27d   : > { %8122 = vmatprep.mubr.msk.f32.mxu0 %vm2015_vm13, %v1975_v60  ;;  %v1750_v16 = vsel %vm450_vm0, %v9532_v36, %v18058_v20  ;;  %v1848_v38 = vsel %vm1839_vm9, %v1815_v63, %v11050_v12  ;;  %v1880_v0 = vsel %vm1872_vm10, %v1847_v48, %v11188_v27  ;;  %v1977_v21 = vsel %vm562_vm4, %v1945_v10, %v1658_v59  ;;  %v18061_v27 = vld [vmem:[#allocation100_spill] sm:$0xff]  ;;  %v18065_v11 = vld [vmem:[#allocation70_spill] sm:$0xff]  ;;  %v18066_v42 = vld [vmem:[#allocation13_spill] sm:$0xff] }
 0x27e   : > { %v1656_v33 = vpop.permute.xlu1 %1655  ;;  %v1751_v51 = vsel %vm450_vm0, %v9533_v52, %v18059_v54  ;;  %v1783_v56 = vsel %vm1773_vm7, %v1750_v16, %v18060_v47  ;;  %v1881_v1 = vsel %vm1872_vm10, %v1848_v38, %v11182_v5  ;;  %v1913_v12 = vsel %vm1905_vm11, %v1880_v0, %v11408_v55  ;;  %v18068_v61 = vld [vmem:[#allocation39_spill] sm:$0xff]  ;;  %v18069_v36 = vld [vmem:[#allocation129_spill] sm:$0xff]  ;;  %v18071_v54 = vld [vmem:[#allocation72_spill] sm:$0xff] }
 0x27f   : > { %v1976_v18 = vsel %vm562_vm4, %v1944_v24, %v1656_v33  ;;  %v1662_v39 = vpop.permute.xlu0 %1661  ;;  %v1784_v28 = vsel %vm1773_vm7, %v1751_v51, %v18061_v27  ;;  %v1816_v23 = vsel %vm1806_vm8, %v1783_v56, %v18062_v49  ;;  %v1914_v60 = vsel %vm1905_vm11, %v1881_v1, %v11403_v31  ;;  %v9536_v38 = vld [vmem:[#allocation2 + $0x98] sm:$0xff]  ;;  %v18072_v51 = vld [vmem:[#allocation103_spill] sm:$0xff] }
 0x280   : > { %8123 = vmatmul.mubr.msk.f32.gmra.mrb[4].mxu0 %vm2015_vm13, %v1976_v18  ;;  %v1946_v59 = vsel %vm1938_vm12, %v1913_v12, %v11571_v19  ;;  %v1817_v5 = vsel %vm1806_vm8, %v1784_v28, %v18063_v26  ;;  %v1849_v55 = vsel %vm1839_vm9, %v1816_v23, %v11064_v32  ;;  %v1947_v15 = vsel %vm1938_vm12, %v1914_v60, %v11568_v43  ;;  %v9535_v32 = vld [vmem:[#allocation2 + $0x90] sm:$0xff]  ;;  %v18070_v0 = vld [vmem:[#allocation73_spill] sm:$0xff]  ;;  %v18075_v60 = vld [vmem:[#allocation130_spill] sm:$0xff] }
 0x281   : > { %8125 = vmatprep.mubr.msk.f32.mxu0 %vm2015_vm13, %v1977_v21  ;;  %v1752_v44 = vsel %vm450_vm0, %v9534_v6, %v18064_v45  ;;  %v1850_v31 = vsel %vm1839_vm9, %v1817_v5, %v11058_v62  ;;  %v1882_v19 = vsel %vm1872_vm10, %v1849_v55, %v11196_v46  ;;  %v1979_v34 = vsel %vm562_vm4, %v1947_v15, %v1662_v39  ;;  %v18067_v46 = vld [vmem:[#allocation101_spill] sm:$0xff]  ;;  %v18074_v12 = vld [vmem:[#allocation40_spill] sm:$0xff]  ;;  %v18076_v5 = vld [vmem:[#allocation75_spill] sm:$0xff] }
 0x282   : > { %v1660_v8 = vpop.permute.xlu1 %1659  ;;  %v1753_v43 = vsel %vm450_vm0, %v9535_v32, %v18065_v11  ;;  %v1785_v22 = vsel %vm1773_vm7, %v1752_v44, %v18066_v42  ;;  %v1883_v24 = vsel %vm1872_vm10, %v1850_v31, %v11190_v4  ;;  %v1915_v62 = vsel %vm1905_vm11, %v1882_v19, %v11416_v9  ;;  %v9538_v26 = vld [vmem:[#allocation2 + $0xb0] sm:$0xff]  ;;  %v18077_v6 = vld [vmem:[#allocation74_spill] sm:$0xff]  ;;  %v18078_v45 = vld [vmem:[#allocation105_spill] sm:$0xff] }
 0x283   : > { %v1978_v17 = vsel %vm562_vm4, %v1946_v59, %v1660_v8  ;;  %v1666_v29 = vpop.permute.xlu0 %1665  ;;  %v1786_v33 = vsel %vm1773_vm7, %v1753_v43, %v18067_v46  ;;  %v1818_v63 = vsel %vm1806_vm8, %v1785_v22, %v18068_v61  ;;  %v1916_v48 = vsel %vm1905_vm11, %v1883_v24, %v11410_v50  ;;  %v18079_v31 = vld [vmem:[#allocation14_spill] sm:$0xff]  ;;  %v18084_v22 = vld [vmem:[#allocation168_spill] sm:$0xff]  ;;  %v18085_v46 = vld [vmem:[#allocation131_spill] sm:$0xff] }
 0x284   : > { %8126 = vmatmul.mubr.msk.f32.gmra.mrb[6].mxu0 %vm2015_vm13, %v1978_v17  ;;  %v1948_v10 = vsel %vm1938_vm12, %v1915_v62, %v11575_v25  ;;  %v1819_v4 = vsel %vm1806_vm8, %v1786_v33, %v18069_v36  ;;  %v1851_v9 = vsel %vm1839_vm9, %v1818_v63, %v11072_v40  ;;  %v1949_v20 = vsel %vm1938_vm12, %v1916_v48, %v11573_v2  ;;  %v9537_v40 = vld [vmem:[#allocation2 + $0xa8] sm:$0xff]  ;;  %v18082_v32 = vld [vmem:[#allocation42_spill] sm:$0xff] }
 0x285   : > { %8128 = vmatprep.mubr.msk.f32.mxu0 %vm2015_vm13, %v1979_v34  ;;  %v1754_v21 = vsel %vm450_vm0, %v9536_v38, %v18070_v0  ;;  %v1852_v50 = vsel %vm1839_vm9, %v1819_v4, %v11066_v14  ;;  %v1884_v25 = vsel %vm1872_vm10, %v1851_v9, %v11204_v53  ;;  %v1981_v39 = vsel %vm562_vm4, %v1949_v20, %v1666_v29  ;;  %v18073_v53 = vld [vmem:[#allocation102_spill] sm:$0xff]  ;;  %v18080_v34 = vld [vmem:[#allocation35_spill] sm:$0xff]  ;;  %v18088_v4 = vld [vmem:[#allocation77_spill] sm:$0xff] }
 0x286   : > { %v1664_v18 = vpop.permute.xlu1 %1663  ;;  %v1755_v2 = vsel %vm450_vm0, %v9537_v40, %v18071_v54  ;;  %v1787_v47 = vsel %vm1773_vm7, %v1754_v21, %v18072_v51  ;;  %v1885_v56 = vsel %vm1872_vm10, %v1852_v50, %v11198_v3  ;;  %v1917_v14 = vsel %vm1905_vm11, %v1884_v25, %v11424_v37  ;;  %v18083_v43 = vld [vmem:[#allocation34_spill] sm:$0xff]  ;;  %v18086_v61 = vld [vmem:[#allocation147_spill] sm:$0xff]  ;;  %v18090_v38 = vld [vmem:[#allocation16_spill] sm:$0xff] }
 0x287   : > { %v1980_v16 = vsel %vm562_vm4, %v1948_v10, %v1664_v18  ;;  %v1670_v52 = vpop.permute.xlu0 %1669  ;;  %v1788_v1 = vsel %vm1773_vm7, %v1755_v2, %v18073_v53  ;;  %v1820_v27 = vsel %vm1806_vm8, %v1787_v47, %v18074_v12  ;;  %v1918_v28 = vsel %vm1905_vm11, %v1885_v56, %v11418_v30  ;;  %v18087_v48 = vld [vmem:[#allocation167_spill] sm:$0xff]  ;;  %v18089_v20 = vld [vmem:[#allocation146_spill] sm:$0xff]  ;;  %v9541_v25 = vld [vmem:[#allocation2 + $0xd8] sm:$0xff] }
 0x288   : > { %8129 = vmatmul.mubr.msk.f32.gmra.mrb[8].mxu0 %vm2015_vm13, %v1980_v16  ;;  %v1950_v49 = vsel %vm1938_vm12, %v1917_v14, %v11579_v7  ;;  %v1821_v3 = vsel %vm1806_vm8, %v1788_v1, %v18075_v60  ;;  %v1853_v37 = vsel %vm1839_vm9, %v1820_v27, %v11080_v35  ;;  %v1951_v59 = vsel %vm1938_vm12, %v1918_v28, %v11577_v13  ;;  %v9539_v35 = vld [vmem:[#allocation2 + $0xc0] sm:$0xff]  ;;  %v9540_v36 = vld [vmem:[#allocation2 + $0xc8] sm:$0xff]  ;;  %v18094_v47 = vld [vmem:[#allocation37_spill] sm:$0xff] }
 0x289   : > { %8131 = vmatprep.mubr.msk.f32.mxu0 %vm2015_vm13, %v1981_v39  ;;  %v1756_v55 = vsel %vm450_vm0, %v9538_v26, %v18076_v5  ;;  %v1854_v30 = vsel %vm1839_vm9, %v1821_v3, %v11074_v58  ;;  %v1886_v7 = vsel %vm1872_vm10, %v1853_v37, %v11212_v57  ;;  %v1983_v15 = vsel %vm562_vm4, %v1951_v59, %v1670_v52  ;;  %v18081_v57 = vld [vmem:[#allocation104_spill] sm:$0xff]  ;;  %v18092_v40 = vld [vmem:[#allocation107_spill] sm:$0xff]  ;;  %v18095_v14 = vld [vmem:[#allocation106_spill] sm:$0xff] }
 0x28a   : > { %v1668_v23 = vpop.permute.xlu1 %1667  ;;  %v1757_v13 = vsel %vm450_vm0, %v9539_v35, %v18077_v6  ;;  %v1789_v44 = vsel %vm1773_vm7, %v1756_v55, %v18078_v45  ;;  %v1887_v19 = vsel %vm1872_vm10, %v1854_v30, %v18079_v31  ;;  %v1919_v58 = vsel %vm1905_vm11, %v1886_v7, %v18080_v34  ;;  %v18091_v39 = vld [vmem:[#allocation76_spill] sm:$0xff]  ;;  %v18093_v2 = vld [vmem:[#allocation15_spill] sm:$0xff]  ;;  %v18100_v59 = vld [vmem:[#allocation149_spill] sm:$0xff] }
 0x28b   : > { %v1982_v8 = vsel %vm562_vm4, %v1950_v49, %v1668_v23  ;;  %v1674_v17 = vpop.permute.xlu0 %1673  ;;  %v1790_v29 = vsel %vm1773_vm7, %v1757_v13, %v18081_v57  ;;  %v1822_v11 = vsel %vm1806_vm8, %v1789_v44, %v18082_v32  ;;  %v1920_v42 = vsel %vm1905_vm11, %v1887_v19, %v18083_v43  ;;  %v18096_v1 = vld [vmem:[#allocation44_spill] sm:$0xff]  ;;  %v18098_v49 = vld [vmem:[#allocation170_spill] sm:$0xff]  ;;  %v18101_v26 = vld [vmem:[#allocation169_spill] sm:$0xff] }
 0x28c   : > { %8132 = vmatmul.mubr.msk.f32.gmra.mrb[10].mxu0 %vm2015_vm13, %v1982_v8  ;;  %v1952_v24 = vsel %vm1938_vm12, %v1919_v58, %v18084_v22  ;;  %v1823_v33 = vsel %vm1806_vm8, %v1790_v29, %v18085_v46  ;;  %v1855_v63 = vsel %vm1839_vm9, %v1822_v11, %v18086_v61  ;;  %v1953_v10 = vsel %vm1938_vm12, %v1920_v42, %v18087_v48  ;;  %v18097_v27 = vld [vmem:[#allocation36_spill] sm:$0xff]  ;;  %v9542_v30 = vld [vmem:[#allocation2 + $0xe0] sm:$0xff]  ;;  %v18102_v7 = vld [vmem:[#allocation79_spill] sm:$0xff] }
 0x28d   : > { %8134 = vmatprep.mubr.msk.f32.mxu0 %vm2015_vm13, %v1983_v15  ;;  %v1758_v9 = vsel %vm450_vm0, %v9540_v36, %v18088_v4  ;;  %v1856_v16 = vsel %vm1839_vm9, %v1823_v33, %v18089_v20  ;;  %v1888_v0 = vsel %vm1872_vm10, %v1855_v63, %v18090_v38  ;;  %v1985_v21 = vsel %vm562_vm4, %v1953_v10, %v1674_v17  ;;  %v18099_v3 = vld [vmem:[#allocation132_spill] sm:$0xff]  ;;  %v18104_v6 = vld [vmem:[#allocation18_spill] sm:$0xff]  ;;  %v18106_v58 = vld [vmem:[#allocation109_spill] sm:$0xff] }
 0x28e   : > { %v1672_v62 = vpop.permute.xlu1 %1671  ;;  %v1759_v52 = vsel %vm450_vm0, %v9541_v25, %v18091_v39  ;;  %v1791_v54 = vsel %vm1773_vm7, %v1758_v9, %v18092_v40  ;;  %v1889_v51 = vsel %vm1872_vm10, %v1856_v16, %v18093_v2  ;;  %v1921_v56 = vsel %vm1905_vm11, %v1888_v0, %v18094_v47  ;;  %v18103_v17 = vld [vmem:[#allocation148_spill] sm:$0xff]  ;;  %v18105_v19 = vld [vmem:[#allocation78_spill] sm:$0xff]  ;;  %v18107_v29 = vld [vmem:[#allocation17_spill] sm:$0xff] }
 0x28f   : > { %v1984_v18 = vsel %vm562_vm4, %v1952_v24, %v1672_v62  ;;  %v1678_v50 = vpop.permute.xlu0 %1677  ;;  %v1792_v53 = vsel %vm1773_vm7, %v1759_v52, %v18095_v14  ;;  %v1824_v12 = vsel %vm1806_vm8, %v1791_v54, %v18096_v1  ;;  %v1922_v28 = vsel %vm1905_vm11, %v1889_v51, %v18097_v27  ;;  %v9543_v31 = vld [vmem:[#allocation2 + $0xf0] sm:$0xff]  ;;  %v18108_v11 = vld [vmem:[#allocation43_spill] sm:$0xff]  ;;  %v18110_v24 = vld [vmem:[#allocation46_spill] sm:$0xff] }
 0x290   : > { %8135 = vmatmul.mubr.msk.f32.gmra.mrb[12].mxu0 %vm2015_vm13, %v1984_v18  ;;  %v1954_v23 = vsel %vm1938_vm12, %v1921_v56, %v18098_v49  ;;  %v1825_v37 = vsel %vm1806_vm8, %v1792_v53, %v18099_v3  ;;  %v1857_v8 = vsel %vm1839_vm9, %v1824_v12, %v18100_v59  ;;  %v1955_v5 = vsel %vm1938_vm12, %v1922_v28, %v18101_v26  ;;  %v18109_v42 = vld [vmem:[#allocation108_spill] sm:$0xff]  ;;  %v18111_v46 = vld [vmem:[#allocation41_spill] sm:$0xff]  ;;  %v18114_v36 = vld [vmem:[#allocation151_spill] sm:$0xff] }
 0x291   : > { %8137 = vmatprep.mubr.msk.f32.mxu0 %vm2015_vm13, %v1985_v21  ;;  %v1760_v15 = vsel %vm450_vm0, %v9542_v30, %v18102_v7  ;;  %v1858_v35 = vsel %vm1839_vm9, %v1825_v37, %v18103_v17  ;;  %v1890_v13 = vsel %vm1872_vm10, %v1857_v8, %v18104_v6  ;;  %v1987_v45 = vsel %vm562_vm4, %v1955_v5, %v1678_v50  ;;  %v18112_v61 = vld [vmem:[#allocation172_spill] sm:$0xff]  ;;  %v18113_v10 = vld [vmem:[#allocation133_spill] sm:$0xff]  ;;  %v18115_v9 = vld [vmem:[#allocation171_spill] sm:$0xff] }
 0x292   : > { %v1676_v60 = vpop.permute.xlu1 %1675  ;;  %v1761_v34 = vsel %vm450_vm0, %v9543_v31, %v18105_v19  ;;  %v1793_v57 = vsel %vm1773_vm7, %v1760_v15, %v18106_v58  ;;  %v1891_v32 = vsel %vm1872_vm10, %v1858_v35, %v18107_v29  ;;  %v1923_v43 = vsel %vm1905_vm11, %v1890_v13, %v18108_v11  ;;  %v9544_v38 = vld [vmem:[#allocation2 + $0xf8] sm:$0xff]  ;;  %v18117_v50 = vld [vmem:[#allocation150_spill] sm:$0xff]  ;;  %v18118_v39 = vld [vmem:[#allocation20_spill] sm:$0xff] }
 0x293   : > { %v1986_v55 = vsel %vm562_vm4, %v1954_v23, %v1676_v60  ;;  %v1682_v44 = vpop.permute.xlu0 %1681  ;;  %v1794_v22 = vsel %vm1773_vm7, %v1761_v34, %v18109_v42  ;;  %v1826_v62 = vsel %vm1806_vm8, %v1793_v57, %v18110_v24  ;;  %v1924_v33 = vsel %vm1905_vm11, %v1891_v32, %v18111_v46  ;;  %v18116_v0 = vld [vmem:[#allocation81_spill] sm:$0xff]  ;;  %v9545_v2 = vld [vmem:[#allocation2 + $0x108] sm:$0xff]  ;;  %v18119_v51 = vld [vmem:[#allocation80_spill] sm:$0xff] }
 0x294   : > { %8138 = vmatmul.mubr.msk.f32.gmra.mrb[14].mxu0 %vm2015_vm13, %v1986_v55  ;;  %v1956_v63 = vsel %vm1938_vm12, %v1923_v43, %v18112_v61  ;;  %v1827_v18 = vsel %vm1806_vm8, %v1794_v22, %v18113_v10  ;;  %v1859_v4 = vsel %vm1839_vm9, %v1826_v62, %v18114_v36  ;;  %v1957_v20 = vsel %vm1938_vm12, %v1924_v33, %v18115_v9  ;;  %v18120_v56 = vld [vmem:[#allocation111_spill] sm:$0xff]  ;;  %v18123_v28 = vld [vmem:[#allocation110_spill] sm:$0xff]  ;;  %v18125_v3 = vld [vmem:[#allocation45_spill] sm:$0xff] }
 0x295   : > { %8140 = vmatprep.mubr.msk.f32.mxu0 %vm2015_vm13, %v1987_v45  ;;  %v1762_v21 = vsel %vm450_vm0, %v9544_v38, %v18116_v0  ;;  %v1860_v25 = vsel %vm1839_vm9, %v1827_v18, %v18117_v50  ;;  %v1892_v52 = vsel %vm1872_vm10, %v1859_v4, %v18118_v39  ;;  %v1989_v40 = vsel %vm562_vm4, %v1957_v20, %v1682_v44  ;;  %v18121_v53 = vld [vmem:[#allocation19_spill] sm:$0xff]  ;;  %v18126_v59 = vld [vmem:[#allocation174_spill] sm:$0xff]  ;;  %v18128_v30 = vld [vmem:[#allocation153_spill] sm:$0xff] }
 0x296   : > { %v1680_v48 = vpop.permute.xlu1 %1679  ;;  %v1763_v47 = vsel %vm450_vm0, %v9545_v2, %v18119_v51  ;;  %v1795_v14 = vsel %vm1773_vm7, %v1762_v21, %v18120_v56  ;;  %v1893_v1 = vsel %vm1872_vm10, %v1860_v25, %v18121_v53  ;;  %v18122_v12 = vld [vmem:[#allocation47_spill] sm:$0xff]  ;;  %v18127_v5 = vld [vmem:[#allocation134_spill] sm:$0xff]  ;;  %v18129_v15 = vld [vmem:[#allocation173_spill] sm:$0xff] }
 0x297   : > { %v1988_v16 = vsel %vm562_vm4, %v1956_v63, %v1680_v48  ;;  %v1686_v54 = vpop.permute.xlu0 %1685  ;;  %v1925_v27 = vsel %vm1905_vm11, %v1892_v52, %v18122_v12  ;;  %v1796_v49 = vsel %vm1773_vm7, %v1763_v47, %v18123_v28  ;;  %v18124_v23 = vld [vmem:[#allocation135_spill] sm:$0xff]  ;;  %v1926_v37 = vsel %vm1905_vm11, %v1893_v1, %v18125_v3  ;;  %v9546_v6 = vld [vmem:[#allocation2 + $0x110] sm:$0xff]  ;;  %v18132_v19 = vld [vmem:[#allocation22_spill] sm:$0xff] }
 0x298   : > { %8141 = vmatmul.mubr.msk.f32.gmra.mrb[16].mxu0 %vm2015_vm13, %v1988_v16  ;;  %v1828_v60 = vsel %vm1806_vm8, %v1795_v14, %v18124_v23  ;;  %v1958_v8 = vsel %vm1938_vm12, %v1925_v27, %v18126_v59  ;;  %v1829_v55 = vsel %vm1806_vm8, %v1796_v49, %v18127_v5  ;;  %v1959_v17 = vsel %vm1938_vm12, %v1926_v37, %v18129_v15  ;;  %v18130_v13 = vld [vmem:[#allocation83_spill] sm:$0xff]  ;;  %v18131_v44 = vld [vmem:[#allocation152_spill] sm:$0xff]  ;;  %v9547_v29 = vld [vmem:[#allocation2 + $0x120] sm:$0xff] }
 0x299   : > { %8143 = vmatprep.mubr.msk.f32.mxu0 %vm2015_vm13, %v1989_v40  ;;  %v1861_v7 = vsel %vm1839_vm9, %v1828_v60, %v18128_v30  ;;  %v1764_v45 = vsel %vm450_vm0, %v9546_v6, %v18130_v13  ;;  %v1862_v31 = vsel %vm1839_vm9, %v1829_v55, %v18131_v44  ;;  %v1991_v58 = vsel %vm562_vm4, %v1959_v17, %v1686_v54  ;;  %v18133_v32 = vld [vmem:[#allocation82_spill] sm:$0xff]  ;;  %v18134_v43 = vld [vmem:[#allocation113_spill] sm:$0xff]  ;;  %v18137_v33 = vld [vmem:[#allocation112_spill] sm:$0xff] }
 0x29a   : > { %v1684_v26 = vpop.permute.xlu1 %1683  ;;  %v1894_v34 = vsel %vm1872_vm10, %v1861_v7, %v18132_v19  ;;  %v1765_v11 = vsel %vm450_vm0, %v9547_v29, %v18133_v32  ;;  %v1797_v42 = vsel %vm1773_vm7, %v1764_v45, %v18134_v43  ;;  %v18135_v22 = vld [vmem:[#allocation21_spill] sm:$0xff]  ;;  %v18139_v10 = vld [vmem:[#allocation48_spill] sm:$0xff]  ;;  %v18142_v38 = vld [vmem:[#allocation155_spill] sm:$0xff] }
 0x29b   : > { %v1990_v35 = vsel %vm562_vm4, %v1958_v8, %v1684_v26  ;;  %v1690_v57 = vpop.permute.xlu0 %1689  ;;  %v1895_v24 = vsel %vm1872_vm10, %v1862_v31, %v18135_v22  ;;  %v18136_v62 = vld [vmem:[#allocation49_spill] sm:$0xff]  ;;  %v1798_v61 = vsel %vm1773_vm7, %v1765_v11, %v18137_v33  ;;  %v18140_v36 = vld [vmem:[#allocation176_spill] sm:$0xff]  ;;  %v18143_v21 = vld [vmem:[#allocation175_spill] sm:$0xff] }
 0x29c   : > { %8144 = vmatmul.mubr.msk.f32.gmra.mrb[18].mxu0 %vm2015_vm13, %v1990_v35  ;;  %v1927_v46 = vsel %vm1905_vm11, %v1894_v34, %v18136_v62  ;;  %v18138_v63 = vld [vmem:[#allocation137_spill] sm:$0xff]  ;;  %v1928_v18 = vsel %vm1905_vm11, %v1895_v24, %v18139_v10  ;;  %v18141_v20 = vld [vmem:[#allocation136_spill] sm:$0xff]  ;;  %v9548_v39 = vld [vmem:[#allocation2 + $0x128] sm:$0xff] }
 0x29d   : > { %8146 = vmatprep.mubr.msk.f32.mxu0 %vm2015_vm13, %v1991_v58  ;;  %v1830_v48 = vsel %vm1806_vm8, %v1797_v42, %v18138_v63  ;;  %v1960_v4 = vsel %vm1938_vm12, %v1927_v46, %v18140_v36  ;;  %v1831_v16 = vsel %vm1806_vm8, %v1798_v61, %v18141_v20  ;;  %v1961_v50 = vsel %vm1938_vm12, %v1928_v18, %v18143_v21  ;;  %v18144_v52 = vld [vmem:[#allocation85_spill] sm:$0xff]  ;;  %v18145_v54 = vld [vmem:[#allocation154_spill] sm:$0xff]  ;;  %v18146_v51 = vld [vmem:[#allocation24_spill] sm:$0xff] }
 0x29e   : > { %v1688_v9 = vpop.permute.xlu1 %1687  ;;  %v1863_v0 = vsel %vm1839_vm9, %v1830_v48, %v18142_v38  ;;  %v1766_v40 = vsel %vm450_vm0, %v9548_v39, %v18144_v52  ;;  %v1864_v2 = vsel %vm1839_vm9, %v1831_v16, %v18145_v54  ;;  %v1993_v56 = vsel %vm562_vm4, %v1961_v50, %v1690_v57  ;;  %v9549_v53 = vld [vmem:[#allocation2 + $0x138] sm:$0xff]  ;;  %v18147_v1 = vld [vmem:[#allocation84_spill] sm:$0xff]  ;;  %v18148_v27 = vld [vmem:[#allocation115_spill] sm:$0xff] }
 0x29f   : > { %v1992_v25 = vsel %vm562_vm4, %v1960_v4, %v1688_v9  ;;  %v1896_v47 = vsel %vm1872_vm10, %v1863_v0, %v18146_v51  ;;  %v1694_v14 = vpop.permute.xlu0 %1693  ;;  %v1767_v12 = vsel %vm450_vm0, %v9549_v53, %v18147_v1  ;;  %v1799_v28 = vsel %vm1773_vm7, %v1766_v40, %v18148_v27  ;;  %v18149_v49 = vld [vmem:[#allocation23_spill] sm:$0xff]  ;;  %v18151_v37 = vld [vmem:[#allocation114_spill] sm:$0xff]  ;;  %v18152_v8 = vld [vmem:[#allocation52_spill] sm:$0xff] }
 0x2a0   : > { %8147 = vmatmul.mubr.msk.f32.gmra.mrb[20].mxu0 %vm2015_vm13, %v1992_v25  ;;  %v1897_v23 = vsel %vm1872_vm10, %v1864_v2, %v18149_v49  ;;  %v18150_v60 = vld [vmem:[#allocation51_spill] sm:$0xff]  ;;  %v1800_v59 = vsel %vm1773_vm7, %v1767_v12, %v18151_v37  ;;  %v1832_v26 = vsel %vm1806_vm8, %v1799_v28, %v18152_v8  ;;  %v18153_v5 = vld [vmem:[#allocation50_spill] sm:$0xff]  ;;  %v18156_v6 = vld [vmem:[#allocation157_spill] sm:$0xff] }
 0x2a1   : > { %v1929_v3 = vsel %vm1905_vm11, %v1896_v47, %v18150_v60  ;;  %8149 = vmatprep.mubr.msk.f32.mxu0 %vm2015_vm13, %v1993_v56  ;;  %v1930_v55 = vsel %vm1905_vm11, %v1897_v23, %v18153_v5  ;;  %v18154_v30 = vld [vmem:[#allocation178_spill] sm:$0xff]  ;;  %v1865_v13 = vsel %vm1839_vm9, %v1832_v26, %v18156_v6  ;;  %v18157_v45 = vld [vmem:[#allocation177_spill] sm:$0xff]  ;;  %v18158_v34 = vld [vmem:[#allocation87_spill] sm:$0xff] }
 0x2a2   : > { %v1962_v7 = vsel %vm1938_vm12, %v1929_v3, %v18154_v30  ;;  %v1692_v15 = vpop.permute.xlu1 %1691  ;;  %v18155_v17 = vld [vmem:[#allocation138_spill] sm:$0xff]  ;;  %v1963_v44 = vsel %vm1938_vm12, %v1930_v55, %v18157_v45  ;;  %v18159_v57 = vld [vmem:[#allocation156_spill] sm:$0xff]  ;;  %v18162_v46 = vld [vmem:[#allocation29_spill] sm:$0xff] }
 0x2a3   : > { %v1833_v35 = vsel %vm1806_vm8, %v1800_v59, %v18155_v17  ;;  %v1994_v31 = vsel %vm562_vm4, %v1962_v7, %v1692_v15  ;;  %v9550_v19 = vld [vmem:[#allocation2 + $0x140] sm:$0xff]  ;;  %v1995_v43 = vsel %vm562_vm4, %v1963_v44, %v1694_v14  ;;  %v1698_v42 = vpop.permute.xlu0 %1697  ;;  %v9551_v22 = vld [vmem:[#allocation2 + $0x150] sm:$0xff]  ;;  %v18163_v61 = vld [vmem:[#allocation25_spill] sm:$0xff] }
 0x2a4   : > { %v1768_v58 = vsel %vm450_vm0, %v9550_v19, %v18158_v34  ;;  %v1866_v29 = vsel %vm1839_vm9, %v1833_v35, %v18159_v57  ;;  %v18160_v32 = vld [vmem:[#allocation26_spill] sm:$0xff]  ;;  %8150 = vmatmul.mubr.msk.f32.gmra.mrb[22].mxu0 %vm2015_vm13, %v1994_v31  ;;  %v18164_v48 = vld [vmem:[#allocation164_spill] sm:$0xff]  ;;  %v18167_v20 = vld [vmem:[#allocation163_spill] sm:$0xff] }
 0x2a5   : > { %v1898_v11 = vsel %vm1872_vm10, %v1865_v13, %v18160_v32  ;;  %v18161_v24 = vld [vmem:[#allocation86_spill] sm:$0xff]  ;;  %v1801_v33 = vsel %vm1773_vm7, %v1768_v58, %v18162_v46  ;;  %v1899_v63 = vsel %vm1872_vm10, %v1866_v29, %v18163_v61  ;;  %8152 = vmatprep.mubr.msk.f32.mxu0 %vm2015_vm13, %v1995_v43  ;;  %v18165_v18 = vld [vmem:[#allocation116_spill] sm:$0xff]  ;;  %v18169_v50 = vld [vmem:[#allocation53_spill] sm:$0xff] }
 0x2a6   : > { %v1769_v62 = vsel %vm450_vm0, %v9551_v22, %v18161_v24  ;;  %v1931_v10 = vsel %vm1905_vm11, %v1898_v11, %v18164_v48  ;;  %v18166_v4 = vld [vmem:[#allocation54_spill] sm:$0xff]  ;;  %v1932_v16 = vsel %vm1905_vm11, %v1899_v63, %v18167_v20  ;;  %v18168_v38 = vld [vmem:[#allocation180_spill] sm:$0xff]  ;;  %v1696_v21 = vpop.permute.xlu1 %1695  ;;  %v18170_v39 = vld [vmem:[#allocation159_spill] sm:$0xff] }
 0x2a7   : > { %v1802_v36 = vsel %vm1773_vm7, %v1769_v62, %v18165_v18  ;;  %v1834_v9 = vsel %vm1806_vm8, %v1801_v33, %v18166_v4  ;;  %v1964_v0 = vsel %vm1938_vm12, %v1931_v10, %v18168_v38  ;;  %v18171_v40 = vld [vmem:[#allocation179_spill] sm:$0xff]  ;;  %v9552_v51 = vld [vmem:[#allocation2 + $0x158] sm:$0xff]  ;;  %v18173_v14 = vld [vmem:[#allocation158_spill] sm:$0xff]  ;;  %v1702_v28 = vpop.permute.xlu0 %1701 }
 0x2a8   : > { %v1835_v25 = vsel %vm1806_vm8, %v1802_v36, %v18169_v50  ;;  %v1867_v52 = vsel %vm1839_vm9, %v1834_v9, %v18170_v39  ;;  %v1965_v54 = vsel %vm1938_vm12, %v1932_v16, %v18171_v40  ;;  %v1996_v2 = vsel %vm562_vm4, %v1964_v0, %v1696_v21  ;;  %v18172_v47 = vld [vmem:[#allocation89_spill] sm:$0xff]  ;;  %v18174_v1 = vld [vmem:[#allocation28_spill] sm:$0xff]  ;;  %v9553_v49 = vld [vmem:[#allocation2 + $0x168] sm:$0xff] }
 0x2a9   : > { %v1770_v56 = vsel %vm450_vm0, %v9552_v51, %v18172_v47  ;;  %v1868_v53 = vsel %vm1839_vm9, %v1835_v25, %v18173_v14  ;;  %v1900_v12 = vsel %vm1872_vm10, %v1867_v52, %v18174_v1  ;;  %v1997_v27 = vsel %vm562_vm4, %v1965_v54, %v1698_v42  ;;  %8153 = vmatmul.mubr.msk.f32.gmra.mrb[24].mxu0 %vm2015_vm13, %v1996_v2  ;;  %v18175_v23 = vld [vmem:[#allocation88_spill] sm:$0xff]  ;;  %v18176_v3 = vld [vmem:[#allocation117_spill] sm:$0xff]  ;;  %v18177_v59 = vld [vmem:[#allocation27_spill] sm:$0xff] }
 0x2aa   : > { %v1771_v60 = vsel %vm450_vm0, %v9553_v49, %v18175_v23  ;;  %v1803_v37 = vsel %vm1773_vm7, %v1770_v56, %v18176_v3  ;;  %v1901_v8 = vsel %vm1872_vm10, %v1868_v53, %v18177_v59  ;;  %v18178_v26 = vld [vmem:[#allocation56_spill] sm:$0xff]  ;;  %8155 = vmatprep.mubr.msk.f32.mxu0 %vm2015_vm13, %v1997_v27  ;;  %v18179_v55 = vld [vmem:[#allocation30_spill] sm:$0xff]  ;;  %v18180_v7 = vld [vmem:[#allocation139_spill] sm:$0xff]  ;;  %v1700_v45 = vpop.permute.xlu1 %1699 }
 0x2ab   : > { %v1933_v5 = vsel %vm1905_vm11, %v1900_v12, %v18178_v26  ;;  %v1804_v30 = vsel %vm1773_vm7, %v1771_v60, %v18179_v55  ;;  %v1836_v15 = vsel %vm1806_vm8, %v1803_v37, %v18180_v7  ;;  %v18181_v17 = vld [vmem:[#allocation165_spill] sm:$0xff]  ;;  %v18183_v44 = vld [vmem:[#allocation55_spill] sm:$0xff]  ;;  %v9554_v32 = vld [vmem:[#allocation2 + $0x170] sm:$0xff]  ;;  %v1706_v36 = vpop.permute.xlu0 %1705 }
 0x2ac   : > { %v1934_v35 = vsel %vm1905_vm11, %v1901_v8, %v18181_v17  ;;  %v18182_v6 = vld [vmem:[#allocation57_spill] sm:$0xff]  ;;  %v1837_v31 = vsel %vm1806_vm8, %v1804_v30, %v18183_v44  ;;  %v18186_v11 = vld [vmem:[#allocation91_spill] sm:$0xff]  ;;  %v18187_v42 = vld [vmem:[#allocation160_spill] sm:$0xff] }
 0x2ad   : > { %v1966_v13 = vsel %vm1938_vm12, %v1933_v5, %v18182_v6  ;;  %v18184_v19 = vld [vmem:[#allocation161_spill] sm:$0xff]  ;;  %v1772_v43 = vsel %vm450_vm0, %v9554_v32, %v18186_v11  ;;  %v1870_v22 = vsel %vm1839_vm9, %v1837_v31, %v18187_v42  ;;  %v18188_v24 = vld [vmem:[#allocation32_spill] sm:$0xff]  ;;  %v18189_v33 = vld [vmem:[#allocation119_spill] sm:$0xff]  ;;  %vm3334_vm0 = vcmask 523264  }
 0x2ae   : > { %v1869_v34 = vsel %vm1839_vm9, %v1836_v15, %v18184_v19  ;;  %v18185_v58 = vld [vmem:[#allocation181_spill] sm:$0xff]  ;;  %v1998_v29 = vsel %vm562_vm4, %v1966_v13, %v1700_v45  ;;  %v1805_v61 = vsel %vm1773_vm7, %v1772_v43, %v18189_v33  ;;  %v18190_v63 = vld [vmem:[#allocation31_spill] sm:$0xff]  ;;  %v18191_v10 = vld [vmem:[#allocation58_spill] sm:$0xff]  ;;  %v1704_v21 = vpop.permute.xlu1 %1703 }
 0x2af   : > { %v1967_v57 = vsel %vm1938_vm12, %v1934_v35, %v18185_v58  ;;  %v1902_v62 = vsel %vm1872_vm10, %v1869_v34, %v18188_v24  ;;  %8156 = vmatmul.mubr.msk.f32.gmra.mrb[26].mxu0 %vm2015_vm13, %v1998_v29  ;;  %v1903_v48 = vsel %vm1872_vm10, %v1870_v22, %v18190_v63  ;;  %v18192_v4 = vld [vmem:[#allocation141_spill] sm:$0xff]  ;;  %v18193_v20 = vld [vmem:[#allocation166_spill] sm:$0xff]  ;;  %v18198_v47 = vld [vmem:[#allocation60_spill] sm:$0xff] }
 0x2b0   : > { %v1999_v46 = vsel %vm562_vm4, %v1967_v57, %v1702_v28  ;;  %v1935_v18 = vsel %vm1905_vm11, %v1902_v62, %v18191_v10  ;;  %v1838_v9 = vsel %vm1806_vm8, %v1805_v61, %v18192_v4  ;;  %v1936_v16 = vsel %vm1905_vm11, %v1903_v48, %v18193_v20  ;;  %v18194_v38 = vld [vmem:[#allocation118_spill] sm:$0xff]  ;;  %v18197_v54 = vld [vmem:[#allocation33_spill] sm:$0xff]  ;;  %v12133_v27 = vld [vmem:[#allocation4 + $0x8] sm:$0xff] }
 0x2b1   : > { %8158 = vmatprep.mubr.msk.f32.mxu0 %vm2015_vm13, %v1999_v46  ;;  %v1968_v0 = vsel %vm1938_vm12, %v1935_v18, %v18194_v38  ;;  %v18195_v50 = vld [vmem:[#allocation162_spill] sm:$0xff]  ;;  %v12135_v28 = vld [vmem:[#allocation4 + $0x10] sm:$0x3]  ;;  %v2509_v23 = vrot.slane %v12133_v27, 1  ;;  %vm8401_vm7 = vmpackc.low %vm5575_vm5, %vm9821_vm6  ;;  %vm5478_vm5 = vcmask 220160  }
 0x2b2   : > { %v1871_v25 = vsel %vm1839_vm9, %v1838_v9, %v18195_v50  ;;  %v18196_v39 = vld [vmem:[#allocation90_spill] sm:$0xff]  ;;  %v2000_v40 = vsel %vm562_vm4, %v1968_v0, %v1704_v21  ;;  %v1708_v53 = vpop.permute.xlu1 %1707  ;;  %v2511_v60 = vrot.slane %v12135_v28, 1  ;;  %vm5238_vm9 = vcmask 48128  }
 0x2b3   : > { %v1969_v52 = vsel %vm1938_vm12, %v1936_v16, %v18196_v39  ;;  %v1904_v2 = vsel %vm1872_vm10, %v1871_v25, %v18197_v54  ;;  %8159 = vmatmul.mubr.msk.f32.gmra.mrb[28].mxu0 %vm2015_vm13, %v2000_v40  ;;  %v12131_v12 = vld [vmem:[#allocation4] sm:$0xff]  ;;  %vm5271_vm10 = vcmask 72704  }
 0x2b4   : > { %v2001_v51 = vsel %vm562_vm4, %v1969_v52, %v1706_v36  ;;  %v1937_v56 = vsel %vm1905_vm11, %v1904_v2, %v18198_v47  ;;  %v2508_v49 = vrot.slane %v12131_v12, 1  ;;  %v12146_v59 = vld [vmem:[%s18199_s3] ss:$0 sm:$0xff] }
 0x2b5   : > { %8161 = vmatprep.mubr.msk.f32.mxu0 %vm2015_vm13, %v2001_v51  ;;  %v1970_v14 = vsel %vm1938_vm12, %v1937_v56, %v11643_v41  ;;  %v2512_v41 = vsel %vm785_vm2, %v2509_v23, %v2511_v60  ;;  %vm5336_vm12 = vcmask 121856  }
 0x2b6   : > { %v2002_v1 = vsel %vm562_vm4, %v1970_v14, %v1708_v53  ;;  %v2510_v3 = vsel %vm785_vm2, %v2508_v49, %v2509_v23 }
 0x2b7   : > { %8162 = vmatmul.mubr.msk.f32.gmra.mrb[30].mxu0 %vm2015_vm13, %v2002_v1  ;;  %v8563_v37 = vpack.i.bf16 %v2512_v41, %v2510_v3  ;;  %vm5369_vm13 = vcmask 146432  }
 0x2b9   : > { %8564 = vrot.lane.b32.xlu0 %v8563_v37, %s17693_s17 }
 0x34b   : > { %v8118_v8 = vpop.f32.mrb[0].mxu0 }
 0x34c   : > { %v2188_v26 = vadd.f32 %v8118_v8, %v12146_v59  ;;  %v2182_v5 = vpop.f32.mrb[1].mxu0 }
 0x34d   : > { %v2183_v55 = vadd.f32 %v12146_v59, %v2182_v5 }
 0x34e   : > { %v2342_v30 = vmax.f32 %v2188_v26, 0.0 }
 0x34f   : > { %v2341_v7 = vmax.f32 %v2183_v55, 0.0  ;;  %v8121_v15 = vpop.f32.mrb[2].mxu0 }
 0x350   : > { %2375 = vst.msk [vmem:[#allocation4 + $0x21] sm:$0xff] %vm562_vm4, %v2342_v30  ;;  %v2198_v17 = vadd.f32 %v8121_v15, %v12146_v59  ;;  %v2192_v35 = vpop.f32.mrb[3].mxu0 }
 0x351   : > { %2374 = vst.msk [vmem:[#allocation4 + $0x19] sm:$0xff] %vm562_vm4, %v2341_v7  ;;  %v2193_v6 = vadd.f32 %v12146_v59, %v2192_v35 }
 0x352   : > { %v2344_v13 = vmax.f32 %v2198_v17, 0.0 }
 0x353   : > { %v2343_v45 = vmax.f32 %v2193_v6, 0.0  ;;  %v8124_v44 = vpop.f32.mrb[4].mxu0 }
 0x354   : > { %2377 = vst.msk [vmem:[#allocation4 + $0x39] sm:$0xff] %vm562_vm4, %v2344_v13  ;;  %v2208_v31 = vadd.f32 %v8124_v44, %v12146_v59  ;;  %v2202_v19 = vpop.f32.mrb[5].mxu0 }
 0x355   : > { %2376 = vst.msk [vmem:[#allocation4 + $0x31] sm:$0xff] %vm562_vm4, %v2343_v45  ;;  %v2203_v34 = vadd.f32 %v12146_v59, %v2202_v19 }
 0x356   : > { %v2346_v58 = vmax.f32 %v2208_v31, 0.0 }
 0x357   : > { %v2345_v57 = vmax.f32 %v2203_v34, 0.0  ;;  %v8127_v29 = vpop.f32.mrb[6].mxu0  ;;  %v12158_v32 = vld [vmem:[#allocation4 + $0x28] sm:$0x3] }
 0x358   : > { %2379 = vst.msk [vmem:[#allocation4 + $0x51] sm:$0xff] %vm562_vm4, %v2346_v58  ;;  %v2218_v11 = vadd.f32 %v8127_v29, %v12146_v59  ;;  %v2212_v43 = vpop.f32.mrb[7].mxu0  ;;  %v12162_v42 = vld [vmem:[#allocation4 + $0x18] sm:$0xff]  ;;  %v12164_v22 = vld [vmem:[#allocation4 + $0x20] sm:$0xff]  ;;  %v2516_v24 = vrot.slane %v12158_v32, 1 }
 0x359   : > { %2378 = vst.msk [vmem:[#allocation4 + $0x49] sm:$0xff] %vm562_vm4, %v2345_v57  ;;  %v2213_v62 = vadd.f32 %v12146_v59, %v2212_v43  ;;  %v2513_v46 = vrot.slane %v12162_v42, 1  ;;  %v2514_v33 = vrot.slane %v12164_v22, 1 }
 0x35a   : > { %v2348_v61 = vmax.f32 %v2218_v11, 0.0 }
 0x35b   : > { %v2347_v63 = vmax.f32 %v2213_v62, 0.0  ;;  %v8130_v48 = vpop.f32.mrb[8].mxu0  ;;  %v12172_v10 = vsel %vm785_vm2, %v2513_v46, %v2514_v33  ;;  %v12175_v18 = vsel %vm785_vm2, %v2514_v33, %v2516_v24  ;;  %v12177_v36 = vld [vmem:[#allocation4 + $0x40] sm:$0x3] }
 0x35c   : > { %18200 = vst [vmem:[#allocation140_spill] sm:$0xff] %v12172_v10  ;;  %18201 = vst [vmem:[#allocation59_spill] sm:$0xff] %v12175_v18  ;;  %v2228_v4 = vadd.f32 %v8130_v48, %v12146_v59  ;;  %v2222_v9 = vpop.f32.mrb[9].mxu0  ;;  %v8568_v20 = vpack.i.bf16 %v12175_v18, %v12172_v10  ;;  %v12183_v16 = vld [vmem:[#allocation4 + $0x30] sm:$0xff]  ;;  %v12185_v38 = vld [vmem:[#allocation4 + $0x38] sm:$0xff]  ;;  %v2521_v0 = vrot.slane %v12177_v36, 1 }
 0x35d   : > { %2381 = vst.msk [vmem:[#allocation4 + $0x69] sm:$0xff] %vm562_vm4, %v2348_v61  ;;  %2380 = vst.msk [vmem:[#allocation4 + $0x61] sm:$0xff] %vm562_vm4, %v2347_v63  ;;  %v2223_v21 = vadd.f32 %v12146_v59, %v2222_v9  ;;  %v2518_v50 = vrot.slane %v12183_v16, 1  ;;  %v2519_v25 = vrot.slane %v12185_v38, 1 }
 0x35e   : > { %v2350_v39 = vmax.f32 %v2228_v4, 0.0  ;;  %8569 = vrot.lane.b32.xlu1 %v8568_v20, %s17693_s17 }
 0x35f   : > { %v2349_v52 = vmax.f32 %v2223_v21, 0.0  ;;  %v8133_v40 = vpop.f32.mrb[10].mxu0  ;;  %v12194_v54 = vsel %vm785_vm2, %v2518_v50, %v2519_v25  ;;  %v12197_v2 = vsel %vm785_vm2, %v2519_v25, %v2521_v0  ;;  %v12199_v51 = vld [vmem:[#allocation4 + $0x58] sm:$0x3] }
 0x360   : > { %18202 = vst [vmem:[#allocation61_spill] sm:$0xff] %v12194_v54  ;;  %18203 = vst [vmem:[#allocation93_spill] sm:$0xff] %v12197_v2  ;;  %v2238_v47 = vadd.f32 %v8133_v40, %v12146_v59  ;;  %v2232_v56 = vpop.f32.mrb[11].mxu0  ;;  %v12205_v14 = vpack.i.bf16 %v12197_v2, %v12194_v54  ;;  %v12207_v53 = vld [vmem:[#allocation4 + $0x48] sm:$0xff]  ;;  %v12209_v1 = vld [vmem:[#allocation4 + $0x50] sm:$0xff]  ;;  %v2526_v49 = vrot.slane %v12199_v51, 1 }
 0x361   : > { %2383 = vst.msk [vmem:[#allocation4 + $0x81] sm:$0xff] %vm562_vm4, %v2350_v39  ;;  %2382 = vst.msk [vmem:[#allocation4 + $0x79] sm:$0xff] %vm562_vm4, %v2349_v52  ;;  %v2233_v23 = vadd.f32 %v12146_v59, %v2232_v56  ;;  %v2523_v60 = vrot.slane %v12207_v53, 1  ;;  %v2524_v3 = vrot.slane %v12209_v1, 1 }
 0x362   : > { %v2352_v41 = vmax.f32 %v2238_v47, 0.0  ;;  %8574 = vrot.lane.b32.xlu0 %v12205_v14, %s17693_s17 }
 0x363   : > { %v2351_v37 = vmax.f32 %v2233_v23, 0.0  ;;  %v8136_v8 = vpop.f32.mrb[12].mxu0  ;;  %v12219_v26 = vsel %vm785_vm2, %v2523_v60, %v2524_v3  ;;  %v12222_v5 = vsel %vm785_vm2, %v2524_v3, %v2526_v49 }
 0x364   : > { %18204 = vst [vmem:[#allocation92_spill] sm:$0xff] %v12219_v26  ;;  %18205 = vst [vmem:[#allocation121_spill] sm:$0xff] %v12222_v5  ;;  %v12224_v55 = vld [vmem:[#allocation4 + $0x70] sm:$0x3]  ;;  %v2248_v30 = vadd.f32 %v8136_v8, %v12146_v59  ;;  %v2242_v7 = vpop.f32.mrb[13].mxu0  ;;  %v12230_v15 = vpack.i.bf16 %v12222_v5, %v12219_v26  ;;  %v12232_v17 = vld [vmem:[#allocation4 + $0x60] sm:$0xff] }
 0x365   : > { %2385 = vst.msk [vmem:[#allocation4 + $0x99] sm:$0xff] %vm562_vm4, %v2352_v41  ;;  %v12234_v35 = vld [vmem:[#allocation4 + $0x68] sm:$0xff]  ;;  %v2531_v6 = vrot.slane %v12224_v55, 1  ;;  %2384 = vst.msk [vmem:[#allocation4 + $0x91] sm:$0xff] %vm562_vm4, %v2351_v37  ;;  %v2243_v13 = vadd.f32 %v12146_v59, %v2242_v7  ;;  %v2528_v45 = vrot.slane %v12232_v17, 1 }
 0x366   : > { %v2529_v44 = vrot.slane %v12234_v35, 1  ;;  %v2354_v31 = vmax.f32 %v2248_v30, 0.0  ;;  %8579 = vrot.lane.b32.xlu1 %v12230_v15, %s17693_s17 }
 0x367   : > { %v2353_v19 = vmax.f32 %v2243_v13, 0.0  ;;  %v8139_v34 = vpop.f32.mrb[14].mxu0 }
 0x368   : > { %v12244_v58 = vsel %vm785_vm2, %v2528_v45, %v2529_v44  ;;  %v12247_v57 = vsel %vm785_vm2, %v2529_v44, %v2531_v6  ;;  %v12249_v29 = vld [vmem:[#allocation4 + $0x88] sm:$0x3]  ;;  %2387 = vst.msk [vmem:[#allocation4 + $0xb1] sm:$0xff] %vm562_vm4, %v2354_v31  ;;  %v2258_v11 = vadd.f32 %v8139_v34, %v12146_v59  ;;  %v2252_v43 = vpop.f32.mrb[15].mxu0  ;;  %v12257_v62 = vld [vmem:[#allocation4 + $0x78] sm:$0xff]  ;;  %v12259_v46 = vld [vmem:[#allocation4 + $0x80] sm:$0xff] }
 0x369   : > { %18206 = vst [vmem:[#allocation120_spill] sm:$0xff] %v12244_v58  ;;  %18207 = vst [vmem:[#allocation63_spill] sm:$0xff] %v12247_v57  ;;  %v12255_v24 = vpack.i.bf16 %v12247_v57, %v12244_v58  ;;  %v2536_v33 = vrot.slane %v12249_v29, 1  ;;  %v2253_v61 = vadd.f32 %v12146_v59, %v2252_v43  ;;  %v2533_v63 = vrot.slane %v12257_v62, 1 }
 0x36a   : > { %2386 = vst.msk [vmem:[#allocation4 + $0xa9] sm:$0xff] %vm562_vm4, %v2353_v19  ;;  %v2534_v48 = vrot.slane %v12259_v46, 1  ;;  %v2356_v4 = vmax.f32 %v2258_v11, 0.0  ;;  %v2591_v58 = vrot.slane %v12135_v28, 2 }
 0x36b   : > { %8584 = vrot.lane.b32.xlu0 %v12255_v24, %s17693_s17  ;;  %v2355_v9 = vmax.f32 %v2253_v61, 0.0  ;;  %v8142_v20 = vpop.f32.mrb[16].mxu0 }
 0x36c   : > { %v12269_v0 = vsel %vm785_vm2, %v2533_v63, %v2534_v48  ;;  %v12272_v21 = vsel %vm785_vm2, %v2534_v48, %v2536_v33  ;;  %v12274_v50 = vld [vmem:[#allocation4 + $0xa0] sm:$0x3]  ;;  %2389 = vst.msk [vmem:[#allocation4 + $0xc9] sm:$0xff] %vm562_vm4, %v2356_v4  ;;  %v2268_v25 = vadd.f32 %v8142_v20, %v12146_v59  ;;  %v2262_v39 = vpop.f32.mrb[17].mxu0  ;;  %v12282_v40 = vld [vmem:[#allocation4 + $0x90] sm:$0xff]  ;;  %v12284_v47 = vld [vmem:[#allocation4 + $0x98] sm:$0xff] }
 0x36d   : > { %18208 = vst [vmem:[#allocation142_spill] sm:$0xff] %v12269_v0  ;;  %18209 = vst [vmem:[#allocation62_spill] sm:$0xff] %v12272_v21  ;;  %v12280_v52 = vpack.i.bf16 %v12272_v21, %v12269_v0  ;;  %v2541_v56 = vrot.slane %v12274_v50, 1  ;;  %v2263_v49 = vadd.f32 %v12146_v59, %v2262_v39  ;;  %v2538_v23 = vrot.slane %v12282_v40, 1 }
 0x36e   : > { %2388 = vst.msk [vmem:[#allocation4 + $0xc1] sm:$0xff] %vm562_vm4, %v2355_v9  ;;  %v2539_v60 = vrot.slane %v12284_v47, 1  ;;  %v2358_v3 = vmax.f32 %v2268_v25, 0.0 }
 0x36f   : > { %18210 = vst [vmem:[#allocation95_spill] sm:$0xff] %v12280_v52  ;;  %8589 = vrot.lane.b32.xlu1 %v12280_v52, %s17693_s17  ;;  %v2357_v41 = vmax.f32 %v2263_v49, 0.0  ;;  %v8145_v37 = vpop.f32.mrb[18].mxu0  ;;  %v12299_v7 = vld [vmem:[#allocation4 + $0xb8] sm:$0x3] }
 0x370   : > { %v12294_v8 = vsel %vm785_vm2, %v2538_v23, %v2539_v60  ;;  %v12297_v30 = vsel %vm785_vm2, %v2539_v60, %v2541_v56  ;;  %2391 = vst.msk [vmem:[#allocation4 + $0xe1] sm:$0xff] %vm562_vm4, %v2358_v3  ;;  %v2278_v6 = vadd.f32 %v8145_v37, %v12146_v59  ;;  %v2272_v13 = vpop.f32.mrb[19].mxu0  ;;  %v2546_v19 = vrot.slane %v12299_v7, 1 }
 0x371   : > { %18211 = vst [vmem:[#allocation94_spill] sm:$0xff] %v12294_v8  ;;  %18212 = vst [vmem:[#allocation123_spill] sm:$0xff] %v12297_v30  ;;  %v12305_v45 = vpack.i.bf16 %v12297_v30, %v12294_v8  ;;  %v12307_v44 = vld [vmem:[#allocation4 + $0xa8] sm:$0xff]  ;;  %v12309_v31 = vld [vmem:[#allocation4 + $0xb0] sm:$0xff]  ;;  %v2273_v34 = vadd.f32 %v12146_v59, %v2272_v13 }
 0x372   : > { %2390 = vst.msk [vmem:[#allocation4 + $0xd9] sm:$0xff] %vm562_vm4, %v2357_v41  ;;  %v2543_v11 = vrot.slane %v12307_v44, 1  ;;  %v2544_v43 = vrot.slane %v12309_v31, 1  ;;  %v2360_v33 = vmax.f32 %v2278_v6, 0.0 }
 0x373   : > { %18213 = vst [vmem:[#allocation122_spill] sm:$0xff] %v12305_v45  ;;  %8594 = vrot.lane.b32.xlu0 %v12305_v45, %s17693_s17  ;;  %v2359_v61 = vmax.f32 %v2273_v34, 0.0  ;;  %v8148_v63 = vpop.f32.mrb[20].mxu0  ;;  %v12324_v9 = vld [vmem:[#allocation4 + $0xd0] sm:$0x3] }
 0x374   : > { %v12319_v48 = vsel %vm785_vm2, %v2543_v11, %v2544_v43  ;;  %v12322_v4 = vsel %vm785_vm2, %v2544_v43, %v2546_v19  ;;  %2393 = vst.msk [vmem:[#allocation4 + $0xf9] sm:$0xff] %vm562_vm4, %v2360_v33  ;;  %v2288_v20 = vadd.f32 %v8148_v63, %v12146_v59  ;;  %v2282_v25 = vpop.f32.mrb[21].mxu0  ;;  %v2551_v23 = vrot.slane %v12324_v9, 1 }
 0x375   : > { %18214 = vst [vmem:[#allocation144_spill] sm:$0xff] %v12319_v48  ;;  %18215 = vst [vmem:[#allocation65_spill] sm:$0xff] %v12322_v4  ;;  %v12330_v39 = vpack.i.bf16 %v12322_v4, %v12319_v48  ;;  %v12332_v56 = vld [vmem:[#allocation4 + $0xc0] sm:$0xff]  ;;  %v12334_v49 = vld [vmem:[#allocation4 + $0xc8] sm:$0xff]  ;;  %v2283_v60 = vadd.f32 %v12146_v59, %v2282_v25 }
 0x376   : > { %2392 = vst.msk [vmem:[#allocation4 + $0xf1] sm:$0xff] %vm562_vm4, %v2359_v61  ;;  %v2548_v3 = vrot.slane %v12332_v56, 1  ;;  %v2549_v41 = vrot.slane %v12334_v49, 1  ;;  %v2362_v37 = vmax.f32 %v2288_v20, 0.0 }
 0x377   : > { %18216 = vst [vmem:[#allocation143_spill] sm:$0xff] %v12330_v39  ;;  %8599 = vrot.lane.b32.xlu1 %v12330_v39, %s17693_s17  ;;  %v2361_v6 = vmax.f32 %v2283_v60, 0.0  ;;  %v8151_v13 = vpop.f32.mrb[22].mxu0  ;;  %v12349_v11 = vld [vmem:[#allocation4 + $0xe8] sm:$0x3] }
 0x378   : > { %v12344_v19 = vsel %vm785_vm2, %v2548_v3, %v2549_v41  ;;  %v12347_v34 = vsel %vm785_vm2, %v2549_v41, %v2551_v23  ;;  %2395 = vst.msk [vmem:[#allocation4 + $0x111] sm:$0xff] %vm562_vm4, %v2362_v37  ;;  %v2298_v43 = vadd.f32 %v8151_v13, %v12146_v59  ;;  %v2292_v33 = vpop.f32.mrb[23].mxu0  ;;  %v2556_v25 = vrot.slane %v12349_v11, 1 }
 0x379   : > { %18217 = vst [vmem:[#allocation64_spill] sm:$0xff] %v12344_v19  ;;  %18218 = vst [vmem:[#allocation97_spill] sm:$0xff] %v12347_v34  ;;  %v12355_v61 = vpack.i.bf16 %v12347_v34, %v12344_v19  ;;  %v12357_v63 = vld [vmem:[#allocation4 + $0xd8] sm:$0xff]  ;;  %v12359_v20 = vld [vmem:[#allocation4 + $0xe0] sm:$0xff]  ;;  %v2293_v23 = vadd.f32 %v12146_v59, %v2292_v33 }
 0x37a   : > { %2394 = vst.msk [vmem:[#allocation4 + $0x109] sm:$0xff] %vm562_vm4, %v2361_v6  ;;  %v2553_v60 = vrot.slane %v12357_v63, 1  ;;  %v2554_v3 = vrot.slane %v12359_v20, 1  ;;  %v2364_v41 = vmax.f32 %v2298_v43, 0.0 }
 0x37b   : > { %18219 = vst [vmem:[#allocation96_spill] sm:$0xff] %v12355_v61  ;;  %8604 = vrot.lane.b32.xlu0 %v12355_v61, %s17693_s17  ;;  %v2363_v37 = vmax.f32 %v2293_v23, 0.0  ;;  %v12374_v4 = vld [vmem:[#allocation4 + $0x100] sm:$0x3] }
 0x37c   : > { %v8154_v13 = vpop.f32.mrb[24].mxu0  ;;  %v12369_v34 = vsel %vm785_vm2, %v2553_v60, %v2554_v3  ;;  %v12372_v19 = vsel %vm785_vm2, %v2554_v3, %v2556_v25  ;;  %2397 = vst.msk [vmem:[#allocation4 + $0x129] sm:$0xff] %vm562_vm4, %v2364_v41  ;;  %v2561_v60 = vrot.slane %v12374_v4, 1 }
 0x37d   : > { %18220 = vst [vmem:[#allocation38_spill] sm:$0xff] %v12369_v34  ;;  %18221 = vst [vmem:[#allocation124_spill] sm:$0xff] %v12372_v19  ;;  %v2308_v6 = vadd.f32 %v8154_v13, %v12146_v59  ;;  %v2302_v33 = vpop.f32.mrb[25].mxu0  ;;  %v12380_v43 = vpack.i.bf16 %v12372_v19, %v12369_v34  ;;  %v12382_v48 = vld [vmem:[#allocation4 + $0xf0] sm:$0xff]  ;;  %v12384_v23 = vld [vmem:[#allocation4 + $0xf8] sm:$0xff] }
 0x37e   : > { %2396 = vst.msk [vmem:[#allocation4 + $0x121] sm:$0xff] %vm562_vm4, %v2363_v37  ;;  %v2303_v25 = vadd.f32 %v12146_v59, %v2302_v33  ;;  %v2558_v3 = vrot.slane %v12382_v48, 1  ;;  %v2559_v41 = vrot.slane %v12384_v23, 1 }
 0x37f   : > { %18222 = vst [vmem:[#allocation67_spill] sm:$0xff] %v12380_v43  ;;  %v2366_v13 = vmax.f32 %v2308_v6, 0.0  ;;  %8609 = vrot.lane.b32.xlu1 %v12380_v43, %s17693_s17  ;;  %v12399_v21 = vld [vmem:[#allocation4 + $0x118] sm:$0x3] }
 0x380   : > { %v2365_v19 = vmax.f32 %v2303_v25, 0.0  ;;  %v12394_v30 = vsel %vm785_vm2, %v2558_v3, %v2559_v41  ;;  %v12397_v8 = vsel %vm785_vm2, %v2559_v41, %v2561_v60  ;;  %v2566_v3 = vrot.slane %v12399_v21, 1 }
 0x381   : > { %18223 = vst [vmem:[#allocation145_spill] sm:$0xff] %v12394_v30  ;;  %18224 = vst [vmem:[#allocation66_spill] sm:$0xff] %v12397_v8  ;;  %v12405_v6 = vpack.i.bf16 %v12397_v8, %v12394_v30  ;;  %v12407_v5 = vld [vmem:[#allocation4 + $0x108] sm:$0xff]  ;;  %v12409_v25 = vld [vmem:[#allocation4 + $0x110] sm:$0xff] }
 0x382   : > { %v8157_v34 = vpop.f32.mrb[26].mxu0  ;;  %2399 = vst.msk [vmem:[#allocation4 + $0x141] sm:$0xff] %vm562_vm4, %v2366_v13  ;;  %2398 = vst.msk [vmem:[#allocation4 + $0x139] sm:$0xff] %vm562_vm4, %v2365_v19  ;;  %v2563_v41 = vrot.slane %v12407_v5, 1  ;;  %v2564_v13 = vrot.slane %v12409_v25, 1 }
 0x383   : > { %v2318_v37 = vadd.f32 %v8157_v34, %v12146_v59  ;;  %v2312_v33 = vpop.f32.mrb[27].mxu0  ;;  %18225 = vst [vmem:[#allocation99_spill] sm:$0xff] %v12405_v6  ;;  %8614 = vrot.lane.b32.xlu0 %v12405_v6, %s17693_s17  ;;  %v12424_v57 = vld [vmem:[#allocation4 + $0x130] sm:$0x3] }
 0x384   : > { %v2313_v60 = vadd.f32 %v12146_v59, %v2312_v33  ;;  %v12419_v0 = vsel %vm785_vm2, %v2563_v41, %v2564_v13  ;;  %v12422_v26 = vsel %vm785_vm2, %v2564_v13, %v2566_v3  ;;  %v2571_v41 = vrot.slane %v12424_v57, 1 }
 0x385   : > { %v2368_v34 = vmax.f32 %v2318_v37, 0.0  ;;  %18226 = vst [vmem:[#allocation98_spill] sm:$0xff] %v12419_v0  ;;  %18227 = vst [vmem:[#allocation126_spill] sm:$0xff] %v12422_v26  ;;  %v12430_v37 = vpack.i.bf16 %v12422_v26, %v12419_v0  ;;  %v12432_v2 = vld [vmem:[#allocation4 + $0x120] sm:$0xff]  ;;  %v2588_v26 = vrot.slane %v12131_v12, 2  ;;  %v2589_v0 = vrot.slane %v12133_v27, 2 }
 0x386   : > { %v2367_v8 = vmax.f32 %v2313_v60, 0.0  ;;  %v8160_v30 = vpop.f32.mrb[28].mxu0  ;;  %v12434_v60 = vld [vmem:[#allocation4 + $0x128] sm:$0xff]  ;;  %v2568_v13 = vrot.slane %v12432_v2, 1 }
 0x387   : > { %2401 = vst.msk [vmem:[#allocation4 + $0x159] sm:$0xff] %vm562_vm4, %v2368_v34  ;;  %v2328_v19 = vadd.f32 %v8160_v30, %v12146_v59  ;;  %v2322_v33 = vpop.f32.mrb[29].mxu0  ;;  %18228 = vst [vmem:[#allocation125_spill] sm:$0xff] %v12430_v37  ;;  %v2569_v34 = vrot.slane %v12434_v60, 1  ;;  %8619 = vrot.lane.b32.xlu1 %v12430_v37, %s17693_s17 }
 0x388   : > { %2400 = vst.msk [vmem:[#allocation4 + $0x151] sm:$0xff] %vm562_vm4, %v2367_v8  ;;  %v2323_v3 = vadd.f32 %v12146_v59, %v2322_v33 }
 0x389   : > { %v2370_v30 = vmax.f32 %v2328_v19, 0.0  ;;  %v12447_v8 = vsel %vm785_vm2, %v2568_v13, %v2569_v34  ;;  %v12450_v33 = vsel %vm785_vm2, %v2569_v34, %v2571_v41  ;;  %v12452_v10 = vld [vmem:[#allocation4 + $0x148] sm:$0x3]  ;;  %v12460_v27 = vld [vmem:[#allocation4 + $0x138] sm:$0xff]  ;;  %v12462_v28 = vld [vmem:[#allocation4 + $0x140] sm:$0xff] }
 0x38a   : > { %v2369_v54 = vmax.f32 %v2323_v3, 0.0  ;;  %v8163_v18 = vpop.f32.mrb[30].mxu0  ;;  %18229 = vst [vmem:[#allocation69_spill] sm:$0xff] %v12447_v8  ;;  %18230 = vst [vmem:[#allocation68_spill] sm:$0xff] %v12450_v33  ;;  %v12458_v12 = vpack.i.bf16 %v12450_v33, %v12447_v8  ;;  %v2576_v3 = vrot.slane %v12452_v10, 1  ;;  %v2573_v13 = vrot.slane %v12460_v27, 1 }
 0x38b   : > { %2403 = vst.msk [vmem:[#allocation4 + $0x171] sm:$0xff] %vm562_vm4, %v2370_v30  ;;  %v2338_v19 = vadd.f32 %v8163_v18, %v12146_v59  ;;  %v2332_v37 = vpop.f32.mrb[31].mxu0  ;;  %v2574_v34 = vrot.slane %v12462_v28, 1  ;;  %v2590_v30 = vsel %vm866_vm3, %v2588_v26, %v2589_v0  ;;  %v2592_v33 = vsel %vm866_vm3, %v2589_v0, %v2591_v58 }
 0x38c   : > { %18231 = vst [vmem:[#allocation12_spill] sm:$0xff] %v12458_v12  ;;  %2402 = vst.msk [vmem:[#allocation4 + $0x169] sm:$0xff] %vm562_vm4, %v2369_v54  ;;  %v2333_v41 = vadd.f32 %v12146_v59, %v2332_v37  ;;  %8624 = vrot.lane.b32.xlu0 %v12458_v12, %s17693_s17  ;;  %v2596_v37 = vrot.slane %v12158_v32, 2  ;;  %v8643_v39 = vpack.i.bf16 %v2592_v33, %v2590_v30  ;;  %v2603_v30 = vrot.slane %v12207_v53, 2 }
 0x38d   : > { %v2372_v18 = vmax.f32 %v2338_v19, 0.0  ;;  %v12474_v43 = vsel %vm785_vm2, %v2573_v13, %v2574_v34  ;;  %v12477_v54 = vsel %vm785_vm2, %v2574_v34, %v2576_v3  ;;  %v2594_v3 = vrot.slane %v12164_v22, 2 }
 0x38e   : > { %v2371_v8 = vmax.f32 %v2333_v41, 0.0  ;;  %18232 = vst [vmem:[#allocation100_spill] sm:$0xff] %v12474_v43  ;;  %18233 = vst [vmem:[#allocation128_spill] sm:$0xff] %v12477_v54  ;;  %v12479_v59 = vld [vmem:[#allocation4 + $0x160] sm:$0x3]  ;;  %v12485_v19 = vpack.i.bf16 %v12477_v54, %v12474_v43  ;;  %v2593_v41 = vrot.slane %v12162_v42, 2 }
 0x38f   : > { %2405 = vst.msk [vmem:[#allocation4 + $0x189] sm:$0xff] %vm562_vm4, %v2372_v18  ;;  %v12487_v26 = vld [vmem:[#allocation4 + $0x150] sm:$0xff]  ;;  %v12489_v58 = vld [vmem:[#allocation4 + $0x158] sm:$0xff]  ;;  %v2581_v0 = vrot.slane %v12479_v59, 1  ;;  %v2598_v34 = vrot.slane %v12183_v16, 2  ;;  %v2599_v18 = vrot.slane %v12185_v38, 2  ;;  %v2597_v45 = vsel %vm866_vm3, %v2594_v3, %v2596_v37 }
 0x390   : > { %18234 = vst [vmem:[#allocation127_spill] sm:$0xff] %v12485_v19  ;;  %2404 = vst.msk [vmem:[#allocation4 + $0x181] sm:$0xff] %vm562_vm4, %v2371_v8  ;;  %v2578_v32 = vrot.slane %v12487_v26, 1  ;;  %v2579_v13 = vrot.slane %v12489_v58, 1  ;;  %8629 = vrot.lane.b32.xlu1 %v12485_v19, %s17693_s17  ;;  %v2601_v54 = vrot.slane %v12177_v36, 2  ;;  %v2595_v36 = vsel %vm866_vm3, %v2593_v41, %v2594_v3 }
 0x391   : > { %v2606_v41 = vrot.slane %v12199_v51, 2  ;;  %v2608_v37 = vrot.slane %v12232_v17, 2  ;;  %v2609_v3 = vrot.slane %v12234_v35, 2 }
 0x392   : > { %v12503_v43 = vsel %vm785_vm2, %v2578_v32, %v2579_v13  ;;  %v12506_v12 = vsel %vm785_vm2, %v2579_v13, %v2581_v0  ;;  %v12508_v8 = vld [vmem:[#allocation4 + $0x178] sm:$0x3]  ;;  %v12523_v13 = vsel %vm866_vm3, %v2598_v34, %v2599_v18  ;;  %v12529_v33 = vsel %vm866_vm3, %v2599_v18, %v2601_v54 }
 0x393   : > { %18235 = vst [vmem:[#allocation71_spill] sm:$0xff] %v12503_v43  ;;  %18236 = vst [vmem:[#allocation70_spill] sm:$0xff] %v12506_v12  ;;  %v12512_v6 = vpack.i.bf16 %v12506_v12, %v12503_v43  ;;  %v12514_v61 = vld [vmem:[#allocation4 + $0x168] sm:$0xff]  ;;  %v12516_v52 = vld [vmem:[#allocation4 + $0x170] sm:$0xff]  ;;  %v2586_v19 = vrot.slane %v12508_v8, 1  ;;  %v2604_v12 = vrot.slane %v12209_v1, 2  ;;  %v12554_v51 = vpack.i.bf16 %v12529_v33, %v12523_v13 }
 0x394   : > { %v2583_v32 = vrot.slane %v12514_v61, 1  ;;  %v2584_v0 = vrot.slane %v12516_v52, 1  ;;  %18238 = vst [vmem:[#allocation101_spill] sm:$0xff] %v12523_v13  ;;  %18239 = vst [vmem:[#allocation39_spill] sm:$0xff] %v12529_v33  ;;  %v2611_v18 = vrot.slane %v12224_v55, 2  ;;  %v12563_v55 = vsel %vm866_vm3, %v2608_v37, %v2609_v3 }
 0x395   : > { %18237 = vst [vmem:[#allocation13_spill] sm:$0xff] %v12512_v6  ;;  %8634 = vrot.lane.b32.xlu0 %v12512_v6, %s17693_s17  ;;  %v12547_v6 = vpack.i.bf16 %v2597_v45, %v2595_v36  ;;  %18245 = vst [vmem:[#allocation40_spill] sm:$0xff] %v12563_v55  ;;  %v2613_v45 = vrot.slane %v12257_v62, 2  ;;  %v2616_v36 = vrot.slane %v12249_v29, 2  ;;  %v2641_v33 = vrot.slane %v12374_v4, 2 }
 0x396   : > { %v12535_v43 = vsel %vm785_vm2, %v2583_v32, %v2584_v0  ;;  %v12538_v34 = vsel %vm785_vm2, %v2584_v0, %v2586_v19  ;;  %v12557_v19 = vsel %vm866_vm3, %v2603_v30, %v2604_v12  ;;  %v12560_v32 = vsel %vm866_vm3, %v2604_v12, %v2606_v41 }
 0x397   : > { %18240 = vst [vmem:[#allocation129_spill] sm:$0xff] %v12535_v43  ;;  %18241 = vst [vmem:[#allocation73_spill] sm:$0xff] %v12538_v34  ;;  %v12544_v54 = vpack.i.bf16 %v12538_v34, %v12535_v43  ;;  %v12569_v0 = vsel %vm866_vm3, %v2609_v3, %v2611_v18  ;;  %v2618_v34 = vrot.slane %v12282_v40, 2  ;;  %v2619_v30 = vrot.slane %v12284_v47, 2 }
 0x398   : > { %18243 = vst [vmem:[#allocation103_spill] sm:$0xff] %v12557_v19  ;;  %18244 = vst [vmem:[#allocation102_spill] sm:$0xff] %v12560_v32  ;;  %v2621_v43 = vrot.slane %v12274_v50, 2  ;;  %v12580_v12 = vpack.i.bf16 %v12569_v0, %v12563_v55  ;;  %v12584_v29 = vpack.i.bf16 %v12560_v32, %v12557_v19  ;;  %v2623_v18 = vrot.slane %v12307_v44, 2 }
 0x399   : > { %18242 = vst [vmem:[#allocation72_spill] sm:$0xff] %v12544_v54  ;;  %8644 = vrot.lane.b32.xlu0 %v8643_v39, %s17691_s26  ;;  %8639 = vrot.lane.b32.xlu1 %v12544_v54, %s17693_s17  ;;  %v2614_v39 = vrot.slane %v12259_v46, 2  ;;  %18246 = vst [vmem:[#allocation130_spill] sm:$0xff] %v12569_v0  ;;  %v12593_v50 = vsel %vm866_vm3, %v2618_v34, %v2619_v30  ;;  %v2624_v0 = vrot.slane %v12309_v31, 2  ;;  %v2628_v55 = vrot.slane %v12332_v56, 2 }
 0x39a   : > { %18249 = vst [vmem:[#allocation105_spill] sm:$0xff] %v12593_v50  ;;  %v12596_v3 = vsel %vm866_vm3, %v2619_v30, %v2621_v43  ;;  %v2629_v32 = vrot.slane %v12334_v49, 2  ;;  %v2626_v19 = vrot.slane %v12299_v7, 2  ;;  %v2633_v43 = vrot.slane %v12357_v63, 2 }
 0x39b   : > { %v12587_v41 = vsel %vm866_vm3, %v2613_v45, %v2614_v39  ;;  %v12590_v37 = vsel %vm866_vm3, %v2614_v39, %v2616_v36  ;;  %18250 = vst [vmem:[#allocation14_spill] sm:$0xff] %v12596_v3  ;;  %v2631_v45 = vrot.slane %v12324_v9, 2  ;;  %v2634_v34 = vrot.slane %v12359_v20, 2 }
 0x39c   : > { %18247 = vst [vmem:[#allocation75_spill] sm:$0xff] %v12587_v41  ;;  %18248 = vst [vmem:[#allocation74_spill] sm:$0xff] %v12590_v37  ;;  %v12612_v39 = vpack.i.bf16 %v12590_v37, %v12587_v41  ;;  %v2636_v36 = vrot.slane %v12349_v11, 2  ;;  %v12617_v9 = vpack.i.bf16 %v12596_v3, %v12593_v50  ;;  %v2638_v7 = vrot.slane %v12382_v48, 2 }
 0x39d   : > { %8654 = vrot.lane.b32.xlu0 %v12554_v51, %s17691_s26  ;;  %8649 = vrot.lane.b32.xlu1 %v12547_v6, %s17691_s26  ;;  %v2639_v30 = vrot.slane %v12384_v23, 2  ;;  %v12623_v13 = vsel %vm866_vm3, %v2628_v55, %v2629_v32  ;;  %v12626_v54 = vsel %vm866_vm3, %v2629_v32, %v2631_v45  ;;  %v12629_v37 = vsel %vm866_vm3, %v2623_v18, %v2624_v0 }
 0x39e   : > { %18251 = vst [vmem:[#allocation35_spill] sm:$0xff] %v12623_v13  ;;  %18252 = vst [vmem:[#allocation104_spill] sm:$0xff] %v12626_v54  ;;  %v12632_v11 = vsel %vm866_vm3, %v2624_v0, %v2626_v19  ;;  %v12639_v4 = vsel %vm866_vm3, %v2633_v43, %v2634_v34  ;;  %v12642_v55 = vsel %vm866_vm3, %v2634_v34, %v2636_v36  ;;  %v2643_v32 = vrot.slane %v12407_v5, 2 }
 0x39f   : > { %18253 = vst [vmem:[#allocation42_spill] sm:$0xff] %v12629_v37  ;;  %18254 = vst [vmem:[#allocation34_spill] sm:$0xff] %v12632_v11  ;;  %v2644_v18 = vrot.slane %v12409_v25, 2  ;;  %v2646_v45 = vrot.slane %v12399_v21, 2  ;;  %v12649_v19 = vpack.i.bf16 %v12626_v54, %v12623_v13  ;;  %v12653_v0 = vpack.i.bf16 %v12632_v11, %v12629_v37 }
 0x3a0   : > { %18255 = vst [vmem:[#allocation168_spill] sm:$0xff] %v12639_v4  ;;  %18256 = vst [vmem:[#allocation131_spill] sm:$0xff] %v12642_v55  ;;  %v12656_v43 = vsel %vm866_vm3, %v2638_v7, %v2639_v30  ;;  %v12659_v34 = vsel %vm866_vm3, %v2639_v30, %v2641_v33  ;;  %v2648_v36 = vrot.slane %v12432_v2, 2  ;;  %v2649_v3 = vrot.slane %v12434_v60, 2 }
 0x3a1   : > { %8664 = vrot.lane.b32.xlu0 %v12580_v12, %s17691_s26  ;;  %8659 = vrot.lane.b32.xlu1 %v12584_v29, %s17691_s26  ;;  %18257 = vst [vmem:[#allocation147_spill] sm:$0xff] %v12656_v43  ;;  %18258 = vst [vmem:[#allocation167_spill] sm:$0xff] %v12659_v34  ;;  %v2651_v21 = vrot.slane %v12424_v57, 2  ;;  %v12670_v54 = vpack.i.bf16 %v12642_v55, %v12639_v4  ;;  %v12674_v33 = vpack.i.bf16 %v12659_v34, %v12656_v43 }
 0x3a2   : > { %v12677_v7 = vsel %vm866_vm3, %v2643_v32, %v2644_v18  ;;  %v12680_v30 = vsel %vm866_vm3, %v2644_v18, %v2646_v45  ;;  %v2653_v57 = vrot.slane %v12460_v27, 2  ;;  %v2658_v13 = vrot.slane %v12487_v26, 2 }
 0x3a3   : > { %18259 = vst [vmem:[#allocation77_spill] sm:$0xff] %v12677_v7  ;;  %18260 = vst [vmem:[#allocation146_spill] sm:$0xff] %v12680_v30  ;;  %v2659_v11 = vrot.slane %v12489_v58, 2  ;;  %v2654_v37 = vrot.slane %v12462_v28, 2  ;;  %v2656_v55 = vrot.slane %v12452_v10, 2  ;;  %v12688_v4 = vsel %vm866_vm3, %v2648_v36, %v2649_v3 }
 0x3a4   : > { %18261 = vst [vmem:[#allocation16_spill] sm:$0xff] %v12688_v4  ;;  %v12691_v34 = vsel %vm866_vm3, %v2649_v3, %v2651_v21  ;;  %v2661_v32 = vrot.slane %v12479_v59, 2  ;;  %v12700_v18 = vpack.i.bf16 %v12680_v30, %v12677_v7  ;;  %v2663_v21 = vrot.slane %v12514_v61, 2 }
 0x3a5   : > { %8674 = vrot.lane.b32.xlu0 %v12617_v9, %s17691_s26  ;;  %8669 = vrot.lane.b32.xlu1 %v12612_v39, %s17691_s26  ;;  %18262 = vst [vmem:[#allocation76_spill] sm:$0xff] %v12691_v34  ;;  %v12704_v10 = vpack.i.bf16 %v12691_v34, %v12688_v4  ;;  %v12707_v45 = vsel %vm866_vm3, %v2658_v13, %v2659_v11  ;;  %v2664_v30 = vrot.slane %v12516_v52, 2  ;;  %v2666_v34 = vrot.slane %v12508_v8, 2 }
 0x3a6   : > { %18263 = vst [vmem:[#allocation107_spill] sm:$0xff] %v12707_v45  ;;  %v12710_v3 = vsel %vm866_vm3, %v2653_v57, %v2654_v37  ;;  %v12713_v59 = vsel %vm866_vm3, %v2654_v37, %v2656_v55  ;;  %v12716_v36 = vsel %vm866_vm3, %v2659_v11, %v2661_v32  ;;  %v8723_v8 = vpack.i.bf16 %v12164_v22, %v12162_v42  ;;  %v4088_v32 = vld [vmem:[%s12757_s18 + $0x18] sm:$0xff] }
 0x3a7   : > { %18264 = vst [vmem:[#allocation15_spill] sm:$0xff] %v12710_v3  ;;  %18265 = vst [vmem:[#allocation37_spill] sm:$0xff] %v12713_v59  ;;  %v12727_v13 = vpack.i.bf16 %v12716_v36, %v12707_v45  ;;  %v12731_v37 = vpack.i.bf16 %v12713_v59, %v12710_v3  ;;  %v12734_v11 = vsel %vm866_vm3, %v2663_v21, %v2664_v30 }
 0x3a8   : > { %18266 = vst [vmem:[#allocation106_spill] sm:$0xff] %v12716_v36  ;;  %18267 = vst [vmem:[#allocation44_spill] sm:$0xff] %v12734_v11  ;;  %v12737_v55 = vsel %vm866_vm3, %v2664_v30, %v2666_v34  ;;  %v18270_v34 = vmov 0.0   ;;  %v8733_v42 = vpack.i.bf16 %v12209_v1, %v12207_v53  ;;  %v8728_v22 = vpack.i.bf16 %v12185_v38, %v12183_v16  ;;  %v4085_v16 = vld [vmem:[%s12757_s18] sm:$0xff]  ;;  %v4086_v38 = vld [vmem:[%s12757_s18 + $0x8] sm:$0xff] }
 0x3a9   : > { %8684 = vrot.lane.b32.xlu0 %v12649_v19, %s17691_s26  ;;  %8679 = vrot.lane.b32.xlu1 %v12653_v0, %s17691_s26  ;;  %18268 = vst [vmem:[#allocation36_spill] sm:$0xff] %v12737_v55  ;;  %v12747_v57 = vpack.i.bf16 %v12737_v55, %v12734_v11  ;;  %507 = vst.msk [vmem:[#allocation3] sm:$0xff] %vm506_vm14, %v18270_v34  ;;  %v8743_v53 = vpack.i.bf16 %v12259_v46, %v12257_v62  ;;  %v4087_v30 = vld [vmem:[%s12757_s18 + $0x10] sm:$0xff]  ;;  %v4089_v46 = vld [vmem:[%s12757_s18 + $0x20] sm:$0xff] }
 0x3aa   : > { %508 = vst.msk [vmem:[#allocation3 + $0x8] sm:$0xff] %vm506_vm14, %v18270_v34  ;;  %511 = vst.msk [vmem:[#allocation3 + $0x18] sm:$0xff] %vm506_vm14, %v18270_v34  ;;  %v8738_v1 = vpack.i.bf16 %v12234_v35, %v12232_v17  ;;  %v8753_v21 = vpack.i.bf16 %v12309_v31, %v12307_v44  ;;  %v8748_v62 = vpack.i.bf16 %v12284_v47, %v12282_v40  ;;  %v4090_v17 = vld [vmem:[%s12757_s18 + $0x28] sm:$0xff]  ;;  %v4091_v40 = vld [vmem:[%s12757_s18 + $0x30] sm:$0xff] }
 0x3ab   : > { %512 = vst.msk [vmem:[#allocation3 + $0x20] sm:$0xff] %vm506_vm14, %v18270_v34  ;;  %514 = vst.msk [vmem:[#allocation3 + $0x30] sm:$0xff] %vm506_vm14, %v18270_v34  ;;  %v8763_v35 = vpack.i.bf16 %v12359_v20, %v12357_v63  ;;  %v8758_v44 = vpack.i.bf16 %v12334_v49, %v12332_v56  ;;  %v4092_v47 = vld [vmem:[%s12757_s18 + $0x38] sm:$0xff]  ;;  %v8773_v31 = vpack.i.bf16 %v12409_v25, %v12407_v5  ;;  %v4093_v56 = vld [vmem:[%s12757_s18 + $0x40] sm:$0xff] }
 0x3ac   : > { %515 = vst.msk [vmem:[#allocation3 + $0x38] sm:$0xff] %vm506_vm14, %v18270_v34  ;;  %517 = vst.msk [vmem:[#allocation3 + $0x48] sm:$0xff] %vm506_vm14, %v18270_v34  ;;  %v8768_v63 = vpack.i.bf16 %v12384_v23, %v12382_v48  ;;  %v4094_v49 = vld [vmem:[%s12757_s18 + $0x48] sm:$0xff]  ;;  %v12919_v20 = vpack.i.bf16 %v12462_v28, %v12460_v27  ;;  %v12923_v5 = vpack.i.bf16 %v12434_v60, %v12432_v2  ;;  %v3496_v48 = vld [vmem:[%s18271_s4] sm:$0xff]  ;;  %v17493_v2 = vmov 0.0|0.0  }
 0x3ad   : > { %8694 = vrot.lane.b32.xlu0 %v12674_v33, %s17691_s26  ;;  %8689 = vrot.lane.b32.xlu1 %v12670_v54, %s17691_s26  ;;  %518 = vst.msk [vmem:[#allocation3 + $0x50] sm:$0xff] %vm506_vm14, %v18270_v34  ;;  %520 = vst.msk [vmem:[#allocation3 + $0x60] sm:$0xff] %vm506_vm14, %v18270_v34  ;;  %v3497_v23 = vld [vmem:[%s18271_s4 + $0x8] sm:$0xff]  ;;  %v4095_v25 = vld [vmem:[%s12757_s18 + $0x50] sm:$0xff]  ;;  %v12942_v28 = vpack.i.bf16 %v12516_v52, %v12514_v61 }
 0x3ae   : > { %521 = vst.msk [vmem:[#allocation3 + $0x68] sm:$0xff] %vm506_vm14, %v18270_v34  ;;  %523 = vst.msk [vmem:[#allocation3 + $0x78] sm:$0xff] %vm506_vm14, %v18270_v34  ;;  %v8341_v27 = vpack.c.bf16 %v3497_v23, %v3496_v48  ;;  %8340 = vmatprep.subr.bf16.mxu0 %v17493_v2  ;;  %v4096_v60 = vld [vmem:[%s12757_s18 + $0x58] sm:$0xff]  ;;  %8462 = vmatprep.subr.bf16.mxu1 %v17493_v2  ;;  %v3498_v52 = vld [vmem:[%s18271_s4 + $0x10] sm:$0xff] }
 0x3af   : > { %524 = vst.msk [vmem:[#allocation3 + $0x80] sm:$0xff] %vm506_vm14, %v18270_v34  ;;  %526 = vst.msk [vmem:[#allocation3 + $0x90] sm:$0xff] %vm506_vm14, %v18270_v34  ;;  %v3499_v61 = vld [vmem:[%s18271_s4 + $0x18] sm:$0xff]  ;;  %v4107_v48 = vld [vmem:[%s12757_s18 + $0xb0] sm:$0xff] }
 0x3b0   : > { %527 = vst.msk [vmem:[#allocation3 + $0x98] sm:$0xff] %vm506_vm14, %v18270_v34  ;;  %529 = vst.msk [vmem:[#allocation3 + $0xa8] sm:$0xff] %vm506_vm14, %v18270_v34  ;;  %8342 = vmatpush1.bf16.msra.mxu0 %v8341_v27  ;;  %8478 = vmatpush1.bf16.msra.mxu1 %v8341_v27  ;;  %v4108_v23 = vld [vmem:[%s12757_s18 + $0xb8] sm:$0xff] }
 0x3b1   : > { %8704 = vrot.lane.b32.xlu0 %v12704_v10, %s17691_s26  ;;  %8699 = vrot.lane.b32.xlu1 %v12700_v18, %s17691_s26  ;;  %530 = vst.msk [vmem:[#allocation3 + $0xb0] sm:$0xff] %vm506_vm14, %v18270_v34  ;;  %532 = vst.msk [vmem:[#allocation3 + $0xc0] sm:$0xff] %vm506_vm14, %v18270_v34 }
 0x3b2   : > { %533 = vst.msk [vmem:[#allocation3 + $0xc8] sm:$0xff] %vm506_vm14, %v18270_v34  ;;  %535 = vst.msk [vmem:[#allocation3 + $0xd8] sm:$0xff] %vm506_vm14, %v18270_v34  ;;  %8343 = vmatprep.subr.bf16.mxu0 %v17493_v2  ;;  %8463 = vmatprep.subr.bf16.mxu1 %v17493_v2 }
 0x3b3   : > { %536 = vst.msk [vmem:[#allocation3 + $0xe0] sm:$0xff] %vm506_vm14, %v18270_v34  ;;  %538 = vst.msk [vmem:[#allocation3 + $0xf0] sm:$0xff] %vm506_vm14, %v18270_v34 }
 0x3b4   : > { %539 = vst.msk [vmem:[#allocation3 + $0xf8] sm:$0xff] %vm506_vm14, %v18270_v34  ;;  %541 = vst.msk [vmem:[#allocation3 + $0x108] sm:$0xff] %vm506_vm14, %v18270_v34 }
 0x3b5   : > { %8714 = vrot.lane.b32.xlu0 %v12727_v13, %s17691_s26  ;;  %8709 = vrot.lane.b32.xlu1 %v12731_v37, %s17691_s26  ;;  %542 = vst.msk [vmem:[#allocation3 + $0x110] sm:$0xff] %vm506_vm14, %v18270_v34  ;;  %544 = vst.msk [vmem:[#allocation3 + $0x120] sm:$0xff] %vm506_vm14, %v18270_v34 }
 0x3b6   : > { %545 = vst.msk [vmem:[#allocation3 + $0x128] sm:$0xff] %vm506_vm14, %v18270_v34  ;;  %547 = vst.msk [vmem:[#allocation3 + $0x138] sm:$0xff] %vm506_vm14, %v18270_v34 }
 0x3b7   : > { %548 = vst.msk [vmem:[#allocation3 + $0x140] sm:$0xff] %vm506_vm14, %v18270_v34  ;;  %550 = vst.msk [vmem:[#allocation3 + $0x150] sm:$0xff] %vm506_vm14, %v18270_v34 }
 0x3b8   : > { %551 = vst.msk [vmem:[#allocation3 + $0x158] sm:$0xff] %vm506_vm14, %v18270_v34  ;;  %553 = vst.msk [vmem:[#allocation3 + $0x168] sm:$0xff] %vm506_vm14, %v18270_v34 }
 0x3b9   : > { %8724 = vrot.lane.b32.xlu0 %v8723_v8, %s17689_s28  ;;  %8719 = vrot.lane.b32.xlu1 %v12747_v57, %s17691_s26  ;;  %554 = vst.msk [vmem:[#allocation3 + $0x170] sm:$0xff] %vm506_vm14, %v18270_v34  ;;  %556 = vst.msk [vmem:[#allocation3 + $0x180] sm:$0xff] %vm506_vm14, %v18270_v34  ;;  %v12946_v8 = vpack.i.bf16 %v12489_v58, %v12487_v26  ;;  %v4097_v26 = vld [vmem:[%s12757_s18 + $0x60] sm:$0xff]  ;;  %v8344_v58 = vpack.c.bf16 %v3499_v61, %v3498_v52  ;;  %v4110_v52 = vld [vmem:[%s12757_s18 + $0xc8] sm:$0xff] }
 0x3ba   : > { %557 = vst.msk [vmem:[#allocation3 + $0x188] sm:$0xff] %vm506_vm14, %v18270_v34  ;;  %559 = vst.msk [vmem:[#allocation3 + $0x198] sm:$0xff] %vm506_vm14, %v18270_v34 }
 0x3bb   : > { %560 = vst.msk [vmem:[#allocation3 + $0x1a0] sm:$0xff] %vm506_vm14, %v18270_v34  ;;  %4118 = vst.msk [vmem:[#allocation3 + $0x19] sm:$0xff] %vm506_vm14, %v4085_v16  ;;  %8345 = vmatpush1.bf16.msra.mxu0 %v8344_v58  ;;  %8479 = vmatpush1.bf16.msra.mxu1 %v8344_v58 }
 0x3bc   : > { %510 = vst.msk [vmem:[#allocation3 + $0x10] sm:$0x3] %vm509_vm15, %v18270_v34  ;;  %513 = vst.msk [vmem:[#allocation3 + $0x28] sm:$0x3] %vm509_vm15, %v18270_v34  ;;  %8346 = vmatprep.subr.bf16.mxu0 %v17493_v2  ;;  %8464 = vmatprep.subr.bf16.mxu1 %v17493_v2 }
 0x3bd   : > { %8734 = vrot.lane.b32.xlu0 %v8733_v42, %s17689_s28  ;;  %8729 = vrot.lane.b32.xlu1 %v8728_v22, %s17689_s28  ;;  %516 = vst.msk [vmem:[#allocation3 + $0x40] sm:$0x3] %vm509_vm15, %v18270_v34  ;;  %519 = vst.msk [vmem:[#allocation3 + $0x58] sm:$0x3] %vm509_vm15, %v18270_v34  ;;  %v12950_v42 = vld [vmem:[#allocation4 + $0x188] sm:$0xff] }
 0x3be   : > { %522 = vst.msk [vmem:[#allocation3 + $0x70] sm:$0x3] %vm509_vm15, %v18270_v34  ;;  %525 = vst.msk [vmem:[#allocation3 + $0x88] sm:$0x3] %vm509_vm15, %v18270_v34  ;;  %v4098_v22 = vld [vmem:[%s12757_s18 + $0x68] sm:$0xff] }
 0x3bf   : > { %528 = vst.msk [vmem:[#allocation3 + $0xa0] sm:$0x3] %vm509_vm15, %v18270_v34  ;;  %531 = vst.msk [vmem:[#allocation3 + $0xb8] sm:$0x3] %vm509_vm15, %v18270_v34 }
 0x3c0   : > { %534 = vst.msk [vmem:[#allocation3 + $0xd0] sm:$0x3] %vm509_vm15, %v18270_v34  ;;  %537 = vst.msk [vmem:[#allocation3 + $0xe8] sm:$0x3] %vm509_vm15, %v18270_v34 }
 0x3c1   : > { %540 = vst.msk [vmem:[#allocation3 + $0x100] sm:$0x3] %vm509_vm15, %v18270_v34  ;;  %543 = vst.msk [vmem:[#allocation3 + $0x118] sm:$0x3] %vm509_vm15, %v18270_v34  ;;  %8744 = vrot.lane.b32.xlu0 %v8743_v53, %s17689_s28  ;;  %8739 = vrot.lane.b32.xlu1 %v8738_v1, %s17689_s28  ;;  %v3501_v53 = vld [vmem:[%s18271_s4 + $0x28] sm:$0xff] }
 0x3c2   : > { %546 = vst.msk [vmem:[#allocation3 + $0x130] sm:$0x3] %vm509_vm15, %v18270_v34  ;;  %549 = vst.msk [vmem:[#allocation3 + $0x148] sm:$0x3] %vm509_vm15, %v18270_v34 }
 0x3c3   : > { %552 = vst.msk [vmem:[#allocation3 + $0x160] sm:$0x3] %vm509_vm15, %v18270_v34  ;;  %555 = vst.msk [vmem:[#allocation3 + $0x178] sm:$0x3] %vm509_vm15, %v18270_v34 }
 0x3c4   : > { %558 = vst.msk [vmem:[#allocation3 + $0x190] sm:$0x3] %vm509_vm15, %v18270_v34  ;;  %561 = vst.msk [vmem:[#allocation3 + $0x1a8] sm:$0x3] %vm509_vm15, %v18270_v34  ;;  %v12948_v34 = vld [vmem:[#allocation4 + $0x180] sm:$0xff]  ;;  %vm5402_vm15 = vcmask 171008  }
 0x3c5   : > { %4119 = vst.msk [vmem:[#allocation3 + $0x21] sm:$0xff] %vm506_vm14, %v4086_v38  ;;  %4120 = vst.msk [vmem:[#allocation3 + $0x31] sm:$0xff] %vm506_vm14, %v4087_v30  ;;  %8754 = vrot.lane.b32.xlu0 %v8753_v21, %s17689_s28  ;;  %8749 = vrot.lane.b32.xlu1 %v8748_v62, %s17689_s28  ;;  %v12970_v16 = vpack.i.bf16 %v12950_v42, %v12948_v34  ;;  %v3500_v38 = vld [vmem:[%s18271_s4 + $0x20] sm:$0xff]  ;;  %v4099_v30 = vld [vmem:[%s12757_s18 + $0x70] sm:$0xff] }
 0x3c6   : > { %4121 = vst.msk [vmem:[#allocation3 + $0x39] sm:$0xff] %vm506_vm14, %v4088_v32  ;;  %4122 = vst.msk [vmem:[#allocation3 + $0x49] sm:$0xff] %vm506_vm14, %v4089_v46  ;;  %v8347_v1 = vpack.c.bf16 %v3501_v53, %v3500_v38  ;;  %v4100_v32 = vld [vmem:[%s12757_s18 + $0x78] sm:$0xff]  ;;  %v4101_v46 = vld [vmem:[%s12757_s18 + $0x80] sm:$0xff] }
 0x3c7   : > { %4123 = vst.msk [vmem:[#allocation3 + $0x51] sm:$0xff] %vm506_vm14, %v4090_v17  ;;  %4124 = vst.msk [vmem:[#allocation3 + $0x61] sm:$0xff] %vm506_vm14, %v4091_v40  ;;  %v3503_v21 = vld [vmem:[%s18271_s4 + $0x38] sm:$0xff]  ;;  %v4102_v17 = vld [vmem:[%s12757_s18 + $0x88] sm:$0xff] }
 0x3c8   : > { %4125 = vst.msk [vmem:[#allocation3 + $0x69] sm:$0xff] %vm506_vm14, %v4092_v47  ;;  %4126 = vst.msk [vmem:[#allocation3 + $0x79] sm:$0xff] %vm506_vm14, %v4093_v56  ;;  %8348 = vmatpush1.bf16.msra.mxu0 %v8347_v1  ;;  %8480 = vmatpush1.bf16.msra.mxu1 %v8347_v1  ;;  %v4104_v40 = vld [vmem:[%s12757_s18 + $0x98] sm:$0xff]  ;;  %v3506_v47 = vld [vmem:[%s18271_s4 + $0x50] sm:$0xff] }
 0x3c9   : > { %8764 = vrot.lane.b32.xlu0 %v8763_v35, %s17689_s28  ;;  %8759 = vrot.lane.b32.xlu1 %v8758_v44, %s17689_s28  ;;  %4127 = vst.msk [vmem:[#allocation3 + $0x81] sm:$0xff] %vm506_vm14, %v4094_v49  ;;  %4128 = vst.msk [vmem:[#allocation3 + $0x91] sm:$0xff] %vm506_vm14, %v4095_v25  ;;  %v4103_v35 = vld [vmem:[%s12757_s18 + $0x90] sm:$0xff]  ;;  %v3508_v56 = vld [vmem:[%s18271_s4 + $0x60] sm:$0xff] }
 0x3ca   : > { %4129 = vst.msk [vmem:[#allocation3 + $0x99] sm:$0xff] %vm506_vm14, %v4096_v60  ;;  %4130 = vst.msk [vmem:[#allocation3 + $0xa9] sm:$0xff] %vm506_vm14, %v4097_v26  ;;  %8349 = vmatprep.subr.bf16.mxu0 %v17493_v2  ;;  %8465 = vmatprep.subr.bf16.mxu1 %v17493_v2  ;;  %v13067_v25 = vld [vmem:[#allocation4 + $0x190] sm:$0x3]  ;;  %v4109_v60 = vld [vmem:[%s12757_s18 + $0xc0] sm:$0xff] }
 0x3cb   : > { %4131 = vst.msk [vmem:[#allocation3 + $0xb1] sm:$0xff] %vm506_vm14, %v4098_v22  ;;  %4132 = vst.msk [vmem:[#allocation3 + $0xc1] sm:$0xff] %vm506_vm14, %v4099_v30  ;;  %v2711_v58 = vrot.slane %v13067_v25, 2  ;;  %v3512_v22 = vld [vmem:[%s18271_s4 + $0x80] sm:$0xff]  ;;  %v3513_v38 = vld [vmem:[%s18271_s4 + $0x88] sm:$0xff] }
 0x3cc   : > { %4133 = vst.msk [vmem:[#allocation3 + $0xc9] sm:$0xff] %vm506_vm14, %v4100_v32  ;;  %4134 = vst.msk [vmem:[#allocation3 + $0xd9] sm:$0xff] %vm506_vm14, %v4101_v46  ;;  %v4111_v53 = vld [vmem:[%s12757_s18 + $0xd0] sm:$0xff]  ;;  %v8365_v1 = vpack.c.bf16 %v3513_v38, %v3512_v22  ;;  %v4112_v30 = vld [vmem:[%s12757_s18 + $0xd8] sm:$0xff] }
 0x3cd   : > { %8774 = vrot.lane.b32.xlu0 %v8773_v31, %s17689_s28  ;;  %8769 = vrot.lane.b32.xlu1 %v8768_v63, %s17689_s28  ;;  %4135 = vst.msk [vmem:[#allocation3 + $0xe1] sm:$0xff] %vm506_vm14, %v4102_v17  ;;  %4136 = vst.msk [vmem:[#allocation3 + $0xf1] sm:$0xff] %vm506_vm14, %v4103_v35  ;;  %v4106_v63 = vld [vmem:[%s12757_s18 + $0xa8] sm:$0xff]  ;;  %v4113_v46 = vld [vmem:[%s12757_s18 + $0xe0] sm:$0xff] }
 0x3ce   : > { %4137 = vst.msk [vmem:[#allocation3 + $0xf9] sm:$0xff] %vm506_vm14, %v4104_v40  ;;  %4139 = vst.msk [vmem:[#allocation3 + $0x111] sm:$0xff] %vm506_vm14, %v4106_v63  ;;  %v13127_v40 = vld [vmem:[#allocation4 + $0x38] sm:$0xff]  ;;  %v13356_v59 = vld [vmem:[#allocation3 + $0x30] sm:$0xff] }
 0x3cf   : > { %4140 = vst.msk [vmem:[#allocation3 + $0x121] sm:$0xff] %vm506_vm14, %v4107_v48  ;;  %4141 = vst.msk [vmem:[#allocation3 + $0x129] sm:$0xff] %vm506_vm14, %v4108_v23  ;;  %v13154_v48 = vld [vmem:[#allocation4 + $0x48] sm:$0xff]  ;;  %v13156_v23 = vld [vmem:[#allocation4 + $0x50] sm:$0xff] }
 0x3d0   : > { %4142 = vst.msk [vmem:[#allocation3 + $0x139] sm:$0xff] %vm506_vm14, %v4109_v60  ;;  %4143 = vst.msk [vmem:[#allocation3 + $0x141] sm:$0xff] %vm506_vm14, %v4110_v52  ;;  %v13073_v61 = vpop.permute.xlu1 %8569  ;;  %v13174_v38 = vld [vmem:[#allocation4 + $0x78] sm:$0xff] }
 0x3d1   : > { %8784 = vrot.lane.b32.xlu0 %v12919_v20, %s17689_s28  ;;  %8779 = vrot.lane.b32.xlu1 %v12923_v5, %s17689_s28  ;;  %4144 = vst.msk [vmem:[#allocation3 + $0x151] sm:$0xff] %vm506_vm14, %v4111_v53  ;;  %4145 = vst.msk [vmem:[#allocation3 + $0x159] sm:$0xff] %vm506_vm14, %v4112_v30  ;;  %v13176_v53 = vld [vmem:[#allocation4 + $0x80] sm:$0xff]  ;;  %v13373_v4 = vld [vmem:[#allocation3 + $0x48] sm:$0xff] }
 0x3d2   : > { %4146 = vst.msk [vmem:[#allocation3 + $0x169] sm:$0xff] %vm506_vm14, %v4113_v46  ;;  %v3520_v30 = vld [vmem:[%s18271_s4 + $0xc0] sm:$0xff] }
 0x3d5   : > { %8794 = vrot.lane.b32.xlu0 %v12942_v28, %s17689_s28  ;;  %8789 = vrot.lane.b32.xlu1 %v12946_v8, %s17689_s28 }
 0x3d8   : > { %v13095_v32 = vpop.permute.xlu1 %8579 }
 0x3d9   : > { %8804 = vrot.lane.b32.xlu0 %v12547_v6, %s17693_s17  ;;  %8799 = vrot.lane.b32.xlu1 %v12970_v16, %s17689_s28  ;;  %v3502_v6 = vld [vmem:[%s18271_s4 + $0x30] sm:$0xff] }
 0x3da   : > { %v8350_v62 = vpack.c.bf16 %v3503_v21, %v3502_v6 }
 0x3dc   : > { %8351 = vmatpush1.bf16.msra.mxu0 %v8350_v62  ;;  %8481 = vmatpush1.bf16.msra.mxu1 %v8350_v62  ;;  %v3515_v62 = vld [vmem:[%s18271_s4 + $0x98] sm:$0xff] }
 0x3dd   : > { %8814 = vrot.lane.b32.xlu0 %v12584_v29, %s17693_s17  ;;  %8809 = vrot.lane.b32.xlu1 %v12554_v51, %s17693_s17  ;;  %v3504_v29 = vld [vmem:[%s18271_s4 + $0x40] sm:$0xff]  ;;  %v3505_v51 = vld [vmem:[%s18271_s4 + $0x48] sm:$0xff] }
 0x3de   : > { %8352 = vmatprep.subr.bf16.mxu0 %v17493_v2  ;;  %8466 = vmatprep.subr.bf16.mxu1 %v17493_v2  ;;  %v8353_v44 = vpack.c.bf16 %v3505_v51, %v3504_v29  ;;  %v4114_v29 = vld [vmem:[%s12757_s18 + $0xe8] sm:$0xff] }
 0x3df   : > { %4147 = vst.msk [vmem:[#allocation3 + $0x171] sm:$0xff] %vm506_vm14, %v4114_v29  ;;  %v9565_v29 = vld [vmem:[#allocation4 + $0xc0] sm:$0xff] }
 0x3e0   : > { %8354 = vmatpush1.bf16.msra.mxu0 %v8353_v44  ;;  %8482 = vmatpush1.bf16.msra.mxu1 %v8353_v44  ;;  %v13125_v44 = vld [vmem:[#allocation4 + $0x30] sm:$0xff] }
 0x3e1   : > { %8824 = vrot.lane.b32.xlu0 %v12612_v39, %s17693_s17  ;;  %8819 = vrot.lane.b32.xlu1 %v12580_v12, %s17693_s17  ;;  %v3507_v39 = vld [vmem:[%s18271_s4 + $0x58] sm:$0xff]  ;;  %v4105_v12 = vld [vmem:[%s12757_s18 + $0xa0] sm:$0xff]  ;;  %v13121_v51 = vpop.permute.xlu1 %8589 }
 0x3e2   : > { %8355 = vmatprep.subr.bf16.mxu0 %v17493_v2  ;;  %8467 = vmatprep.subr.bf16.mxu1 %v17493_v2  ;;  %v8356_v31 = vpack.c.bf16 %v3507_v39, %v3506_v47  ;;  %4138 = vst.msk [vmem:[#allocation3 + $0x109] sm:$0xff] %vm506_vm14, %v4105_v12  ;;  %v8883_v47 = vpack.i.bf16 %v13127_v40, %v13125_v44  ;;  %v3517_v39 = vld [vmem:[%s18271_s4 + $0xa8] sm:$0xff] }
 0x3e4   : > { %8357 = vmatpush1.bf16.msra.mxu0 %v8356_v31  ;;  %8483 = vmatpush1.bf16.msra.mxu1 %v8356_v31 }
 0x3e5   : > { %8834 = vrot.lane.b32.xlu0 %v12653_v0, %s17693_s17  ;;  %8829 = vrot.lane.b32.xlu1 %v12617_v9, %s17693_s17  ;;  %v3509_v0 = vld [vmem:[%s18271_s4 + $0x68] sm:$0xff]  ;;  %v13045_v9 = vpop.permute.xlu0 %8564 }
 0x3e6   : > { %8358 = vmatprep.subr.bf16.mxu0 %v17493_v2  ;;  %8468 = vmatprep.subr.bf16.mxu1 %v17493_v2  ;;  %v8359_v49 = vpack.c.bf16 %v3509_v0, %v3508_v56  ;;  %v13148_v56 = vld [vmem:[#allocation4 + $0x60] sm:$0xff]  ;;  %v13150_v0 = vld [vmem:[#allocation4 + $0x68] sm:$0xff] }
 0x3e8   : > { %8360 = vmatpush1.bf16.msra.mxu0 %v8359_v49  ;;  %8484 = vmatpush1.bf16.msra.mxu1 %v8359_v49  ;;  %v8893_v49 = vpack.i.bf16 %v13150_v0, %v13148_v56 }
 0x3e9   : > { %8844 = vrot.lane.b32.xlu0 %v12670_v54, %s17693_s17  ;;  %8839 = vrot.lane.b32.xlu1 %v12649_v19, %s17693_s17  ;;  %v3510_v54 = vld [vmem:[%s18271_s4 + $0x70] sm:$0xff]  ;;  %v3511_v19 = vld [vmem:[%s18271_s4 + $0x78] sm:$0xff]  ;;  %v13075_v26 = vpop.permute.xlu0 %8574  ;;  %v13144_v31 = vpop.permute.xlu1 %8599 }
 0x3ea   : > { %8361 = vmatprep.subr.bf16.mxu0 %v17493_v2  ;;  %8469 = vmatprep.subr.bf16.mxu1 %v17493_v2  ;;  %v8362_v27 = vpack.c.bf16 %v3511_v19, %v3510_v54  ;;  %18275 = vst [vmem:[#allocation169_spill] sm:$0xff] %v13144_v31  ;;  %v8888_v54 = vpack.i.bf16 %v13156_v23, %v13154_v48  ;;  %v3518_v19 = vld [vmem:[%s18271_s4 + $0xb0] sm:$0xff]  ;;  %v13466_v31 = vld [vmem:[#allocation3 + $0xb0] sm:$0xff] }
 0x3ec   : > { %8363 = vmatpush1.bf16.msra.mxu0 %v8362_v27  ;;  %8485 = vmatpush1.bf16.msra.mxu1 %v8362_v27  ;;  %v3519_v27 = vld [vmem:[%s18271_s4 + $0xb8] sm:$0xff] }
 0x3ed   : > { %8854 = vrot.lane.b32.xlu0 %v12700_v18, %s17693_s17  ;;  %8849 = vrot.lane.b32.xlu1 %v12674_v33, %s17693_s17  ;;  %v2708_v18 = vrot.slane %v12948_v34, 2  ;;  %v2709_v33 = vrot.slane %v12950_v42, 2  ;;  %v13097_v6 = vpop.permute.xlu0 %8584  ;;  %v8374_v60 = vpack.c.bf16 %v3519_v27, %v3518_v19 }
 0x3ee   : > { %8364 = vmatprep.subr.bf16.mxu0 %v17493_v2  ;;  %8470 = vmatprep.subr.bf16.mxu1 %v17493_v2 }
 0x3ef   : > { %v13101_v21 = vsel %vm866_vm3, %v2708_v18, %v2709_v33 }
 0x3f0   : > { %8366 = vmatpush1.bf16.msra.mxu0 %v8365_v1  ;;  %8486 = vmatpush1.bf16.msra.mxu1 %v8365_v1  ;;  %18272 = vst [vmem:[#allocation170_spill] sm:$0xff] %v13101_v21  ;;  %v8898_v1 = vpack.i.bf16 %v13176_v53, %v13174_v38 }
 0x3f1   : > { %8864 = vrot.lane.b32.xlu0 %v12731_v37, %s17693_s17  ;;  %8859 = vrot.lane.b32.xlu1 %v12704_v10, %s17693_s17  ;;  %v13104_v37 = vsel %vm866_vm3, %v2709_v33, %v2711_v58  ;;  %v3514_v10 = vld [vmem:[%s18271_s4 + $0x90] sm:$0xff]  ;;  %v13123_v35 = vpop.permute.xlu0 %8594  ;;  %v13170_v52 = vpop.permute.xlu1 %8609  ;;  %v9562_v58 = vld [vmem:[#allocation4 + $0x98] sm:$0xff] }
 0x3f2   : > { %18273 = vst [vmem:[#allocation132_spill] sm:$0xff] %v13104_v37  ;;  %8367 = vmatprep.subr.bf16.mxu0 %v17493_v2  ;;  %8471 = vmatprep.subr.bf16.mxu1 %v17493_v2  ;;  %v8368_v17 = vpack.c.bf16 %v3515_v62, %v3514_v10  ;;  %18274 = vst [vmem:[#allocation149_spill] sm:$0xff] %v13123_v35  ;;  %v9561_v33 = vld [vmem:[#allocation4 + $0x90] sm:$0xff]  ;;  %v3521_v10 = vld [vmem:[%s18271_s4 + $0xc8] sm:$0xff] }
 0x3f3   : > { %18277 = vst [vmem:[#allocation148_spill] sm:$0xff] %v13170_v52  ;;  %v8903_v22 = vpack.i.bf16 %v9562_v58, %v9561_v33  ;;  %v8377_v62 = vpack.c.bf16 %v3521_v10, %v3520_v30  ;;  %v9569_v33 = vld [vmem:[#allocation4 + $0xf0] sm:$0xff]  ;;  %v9570_v58 = vld [vmem:[#allocation4 + $0xf8] sm:$0xff]  ;;  %v9572_v30 = vld [vmem:[#allocation4 + $0xe0] sm:$0xff] }
 0x3f4   : > { %8369 = vmatpush1.bf16.msra.mxu0 %v8368_v17  ;;  %8487 = vmatpush1.bf16.msra.mxu1 %v8368_v17 }
 0x3f5   : > { %8874 = vrot.lane.b32.xlu0 %v12747_v57, %s17693_s17  ;;  %8869 = vrot.lane.b32.xlu1 %v12727_v13, %s17693_s17  ;;  %v8878_v57 = vpack.i.bf16 %v13104_v37, %v13101_v21  ;;  %v3516_v13 = vld [vmem:[%s18271_s4 + $0xa0] sm:$0xff]  ;;  %v13146_v63 = vpop.permute.xlu0 %8604 }
 0x3f6   : > { %8370 = vmatprep.subr.bf16.mxu0 %v17493_v2  ;;  %8472 = vmatprep.subr.bf16.mxu1 %v17493_v2  ;;  %v8371_v12 = vpack.c.bf16 %v3517_v39, %v3516_v13  ;;  %18276 = vst [vmem:[#allocation79_spill] sm:$0xff] %v13146_v63  ;;  %v9567_v13 = vld [vmem:[#allocation4 + $0xa8] sm:$0xff]  ;;  %v9568_v39 = vld [vmem:[#allocation4 + $0xb0] sm:$0xff]  ;;  %v13437_v63 = vld [vmem:[#allocation3 + $0x88] sm:$0x3] }
 0x3f8   : > { %8372 = vmatpush1.bf16.msra.mxu0 %v8371_v12  ;;  %8488 = vmatpush1.bf16.msra.mxu1 %v8371_v12  ;;  %v8908_v12 = vpack.i.bf16 %v9568_v39, %v9567_v13  ;;  %v9573_v39 = vld [vmem:[#allocation4 + $0x108] sm:$0xff] }
 0x3f9   : > { %8884 = vrot.lane.b32.xlu0 %v8883_v47, %s17691_s26  ;;  %8879 = vrot.lane.b32.xlu1 %v8878_v57, %s17693_s17  ;;  %v13172_v18 = vpop.permute.xlu0 %8614  ;;  %v13190_v46 = vpop.permute.xlu1 %8619  ;;  %v9566_v47 = vld [vmem:[#allocation4 + $0xc8] sm:$0xff]  ;;  %s14954_s17 = sshll.u32 %s17698_s20, 8 }
 0x3fa   : > { %8373 = vmatprep.subr.bf16.mxu0 %v17493_v2  ;;  %8473 = vmatprep.subr.bf16.mxu1 %v17493_v2  ;;  %18278 = vst [vmem:[#allocation18_spill] sm:$0xff] %v13172_v18  ;;  %18279 = vst [vmem:[#allocation78_spill] sm:$0xff] %v13190_v46  ;;  %v8913_v57 = vpack.i.bf16 %v9566_v47, %v9565_v29  ;;  %v3525_v29 = vld [vmem:[%s18271_s4 + $0xe8] sm:$0xff] }
 0x3fb   : > { %v13391_v18 = vld [vmem:[#allocation3 + $0x58] sm:$0x3] }
 0x3fc   : > { %8375 = vmatpush1.bf16.msra.mxu0 %v8374_v60  ;;  %8489 = vmatpush1.bf16.msra.mxu1 %v8374_v60 }
 0x3fd   : > { %8894 = vrot.lane.b32.xlu0 %v8893_v49, %s17691_s26  ;;  %8889 = vrot.lane.b32.xlu1 %v8888_v54, %s17691_s26  ;;  %v3522_v49 = vld [vmem:[%s18271_s4 + $0xd0] sm:$0xff]  ;;  %v3523_v54 = vld [vmem:[%s18271_s4 + $0xd8] sm:$0xff] }
 0x3fe   : > { %8376 = vmatprep.subr.bf16.mxu0 %v17493_v2  ;;  %8474 = vmatprep.subr.bf16.mxu1 %v17493_v2  ;;  %v13192_v17 = vpop.permute.xlu0 %8624  ;;  %v8380_v19 = vpack.c.bf16 %v3523_v54, %v3522_v49  ;;  %v3526_v54 = vld [vmem:[%s18271_s4 + $0xf0] sm:$0xff] }
 0x3ff   : > { %18280 = vst [vmem:[#allocation109_spill] sm:$0xff] %v13192_v17 }
 0x400   : > { %8378 = vmatpush1.bf16.msra.mxu0 %v8377_v62  ;;  %8490 = vmatpush1.bf16.msra.mxu1 %v8377_v62  ;;  %v3524_v62 = vld [vmem:[%s18271_s4 + $0xe0] sm:$0xff] }
 0x401   : > { %8904 = vrot.lane.b32.xlu0 %v8903_v22, %s17691_s26  ;;  %8899 = vrot.lane.b32.xlu1 %v8898_v1, %s17691_s26  ;;  %v8923_v22 = vpack.i.bf16 %v9570_v58, %v9569_v33  ;;  %v9571_v1 = vld [vmem:[#allocation4 + $0xd8] sm:$0xff]  ;;  %v8383_v47 = vpack.c.bf16 %v3525_v29, %v3524_v62 }
 0x402   : > { %8379 = vmatprep.subr.bf16.mxu0 %v17493_v2  ;;  %8475 = vmatprep.subr.bf16.mxu1 %v17493_v2  ;;  %v13204_v27 = vpop.permute.xlu1 %8629  ;;  %v8918_v10 = vpack.i.bf16 %v9572_v30, %v9571_v1  ;;  %v2457_v1 = vld [vmem:[#allocation4 + $0x198] sm:$0xff]  ;;  %v2458_v30 = vld [vmem:[#allocation4 + $0x1a0] sm:$0xff] }
 0x403   : > { %18281 = vst [vmem:[#allocation17_spill] sm:$0xff] %v13204_v27  ;;  %v8958_v62 = vpack.i.bf16 %v2458_v30, %v2457_v1  ;;  %v2716_v27 = vrot.slane %v2457_v1, 1  ;;  %v18310_v1 = vld [vmem:[#allocation127_spill] sm:$0xff] }
 0x404   : > { %8381 = vmatpush1.bf16.msra.mxu0 %v8380_v19  ;;  %8491 = vmatpush1.bf16.msra.mxu1 %v8380_v19  ;;  %v3527_v19 = vld [vmem:[%s18271_s4 + $0xf8] sm:$0xff] }
 0x405   : > { %8914 = vrot.lane.b32.xlu0 %v8913_v57, %s17691_s26  ;;  %8909 = vrot.lane.b32.xlu1 %v8908_v12, %s17691_s26  ;;  %v9574_v12 = vld [vmem:[#allocation4 + $0x110] sm:$0xff]  ;;  %v8386_v33 = vpack.c.bf16 %v3527_v19, %v3526_v54 }
 0x406   : > { %8382 = vmatprep.subr.bf16.mxu0 %v17493_v2  ;;  %8476 = vmatprep.subr.bf16.mxu1 %v17493_v2  ;;  %v8928_v49 = vpack.i.bf16 %v9574_v12, %v9573_v39  ;;  %v3529_v39 = vld [vmem:[%s18271_s4 + $0x108] sm:$0xff]  ;;  %v18290_v12 = vld [vmem:[#allocation122_spill] sm:$0xff]  ;;  %v18295_v19 = vld [vmem:[#allocation96_spill] sm:$0xff] }
 0x407   : > { %v13206_v60 = vpop.permute.xlu0 %8634 }
 0x408   : > { %18282 = vst [vmem:[#allocation43_spill] sm:$0xff] %v13206_v60  ;;  %8384 = vmatpush1.bf16.msra.mxu0 %v8383_v47  ;;  %8492 = vmatpush1.bf16.msra.mxu1 %v8383_v47  ;;  %v2672_v60 = vrot.slane %v12950_v42, 1 }
 0x409   : > { %8924 = vrot.lane.b32.xlu0 %v8923_v22, %s17691_s26  ;;  %8919 = vrot.lane.b32.xlu1 %v8918_v10, %s17691_s26 }
 0x40a   : > { %8385 = vmatprep.subr.bf16.mxu0 %v17493_v2  ;;  %8477 = vmatprep.subr.bf16.mxu1 %v17493_v2 }
 0x40b   : > { %v13218_v57 = vpop.permute.xlu0 %8644  ;;  %v13220_v13 = vpop.permute.xlu1 %8639 }
 0x40c   : > { %18283 = vst [vmem:[#allocation108_spill] sm:$0xff] %v13220_v13  ;;  %8387 = vmatpush1.bf16.msra.mxu0 %v8386_v33  ;;  %8493 = vmatpush1.bf16.msra.mxu1 %v8386_v33  ;;  %v18296_v33 = vld [vmem:[#allocation143_spill] sm:$0xff] }
 0x40d   : > { %8934 = vrot.lane.b32.xlu0 %v12923_v5, %s17691_s26  ;;  %8929 = vrot.lane.b32.xlu1 %v8928_v49, %s17691_s26  ;;  %v2459_v13 = vld [vmem:[#allocation4 + $0x1a8] sm:$0x3] }
 0x40e   : > { %8406 = vmatprep.subr.bf16.mxu1 %v17493_v2 }
 0x40f   : > { %v13233_v58 = vpop.permute.xlu0 %8654  ;;  %v13235_v22 = vpop.permute.xlu1 %8649 }
 0x411   : > { %8944 = vrot.lane.b32.xlu0 %v12946_v8, %s17691_s26  ;;  %8939 = vrot.lane.b32.xlu1 %v12919_v20, %s17691_s26 }
 0x413   : > { %v13242_v5 = vpop.permute.xlu0 %8664  ;;  %v13244_v10 = vpop.permute.xlu1 %8659 }
 0x415   : > { %8954 = vrot.lane.b32.xlu0 %v12970_v16, %s17691_s26  ;;  %8949 = vrot.lane.b32.xlu1 %v12942_v28, %s17691_s26 }
 0x417   : > { %v13250_v29 = vpop.permute.xlu0 %8674  ;;  %v13252_v47 = vpop.permute.xlu1 %8669 }
 0x418   : > { %18284 = vst [vmem:[#allocation46_spill] sm:$0xff] %v13250_v29  ;;  %18285 = vst [vmem:[#allocation41_spill] sm:$0xff] %v13252_v47  ;;  %v13483_v29 = vld [vmem:[#allocation3 + $0xb8] sm:$0x3] }
 0x419   : > { %8964 = vrot.lane.b32.xlu0 %v12205_v14, %s17689_s28  ;;  %8959 = vrot.lane.b32.xlu1 %v8958_v62, %s17691_s26  ;;  %v3528_v14 = vld [vmem:[%s18271_s4 + $0x100] sm:$0xff]  ;;  %s14987_s26 = scalar_lea.vmem [#allocation5], %s14954_s17 }
 0x41a   : > { %v13279_v49 = vpack.c.bf16 %v3529_v39, %v3528_v14  ;;  %v18300_v14 = vld [vmem:[#allocation67_spill] sm:$0xff]  ;;  %s7633_s20 = sshll.u32 %s14987_s26, 4  ;;  %s17114_s20 = int_to_ptr.vmem [resolvable:$true] %s7633_s20 }
 0x41b   : > { %v13257_v20 = vpop.permute.xlu0 %8684  ;;  %v13259_v8 = vpop.permute.xlu1 %8679  ;;  %s9680_s1 = scalar_lea.vmem %s17114_s20, 4096 }
 0x41c   : > { %18286 = vst [vmem:[#allocation172_spill] sm:$0xff] %v13257_v20  ;;  %18287 = vst [vmem:[#allocation133_spill] sm:$0xff] %v13259_v8  ;;  %8389 = vmatprep.subr.bf16.mxu0 %v13279_v49  ;;  %v13420_v20 = vld [vmem:[#allocation3 + $0x80] sm:$0xff]  ;;  %p9681_p11 = scmp.ne.s32.totalorder %s17114_s20, %s9680_s1 }
 0x41d   : > { %8974 = vrot.lane.b32.xlu0 %v12255_v24, %s17689_s28  ;;  %8969 = vrot.lane.b32.xlu1 %v12230_v15, %s17689_s28  ;;  %v18291_v24 = vld [vmem:[#allocation95_spill] sm:$0xff]  ;;  %18292 = vst [vmem:[#allocation81_spill] sm:$0xff] %v13279_v49 }
 0x41e   : > { %p9682_p12 = pnand %p9681_p11, %p9932_p5 }
 0x41f   : > { %v13265_v28 = vpop.permute.xlu0 %8694  ;;  %v13267_v16 = vpop.permute.xlu1 %8689 }
 0x420   : > { %18288 = vst [vmem:[#allocation151_spill] sm:$0xff] %v13265_v28  ;;  %18289 = vst [vmem:[#allocation171_spill] sm:$0xff] %v13267_v16  ;;  %v13397_v16 = vld [vmem:[#allocation3 + $0x60] sm:$0xff]  ;;  %p9683_p13 = pneg %p9682_p12 }
 0x421   : > { %8984 = vrot.lane.b32.xlu0 %v18290_v12, %s17689_s28  ;;  %8979 = vrot.lane.b32.xlu1 %v18291_v24, %s17689_s28  ;;  %v18299_v24 = vld [vmem:[#allocation99_spill] sm:$0xff] }
 0x423   : > { %v13281_v15 = vpop.permute.xlu0 %8704  ;;  %v13283_v54 = vpop.permute.xlu1 %8699 }
 0x424   : > { %18293 = vst [vmem:[#allocation150_spill] sm:$0xff] %v13281_v15  ;;  %18294 = vst [vmem:[#allocation20_spill] sm:$0xff] %v13283_v54 }
 0x425   : > { %8994 = vrot.lane.b32.xlu0 %v18295_v19, %s17689_s28  ;;  %8989 = vrot.lane.b32.xlu1 %v18296_v33, %s17689_s28  ;;  %v2671_v19 = vrot.slane %v12948_v34, 1  ;;  %v2674_v33 = vrot.slane %v13067_v25, 1  ;;  %v13315_v34 = vld [vmem:[#allocation3 + $0x8] sm:$0xff] }
 0x426   : > { %v4253_v55 = vrot.slane %v13315_v34, 1 }
 0x427   : > { %v13290_v62 = vpop.permute.xlu0 %8714  ;;  %v13292_v12 = vpop.permute.xlu1 %8709  ;;  %v13318_v42 = vsel %vm785_vm2, %v2671_v19, %v2672_v60  ;;  %v13321_v25 = vsel %vm785_vm2, %v2672_v60, %v2674_v33  ;;  %v13337_v33 = vld [vmem:[#allocation3 + $0x10] sm:$0x3] }
 0x428   : > { %18297 = vst [vmem:[#allocation80_spill] sm:$0xff] %v13290_v62  ;;  %18298 = vst [vmem:[#allocation111_spill] sm:$0xff] %v13292_v12  ;;  %v18303_v62 = vld [vmem:[#allocation12_spill] sm:$0xff]  ;;  %v18304_v12 = vld [vmem:[#allocation125_spill] sm:$0xff]  ;;  %v9033_v60 = vpack.i.bf16 %v13321_v25, %v13318_v42  ;;  %v4255_v15 = vrot.slane %v13337_v33, 1 }
 0x429   : > { %9004 = vrot.lane.b32.xlu0 %v18299_v24, %s17689_s28  ;;  %8999 = vrot.lane.b32.xlu1 %v18300_v14, %s17689_s28  ;;  %v2717_v24 = vrot.slane %v2458_v30, 1  ;;  %v2719_v14 = vrot.slane %v2459_v13, 1  ;;  %18307 = vst [vmem:[#allocation45_spill] sm:$0xff] %v13318_v42  ;;  %18308 = vst [vmem:[#allocation174_spill] sm:$0xff] %v13321_v25  ;;  %v13350_v42 = vld [vmem:[#allocation3 + $0x28] sm:$0x3] }
 0x42b   : > { %v13298_v39 = vpop.permute.xlu0 %8724  ;;  %v13300_v2 = vpop.permute.xlu1 %8719  ;;  %v2718_v13 = vsel %vm785_vm2, %v2716_v27, %v2717_v24  ;;  %v2720_v30 = vsel %vm785_vm2, %v2717_v24, %v2719_v14  ;;  %v18313_v27 = vld [vmem:[#allocation72_spill] sm:$0xff] }
 0x42c   : > { %18301 = vst [vmem:[#allocation19_spill] sm:$0xff] %v13298_v39  ;;  %18302 = vst [vmem:[#allocation47_spill] sm:$0xff] %v13300_v2  ;;  %v13313_v2 = vld [vmem:[#allocation3] sm:$0xff]  ;;  %v9038_v24 = vpack.i.bf16 %v2720_v30, %v2718_v13  ;;  %v4260_v13 = vrot.slane %v13350_v42, 1  ;;  %v4256_v30 = vsel %vm785_vm2, %v4253_v55, %v4255_v15  ;;  %v4267_v15 = vrot.slane %v13373_v4, 1  ;;  %v13535_v39 = vld [vmem:[#allocation3 + $0xf0] sm:$0xff] }
 0x42d   : > { %9014 = vrot.lane.b32.xlu0 %v18303_v62, %s17689_s28  ;;  %9009 = vrot.lane.b32.xlu1 %v18304_v12, %s17689_s28  ;;  %v18309_v62 = vld [vmem:[#allocation13_spill] sm:$0xff]  ;;  %v4252_v12 = vrot.slane %v13313_v2, 1  ;;  %18349 = vst [vmem:[#allocation164_spill] sm:$0xff] %v13535_v39 }
 0x42f   : > { %v13309_v37 = vpop.permute.xlu0 %8734  ;;  %v13311_v21 = vpop.permute.xlu1 %8729  ;;  %v4254_v14 = vsel %vm785_vm2, %v4252_v12, %v4253_v55 }
 0x430   : > { %18305 = vst [vmem:[#allocation110_spill] sm:$0xff] %v13309_v37  ;;  %18306 = vst [vmem:[#allocation135_spill] sm:$0xff] %v13311_v21 }
 0x431   : > { %9024 = vrot.lane.b32.xlu0 %v18309_v62, %s17689_s28  ;;  %9019 = vrot.lane.b32.xlu1 %v18310_v1, %s17689_s28  ;;  %v13339_v62 = vld [vmem:[#allocation3 + $0x18] sm:$0xff]  ;;  %v13341_v1 = vld [vmem:[#allocation3 + $0x20] sm:$0xff] }
 0x432   : > { %v4257_v17 = vrot.slane %v13339_v62, 1  ;;  %v4258_v25 = vrot.slane %v13341_v1, 1 }
 0x433   : > { %v13331_v11 = vpop.permute.xlu0 %8744  ;;  %v13333_v19 = vpop.permute.xlu1 %8739 }
 0x434   : > { %18311 = vst [vmem:[#allocation134_spill] sm:$0xff] %v13331_v11  ;;  %18312 = vst [vmem:[#allocation153_spill] sm:$0xff] %v13333_v19  ;;  %v13365_v12 = vsel %vm785_vm2, %v4257_v17, %v4258_v25  ;;  %v13383_v55 = vsel %vm785_vm2, %v4258_v25, %v4260_v13  ;;  %v4270_v25 = vrot.slane %v13391_v18, 1  ;;  %v13512_v19 = vld [vmem:[#allocation3 + $0xe0] sm:$0xff] }
 0x435   : > { %9029 = vrot.lane.b32.xlu1 %v18313_v27, %s17689_s28  ;;  %9034 = vrot.lane.b32.xlu0 %v9033_v60, %s17689_s28  ;;  %v13358_v27 = vld [vmem:[#allocation3 + $0x38] sm:$0xff]  ;;  %18316 = vst [vmem:[#allocation152_spill] sm:$0xff] %v13365_v12  ;;  %v4262_v60 = vrot.slane %v13356_v59, 1  ;;  %18319 = vst [vmem:[#allocation113_spill] sm:$0xff] %v13383_v55 }
 0x436   : > { %v4263_v3 = vrot.slane %v13358_v27, 1 }
 0x437   : > { %v13352_v36 = vpop.permute.xlu0 %8754  ;;  %v13354_v45 = vpop.permute.xlu1 %8749 }
 0x438   : > { %18314 = vst [vmem:[#allocation173_spill] sm:$0xff] %v13352_v36  ;;  %18315 = vst [vmem:[#allocation83_spill] sm:$0xff] %v13354_v45  ;;  %v13386_v17 = vsel %vm785_vm2, %v4262_v60, %v4263_v3  ;;  %v13489_v45 = vld [vmem:[#allocation3 + $0xc0] sm:$0xff] }
 0x439   : > { %9039 = vrot.lane.b32.xlu1 %v9038_v24, %s17689_s28  ;;  %4438 = vrot.lane.b32.xlu0 %v4254_v14, %s9816_s15  ;;  %v13375_v24 = vld [vmem:[#allocation3 + $0x50] sm:$0xff]  ;;  %v13377_v14 = vld [vmem:[#allocation3 + $0x40] sm:$0x3]  ;;  %18320 = vst [vmem:[#allocation21_spill] sm:$0xff] %v13386_v17  ;;  %v4292_v11 = vrot.slane %v13489_v45, 1  ;;  %s17701_s28 = smov 18  }
 0x43a   : > { %v4268_v7 = vrot.slane %v13375_v24, 1  ;;  %v4265_v28 = vrot.slane %v13377_v14, 1 }
 0x43b   : > { %v13369_v54 = vpop.permute.xlu0 %8764  ;;  %v13371_v46 = vpop.permute.xlu1 %8759 }
 0x43c   : > { %18317 = vst [vmem:[#allocation22_spill] sm:$0xff] %v13369_v54  ;;  %18318 = vst [vmem:[#allocation82_spill] sm:$0xff] %v13371_v46  ;;  %v13407_v13 = vsel %vm785_vm2, %v4267_v15, %v4268_v7  ;;  %v13410_v60 = vsel %vm785_vm2, %v4263_v3, %v4265_v28  ;;  %v13429_v3 = vsel %vm785_vm2, %v4268_v7, %v4270_v25  ;;  %v13443_v46 = vld [vmem:[#allocation3 + $0x90] sm:$0xff] }
 0x43d   : > { %4440 = vrot.lane.b32.xlu1 %v4256_v30, %s9816_s15  ;;  %4442 = vrot.lane.b32.xlu0 %v13365_v12, %s9816_s15  ;;  %v13399_v12 = vld [vmem:[#allocation3 + $0x68] sm:$0xff]  ;;  %18323 = vst [vmem:[#allocation137_spill] sm:$0xff] %v13407_v13  ;;  %18324 = vst [vmem:[#allocation48_spill] sm:$0xff] %v13410_v60 }
 0x43e   : > { %18327 = vst [vmem:[#allocation155_spill] sm:$0xff] %v13429_v3 }
 0x43f   : > { %v13393_v43 = vpop.permute.xlu0 %8774  ;;  %v13395_v30 = vpop.permute.xlu1 %8769 }
 0x440   : > { %18321 = vst [vmem:[#allocation49_spill] sm:$0xff] %v13393_v43  ;;  %18322 = vst [vmem:[#allocation112_spill] sm:$0xff] %v13395_v30  ;;  %v4272_v43 = vrot.slane %v13397_v16, 1  ;;  %v4273_v30 = vrot.slane %v13399_v12, 1 }
 0x441   : > { %4446 = vrot.lane.b32.xlu0 %v13386_v17, %s9816_s15  ;;  %4444 = vrot.lane.b32.xlu1 %v13383_v55, %s9816_s15  ;;  %v13418_v17 = vld [vmem:[#allocation3 + $0x78] sm:$0xff]  ;;  %v13422_v55 = vld [vmem:[#allocation3 + $0x70] sm:$0x3] }
 0x442   : > { %v13432_v28 = vsel %vm785_vm2, %v4272_v43, %v4273_v30  ;;  %v4277_v15 = vrot.slane %v13418_v17, 1  ;;  %v4280_v43 = vrot.slane %v13437_v63, 1 }
 0x443   : > { %v13414_v52 = vpop.permute.xlu0 %8784  ;;  %v13416_v54 = vpop.permute.xlu1 %8779  ;;  %18328 = vst [vmem:[#allocation175_spill] sm:$0xff] %v13432_v28 }
 0x444   : > { %18325 = vst [vmem:[#allocation176_spill] sm:$0xff] %v13414_v52  ;;  %18326 = vst [vmem:[#allocation136_spill] sm:$0xff] %v13416_v54  ;;  %v4278_v52 = vrot.slane %v13420_v20, 1  ;;  %v4275_v54 = vrot.slane %v13422_v55, 1 }
 0x445   : > { %4450 = vrot.lane.b32.xlu0 %v13407_v13, %s9816_s15  ;;  %4448 = vrot.lane.b32.xlu1 %v13410_v60, %s9816_s15  ;;  %v13445_v60 = vld [vmem:[#allocation3 + $0x98] sm:$0xff] }
 0x446   : > { %v13453_v7 = vsel %vm785_vm2, %v4277_v15, %v4278_v52  ;;  %v13456_v25 = vsel %vm785_vm2, %v4273_v30, %v4275_v54  ;;  %v13475_v54 = vsel %vm785_vm2, %v4278_v52, %v4280_v43 }
 0x447   : > { %v13439_v50 = vpop.permute.xlu0 %8794  ;;  %v13441_v13 = vpop.permute.xlu1 %8789  ;;  %18331 = vst [vmem:[#allocation24_spill] sm:$0xff] %v13453_v7  ;;  %18332 = vst [vmem:[#allocation84_spill] sm:$0xff] %v13456_v25 }
 0x448   : > { %18329 = vst [vmem:[#allocation85_spill] sm:$0xff] %v13439_v50  ;;  %18330 = vst [vmem:[#allocation154_spill] sm:$0xff] %v13441_v13  ;;  %v4282_v50 = vrot.slane %v13443_v46, 1  ;;  %v4283_v13 = vrot.slane %v13445_v60, 1 }
 0x449   : > { %4454 = vrot.lane.b32.xlu0 %v13432_v28, %s9816_s15  ;;  %4452 = vrot.lane.b32.xlu1 %v13429_v3, %s9816_s15  ;;  %v13464_v28 = vld [vmem:[#allocation3 + $0xa8] sm:$0xff]  ;;  %v13468_v3 = vld [vmem:[#allocation3 + $0xa0] sm:$0x3]  ;;  %18335 = vst [vmem:[#allocation51_spill] sm:$0xff] %v13475_v54 }
 0x44a   : > { %v13478_v30 = vsel %vm785_vm2, %v4282_v50, %v4283_v13  ;;  %v4287_v15 = vrot.slane %v13464_v28, 1  ;;  %v4285_v36 = vrot.slane %v13468_v3, 1  ;;  %v4290_v50 = vrot.slane %v13483_v29, 1 }
 0x44b   : > { %v13460_v41 = vpop.permute.xlu0 %8804  ;;  %v13462_v8 = vpop.permute.xlu1 %8799  ;;  %18336 = vst [vmem:[#allocation114_spill] sm:$0xff] %v13478_v30 }
 0x44c   : > { %18333 = vst [vmem:[#allocation115_spill] sm:$0xff] %v13460_v41  ;;  %18334 = vst [vmem:[#allocation23_spill] sm:$0xff] %v13462_v8  ;;  %v4288_v8 = vrot.slane %v13466_v31, 1  ;;  %v13502_v43 = vsel %vm785_vm2, %v4283_v13, %v4285_v36  ;;  %v13558_v41 = vld [vmem:[#allocation3 + $0x110] sm:$0xff] }
 0x44d   : > { %4458 = vrot.lane.b32.xlu0 %v13453_v7, %s9816_s15  ;;  %4456 = vrot.lane.b32.xlu1 %v13456_v25, %s9816_s15  ;;  %v13491_v25 = vld [vmem:[#allocation3 + $0xc8] sm:$0xff]  ;;  %18340 = vst [vmem:[#allocation138_spill] sm:$0xff] %v13502_v43  ;;  %18356 = vst [vmem:[#allocation179_spill] sm:$0xff] %v13558_v41 }
 0x44e   : > { %v13499_v52 = vsel %vm785_vm2, %v4287_v15, %v4288_v8  ;;  %v4293_v37 = vrot.slane %v13491_v25, 1  ;;  %v13521_v36 = vsel %vm785_vm2, %v4288_v8, %v4290_v50 }
 0x44f   : > { %v13485_v35 = vpop.permute.xlu0 %8814  ;;  %v13487_v7 = vpop.permute.xlu1 %8809  ;;  %18339 = vst [vmem:[#allocation178_spill] sm:$0xff] %v13499_v52  ;;  %18344 = vst [vmem:[#allocation156_spill] sm:$0xff] %v13521_v36 }
 0x450   : > { %18337 = vst [vmem:[#allocation52_spill] sm:$0xff] %v13485_v35  ;;  %18338 = vst [vmem:[#allocation50_spill] sm:$0xff] %v13487_v7  ;;  %v13524_v13 = vsel %vm785_vm2, %v4292_v11, %v4293_v37 }
 0x451   : > { %4462 = vrot.lane.b32.xlu0 %v13478_v30, %s9816_s15  ;;  %4460 = vrot.lane.b32.xlu1 %v13475_v54, %s9816_s15  ;;  %v13510_v30 = vld [vmem:[#allocation3 + $0xd8] sm:$0xff]  ;;  %v13514_v54 = vld [vmem:[#allocation3 + $0xd0] sm:$0x3]  ;;  %18345 = vst [vmem:[#allocation26_spill] sm:$0xff] %v13524_v13 }
 0x452   : > { %18343 = vst [vmem:[#allocation87_spill] sm:$0xff] %v13514_v54  ;;  %v4297_v15 = vrot.slane %v13510_v30, 1  ;;  %v4295_v21 = vrot.slane %v13514_v54, 1 }
 0x453   : > { %v13506_v35 = vpop.permute.xlu0 %8824  ;;  %v13508_v49 = vpop.permute.xlu1 %8819 }
 0x454   : > { %18341 = vst [vmem:[#allocation157_spill] sm:$0xff] %v13506_v35  ;;  %18342 = vst [vmem:[#allocation177_spill] sm:$0xff] %v13508_v49  ;;  %v4298_v35 = vrot.slane %v13512_v19, 1  ;;  %v13529_v49 = vld [vmem:[#allocation3 + $0xe8] sm:$0x3]  ;;  %v13548_v50 = vsel %vm785_vm2, %v4293_v37, %v4295_v21 }
 0x455   : > { %4466 = vrot.lane.b32.xlu0 %v13499_v52, %s9816_s15  ;;  %4464 = vrot.lane.b32.xlu1 %v13502_v43, %s9816_s15  ;;  %18346 = vst [vmem:[#allocation86_spill] sm:$0xff] %v13529_v49  ;;  %v13537_v43 = vld [vmem:[#allocation3 + $0xf8] sm:$0xff]  ;;  %v4300_v11 = vrot.slane %v13529_v49, 1  ;;  %18352 = vst [vmem:[#allocation163_spill] sm:$0xff] %v13548_v50 }
 0x456   : > { %18350 = vst [vmem:[#allocation116_spill] sm:$0xff] %v13537_v43  ;;  %v13545_v8 = vsel %vm785_vm2, %v4297_v15, %v4298_v35  ;;  %v13575_v49 = vld [vmem:[#allocation3 + $0x118] sm:$0x3] }
 0x457   : > { %v13531_v7 = vpop.permute.xlu0 %8834  ;;  %v13533_v52 = vpop.permute.xlu1 %8829  ;;  %18351 = vst [vmem:[#allocation54_spill] sm:$0xff] %v13545_v8  ;;  %v13567_v21 = vsel %vm785_vm2, %v4298_v35, %v4300_v11  ;;  %18360 = vst [vmem:[#allocation88_spill] sm:$0xff] %v13575_v49  ;;  %v4310_v35 = vrot.slane %v13575_v49, 1  ;;  %v13621_v49 = vld [vmem:[#allocation3 + $0x148] sm:$0x3] }
 0x458   : > { %18347 = vst [vmem:[#allocation29_spill] sm:$0xff] %v13531_v7  ;;  %18348 = vst [vmem:[#allocation25_spill] sm:$0xff] %v13533_v52  ;;  %v4302_v7 = vrot.slane %v13535_v39, 1  ;;  %v4303_v52 = vrot.slane %v13537_v43, 1  ;;  %v13581_v39 = vld [vmem:[#allocation3 + $0x120] sm:$0xff] }
 0x459   : > { %4470 = vrot.lane.b32.xlu0 %v13524_v13, %s9816_s15  ;;  %4468 = vrot.lane.b32.xlu1 %v13521_v36, %s9816_s15  ;;  %v13556_v13 = vld [vmem:[#allocation3 + $0x108] sm:$0xff]  ;;  %v13560_v36 = vld [vmem:[#allocation3 + $0x100] sm:$0x3]  ;;  %18358 = vst [vmem:[#allocation158_spill] sm:$0xff] %v13567_v21  ;;  %18363 = vst [vmem:[#allocation56_spill] sm:$0xff] %v13581_v39 }
 0x45a   : > { %18355 = vst [vmem:[#allocation159_spill] sm:$0xff] %v13556_v13  ;;  %18357 = vst [vmem:[#allocation89_spill] sm:$0xff] %v13560_v36  ;;  %v13570_v37 = vsel %vm785_vm2, %v4302_v7, %v4303_v52  ;;  %v4307_v15 = vrot.slane %v13556_v13, 1  ;;  %v13604_v13 = vld [vmem:[#allocation3 + $0x140] sm:$0xff] }
 0x45b   : > { %v13552_v47 = vpop.permute.xlu0 %8844  ;;  %v13554_v54 = vpop.permute.xlu1 %8839  ;;  %18359 = vst [vmem:[#allocation28_spill] sm:$0xff] %v13570_v37  ;;  %18370 = vst [vmem:[#allocation181_spill] sm:$0xff] %v13604_v13 }
 0x45c   : > { %18353 = vst [vmem:[#allocation180_spill] sm:$0xff] %v13552_v47  ;;  %18354 = vst [vmem:[#allocation53_spill] sm:$0xff] %v13554_v54  ;;  %v4308_v47 = vrot.slane %v13558_v41, 1  ;;  %v4305_v54 = vrot.slane %v13560_v36, 1 }
 0x45d   : > { %4474 = vrot.lane.b32.xlu0 %v13545_v8, %s9816_s15  ;;  %4472 = vrot.lane.b32.xlu1 %v13548_v50, %s9816_s15  ;;  %v13583_v50 = vld [vmem:[#allocation3 + $0x128] sm:$0xff]  ;;  %18374 = vst [vmem:[#allocation119_spill] sm:$0xff] %v13621_v49 }
 0x45e   : > { %18364 = vst [vmem:[#allocation30_spill] sm:$0xff] %v13583_v50  ;;  %v13591_v7 = vsel %vm785_vm2, %v4307_v15, %v4308_v47  ;;  %v13594_v11 = vsel %vm785_vm2, %v4303_v52, %v4305_v54  ;;  %v13613_v54 = vsel %vm785_vm2, %v4308_v47, %v4310_v35  ;;  %v4320_v47 = vrot.slane %v13621_v49, 1 }
 0x45f   : > { %v13577_v43 = vpop.permute.xlu0 %8854  ;;  %v13579_v8 = vpop.permute.xlu1 %8849  ;;  %18365 = vst [vmem:[#allocation139_spill] sm:$0xff] %v13591_v7  ;;  %18366 = vst [vmem:[#allocation165_spill] sm:$0xff] %v13594_v11 }
 0x460   : > { %18361 = vst [vmem:[#allocation117_spill] sm:$0xff] %v13577_v43  ;;  %18362 = vst [vmem:[#allocation27_spill] sm:$0xff] %v13579_v8  ;;  %v4312_v43 = vrot.slane %v13581_v39, 1  ;;  %v4313_v8 = vrot.slane %v13583_v50, 1  ;;  %v13627_v39 = vld [vmem:[#allocation3 + $0x150] sm:$0xff] }
 0x461   : > { %4478 = vrot.lane.b32.xlu0 %v13570_v37, %s9816_s15  ;;  %4476 = vrot.lane.b32.xlu1 %v13567_v21, %s9816_s15  ;;  %v13602_v37 = vld [vmem:[#allocation3 + $0x138] sm:$0xff]  ;;  %v13606_v21 = vld [vmem:[#allocation3 + $0x130] sm:$0x3]  ;;  %18372 = vst [vmem:[#allocation160_spill] sm:$0xff] %v13613_v54  ;;  %18377 = vst [vmem:[#allocation141_spill] sm:$0xff] %v13627_v39 }
 0x462   : > { %18369 = vst [vmem:[#allocation161_spill] sm:$0xff] %v13602_v37  ;;  %18371 = vst [vmem:[#allocation91_spill] sm:$0xff] %v13606_v21  ;;  %v13616_v52 = vsel %vm785_vm2, %v4312_v43, %v4313_v8  ;;  %v4317_v15 = vrot.slane %v13602_v37, 1  ;;  %v13650_v37 = vld [vmem:[#allocation3 + $0x170] sm:$0xff] }
 0x463   : > { %v13598_v36 = vpop.permute.xlu0 %8864  ;;  %v13600_v41 = vpop.permute.xlu1 %8859  ;;  %18373 = vst [vmem:[#allocation32_spill] sm:$0xff] %v13616_v52  ;;  %18384 = vst [vmem:[#allocation122_spill] sm:$0xff] %v13650_v37 }
 0x464   : > { %18367 = vst [vmem:[#allocation57_spill] sm:$0xff] %v13598_v36  ;;  %18368 = vst [vmem:[#allocation55_spill] sm:$0xff] %v13600_v41  ;;  %v4318_v36 = vrot.slane %v13604_v13, 1  ;;  %v4315_v41 = vrot.slane %v13606_v21, 1 }
 0x465   : > { %4482 = vrot.lane.b32.xlu0 %v13591_v7, %s9816_s15  ;;  %4480 = vrot.lane.b32.xlu1 %v13594_v11, %s9816_s15  ;;  %v13629_v11 = vld [vmem:[#allocation3 + $0x158] sm:$0xff] }
 0x466   : > { %18378 = vst [vmem:[#allocation166_spill] sm:$0xff] %v13629_v11  ;;  %v13637_v43 = vsel %vm785_vm2, %v4317_v15, %v4318_v36  ;;  %v13640_v35 = vsel %vm785_vm2, %v4313_v8, %v4315_v41  ;;  %v13659_v41 = vsel %vm785_vm2, %v4318_v36, %v4320_v47  ;;  %v4332_v36 = vrot.slane %v13313_v2, 2 }
 0x467   : > { %v13623_v50 = vpop.permute.xlu0 %8874  ;;  %v13625_v7 = vpop.permute.xlu1 %8869  ;;  %18379 = vst [vmem:[#allocation118_spill] sm:$0xff] %v13637_v43  ;;  %18380 = vst [vmem:[#allocation162_spill] sm:$0xff] %v13640_v35  ;;  %v8577_v2 = vunpack.i.h.bf16 %v13075_v26 }
 0x468   : > { %18375 = vst [vmem:[#allocation31_spill] sm:$0xff] %v13623_v50  ;;  %18376 = vst [vmem:[#allocation58_spill] sm:$0xff] %v13625_v7  ;;  %v4322_v50 = vrot.slane %v13627_v39, 1  ;;  %v4323_v7 = vrot.slane %v13629_v11, 1 }
 0x469   : > { %4486 = vrot.lane.b32.xlu0 %v13616_v52, %s9816_s15  ;;  %4484 = vrot.lane.b32.xlu1 %v13613_v54, %s9816_s15  ;;  %v13648_v52 = vld [vmem:[#allocation3 + $0x168] sm:$0xff]  ;;  %v13652_v54 = vld [vmem:[#allocation3 + $0x160] sm:$0x3]  ;;  %18386 = vst [vmem:[#allocation96_spill] sm:$0xff] %v13659_v41 }
 0x46a   : > { %18383 = vst [vmem:[#allocation60_spill] sm:$0xff] %v13648_v52  ;;  %18385 = vst [vmem:[#allocation95_spill] sm:$0xff] %v13652_v54  ;;  %v13662_v8 = vsel %vm785_vm2, %v4322_v50, %v4323_v7  ;;  %v4327_v15 = vrot.slane %v13648_v52, 1  ;;  %v4325_v49 = vrot.slane %v13652_v54, 1  ;;  %v4333_v50 = vrot.slane %v13315_v34, 2 }
 0x46b   : > { %v13644_v21 = vpop.permute.xlu0 %8884  ;;  %v13646_v13 = vpop.permute.xlu1 %8879  ;;  %18387 = vst [vmem:[#allocation143_spill] sm:$0xff] %v13662_v8  ;;  %v8567_v52 = vunpack.i.h.bf16 %v13045_v9  ;;  %v8576_v34 = vunpack.i.l.bf16 %v13075_v26 }
 0x46c   : > { %18381 = vst [vmem:[#allocation90_spill] sm:$0xff] %v13644_v21  ;;  %18382 = vst [vmem:[#allocation33_spill] sm:$0xff] %v13646_v13  ;;  %v4328_v13 = vrot.slane %v13650_v37, 1  ;;  %v13684_v54 = vsel %vm785_vm2, %v4323_v7, %v4325_v49  ;;  %v8581_v49 = vunpack.i.l.bf16 %v13095_v32  ;;  %v4115_v7 = vld [vmem:[%s12757_s18 + $0xf0] sm:$0xff]  ;;  %v8587_v21 = vunpack.i.h.bf16 %v13097_v6 }
 0x46d   : > { %4490 = vrot.lane.b32.xlu0 %v13637_v43, %s9816_s15  ;;  %4488 = vrot.lane.b32.xlu1 %v13640_v35, %s9816_s15  ;;  %v13671_v43 = vld [vmem:[#allocation3 + $0x178] sm:$0x3]  ;;  %v8566_v35 = vunpack.i.l.bf16 %v13045_v9  ;;  %18392 = vst [vmem:[#allocation13_spill] sm:$0xff] %v13684_v54  ;;  %v4334_v26 = vsel %vm866_vm3, %v4332_v36, %v4333_v50  ;;  %4148 = vst.msk [vmem:[#allocation3 + $0x181] sm:$0xff] %vm506_vm14, %v4115_v7  ;;  %v9577_v7 = vld [vmem:[#allocation4 + $0x18] sm:$0xff] }
 0x46e   : > { %18390 = vst [vmem:[#allocation12_spill] sm:$0xff] %v13671_v43  ;;  %v13681_v47 = vsel %vm785_vm2, %v4327_v15, %v4328_v13  ;;  %v4330_v37 = vrot.slane %v13671_v43, 1  ;;  %v8582_v15 = vunpack.i.h.bf16 %v13095_v32  ;;  %v9575_v43 = vld [vmem:[#allocation4] sm:$0xff] }
 0x46f   : > { %v13667_v11 = vpop.permute.xlu0 %8894  ;;  %v13669_v39 = vpop.permute.xlu1 %8889  ;;  %18391 = vst [vmem:[#allocation125_spill] sm:$0xff] %v13681_v47  ;;  %v13700_v9 = vsel %vm562_vm4, %v9575_v43, %v8566_v35  ;;  %v4337_v43 = vrot.slane %v13339_v62, 2  ;;  %v4338_v35 = vrot.slane %v13341_v1, 2 }
 0x470   : > { %18388 = vst [vmem:[#allocation99_spill] sm:$0xff] %v13667_v11  ;;  %18389 = vst [vmem:[#allocation67_spill] sm:$0xff] %v13669_v39  ;;  %v8571_v11 = vunpack.i.l.bf16 %v13073_v61  ;;  %v13711_v32 = vsel %vm785_vm2, %v4328_v13, %v4330_v37  ;;  %v9578_v37 = vld [vmem:[#allocation4 + $0x20] sm:$0xff]  ;;  %v13734_v1 = vsel %vm562_vm4, %v13156_v23, %v8582_v15  ;;  %v4343_v23 = vrot.slane %v13358_v27, 2  ;;  %v4116_v15 = vld [vmem:[%s12757_s18 + $0xf8] sm:$0xff]  ;;  %s9818_s18 = smov 9  }
 0x471   : > { %4494 = vrot.lane.b32.xlu0 %v13662_v8, %s9816_s15  ;;  %4492 = vrot.lane.b32.xlu1 %v13659_v41, %s9816_s15  ;;  %v8572_v8 = vunpack.i.h.bf16 %v13073_v61  ;;  %v8586_v61 = vunpack.i.l.bf16 %v13097_v6  ;;  %18395 = vst [vmem:[#allocation182_spill] sm:$0xff] %v13711_v32  ;;  %v8591_v6 = vunpack.i.l.bf16 %v13121_v51  ;;  %4149 = vst.msk [vmem:[#allocation3 + $0x189] sm:$0xff] %vm506_vm14, %v4116_v15 }
 0x472   : > { %v13723_v13 = vsel %vm562_vm4, %v9577_v7, %v8571_v11  ;;  %v8592_v11 = vunpack.i.h.bf16 %v13121_v51  ;;  %v4362_v7 = vrot.slane %v13443_v46, 2 }
 0x473   : > { %v13690_v39 = vpop.permute.xlu0 %8904  ;;  %v13692_v41 = vpop.permute.xlu1 %8899  ;;  %v13726_v62 = vsel %vm562_vm4, %v9578_v37, %v8572_v8  ;;  %v4340_v8 = vrot.slane %v13350_v42, 2  ;;  %v13756_v51 = vsel %vm562_vm4, %v13148_v56, %v8586_v61  ;;  %v4347_v42 = vrot.slane %v13373_v4, 2 }
 0x474   : > { %18393 = vst [vmem:[#allocation127_spill] sm:$0xff] %v13690_v39  ;;  %18394 = vst [vmem:[#allocation72_spill] sm:$0xff] %v13692_v41  ;;  %v4335_v39 = vrot.slane %v13337_v33, 2  ;;  %v13730_v33 = vsel %vm562_vm4, %v13154_v48, %v8581_v49  ;;  %v4342_v48 = vrot.slane %v13356_v59, 2  ;;  %v13772_v56 = vsel %vm562_vm4, %v13174_v38, %v8591_v6 }
 0x475   : > { %4498 = vrot.lane.b32.xlu0 %v13681_v47, %s9816_s15  ;;  %4496 = vrot.lane.b32.xlu1 %v13684_v54, %s9816_s15  ;;  %v9576_v54 = vld [vmem:[#allocation4 + $0x8] sm:$0xff]  ;;  %v4350_v49 = vrot.slane %v13391_v18, 2  ;;  %v13789_v38 = vsel %vm562_vm4, %v13176_v53, %v8592_v11  ;;  %v4357_v18 = vrot.slane %v13418_v17, 2  ;;  %v8656_v61 = vunpack.i.l.bf16 %v13233_v58 }
 0x476   : > { %v3303_v36 = vsel %vm562_vm4, %v9576_v54, %v8567_v52  ;;  %v3306_v54 = vsel %vm562_vm4, %v13125_v44, %v8576_v34  ;;  %v13740_v52 = vsel %vm562_vm4, %v13127_v40, %v8577_v2  ;;  %v13751_v44 = vsel %vm866_vm3, %v4337_v43, %v4338_v35 }
 0x477   : > { %v13717_v41 = vpop.permute.xlu0 %8914  ;;  %v13719_v47 = vpop.permute.xlu1 %8909  ;;  %18396 = vst [vmem:[#allocation183_spill] sm:$0xff] %v13751_v44  ;;  %v4336_v40 = vsel %vm866_vm3, %v4333_v50, %v4335_v39  ;;  %v13760_v2 = vsel %vm562_vm4, %v13150_v0, %v8587_v21  ;;  %v4348_v34 = vrot.slane %v13375_v24, 2  ;;  %v4345_v39 = vrot.slane %v13377_v14, 2 }
 0x478   : > { %v8646_v50 = vunpack.i.l.bf16 %v13218_v57  ;;  %v4352_v0 = vrot.slane %v13397_v16, 2  ;;  %v4353_v21 = vrot.slane %v13399_v12, 2  ;;  %v13782_v4 = vsel %vm866_vm3, %v4342_v48, %v4343_v23 }
 0x479   : > { %4534 = vrot.lane.b32.xlu0 %v4334_v26, %s9817_s16  ;;  %4500 = vrot.lane.b32.xlu1 %v13711_v32, %s9816_s15  ;;  %18397 = vst [vmem:[#allocation184_spill] sm:$0xff] %v13782_v4  ;;  %v13785_v24 = vsel %vm866_vm3, %v4338_v35, %v4340_v8  ;;  %v8647_v16 = vunpack.i.h.bf16 %v13218_v57  ;;  %v4358_v12 = vrot.slane %v13420_v20, 2  ;;  %v4355_v14 = vrot.slane %v13422_v55, 2  ;;  %s18768_s15 = smov 32  }
 0x47a   : > { %v8652_v26 = vunpack.i.h.bf16 %v13235_v22  ;;  %v8651_v43 = vunpack.i.l.bf16 %v13235_v22  ;;  %v13803_v53 = vsel %vm866_vm3, %v4347_v42, %v4348_v34  ;;  %v13806_v57 = vsel %vm866_vm3, %v4343_v23, %v4345_v39 }
 0x47b   : > { %v13763_v59 = vpop.permute.xlu0 %8924  ;;  %v13765_v27 = vpop.permute.xlu1 %8919  ;;  %18398 = vst [vmem:[#allocation185_spill] sm:$0xff] %v13803_v53  ;;  %18399 = vst [vmem:[#allocation186_spill] sm:$0xff] %v13806_v57  ;;  %v13809_v20 = vsel %vm866_vm3, %v4352_v0, %v4353_v21  ;;  %v13812_v55 = vsel %vm866_vm3, %v4348_v34, %v4350_v49  ;;  %v13816_v17 = vsel %vm3334_vm0, %v13700_v9, %v8646_v50  ;;  %v8657_v22 = vunpack.i.h.bf16 %v13233_v58 }
 0x47c   : > { %18400 = vst [vmem:[#allocation187_spill] sm:$0xff] %v13809_v20  ;;  %18401 = vst [vmem:[#allocation188_spill] sm:$0xff] %v13812_v55  ;;  %v4363_v37 = vrot.slane %v13445_v60, 2  ;;  %v4360_v11 = vrot.slane %v13437_v63, 2  ;;  %v8661_v48 = vunpack.i.l.bf16 %v13244_v10  ;;  %v13828_v23 = vsel %vm866_vm3, %v4357_v18, %v4358_v12  ;;  %v18407_v18 = vld [vmem:[#allocation90_spill] sm:$0xff] }
 0x47d   : > { %4538 = vrot.lane.b32.xlu0 %v13751_v44, %s9817_s16  ;;  %4536 = vrot.lane.b32.xlu1 %v4336_v40, %s9817_s16  ;;  %18402 = vst [vmem:[#allocation189_spill] sm:$0xff] %v13828_v23  ;;  %v13831_v9 = vsel %vm866_vm3, %v4353_v21, %v4355_v14  ;;  %v13834_v58 = vsel %vm3334_vm0, %v3303_v36, %v8647_v16  ;;  %v8662_v8 = vunpack.i.h.bf16 %v13244_v10  ;;  %v8667_v36 = vunpack.i.h.bf16 %v13242_v5 }
 0x47e   : > { %18403 = vst [vmem:[#allocation190_spill] sm:$0xff] %v13831_v9  ;;  %v13843_v63 = vsel %vm3334_vm0, %v13723_v13, %v8651_v43  ;;  %v13847_v60 = vsel %vm3334_vm0, %v13726_v62, %v8652_v26  ;;  %v13850_v40 = vsel %vm3334_vm0, %v3306_v54, %v8656_v61  ;;  %v8666_v42 = vunpack.i.l.bf16 %v13242_v5  ;;  %v18410_v61 = vld [vmem:[#allocation116_spill] sm:$0xff]  ;;  %v18414_v43 = vld [vmem:[#allocation86_spill] sm:$0xff] }
 0x47f   : > { %v13798_v35 = vpop.permute.xlu0 %8934  ;;  %v13800_v6 = vpop.permute.xlu1 %8929  ;;  %v4367_v10 = vrot.slane %v13464_v28, 2  ;;  %v4368_v34 = vrot.slane %v13466_v31, 2  ;;  %v13861_v13 = vsel %vm866_vm3, %v4362_v7, %v4363_v37  ;;  %v13864_v62 = vsel %vm866_vm3, %v4358_v12, %v4360_v11  ;;  %v18409_v12 = vld [vmem:[#allocation164_spill] sm:$0xff]  ;;  %v18412_v11 = vld [vmem:[#allocation19_spill] sm:$0xff] }
 0x480   : > { %18404 = vst [vmem:[#allocation191_spill] sm:$0xff] %v13861_v13  ;;  %18405 = vst [vmem:[#allocation192_spill] sm:$0xff] %v13864_v62  ;;  %v13868_v5 = vsel %vm3334_vm0, %v13740_v52, %v8657_v22  ;;  %v4365_v28 = vrot.slane %v13468_v3, 2  ;;  %v13873_v31 = vsel %vm3334_vm0, %v13730_v33, %v8661_v48  ;;  %v4372_v54 = vrot.slane %v13489_v45, 2  ;;  %v18406_v33 = vld [vmem:[#allocation115_spill] sm:$0xff] }
 0x481   : > { %4542 = vrot.lane.b32.xlu0 %v13782_v4, %s9817_s16  ;;  %4540 = vrot.lane.b32.xlu1 %v13785_v24, %s9817_s16  ;;  %v4373_v39 = vrot.slane %v13491_v25, 2  ;;  %v4370_v21 = vrot.slane %v13483_v29, 2  ;;  %v13884_v52 = vsel %vm3334_vm0, %v13734_v1, %v8662_v8  ;;  %v4377_v3 = vrot.slane %v13510_v30, 2 }
 0x482   : > { %v4378_v49 = vrot.slane %v13512_v19, 2  ;;  %v8806_v16 = vunpack.i.l.bf16 %v18406_v33  ;;  %v13890_v45 = vsel %vm866_vm3, %v4367_v10, %v4368_v34  ;;  %v13894_v25 = vsel %vm3334_vm0, %v13756_v51, %v8666_v42  ;;  %v18408_v19 = vld [vmem:[#allocation87_spill] sm:$0xff]  ;;  %v18411_v51 = vld [vmem:[#allocation41_spill] sm:$0xff] }
 0x483   : > { %v13837_v15 = vpop.permute.xlu0 %8944  ;;  %v13839_v46 = vpop.permute.xlu1 %8939  ;;  %v13898_v29 = vsel %vm3334_vm0, %v13760_v2, %v8667_v36  ;;  %v8886_v1 = vunpack.i.l.bf16 %v18407_v18  ;;  %v4375_v30 = vrot.slane %v18408_v19, 2  ;;  %v4382_v14 = vrot.slane %v18409_v12, 2 }
 0x484   : > { %v8807_v22 = vunpack.i.h.bf16 %v18406_v33  ;;  %v13911_v2 = vsel %vm866_vm3, %v4363_v37, %v4365_v28  ;;  %v13914_v7 = vsel %vm866_vm3, %v4372_v54, %v4373_v39  ;;  %v8726_v48 = vunpack.i.l.bf16 %v18412_v11  ;;  %v3530_v37 = vld [vmem:[%s18271_s4 + $0x110] sm:$0xff]  ;;  %v3531_v28 = vld [vmem:[%s18271_s4 + $0x118] sm:$0xff] }
 0x485   : > { %4546 = vrot.lane.b32.xlu0 %v13803_v53, %s9817_s16  ;;  %4544 = vrot.lane.b32.xlu1 %v13806_v57, %s9817_s16  ;;  %v8887_v8 = vunpack.i.h.bf16 %v18407_v18  ;;  %v13921_v10 = vsel %vm866_vm3, %v4368_v34, %v4370_v21  ;;  %v13924_v19 = vsel %vm866_vm3, %v4377_v3, %v4378_v49  ;;  %v18413_v18 = vld [vmem:[#allocation140_spill] sm:$0xff]  ;;  %v4380_v26 = vrot.slane %v18414_v43, 2  ;;  %v18419_v53 = vld [vmem:[#allocation67_spill] sm:$0xff] }
 0x486   : > { %v3400_v12 = vsel %vm562_vm4, %v18413_v18, %v8806_v16  ;;  %v8727_v34 = vunpack.i.h.bf16 %v18412_v11  ;;  %v13942_v3 = vsel %vm866_vm3, %v4373_v39, %v4375_v30  ;;  %v18416_v16 = vld [vmem:[#allocation50_spill] sm:$0xff]  ;;  %v18417_v18 = vld [vmem:[#allocation59_spill] sm:$0xff]  ;;  %v3368_v30 = vsel %vm3367_vm1, %v13816_v17, %v8726_v48  ;;  %v18422_v57 = vld [vmem:[#allocation72_spill] sm:$0xff] }
 0x487   : > { %v13877_v50 = vpop.permute.xlu0 %8954  ;;  %v13879_v0 = vpop.permute.xlu1 %8949  ;;  %v3432_v21 = vsel %vm3334_vm0, %v3400_v12, %v8886_v1  ;;  %v8811_v43 = vunpack.i.l.bf16 %v18416_v16  ;;  %v8891_v1 = vunpack.i.l.bf16 %v18419_v53  ;;  %v8901_v4 = vunpack.i.l.bf16 %v18422_v57  ;;  %v18427_v48 = vld [vmem:[#allocation120_spill] sm:$0xff] }
 0x488   : > { %v3369_v17 = vsel %vm3367_vm1, %v13834_v58, %v8727_v34  ;;  %v8892_v58 = vunpack.i.h.bf16 %v18419_v53 }
 0x489   : > { %4550 = vrot.lane.b32.xlu0 %v13809_v20, %s9817_s16  ;;  %4548 = vrot.lane.b32.xlu1 %v13812_v55, %s9817_s16  ;;  %v8392_v20 = vpack.c.bf16 %v3531_v28, %v3530_v37  ;;  %v18418_v55 = vld [vmem:[#allocation177_spill] sm:$0xff]  ;;  %v18420_v37 = vld [vmem:[#allocation159_spill] sm:$0xff] }
 0x48b   : > { %v8965_v36 = vpop.permute.xlu0 %8964  ;;  %v13918_v42 = vpop.permute.xlu1 %8959 }
 0x48c   : > { %v8967_v54 = vunpack.i.h.bf16 %v8965_v36  ;;  %v8966_v33 = vunpack.i.l.bf16 %v8965_v36  ;;  %v18415_v36 = vrot.slane %v18410_v61, 2 }
 0x48d   : > { %4554 = vrot.lane.b32.xlu0 %v13828_v23, %s9817_s16  ;;  %4552 = vrot.lane.b32.xlu1 %v13831_v9, %s9817_s16  ;;  %v3401_v23 = vsel %vm562_vm4, %v18417_v18, %v8807_v22  ;;  %v8821_v9 = vunpack.i.l.bf16 %v18418_v55  ;;  %v13962_v22 = vsel %vm866_vm3, %v4378_v49, %v4380_v26  ;;  %v8812_v26 = vunpack.i.h.bf16 %v18416_v16 }
 0x48e   : > { %v13947_v32 = vsel %vm866_vm3, %v4382_v14, %v18415_v36  ;;  %v3464_v11 = vsel %vm3367_vm1, %v3432_v21, %v8966_v33  ;;  %v3433_v14 = vsel %vm3334_vm0, %v3401_v23, %v8887_v8  ;;  %v18421_v21 = vld [vmem:[#allocation135_spill] sm:$0xff] }
 0x48f   : > { %v13955_v12 = vpop.permute.xlu0 %8974  ;;  %3667 = vmatprep.mubr.f32.mxu0 %v3464_v11  ;;  %v8970_v39 = vpop.permute.xlu1 %8969  ;;  %v3465_v33 = vsel %vm3367_vm1, %v3433_v14, %v8967_v54  ;;  %v8731_v18 = vunpack.i.l.bf16 %v18421_v21  ;;  %v18423_v23 = vld [vmem:[#allocation179_spill] sm:$0xff]  ;;  %v8732_v8 = vunpack.i.h.bf16 %v18421_v21  ;;  %v18424_v54 = vld [vmem:[#allocation153_spill] sm:$0xff]  ;;  %v3406_v16 = vsel %vm562_vm4, %v18427_v48, %v8821_v9 }
 0x490   : > { %v8971_v36 = vunpack.i.l.bf16 %v8970_v39  ;;  %3668 = vmatmul.mubr.f32.vlgmr.msra.gmra.mrb[32].mxu0 %v3368_v30  ;;  %v8741_v49 = vunpack.i.l.bf16 %v18424_v54  ;;  %v18425_v11 = vld [vmem:[#allocation61_spill] sm:$0xff]  ;;  %v3438_v53 = vsel %vm3334_vm0, %v3406_v16, %v8901_v4  ;;  %v18433_v16 = vld [vmem:[#allocation127_spill] sm:$0xff] }
 0x491   : > { %3672 = vmatprep.mubr.f32.mxu0 %v3465_v33  ;;  %4558 = vrot.lane.b32.xlu0 %v13861_v13, %s9817_s16  ;;  %v3402_v30 = vsel %vm562_vm4, %v18425_v11, %v8811_v43  ;;  %v18426_v14 = vld [vmem:[#allocation81_spill] sm:$0xff]  ;;  %v8822_v33 = vunpack.i.h.bf16 %v18418_v55  ;;  %v8902_v13 = vunpack.i.h.bf16 %v18422_v57  ;;  %v8742_v55 = vunpack.i.h.bf16 %v18424_v54 }
 0x492   : > { %4556 = vrot.lane.b32.xlu1 %v13864_v62, %s9817_s16  ;;  %8391 = vmatpush3.bf16.msra.mxu0 %v18426_v14  ;;  %v3434_v21 = vsel %vm3334_vm0, %v3402_v30, %v8891_v1  ;;  %v8972_v62 = vunpack.i.h.bf16 %v8970_v39  ;;  %v3370_v9 = vsel %vm3367_vm1, %v13843_v63, %v8731_v18  ;;  %v18428_v1 = vld [vmem:[#allocation52_spill] sm:$0xff]  ;;  %v3374_v39 = vsel %vm3367_vm1, %v13873_v31, %v8741_v49  ;;  %v18431_v30 = vld [vmem:[#allocation99_spill] sm:$0xff] }
 0x493   : > { %v13982_v34 = vpop.permute.xlu0 %8984  ;;  %v8980_v28 = vpop.permute.xlu1 %8979  ;;  %8393 = vmatprep.subr.bf16.mxu0 %v8392_v20  ;;  %v3466_v43 = vsel %vm3367_vm1, %v3434_v21, %v8971_v36  ;;  %v8816_v48 = vunpack.i.l.bf16 %v18428_v1  ;;  %v18429_v36 = vld [vmem:[#allocation93_spill] sm:$0xff]  ;;  %v8896_v4 = vunpack.i.l.bf16 %v18431_v30  ;;  %v18432_v21 = vld [vmem:[#allocation63_spill] sm:$0xff]  ;;  %v8906_v31 = vunpack.i.l.bf16 %v18433_v16 }
 0x494   : > { %v8981_v44 = vunpack.i.l.bf16 %v8980_v28  ;;  %3673 = vmatmul.mubr.f32.gmra.mrb[34].mxu0 %v3369_v17  ;;  %v8982_v11 = vunpack.i.h.bf16 %v8980_v28  ;;  %v3403_v28 = vsel %vm562_vm4, %v18429_v36, %v8812_v26  ;;  %v18430_v17 = vld [vmem:[#allocation157_spill] sm:$0xff]  ;;  %v8976_v49 = vunpack.i.l.bf16 %v13955_v12 }
 0x495   : > { %4562 = vrot.lane.b32.xlu0 %v13890_v45, %s9817_s16  ;;  %3677 = vmatprep.mubr.f32.mxu0 %v3466_v43  ;;  %v8826_v54 = vunpack.i.l.bf16 %v18430_v17  ;;  %v3435_v18 = vsel %vm3334_vm0, %v3403_v28, %v8892_v58  ;;  %v18435_v58 = vld [vmem:[#allocation134_spill] sm:$0xff] }
 0x496   : > { %4560 = vrot.lane.b32.xlu1 %v13911_v2, %s9817_s16  ;;  %v3470_v57 = vsel %vm3367_vm1, %v3438_v53, %v8981_v44  ;;  %v3407_v44 = vsel %vm562_vm4, %v18432_v21, %v8822_v33  ;;  %8395 = vmatpush3.bf16.msra.mxu0 %v8392_v20  ;;  %v3467_v26 = vsel %vm3367_vm1, %v3435_v18, %v8972_v62  ;;  %v18434_v53 = vld [vmem:[#allocation110_spill] sm:$0xff]  ;;  %v18436_v62 = vld [vmem:[#allocation92_spill] sm:$0xff]  ;;  %v8827_v18 = vunpack.i.h.bf16 %v18430_v17 }
 0x497   : > { %v14005_v14 = vpop.permute.xlu0 %8994  ;;  %v14007_v63 = vpop.permute.xlu1 %8989  ;;  %3697 = vmatprep.mubr.f32.mxu1 %v3470_v57  ;;  %v3439_v43 = vsel %vm3334_vm0, %v3407_v44, %v8902_v13  ;;  %v8736_v36 = vunpack.i.l.bf16 %v18434_v53  ;;  %v8986_v57 = vunpack.i.l.bf16 %v13982_v34  ;;  %v3371_v33 = vsel %vm3367_vm1, %v13847_v60, %v8732_v8 }
 0x498   : > { %3678 = vmatmul.mubr.f32.gmra.mrb[36].mxu0 %v3370_v9  ;;  %3698 = vmatmul.mubr.f32.vlgmr.msra.gmra.mrb[0].mxu1 %v3374_v39  ;;  %v3471_v20 = vsel %vm3367_vm1, %v3439_v43, %v8982_v11  ;;  %v8746_v9 = vunpack.i.l.bf16 %v18435_v58  ;;  %v8817_v39 = vunpack.i.h.bf16 %v18428_v1  ;;  %v3375_v13 = vsel %vm3367_vm1, %v13884_v52, %v8742_v55  ;;  %v18437_v1 = vld [vmem:[#allocation142_spill] sm:$0xff]  ;;  %v18439_v43 = vld [vmem:[#allocation25_spill] sm:$0xff] }
 0x499   : > { %4566 = vrot.lane.b32.xlu0 %v13914_v7, %s9817_s16  ;;  %3682 = vmatprep.mubr.f32.mxu0 %v3467_v26  ;;  %v3404_v28 = vsel %vm562_vm4, %v18436_v62, %v8816_v48  ;;  %v8897_v11 = vunpack.i.h.bf16 %v18431_v30  ;;  %v3408_v44 = vsel %vm562_vm4, %v18437_v1, %v8826_v54  ;;  %v8907_v26 = vunpack.i.h.bf16 %v18433_v16  ;;  %v18441_v62 = vld [vmem:[#allocation62_spill] sm:$0xff] }
 0x49a   : > { %4564 = vrot.lane.b32.xlu1 %v13921_v10, %s9817_s16  ;;  %3702 = vmatprep.mubr.f32.mxu1 %v3471_v20  ;;  %v3436_v8 = vsel %vm3334_vm0, %v3404_v28, %v8896_v4  ;;  %v8977_v52 = vunpack.i.h.bf16 %v13955_v12  ;;  %v3440_v48 = vsel %vm3334_vm0, %v3408_v44, %v8906_v31  ;;  %v8737_v17 = vunpack.i.h.bf16 %v18434_v53  ;;  %v18438_v4 = vld [vmem:[#allocation89_spill] sm:$0xff] }
 0x49b   : > { %v14033_v21 = vpop.permute.xlu0 %9004  ;;  %v14035_v60 = vpop.permute.xlu1 %8999  ;;  %v3468_v55 = vsel %vm3367_vm1, %v3436_v8, %v8976_v49  ;;  %v8987_v30 = vunpack.i.h.bf16 %v13982_v34  ;;  %v3472_v54 = vsel %vm3367_vm1, %v3440_v48, %v8986_v57  ;;  %v4385_v16 = vrot.slane %v18438_v4, 2  ;;  %v18440_v34 = vld [vmem:[#allocation121_spill] sm:$0xff] }
 0x49c   : > { %3683 = vmatmul.mubr.f32.gmra.mrb[38].mxu0 %v3371_v33  ;;  %3703 = vmatmul.mubr.f32.gmra.mrb[2].mxu1 %v3375_v13  ;;  %v8747_v12 = vunpack.i.h.bf16 %v18435_v58  ;;  %v8831_v20 = vunpack.i.l.bf16 %v18439_v43  ;;  %v3372_v31 = vsel %vm3367_vm1, %v13850_v40, %v8736_v36  ;;  %v3405_v49 = vsel %vm562_vm4, %v18440_v34, %v8817_v39 }
 0x49d   : > { %4570 = vrot.lane.b32.xlu0 %v13924_v19, %s9817_s16  ;;  %3687 = vmatprep.mubr.f32.mxu0 %v3468_v55  ;;  %v8911_v53 = vunpack.i.l.bf16 %v13719_v47  ;;  %v3376_v58 = vsel %vm3367_vm1, %v13894_v25, %v8746_v9  ;;  %v3437_v13 = vsel %vm3334_vm0, %v3405_v49, %v8897_v11  ;;  %v3409_v28 = vsel %vm562_vm4, %v18441_v62, %v8827_v18  ;;  %v18446_v11 = vld [vmem:[#allocation56_spill] sm:$0xff]  ;;  %v18451_v62 = vld [vmem:[#allocation149_spill] sm:$0xff] }
 0x49e   : > { %4568 = vrot.lane.b32.xlu1 %v13942_v3, %s9817_s16  ;;  %3707 = vmatprep.mubr.f32.mxu1 %v3472_v54  ;;  %v8991_v8 = vunpack.i.l.bf16 %v14007_v63  ;;  %v3469_v40 = vsel %vm3367_vm1, %v3437_v13, %v8977_v52  ;;  %v3441_v36 = vsel %vm3334_vm0, %v3409_v28, %v8907_v26  ;;  %v18442_v39 = vrot.slane %v18423_v23, 2  ;;  %v18447_v52 = vld [vmem:[#allocation30_spill] sm:$0xff] }
 0x49f   : > { %v14059_v33 = vpop.permute.xlu0 %9014  ;;  %v14061_v57 = vpop.permute.xlu1 %9009  ;;  %v18443_v1 = vrot.slane %v18420_v37, 2  ;;  %v3473_v25 = vsel %vm3367_vm1, %v3441_v36, %v8987_v30  ;;  %v18445_v9 = vrot.slane %v18410_v61, 2  ;;  %v4392_v26 = vrot.slane %v18446_v11, 2  ;;  %v18448_v54 = vld [vmem:[#allocation94_spill] sm:$0xff]  ;;  %v18449_v61 = vld [vmem:[#allocation88_spill] sm:$0xff]  ;;  %v18455_v36 = vld [vmem:[#allocation181_spill] sm:$0xff] }
 0x4a0   : > { %3688 = vmatmul.mubr.f32.gmra.mrb[40].mxu0 %v3372_v31  ;;  %3708 = vmatmul.mubr.f32.gmra.mrb[4].mxu1 %v3376_v58  ;;  %v4393_v55 = vrot.slane %v18447_v52, 2  ;;  %v8832_v37 = vunpack.i.h.bf16 %v18439_v43  ;;  %v3373_v48 = vsel %vm3367_vm1, %v13868_v5, %v8737_v17  ;;  %v3410_v30 = vsel %vm562_vm4, %v18448_v54, %v8831_v20  ;;  %v18461_v11 = vld [vmem:[#allocation91_spill] sm:$0xff] }
 0x4a1   : > { %v14076_v44 = vsel %vm866_vm3, %v18443_v1, %v18442_v39  ;;  %4574 = vrot.lane.b32.xlu0 %v13947_v32, %s9817_s16  ;;  %3692 = vmatprep.mubr.f32.mxu0 %v3469_v40  ;;  %v14084_v18 = vsel %vm866_vm3, %v18445_v9, %v4385_v16  ;;  %v4390_v4 = vrot.slane %v18449_v61, 2  ;;  %v18450_v16 = vld [vmem:[#allocation83_spill] sm:$0xff]  ;;  %v8912_v34 = vunpack.i.h.bf16 %v13719_v47  ;;  %v18456_v39 = vld [vmem:[#allocation29_spill] sm:$0xff] }
 0x4a2   : > { %18444 = vst [vmem:[#allocation115_spill] sm:$0xff] %v14076_v44  ;;  %4572 = vrot.lane.b32.xlu1 %v13962_v22, %s9817_s16  ;;  %3712 = vmatprep.mubr.f32.mxu1 %v3473_v25  ;;  %v8751_v31 = vunpack.i.l.bf16 %v18450_v16  ;;  %v3377_v43 = vsel %vm3367_vm1, %v13898_v29, %v8747_v12  ;;  %v3442_v13 = vsel %vm3334_vm0, %v3410_v30, %v8911_v53  ;;  %v8597_v5 = vunpack.i.h.bf16 %v18451_v62  ;;  %v18454_v53 = vld [vmem:[#allocation161_spill] sm:$0xff] }
 0x4a3   : > { %v14098_v49 = vpop.permute.xlu0 %9024  ;;  %v14100_v58 = vpop.permute.xlu1 %9019  ;;  %v8672_v17 = vunpack.i.h.bf16 %v18411_v51  ;;  %v8992_v20 = vunpack.i.h.bf16 %v14007_v63  ;;  %v3474_v28 = vsel %vm3367_vm1, %v3442_v13, %v8991_v8  ;;  %v18452_v47 = vunpack.i.l.bf16 %v18411_v51  ;;  %v18457_v8 = vld [vmem:[#allocation101_spill] sm:$0xff] }
 0x4a4   : > { %3693 = vmatmul.mubr.f32.gmra.mrb[42].mxu0 %v3373_v48  ;;  %3713 = vmatmul.mubr.f32.gmra.mrb[6].mxu1 %v3377_v43  ;;  %v14116_v12 = vsel %vm866_vm3, %v4392_v26, %v4393_v55  ;;  %v4397_v40 = vrot.slane %v18454_v53, 2  ;;  %v4398_v63 = vrot.slane %v18455_v36, 2  ;;  %v8836_v1 = vunpack.i.l.bf16 %v18456_v39  ;;  %v18462_v43 = vld [vmem:[#allocation46_spill] sm:$0xff] }
 0x4a5   : > { %4578 = vrot.lane.b32.xlu0 %v14076_v44, %s9817_s16  ;;  %3717 = vmatprep.mubr.f32.mxu1 %v3474_v28  ;;  %v3345_v29 = vsel %vm3334_vm0, %v13772_v56, %v18452_v47  ;;  %18453 = vst [vmem:[#allocation90_spill] sm:$0xff] %v14116_v12  ;;  %v18458_v51 = vrot.slane %v18423_v23, 2  ;;  %v18460_v56 = vld [vmem:[#allocation123_spill] sm:$0xff]  ;;  %v4395_v26 = vrot.slane %v18461_v11, 2  ;;  %v8752_v52 = vunpack.i.h.bf16 %v18450_v16  ;;  %v18465_v47 = vld [vmem:[#allocation141_spill] sm:$0xff]  ;;  %v18466_v53 = vld [vmem:[#allocation166_spill] sm:$0xff] }
 0x4a6   : > { %4576 = vrot.lane.b32.xlu1 %v14084_v18, %s9817_s16  ;;  %8172 = vmatprep.mubr.msk.f32.mxu0 %vm562_vm4, %v18457_v8  ;;  %v3411_v9 = vsel %vm562_vm4, %v18460_v56, %v8832_v37  ;;  %v8916_v48 = vunpack.i.l.bf16 %v13717_v41  ;;  %v3378_v61 = vsel %vm3367_vm1, %v3345_v29, %v8751_v31  ;;  %v8676_v13 = vunpack.i.l.bf16 %v18462_v43  ;;  %v18463_v28 = vld [vmem:[#allocation39_spill] sm:$0xff]  ;;  %v18469_v56 = vld [vmem:[#allocation144_spill] sm:$0xff]  ;;  %v9609_v44 = vld [vmem:[#allocation4 + $0x1a0] sm:$0xff] }
 0x4a7   : > { %v14128_v25 = vsel %vm866_vm3, %v18458_v51, %v4390_v4  ;;  %v14135_v54 = vpop.permute.xlu0 %9034  ;;  %v14137_v30 = vpop.permute.xlu1 %9029  ;;  %v3443_v23 = vsel %vm3334_vm0, %v3411_v9, %v8912_v34  ;;  %v8596_v4 = vunpack.i.l.bf16 %v18451_v62  ;;  %v8996_v37 = vunpack.i.l.bf16 %v14005_v14  ;;  %v18471_v9 = vld [vmem:[#allocation173_spill] sm:$0xff]  ;;  %v18485_v62 = vld [vmem:[#allocation75_spill] sm:$0xff] }
 0x4a8   : > { %18459 = vst [vmem:[#allocation87_spill] sm:$0xff] %v14128_v25  ;;  %3718 = vmatmul.mubr.f32.gmra.mrb[8].mxu1 %v3378_v61  ;;  %8173 = vmatmul.mubr.msk.f32.vlgmr.msra.gmra.mrb[44].mxu0 %vm562_vm4, %v18463_v28  ;;  %v3475_v16 = vsel %vm3367_vm1, %v3443_v23, %v8992_v20  ;;  %v3346_v31 = vsel %vm3334_vm0, %v13789_v38, %v8672_v17  ;;  %v4402_v29 = vrot.slane %v18465_v47, 2  ;;  %v4403_v36 = vrot.slane %v18466_v53, 2  ;;  %v18467_v20 = vld [vmem:[#allocation103_spill] sm:$0xff]  ;;  %v9579_v53 = vld [vmem:[#allocation4 + $0x90] sm:$0xff] }
 0x4a9   : > { %4582 = vrot.lane.b32.xlu0 %v14116_v12, %s9817_s16  ;;  %3722 = vmatprep.mubr.f32.mxu1 %v3475_v16  ;;  %v14152_v34 = vsel %vm866_vm3, %v4397_v40, %v4398_v63  ;;  %v8837_v8 = vunpack.i.h.bf16 %v18456_v39  ;;  %v14162_v51 = vsel %vm866_vm3, %v4393_v55, %v4395_v26  ;;  %v3412_v38 = vsel %vm562_vm4, %v18469_v56, %v8836_v1  ;;  %v18470_v17 = vld [vmem:[#allocation119_spill] sm:$0xff]  ;;  %v18472_v1 = vld [vmem:[#allocation102_spill] sm:$0xff]  ;;  %v18476_v56 = vld [vmem:[#allocation53_spill] sm:$0xff] }
 0x4aa   : > { %18464 = vst [vmem:[#allocation164_spill] sm:$0xff] %v14152_v34  ;;  %4580 = vrot.lane.b32.xlu1 %v14128_v25, %s9817_s16  ;;  %8175 = vmatprep.mubr.msk.f32.mxu0 %vm562_vm4, %v18467_v20  ;;  %18468 = vst [vmem:[#allocation116_spill] sm:$0xff] %v14162_v51  ;;  %v4400_v40 = vrot.slane %v18470_v17, 2  ;;  %v8756_v11 = vunpack.i.l.bf16 %v18471_v9  ;;  %v8917_v61 = vunpack.i.h.bf16 %v13717_v41  ;;  %v3379_v28 = vsel %vm3367_vm1, %v3346_v31, %v8752_v52  ;;  %v18475_v31 = vld [vmem:[#allocation122_spill] sm:$0xff]  ;;  %v18479_v17 = vld [vmem:[#allocation65_spill] sm:$0xff] }
 0x4ab   : > { %v14169_v23 = vpop.permute.xlu0 %4438  ;;  %v14171_v39 = vpop.permute.xlu1 %9039  ;;  %v3444_v16 = vsel %vm3334_vm0, %v3412_v38, %v8916_v48  ;;  %v8677_v55 = vunpack.i.h.bf16 %v18462_v43  ;;  %v8997_v26 = vunpack.i.h.bf16 %v14005_v14  ;;  %v3314_v41 = vsel %vm562_vm4, %v9579_v53, %v8596_v4  ;;  %v18474_v43 = vld [vmem:[#allocation60_spill] sm:$0xff] }
 0x4ac   : > { %3723 = vmatmul.mubr.f32.gmra.mrb[10].mxu1 %v3379_v28  ;;  %8176 = vmatmul.mubr.msk.f32.gmra.mrb[46].mxu0 %vm562_vm4, %v18472_v1  ;;  %v3476_v47 = vsel %vm3367_vm1, %v3444_v16, %v8996_v37  ;;  %v3347_v52 = vsel %vm3334_vm0, %v3314_v41, %v8676_v13  ;;  %v14185_v48 = vsel %vm866_vm3, %v4402_v29, %v4403_v36  ;;  %v4407_v14 = vrot.slane %v18474_v43, 2  ;;  %v18477_v37 = vld [vmem:[#allocation40_spill] sm:$0xff]  ;;  %v18480_v29 = vld [vmem:[#allocation95_spill] sm:$0xff] }
 0x4ad   : > { %4586 = vrot.lane.b32.xlu0 %v14152_v34, %s9817_s16  ;;  %3727 = vmatprep.mubr.f32.mxu1 %v3476_v47  ;;  %18473 = vst [vmem:[#allocation41_spill] sm:$0xff] %v14185_v48  ;;  %v4408_v20 = vrot.slane %v18475_v31, 2  ;;  %v8841_v38 = vunpack.i.l.bf16 %v18476_v56  ;;  %v14195_v4 = vsel %vm866_vm3, %v4398_v63, %v4400_v40  ;;  %v3413_v13 = vsel %vm562_vm4, %v18479_v17, %v8837_v8  ;;  %v18481_v40 = vld [vmem:[#allocation130_spill] sm:$0xff]  ;;  %v9580_v31 = vld [vmem:[#allocation4 + $0x98] sm:$0xff] }
 0x4ae   : > { %4584 = vrot.lane.b32.xlu1 %v14162_v51, %s9817_s16  ;;  %8178 = vmatprep.mubr.msk.f32.mxu0 %vm562_vm4, %v18477_v37  ;;  %18478 = vst [vmem:[#allocation19_spill] sm:$0xff] %v14195_v4  ;;  %v4405_v28 = vrot.slane %v18480_v29, 2  ;;  %v8757_v16 = vunpack.i.h.bf16 %v18471_v9  ;;  %v8921_v1 = vunpack.i.l.bf16 %v13765_v27  ;;  %v3380_v41 = vsel %vm3367_vm1, %v3347_v52, %v8756_v11  ;;  %v18482_v37 = vld [vmem:[#allocation169_spill] sm:$0xff]  ;;  %v18487_v52 = vld [vmem:[#allocation64_spill] sm:$0xff] }
 0x4af   : > { %v14202_v47 = vpop.permute.xlu0 %4442  ;;  %v14204_v53 = vpop.permute.xlu1 %4440  ;;  %v3445_v43 = vsel %vm3334_vm0, %v3413_v13, %v8917_v61  ;;  %v9001_v63 = vunpack.i.l.bf16 %v14035_v60  ;;  %v3315_v9 = vsel %vm562_vm4, %v9580_v31, %v8597_v5  ;;  %v8601_v17 = vunpack.i.l.bf16 %v18482_v37  ;;  %v18483_v29 = vld [vmem:[#allocation133_spill] sm:$0xff] }
 0x4b0   : > { %3728 = vmatmul.mubr.f32.gmra.mrb[12].mxu1 %v3380_v41  ;;  %8179 = vmatmul.mubr.msk.f32.gmra.mrb[48].mxu0 %vm562_vm4, %v18481_v40  ;;  %v3477_v8 = vsel %vm3367_vm1, %v3445_v43, %v8997_v26  ;;  %v8681_v34 = vunpack.i.l.bf16 %v18483_v29  ;;  %v3348_v11 = vsel %vm3334_vm0, %v3315_v9, %v8677_v55  ;;  %v14221_v61 = vsel %vm866_vm3, %v4407_v14, %v4408_v20  ;;  %v18488_v41 = vld [vmem:[#allocation12_spill] sm:$0xff]  ;;  %v18489_v55 = vld [vmem:[#allocation82_spill] sm:$0xff] }
 0x4b1   : > { %4590 = vrot.lane.b32.xlu0 %v14185_v48, %s9817_s16  ;;  %3732 = vmatprep.mubr.f32.mxu1 %v3477_v8  ;;  %18484 = vst [vmem:[#allocation140_spill] sm:$0xff] %v14221_v61  ;;  %v8842_v26 = vunpack.i.h.bf16 %v18476_v56  ;;  %v14229_v5 = vsel %vm866_vm3, %v4403_v36, %v4405_v28  ;;  %v3414_v13 = vsel %vm562_vm4, %v18487_v52, %v8841_v38  ;;  %v4410_v43 = vrot.slane %v18488_v41, 2  ;;  %v18490_v28 = vld [vmem:[#allocation74_spill] sm:$0xff]  ;;  %v9581_v52 = vld [vmem:[#allocation4 + $0xa8] sm:$0xff] }
 0x4b2   : > { %4588 = vrot.lane.b32.xlu1 %v14195_v4, %s9817_s16  ;;  %8181 = vmatprep.mubr.msk.f32.mxu0 %vm562_vm4, %v18485_v62  ;;  %18486 = vst [vmem:[#allocation86_spill] sm:$0xff] %v14229_v5  ;;  %v8761_v40 = vunpack.i.l.bf16 %v18489_v55  ;;  %v8922_v14 = vunpack.i.h.bf16 %v13765_v27  ;;  %v3381_v31 = vsel %vm3367_vm1, %v3348_v11, %v8757_v16  ;;  %v3446_v9 = vsel %vm3334_vm0, %v3414_v13, %v8921_v1  ;;  %v18491_v1 = vld [vmem:[#allocation180_spill] sm:$0xff] }
 0x4b3   : > { %v14236_v8 = vpop.permute.xlu0 %4446  ;;  %v14238_v56 = vpop.permute.xlu1 %4444  ;;  %v9002_v36 = vunpack.i.h.bf16 %v14035_v60  ;;  %v3478_v38 = vsel %vm3367_vm1, %v3446_v9, %v9001_v63  ;;  %v8602_v62 = vunpack.i.h.bf16 %v18482_v37  ;;  %v8682_v27 = vunpack.i.h.bf16 %v18483_v29  ;;  %v18492_v60 = vld [vmem:[#allocation105_spill] sm:$0xff] }
 0x4b4   : > { %3733 = vmatmul.mubr.f32.gmra.mrb[14].mxu1 %v3381_v31  ;;  %8182 = vmatmul.mubr.msk.f32.gmra.mrb[50].mxu0 %vm562_vm4, %v18490_v28  ;;  %v3316_v16 = vsel %vm562_vm4, %v9581_v52, %v8601_v17  ;;  %v8846_v11 = vunpack.i.l.bf16 %v18491_v1  ;;  %v14258_v37 = vsel %vm866_vm3, %v4408_v20, %v4410_v43  ;;  %v18494_v29 = vld [vmem:[#allocation97_spill] sm:$0xff]  ;;  %v8762_v41 = vunpack.i.h.bf16 %v18489_v55  ;;  %v18496_v20 = vld [vmem:[#allocation14_spill] sm:$0xff]  ;;  %v18497_v43 = vld [vmem:[#allocation79_spill] sm:$0xff] }
 0x4b5   : > { %4594 = vrot.lane.b32.xlu0 %v14221_v61, %s9817_s16  ;;  %3737 = vmatprep.mubr.f32.mxu1 %v3478_v38  ;;  %v3349_v63 = vsel %vm3334_vm0, %v3316_v16, %v8681_v34  ;;  %18493 = vst [vmem:[#allocation50_spill] sm:$0xff] %v14258_v37  ;;  %v3415_v13 = vsel %vm562_vm4, %v18494_v29, %v8842_v26  ;;  %v8926_v17 = vunpack.i.l.bf16 %v13763_v59  ;;  %v9006_v34 = vunpack.i.l.bf16 %v14033_v21  ;;  %v9582_v52 = vld [vmem:[#allocation3 + $0x18] sm:$0xff]  ;;  %v9583_v16 = vld [vmem:[#allocation4 + $0xb0] sm:$0xff]  ;;  %v18499_v29 = vld [vmem:[#allocation42_spill] sm:$0xff] }
 0x4b6   : > { %4592 = vrot.lane.b32.xlu1 %v14229_v5, %s9817_s16  ;;  %8184 = vmatprep.mubr.msk.f32.mxu0 %vm562_vm4, %v18492_v60  ;;  %v3382_v28 = vsel %vm3367_vm1, %v3349_v63, %v8761_v40  ;;  %v3447_v38 = vsel %vm3334_vm0, %v3415_v13, %v8922_v14  ;;  %v8606_v55 = vunpack.i.l.bf16 %v18497_v43  ;;  %v3317_v40 = vsel %vm562_vm4, %v9583_v16, %v8602_v62  ;;  %v18498_v60 = vld [vmem:[#allocation172_spill] sm:$0xff]  ;;  %v18500_v13 = vld [vmem:[#allocation38_spill] sm:$0xff] }
 0x4b7   : > { %v14264_v31 = vpop.permute.xlu0 %4450  ;;  %v14266_v9 = vpop.permute.xlu1 %4448  ;;  %v3479_v26 = vsel %vm3367_vm1, %v3447_v38, %v9002_v36  ;;  %v8686_v14 = vunpack.i.l.bf16 %v18498_v60  ;;  %v8847_v63 = vunpack.i.h.bf16 %v18491_v1  ;;  %v3350_v36 = vsel %vm3334_vm0, %v3317_v40, %v8682_v27  ;;  %v18501_v38 = vld [vmem:[#allocation22_spill] sm:$0xff]  ;;  %v18515_v61 = vld [vmem:[#allocation112_spill] sm:$0xff] }
 0x4b8   : > { %18495 = vst [vmem:[#allocation59_spill] sm:$0xff] %v14264_v31  ;;  %3738 = vmatmul.mubr.f32.gmra.mrb[16].mxu1 %v3382_v28  ;;  %8185 = vmatmul.mubr.msk.f32.gmra.mrb[52].mxu0 %vm562_vm4, %v18496_v20  ;;  %v3416_v28 = vsel %vm562_vm4, %v18500_v13, %v8846_v11  ;;  %v8766_v20 = vunpack.i.l.bf16 %v18501_v38  ;;  %v3383_v1 = vsel %vm3367_vm1, %v3350_v36, %v8762_v41  ;;  %v8607_v11 = vunpack.i.h.bf16 %v18497_v43  ;;  %v14299_v40 = vld [vmem:[#allocation3 + $0x30] sm:$0xff]  ;;  %v9586_v13 = vld [vmem:[#allocation3 + $0x20] sm:$0xff] }
 0x4b9   : > { %4630 = vrot.lane.b32.xlu0 %v9582_v52, %s9818_s18  ;;  %3742 = vmatprep.mubr.f32.mxu1 %v3479_v26  ;;  %v8927_v26 = vunpack.i.h.bf16 %v13763_v59  ;;  %v3448_v16 = vsel %vm3334_vm0, %v3416_v28, %v8926_v17  ;;  %v9585_v59 = vld [vmem:[#allocation4 + $0xc0] sm:$0xff]  ;;  %v8687_v17 = vunpack.i.h.bf16 %v18498_v60  ;;  %v18506_v28 = vld [vmem:[#allocation35_spill] sm:$0xff]  ;;  %v18507_v43 = vld [vmem:[#allocation124_spill] sm:$0xff]  ;;  %v8771_v5 = vunpack.i.l.bf16 %v18515_v61 }
 0x4ba   : > { %4596 = vrot.lane.b32.xlu1 %v14258_v37, %s9817_s16  ;;  %8187 = vmatprep.mubr.msk.f32.mxu0 %vm562_vm4, %v18499_v29  ;;  %v9007_v37 = vunpack.i.h.bf16 %v14033_v21  ;;  %v18504_v29 = vld [vmem:[#allocation34_spill] sm:$0xff]  ;;  %v3480_v27 = vsel %vm3367_vm1, %v3448_v16, %v9006_v34  ;;  %v3318_v41 = vsel %vm562_vm4, %v9585_v59, %v8606_v55  ;;  %v18505_v21 = vld [vmem:[#allocation27_spill] sm:$0xff]  ;;  %v8767_v16 = vunpack.i.h.bf16 %v18501_v38  ;;  %s17699_s16 = smov 21  }
 0x4bb   : > { %v14288_v62 = vpop.permute.xlu0 %4454  ;;  %v14290_v52 = vpop.permute.xlu1 %4452  ;;  %v8851_v36 = vunpack.i.l.bf16 %v18505_v21  ;;  %v3351_v34 = vsel %vm3334_vm0, %v3318_v41, %v8686_v14  ;;  %v14325_v41 = vld [vmem:[#allocation3 + $0x48] sm:$0xff]  ;;  %v9017_v12 = vunpack.i.h.bf16 %v14059_v33  ;;  %v9027_v31 = vunpack.i.h.bf16 %v14098_v49 }
 0x4bc   : > { %18502 = vst [vmem:[#allocation177_spill] sm:$0xff] %v14288_v62  ;;  %18503 = vst [vmem:[#allocation67_spill] sm:$0xff] %v14290_v52  ;;  %3743 = vmatmul.mubr.f32.gmra.mrb[18].mxu1 %v3383_v1  ;;  %8188 = vmatmul.mubr.msk.f32.gmra.mrb[54].mxu0 %vm562_vm4, %v18504_v29  ;;  %v3417_v1 = vsel %vm562_vm4, %v18507_v43, %v8847_v63  ;;  %v8931_v29 = vunpack.i.l.bf16 %v13800_v6  ;;  %v18511_v63 = vld [vmem:[#allocation148_spill] sm:$0xff]  ;;  %v9588_v43 = vld [vmem:[#allocation4 + $0xc8] sm:$0xff]  ;;  %v2722_v52 = vrot.slane %v9609_v44, 2 }
 0x4bd   : > { %4634 = vrot.lane.b32.xlu0 %v14299_v40, %s9818_s18  ;;  %3747 = vmatprep.mubr.f32.mxu1 %v3480_v27  ;;  %v3384_v27 = vsel %vm3367_vm1, %v3351_v34, %v8766_v20  ;;  %v3449_v59 = vsel %vm3334_vm0, %v3417_v1, %v8927_v26  ;;  %v8611_v38 = vunpack.i.l.bf16 %v18511_v63  ;;  %v3319_v20 = vsel %vm562_vm4, %v9588_v43, %v8607_v11  ;;  %v18512_v26 = vld [vmem:[#allocation171_spill] sm:$0xff] }
 0x4be   : > { %4632 = vrot.lane.b32.xlu1 %v9586_v13, %s9818_s18  ;;  %8190 = vmatprep.mubr.msk.f32.mxu0 %vm562_vm4, %v18506_v28  ;;  %v9011_v13 = vunpack.i.l.bf16 %v14061_v57  ;;  %v18510_v28 = vld [vmem:[#allocation104_spill] sm:$0xff]  ;;  %v3481_v14 = vsel %vm3367_vm1, %v3449_v59, %v9007_v37  ;;  %v8691_v34 = vunpack.i.l.bf16 %v18512_v26  ;;  %v8852_v1 = vunpack.i.h.bf16 %v18505_v21 }
 0x4bf   : > { %v14314_v55 = vpop.permute.xlu0 %4458  ;;  %v14316_v60 = vpop.permute.xlu1 %4456  ;;  %v18513_v37 = vld [vmem:[#allocation168_spill] sm:$0xff]  ;;  %v3352_v59 = vsel %vm3334_vm0, %v3319_v20, %v8687_v17  ;;  %v8932_v11 = vunpack.i.h.bf16 %v13800_v6  ;;  %v9591_v6 = vld [vmem:[#allocation4 + $0xd8] sm:$0xff] }
 0x4c0   : > { %18508 = vst [vmem:[#allocation159_spill] sm:$0xff] %v14314_v55  ;;  %18509 = vst [vmem:[#allocation135_spill] sm:$0xff] %v14316_v60  ;;  %3748 = vmatmul.mubr.f32.gmra.mrb[20].mxu1 %v3384_v27  ;;  %8191 = vmatmul.mubr.msk.f32.gmra.mrb[56].mxu0 %vm562_vm4, %v18510_v28  ;;  %v14332_v27 = vld [vmem:[#allocation3 + $0x38] sm:$0xff]  ;;  %v18514_v28 = vld [vmem:[#allocation145_spill] sm:$0xff]  ;;  %v3385_v48 = vsel %vm3367_vm1, %v3352_v59, %v8767_v16  ;;  %v9012_v55 = vunpack.i.h.bf16 %v14061_v57  ;;  %v3320_v16 = vsel %vm562_vm4, %v9591_v6, %v8611_v38 }
 0x4c1   : > { %4638 = vrot.lane.b32.xlu0 %v14325_v41, %s9818_s18  ;;  %3752 = vmatprep.mubr.f32.mxu1 %v3481_v14  ;;  %v3418_v14 = vsel %vm562_vm4, %v18514_v28, %v8851_v36  ;;  %v8612_v36 = vunpack.i.h.bf16 %v18511_v63  ;;  %v14354_v20 = vld [vmem:[#allocation3 + $0x60] sm:$0xff]  ;;  %v18519_v57 = vld [vmem:[#allocation117_spill] sm:$0xff]  ;;  %v14361_v59 = vld [vmem:[#allocation3 + $0x50] sm:$0xff]  ;;  %v8936_v38 = vunpack.i.l.bf16 %v13798_v35 }
 0x4c2   : > { %4636 = vrot.lane.b32.xlu1 %v14332_v27, %s9818_s18  ;;  %8193 = vmatprep.mubr.msk.f32.mxu0 %vm562_vm4, %v18513_v37  ;;  %v3450_v4 = vsel %vm3334_vm0, %v3418_v14, %v8931_v29  ;;  %v18518_v37 = vld [vmem:[#allocation131_spill] sm:$0xff]  ;;  %v8692_v29 = vunpack.i.h.bf16 %v18512_v26  ;;  %v18521_v63 = vld [vmem:[#allocation66_spill] sm:$0xff]  ;;  %v8772_v14 = vunpack.i.h.bf16 %v18515_v61 }
 0x4c3   : > { %v14343_v43 = vpop.permute.xlu0 %4462  ;;  %v14345_v21 = vpop.permute.xlu1 %4460  ;;  %v3482_v17 = vsel %vm3367_vm1, %v3450_v4, %v9011_v13  ;;  %v18520_v4 = vld [vmem:[#allocation147_spill] sm:$0xff]  ;;  %v3353_v13 = vsel %vm3334_vm0, %v3320_v16, %v8691_v34  ;;  %v3419_v28 = vsel %vm562_vm4, %v18521_v63, %v8852_v1  ;;  %v18525_v1 = vld [vmem:[#allocation18_spill] sm:$0xff] }
 0x4c4   : > { %18516 = vst [vmem:[#allocation72_spill] sm:$0xff] %v14343_v43  ;;  %18517 = vst [vmem:[#allocation179_spill] sm:$0xff] %v14345_v21  ;;  %3753 = vmatmul.mubr.f32.gmra.mrb[22].mxu1 %v3385_v48  ;;  %8194 = vmatmul.mubr.msk.f32.gmra.mrb[58].mxu0 %vm562_vm4, %v18518_v37  ;;  %v8856_v48 = vunpack.i.l.bf16 %v18519_v57  ;;  %v3451_v6 = vsel %vm3334_vm0, %v3419_v28, %v8932_v11  ;;  %v9016_v43 = vunpack.i.l.bf16 %v14059_v33  ;;  %v8616_v61 = vunpack.i.l.bf16 %v18525_v1  ;;  %v14383_v16 = vld [vmem:[#allocation3 + $0x78] sm:$0xff]  ;;  %v9594_v63 = vld [vmem:[#allocation4 + $0xe0] sm:$0xff] }
 0x4c5   : > { %4642 = vrot.lane.b32.xlu0 %v14354_v20, %s9818_s18  ;;  %3757 = vmatprep.mubr.f32.mxu1 %v3482_v17  ;;  %v3386_v17 = vsel %vm3367_vm1, %v3353_v13, %v8771_v5  ;;  %v3483_v34 = vsel %vm3367_vm1, %v3451_v6, %v9012_v55  ;;  %v3321_v5 = vsel %vm562_vm4, %v9594_v63, %v8612_v36  ;;  %v18526_v11 = vld [vmem:[#allocation151_spill] sm:$0xff]  ;;  %v8857_v28 = vunpack.i.h.bf16 %v18519_v57  ;;  %v18527_v55 = vld [vmem:[#allocation77_spill] sm:$0xff] }
 0x4c6   : > { %4640 = vrot.lane.b32.xlu1 %v14361_v59, %s9818_s18  ;;  %8196 = vmatprep.mubr.msk.f32.mxu0 %vm562_vm4, %v18520_v4  ;;  %v18524_v4 = vld [vmem:[#allocation167_spill] sm:$0xff]  ;;  %v8696_v13 = vunpack.i.l.bf16 %v18526_v11  ;;  %v3354_v6 = vsel %vm3334_vm0, %v3321_v5, %v8692_v29  ;;  %v8937_v36 = vunpack.i.h.bf16 %v13798_v35  ;;  %v14412_v5 = vld [vmem:[#allocation3 + $0x90] sm:$0xff]  ;;  %v9597_v35 = vld [vmem:[#allocation4 + $0xf0] sm:$0xff] }
 0x4c7   : > { %v14372_v26 = vpop.permute.xlu0 %4466  ;;  %v14374_v37 = vpop.permute.xlu1 %4464  ;;  %v3387_v21 = vsel %vm3367_vm1, %v3354_v6, %v8772_v14  ;;  %v3322_v14 = vsel %vm562_vm4, %v9597_v35, %v8616_v61  ;;  %v18533_v33 = vld [vmem:[#allocation55_spill] sm:$0xff]  ;;  %v14419_v6 = vld [vmem:[#allocation3 + $0x80] sm:$0xff]  ;;  %v8941_v61 = vunpack.i.l.bf16 %v13839_v46 }
 0x4c8   : > { %18522 = vst [vmem:[#allocation153_spill] sm:$0xff] %v14372_v26  ;;  %18523 = vst [vmem:[#allocation61_spill] sm:$0xff] %v14374_v37  ;;  %3758 = vmatmul.mubr.f32.gmra.mrb[24].mxu1 %v3386_v17  ;;  %8197 = vmatmul.mubr.msk.f32.gmra.mrb[60].mxu0 %vm562_vm4, %v18524_v4  ;;  %v14390_v17 = vld [vmem:[#allocation3 + $0x68] sm:$0xff]  ;;  %v18528_v4 = vld [vmem:[#allocation98_spill] sm:$0xff] }
 0x4c9   : > { %4646 = vrot.lane.b32.xlu0 %v14383_v16, %s9818_s18  ;;  %3762 = vmatprep.mubr.f32.mxu1 %v3483_v34  ;;  %v3420_v34 = vsel %vm562_vm4, %v18528_v4, %v8856_v48  ;;  %v18529_v26 = vld [vmem:[#allocation49_spill] sm:$0xff]  ;;  %v8617_v48 = vunpack.i.h.bf16 %v18525_v1  ;;  %v18535_v1 = vld [vmem:[#allocation126_spill] sm:$0xff] }
 0x4ca   : > { %4644 = vrot.lane.b32.xlu1 %v14390_v17, %s9818_s18  ;;  %8199 = vmatprep.mubr.msk.f32.mxu0 %vm562_vm4, %v18527_v55  ;;  %v8776_v37 = vunpack.i.l.bf16 %v18529_v26  ;;  %v3452_v51 = vsel %vm3334_vm0, %v3420_v34, %v8936_v38  ;;  %v18532_v55 = vld [vmem:[#allocation146_spill] sm:$0xff]  ;;  %v8697_v38 = vunpack.i.h.bf16 %v18526_v11  ;;  %v3421_v4 = vsel %vm562_vm4, %v18535_v1, %v8857_v28  ;;  %v9600_v1 = vld [vmem:[#allocation4 + $0xf8] sm:$0xff] }
 0x4cb   : > { %v14401_v63 = vpop.permute.xlu0 %4470  ;;  %v14403_v57 = vpop.permute.xlu1 %4468  ;;  %v3484_v29 = vsel %vm3367_vm1, %v3452_v51, %v9016_v43  ;;  %v18534_v51 = vld [vmem:[#allocation16_spill] sm:$0xff]  ;;  %v3355_v43 = vsel %vm3334_vm0, %v3322_v14, %v8696_v13  ;;  %v8777_v34 = vunpack.i.h.bf16 %v18529_v26  ;;  %v3453_v35 = vsel %vm3334_vm0, %v3421_v4, %v8937_v36  ;;  %v18539_v28 = vld [vmem:[#allocation78_spill] sm:$0xff]  ;;  %v14441_v14 = vld [vmem:[#allocation3 + $0xa8] sm:$0xff] }
 0x4cc   : > { %18530 = vst [vmem:[#allocation81_spill] sm:$0xff] %v14401_v63  ;;  %18531 = vst [vmem:[#allocation120_spill] sm:$0xff] %v14403_v57  ;;  %3763 = vmatmul.mubr.f32.gmra.mrb[26].mxu1 %v3387_v21  ;;  %8200 = vmatmul.mubr.msk.f32.gmra.mrb[62].mxu0 %vm562_vm4, %v18532_v55  ;;  %v8861_v21 = vunpack.i.l.bf16 %v18533_v33  ;;  %v9021_v63 = vunpack.i.l.bf16 %v14100_v58  ;;  %v3485_v13 = vsel %vm3367_vm1, %v3453_v35, %v9017_v12  ;;  %v8621_v26 = vunpack.i.l.bf16 %v18539_v28  ;;  %v18540_v36 = vld [vmem:[#allocation20_spill] sm:$0xff]  ;;  %v18541_v12 = vld [vmem:[#allocation15_spill] sm:$0xff] }
 0x4cd   : > { %4650 = vrot.lane.b32.xlu0 %v14412_v5, %s9818_s18  ;;  %3767 = vmatprep.mubr.f32.mxu1 %v3484_v29  ;;  %v3388_v29 = vsel %vm3367_vm1, %v3355_v43, %v8776_v37  ;;  %v3323_v37 = vsel %vm562_vm4, %v9600_v1, %v8617_v48  ;;  %v8701_v43 = vunpack.i.l.bf16 %v18540_v36  ;;  %v8862_v4 = vunpack.i.h.bf16 %v18533_v33 }
 0x4ce   : > { %4648 = vrot.lane.b32.xlu1 %v14419_v6, %s9818_s18  ;;  %8202 = vmatprep.mubr.msk.f32.mxu0 %vm562_vm4, %v18534_v51  ;;  %v18538_v51 = vld [vmem:[#allocation76_spill] sm:$0xff]  ;;  %v3356_v35 = vsel %vm3334_vm0, %v3323_v37, %v8697_v38  ;;  %v8942_v48 = vunpack.i.h.bf16 %v13839_v46  ;;  %v8622_v62 = vunpack.i.h.bf16 %v18539_v28  ;;  %v18546_v38 = vld [vmem:[#allocation37_spill] sm:$0xff]  ;;  %v8702_v46 = vunpack.i.h.bf16 %v18540_v36 }
 0x4cf   : > { %v14430_v11 = vpop.permute.xlu0 %4474  ;;  %v14432_v55 = vpop.permute.xlu1 %4472  ;;  %v3389_v57 = vsel %vm3367_vm1, %v3356_v35, %v8777_v34  ;;  %v14471_v37 = vld [vmem:[#allocation3 + $0xc0] sm:$0xff]  ;;  %v9603_v34 = vld [vmem:[#allocation4 + $0x108] sm:$0xff]  ;;  %v14478_v35 = vld [vmem:[#allocation3 + $0xb0] sm:$0xff] }
 0x4d0   : > { %18536 = vst [vmem:[#allocation52_spill] sm:$0xff] %v14430_v11  ;;  %18537 = vst [vmem:[#allocation93_spill] sm:$0xff] %v14432_v55  ;;  %3768 = vmatmul.mubr.f32.gmra.mrb[28].mxu1 %v3388_v29  ;;  %8203 = vmatmul.mubr.msk.f32.gmra.mrb[64].mxu0 %vm562_vm4, %v18538_v51  ;;  %v14448_v29 = vld [vmem:[#allocation3 + $0x98] sm:$0xff]  ;;  %v18542_v51 = vld [vmem:[#allocation69_spill] sm:$0xff] }
 0x4d1   : > { %4654 = vrot.lane.b32.xlu0 %v14441_v14, %s9818_s18  ;;  %3772 = vmatprep.mubr.f32.mxu1 %v3485_v13  ;;  %v3422_v13 = vsel %vm562_vm4, %v18542_v51, %v8861_v21  ;;  %v18543_v11 = vld [vmem:[#allocation136_spill] sm:$0xff] }
 0x4d2   : > { %4652 = vrot.lane.b32.xlu1 %v14448_v29, %s9818_s18  ;;  %8205 = vmatprep.mubr.msk.f32.mxu0 %vm562_vm4, %v18541_v12  ;;  %v8781_v55 = vunpack.i.l.bf16 %v18543_v11  ;;  %v3454_v60 = vsel %vm3334_vm0, %v3422_v13, %v8941_v61  ;;  %v9022_v12 = vunpack.i.h.bf16 %v14100_v58  ;;  %v3324_v61 = vsel %vm562_vm4, %v9603_v34, %v8621_v26  ;;  %v18547_v58 = vld [vmem:[#allocation57_spill] sm:$0xff]  ;;  %v18549_v36 = vld [vmem:[#allocation68_spill] sm:$0xff] }
 0x4d3   : > { %v14459_v1 = vpop.permute.xlu0 %4478  ;;  %v14461_v33 = vpop.permute.xlu1 %4476  ;;  %v3486_v21 = vsel %vm3367_vm1, %v3454_v60, %v9021_v63  ;;  %v8782_v28 = vunpack.i.h.bf16 %v18543_v11  ;;  %v18548_v60 = vld [vmem:[#allocation107_spill] sm:$0xff]  ;;  %v3357_v63 = vsel %vm3334_vm0, %v3324_v61, %v8701_v43  ;;  %v3423_v51 = vsel %vm562_vm4, %v18549_v36, %v8862_v4  ;;  %v9605_v61 = vld [vmem:[#allocation4 + $0x110] sm:$0xff] }
 0x4d4   : > { %18544 = vst [vmem:[#allocation157_spill] sm:$0xff] %v14459_v1  ;;  %18545 = vst [vmem:[#allocation99_spill] sm:$0xff] %v14461_v33  ;;  %3773 = vmatmul.mubr.f32.gmra.mrb[30].mxu1 %v3389_v57  ;;  %8206 = vmatmul.mubr.msk.f32.gmra.mrb[66].mxu0 %vm562_vm4, %v18546_v38  ;;  %v8866_v57 = vunpack.i.l.bf16 %v18547_v58  ;;  %v8946_v13 = vunpack.i.l.bf16 %v13837_v15  ;;  %v3390_v38 = vsel %vm3367_vm1, %v3357_v63, %v8781_v55  ;;  %v9026_v34 = vunpack.i.l.bf16 %v14098_v49  ;;  %v18552_v1 = vld [vmem:[#allocation106_spill] sm:$0xff]  ;;  %v9612_v49 = vld [vmem:[#allocation4 + $0x1a8] sm:$0x3] }
 0x4d5   : > { %4658 = vrot.lane.b32.xlu0 %v14471_v37, %s9818_s18  ;;  %3777 = vmatprep.mubr.f32.mxu1 %v3486_v21  ;;  %v3455_v21 = vsel %vm3334_vm0, %v3423_v51, %v8942_v48  ;;  %v3325_v4 = vsel %vm562_vm4, %v9605_v61, %v8622_v62  ;;  %v18555_v48 = vld [vmem:[#allocation176_spill] sm:$0xff] }
 0x4d6   : > { %4656 = vrot.lane.b32.xlu1 %v14478_v35, %s9818_s18  ;;  %8208 = vmatprep.mubr.msk.f32.mxu0 %vm562_vm4, %v18548_v60  ;;  %v3487_v43 = vsel %vm3367_vm1, %v3455_v21, %v9022_v12  ;;  %v18553_v60 = vld [vmem:[#allocation109_spill] sm:$0xff]  ;;  %v3358_v55 = vsel %vm3334_vm0, %v3325_v4, %v8702_v46  ;;  %v8786_v63 = vunpack.i.l.bf16 %v18555_v48  ;;  %v18556_v62 = vld [vmem:[#allocation44_spill] sm:$0xff] }
 0x4d7   : > { %v14488_v26 = vpop.permute.xlu0 %4482  ;;  %v14490_v11 = vpop.permute.xlu1 %4480  ;;  %v8626_v36 = vunpack.i.l.bf16 %v18553_v60  ;;  %v14508_v12 = vld [vmem:[#allocation3 + $0xc8] sm:$0xff]  ;;  %v3391_v51 = vsel %vm3367_vm1, %v3358_v55, %v8782_v28  ;;  %v14529_v55 = vld [vmem:[#allocation3 + $0xf0] sm:$0xff] }
 0x4d8   : > { %18550 = vst [vmem:[#allocation63_spill] sm:$0xff] %v14488_v26  ;;  %18551 = vst [vmem:[#allocation127_spill] sm:$0xff] %v14490_v11  ;;  %3778 = vmatmul.mubr.f32.gmra.mrb[32].mxu1 %v3390_v38  ;;  %8209 = vmatmul.mubr.msk.f32.gmra.mrb[68].mxu0 %vm562_vm4, %v18552_v1  ;;  %v18554_v26 = vld [vmem:[#allocation150_spill] sm:$0xff]  ;;  %v14501_v11 = vld [vmem:[#allocation3 + $0xd8] sm:$0xff]  ;;  %v8867_v1 = vunpack.i.h.bf16 %v18547_v58 }
 0x4d9   : > { %v8706_v33 = vunpack.i.l.bf16 %v18554_v26  ;;  %4662 = vrot.lane.b32.xlu0 %v14501_v11, %s9818_s18  ;;  %3782 = vmatprep.mubr.f32.mxu1 %v3487_v43  ;;  %v18557_v38 = vld [vmem:[#allocation100_spill] sm:$0xff]  ;;  %v8947_v43 = vunpack.i.h.bf16 %v13837_v15  ;;  %v9608_v4 = vld [vmem:[#allocation4 + $0x198] sm:$0xff]  ;;  %v8627_v15 = vunpack.i.h.bf16 %v18553_v60 }
 0x4da   : > { %4660 = vrot.lane.b32.xlu1 %v14508_v12, %s9818_s18  ;;  %8211 = vmatprep.mubr.msk.f32.mxu0 %vm562_vm4, %v18556_v62  ;;  %v3424_v21 = vsel %vm562_vm4, %v18557_v38, %v8866_v57  ;;  %v2721_v25 = vrot.slane %v9608_v4, 2  ;;  %v18560_v62 = vld [vmem:[#allocation36_spill] sm:$0xff]  ;;  %v8707_v57 = vunpack.i.h.bf16 %v18554_v26  ;;  %v8787_v38 = vunpack.i.h.bf16 %v18555_v48  ;;  %v18562_v26 = vld [vmem:[#allocation170_spill] sm:$0xff] }
 0x4db   : > { %v14518_v46 = vpop.permute.xlu0 %4486  ;;  %v14520_v61 = vpop.permute.xlu1 %4484  ;;  %v3456_v58 = vsel %vm3334_vm0, %v3424_v21, %v8946_v13  ;;  %v9611_v13 = vld [vmem:[#allocation4 + $0x120] sm:$0xff] }
 0x4dc   : > { %18558 = vst [vmem:[#allocation110_spill] sm:$0xff] %v14518_v46  ;;  %18559 = vst [vmem:[#allocation134_spill] sm:$0xff] %v14520_v61  ;;  %3783 = vmatmul.mubr.f32.gmra.mrb[34].mxu1 %v3391_v51  ;;  %8212 = vmatmul.mubr.msk.f32.gmra.mrb[70].mxu0 %vm562_vm4, %v18560_v62  ;;  %v3488_v28 = vsel %vm3367_vm1, %v3456_v58, %v9026_v34  ;;  %v3326_v44 = vsel %vm562_vm4, %v9611_v13, %v8626_v36  ;;  %v2724_v51 = vrot.slane %v9612_v49, 2  ;;  %v18561_v21 = vld [vmem:[#allocation58_spill] sm:$0xff]  ;;  %v14536_v34 = vld [vmem:[#allocation3 + $0xe0] sm:$0xff] }
 0x4dd   : > { %4666 = vrot.lane.b32.xlu0 %v14529_v55, %s9818_s18  ;;  %3787 = vmatprep.mubr.f32.mxu1 %v3488_v28  ;;  %v8871_v4 = vunpack.i.l.bf16 %v18561_v21  ;;  %v3359_v60 = vsel %vm3334_vm0, %v3326_v44, %v8706_v33  ;;  %v18563_v58 = vld [vmem:[#allocation128_spill] sm:$0xff]  ;;  %v8951_v36 = vunpack.i.l.bf16 %v13879_v0  ;;  %v2723_v46 = vsel %vm866_vm3, %v2721_v25, %v2722_v52  ;;  %v18568_v25 = vld [vmem:[#allocation111_spill] sm:$0xff] }
 0x4de   : > { %4664 = vrot.lane.b32.xlu1 %v14536_v34, %s9818_s18  ;;  %8214 = vmatprep.mubr.msk.f32.mxu0 %vm562_vm4, %v18562_v26  ;;  %v3425_v62 = vsel %vm562_vm4, %v18563_v58, %v8867_v1  ;;  %v3392_v13 = vsel %vm3367_vm1, %v3359_v60, %v8786_v63  ;;  %v9031_v61 = vunpack.i.l.bf16 %v14137_v30  ;;  %v18566_v26 = vld [vmem:[#allocation132_spill] sm:$0xff]  ;;  %v18567_v1 = vld [vmem:[#allocation17_spill] sm:$0xff]  ;;  %v8711_v60 = vunpack.i.l.bf16 %v18568_v25 }
 0x4df   : > { %v14546_v28 = vpop.permute.xlu0 %4490  ;;  %v14548_v48 = vpop.permute.xlu1 %4488  ;;  %v3457_v49 = vsel %vm3334_vm0, %v3425_v62, %v8947_v43  ;;  %v8631_v44 = vunpack.i.l.bf16 %v18567_v1  ;;  %v9614_v58 = vld [vmem:[#allocation3 + $0x108] sm:$0xff]  ;;  %v2725_v43 = vsel %vm866_vm3, %v2722_v52, %v2724_v51  ;;  %v8872_v62 = vunpack.i.h.bf16 %v18561_v21 }
 0x4e0   : > { %18564 = vst [vmem:[#allocation92_spill] sm:$0xff] %v14546_v28  ;;  %18565 = vst [vmem:[#allocation142_spill] sm:$0xff] %v14548_v48  ;;  %3788 = vmatmul.mubr.f32.gmra.mrb[36].mxu1 %v3392_v13  ;;  %8215 = vmatmul.mubr.msk.f32.gmra.mrb[72].mxu0 %vm562_vm4, %v18566_v26  ;;  %v3489_v33 = vsel %vm3367_vm1, %v3457_v49, %v9027_v31  ;;  %v9615_v28 = vld [vmem:[#allocation4 + $0x128] sm:$0xff]  ;;  %v8952_v52 = vunpack.i.h.bf16 %v13879_v0  ;;  %v9032_v48 = vunpack.i.h.bf16 %v14137_v30  ;;  %v9618_v0 = vld [vmem:[#allocation4 + $0x138] sm:$0xff] }
 0x4e1   : > { %4670 = vrot.lane.b32.xlu0 %v9614_v58, %s9818_s18  ;;  %3792 = vmatprep.mubr.f32.mxu1 %v3489_v33  ;;  %v3327_v63 = vsel %vm562_vm4, %v9615_v28, %v8627_v15  ;;  %v14563_v13 = vld [vmem:[#allocation3 + $0xf8] sm:$0xff]  ;;  %v18570_v33 = vld [vmem:[#allocation154_spill] sm:$0xff] }
 0x4e2   : > { %4668 = vrot.lane.b32.xlu1 %v14563_v13, %s9818_s18  ;;  %v3360_v31 = vsel %vm3334_vm0, %v3327_v63, %v8707_v57  ;;  %v18569_v49 = vld [vmem:[#allocation71_spill] sm:$0xff]  ;;  %8217 = vmatprep.mubr.msk.f32.mxu0 %vm562_vm4, %v2723_v46  ;;  %v8791_v15 = vunpack.i.l.bf16 %v18570_v33  ;;  %v8632_v46 = vunpack.i.h.bf16 %v18567_v1  ;;  %v3328_v63 = vsel %vm562_vm4, %v9618_v0, %v8631_v44 }
 0x4e3   : > { %v3426_v26 = vsel %vm562_vm4, %v18569_v49, %v8871_v4  ;;  %v14573_v51 = vpop.permute.xlu0 %4494  ;;  %v14575_v28 = vpop.permute.xlu1 %4492  ;;  %v3393_v21 = vsel %vm3367_vm1, %v3360_v31, %v8787_v38  ;;  %v9617_v4 = vld [vmem:[#allocation3 + $0x120] sm:$0xff]  ;;  %v8712_v38 = vunpack.i.h.bf16 %v18568_v25  ;;  %v18573_v31 = vld [vmem:[#allocation31_spill] sm:$0xff]  ;;  %v9619_v49 = vld [vmem:[#allocation3 + $0x110] sm:$0xff]  ;;  %v3361_v30 = vsel %vm3334_vm0, %v3328_v63, %v8711_v60 }
 0x4e4   : > { %18571 = vst [vmem:[#allocation89_spill] sm:$0xff] %v14573_v51  ;;  %18572 = vst [vmem:[#allocation25_spill] sm:$0xff] %v14575_v28  ;;  %v3458_v58 = vsel %vm3334_vm0, %v3426_v26, %v8951_v36  ;;  %3793 = vmatmul.mubr.f32.gmra.mrb[38].mxu1 %v3393_v21  ;;  %8218 = vmatmul.mubr.msk.f32.gmra.mrb[74].mxu0 %vm562_vm4, %v2725_v43  ;;  %v8876_v36 = vunpack.i.l.bf16 %v18573_v31  ;;  %v8792_v1 = vunpack.i.h.bf16 %v18570_v33  ;;  %v8956_v26 = vunpack.i.l.bf16 %v13877_v50  ;;  %v9621_v33 = vld [vmem:[#allocation4 + $0x140] sm:$0xff] }
 0x4e5   : > { %v3490_v57 = vsel %vm3367_vm1, %v3458_v58, %v9031_v61  ;;  %4674 = vrot.lane.b32.xlu0 %v9617_v4, %s9818_s18  ;;  %v18574_v61 = vld [vmem:[#allocation70_spill] sm:$0xff]  ;;  %v3394_v44 = vsel %vm3367_vm1, %v3361_v30, %v8791_v15  ;;  %v18577_v4 = vld [vmem:[#allocation43_spill] sm:$0xff]  ;;  %v3329_v63 = vsel %vm562_vm4, %v9621_v33, %v8632_v46  ;;  %v8877_v15 = vunpack.i.h.bf16 %v18573_v31  ;;  %v9622_v30 = vld [vmem:[#allocation3 + $0x128] sm:$0xff] }
 0x4e6   : > { %3797 = vmatprep.mubr.f32.mxu1 %v3490_v57  ;;  %4672 = vrot.lane.b32.xlu1 %v9619_v49, %s9818_s18  ;;  %v3427_v43 = vsel %vm562_vm4, %v18574_v61, %v8872_v62  ;;  %v9036_v57 = vunpack.i.l.bf16 %v14135_v54  ;;  %v8636_v0 = vunpack.i.l.bf16 %v18577_v4  ;;  %v9620_v62 = vld [vmem:[#allocation3 + $0x138] sm:$0xff]  ;;  %v18578_v49 = vld [vmem:[#allocation80_spill] sm:$0xff]  ;;  %v9037_v33 = vunpack.i.h.bf16 %v14135_v54  ;;  %v9630_v51 = vld [vmem:[#allocation3 + $0x170] sm:$0xff] }
 0x4e7   : > { %v14593_v21 = vpop.permute.xlu0 %4498  ;;  %v14595_v58 = vpop.permute.xlu1 %4496  ;;  %v3459_v25 = vsel %vm3334_vm0, %v3427_v43, %v8952_v52  ;;  %v8716_v61 = vunpack.i.l.bf16 %v18578_v49  ;;  %v3362_v52 = vsel %vm3334_vm0, %v3329_v63, %v8712_v38  ;;  %v18579_v43 = vld [vmem:[#allocation129_spill] sm:$0xff]  ;;  %v8637_v63 = vunpack.i.h.bf16 %v18577_v4 }
 0x4e8   : > { %18575 = vst [vmem:[#allocation121_spill] sm:$0xff] %v14593_v21  ;;  %18576 = vst [vmem:[#allocation62_spill] sm:$0xff] %v14595_v58  ;;  %3798 = vmatmul.mubr.f32.gmra.mrb[40].mxu1 %v3394_v44  ;;  %v3491_v60 = vsel %vm3367_vm1, %v3459_v25, %v9032_v48  ;;  %v3428_v48 = vsel %vm562_vm4, %v18579_v43, %v8876_v36  ;;  %v18580_v44 = vld [vmem:[#allocation85_spill] sm:$0xff]  ;;  %v3395_v46 = vsel %vm3367_vm1, %v3362_v52, %v8792_v1  ;;  %v9623_v36 = vld [vmem:[#allocation3 + $0x150] sm:$0xff] }
 0x4e9   : > { %4678 = vrot.lane.b32.xlu0 %v9620_v62, %s9818_s18  ;;  %3802 = vmatprep.mubr.f32.mxu1 %v3491_v60  ;;  %v8796_v25 = vunpack.i.l.bf16 %v18580_v44  ;;  %v8957_v62 = vunpack.i.h.bf16 %v13877_v50  ;;  %v3460_v31 = vsel %vm3334_vm0, %v3428_v48, %v8956_v26  ;;  %v9624_v50 = vld [vmem:[#allocation4 + $0x150] sm:$0xff]  ;;  %v8717_v43 = vunpack.i.h.bf16 %v18578_v49  ;;  %v18583_v26 = vld [vmem:[#allocation73_spill] sm:$0xff] }
 0x4ea   : > { %4676 = vrot.lane.b32.xlu1 %v9622_v30, %s9818_s18  ;;  %v3492_v38 = vsel %vm3367_vm1, %v3460_v31, %v9036_v57  ;;  %v3330_v30 = vsel %vm562_vm4, %v9624_v50, %v8636_v0  ;;  %v9625_v52 = vld [vmem:[#allocation3 + $0x140] sm:$0xff]  ;;  %v3429_v57 = vsel %vm562_vm4, %v18583_v26, %v8877_v15  ;;  %v8797_v4 = vunpack.i.h.bf16 %v18580_v44  ;;  %v9626_v15 = vld [vmem:[#allocation3 + $0x168] sm:$0xff] }
 0x4eb   : > { %v14612_v60 = vpop.permute.xlu0 %4534  ;;  %v14614_v21 = vpop.permute.xlu1 %4500  ;;  %v3363_v54 = vsel %vm3334_vm0, %v3330_v30, %v8716_v61  ;;  %v8961_v48 = vunpack.i.l.bf16 %v13918_v42  ;;  %v3461_v49 = vsel %vm3334_vm0, %v3429_v57, %v8957_v62  ;;  %v9627_v44 = vld [vmem:[#allocation4 + $0x158] sm:$0xff]  ;;  %v4198_v57 = vld [vmem:[#allocation3 + $0x180] sm:$0xff] }
 0x4ec   : > { %18581 = vst [vmem:[#allocation56_spill] sm:$0xff] %v14614_v21  ;;  %3803 = vmatmul.mubr.f32.gmra.mrb[42].mxu1 %v3395_v46  ;;  %v18582_v21 = vld [vmem:[#allocation33_spill] sm:$0xff]  ;;  %v3396_v0 = vsel %vm3367_vm1, %v3363_v54, %v8796_v25  ;;  %v3493_v61 = vsel %vm3367_vm1, %v3461_v49, %v9037_v33  ;;  %v3331_v30 = vsel %vm562_vm4, %v9627_v44, %v8637_v63  ;;  %v9628_v54 = vld [vmem:[#allocation3 + $0x158] sm:$0xff] }
 0x4ed   : > { %4682 = vrot.lane.b32.xlu0 %v9623_v36, %s9818_s18  ;;  %3807 = vmatprep.mubr.f32.mxu1 %v3492_v38  ;;  %v8881_v1 = vunpack.i.l.bf16 %v18582_v21  ;;  %v9041_v38 = vunpack.i.l.bf16 %v14171_v39  ;;  %v18584_v36 = vld [vmem:[#allocation108_spill] sm:$0xff]  ;;  %v8882_v25 = vunpack.i.h.bf16 %v18582_v21  ;;  %v3364_v62 = vsel %vm3334_vm0, %v3331_v30, %v8717_v43  ;;  %v18586_v33 = vld [vmem:[#allocation45_spill] sm:$0xff]  ;;  %v18587_v49 = vld [vmem:[#allocation23_spill] sm:$0xff] }
 0x4ee   : > { %4680 = vrot.lane.b32.xlu1 %v9625_v52, %s9818_s18  ;;  %v8641_v50 = vunpack.i.l.bf16 %v18584_v36  ;;  %v18585_v52 = vld [vmem:[#allocation47_spill] sm:$0xff]  ;;  %v8801_v58 = vunpack.i.l.bf16 %v18587_v49  ;;  %v3397_v44 = vsel %vm3367_vm1, %v3364_v62, %v8797_v4  ;;  %v8642_v30 = vunpack.i.h.bf16 %v18584_v36 }
 0x4ef   : > { %v14631_v46 = vpop.permute.xlu0 %4538  ;;  %v14633_v31 = vpop.permute.xlu1 %4536  ;;  %v8721_v26 = vunpack.i.l.bf16 %v18585_v52 }
 0x4f0   : > { %3808 = vmatmul.mubr.f32.gmra.mrb[44].mxu1 %v3396_v0  ;;  %v3430_v0 = vsel %vm562_vm4, %v18586_v33, %v8881_v1  ;;  %v9629_v1 = vld [vmem:[#allocation4 + $0x168] sm:$0xff]  ;;  %v8722_v33 = vunpack.i.h.bf16 %v18585_v52 }
 0x4f1   : > { %4686 = vrot.lane.b32.xlu0 %v9626_v15, %s9818_s18  ;;  %3812 = vmatprep.mubr.f32.mxu1 %v3493_v61  ;;  %v8962_v61 = vunpack.i.h.bf16 %v13918_v42  ;;  %v3462_v21 = vsel %vm3334_vm0, %v3430_v0, %v8961_v48  ;;  %v3332_v42 = vsel %vm562_vm4, %v9629_v1, %v8641_v50  ;;  %v18588_v48 = vld [vmem:[#allocation174_spill] sm:$0xff]  ;;  %v4199_v0 = vld [vmem:[#allocation3 + $0x188] sm:$0xff] }
 0x4f2   : > { %4684 = vrot.lane.b32.xlu1 %v9628_v54, %s9818_s18  ;;  %v9042_v54 = vunpack.i.h.bf16 %v14171_v39  ;;  %v3494_v43 = vsel %vm3367_vm1, %v3462_v21, %v9041_v38  ;;  %v3365_v4 = vsel %vm3334_vm0, %v3332_v42, %v8721_v26  ;;  %v3431_v39 = vsel %vm562_vm4, %v18588_v48, %v8882_v25  ;;  %v9631_v26 = vld [vmem:[#allocation4 + $0x170] sm:$0xff]  ;;  %v18590_v21 = vld [vmem:[#allocation21_spill] sm:$0xff]  ;;  %v5467_v1 = vld [vmem:[%s17338_s6] sm:$0xff] }
 0x4f3   : > { %v14650_v15 = vpop.permute.xlu0 %4542  ;;  %v14652_v63 = vpop.permute.xlu1 %4540  ;;  %v8802_v38 = vunpack.i.h.bf16 %v18587_v49  ;;  %v3463_v50 = vsel %vm3334_vm0, %v3431_v39, %v8962_v61  ;;  %v3333_v25 = vsel %vm562_vm4, %v9631_v26, %v8642_v30  ;;  %v5468_v42 = vld [vmem:[%s17338_s6 + $0x8] sm:$0xff] }
 0x4f4   : > { %3813 = vmatmul.mubr.f32.gmra.mrb[46].mxu1 %v3397_v44  ;;  %v3495_v52 = vsel %vm3367_vm1, %v3463_v50, %v9042_v54  ;;  %v3366_v49 = vsel %vm3334_vm0, %v3333_v25, %v8722_v33  ;;  %v18591_v54 = vld [vmem:[#allocation113_spill] sm:$0xff]  ;;  %v8396_v33 = vpack.c.bf16 %v5468_v42, %v5467_v1 }
 0x4f5   : > { %4690 = vrot.lane.b32.xlu0 %v4198_v57, %s9818_s18  ;;  %3817 = vmatprep.mubr.f32.mxu1 %v3494_v43  ;;  %v3398_v57 = vsel %vm3367_vm1, %v3365_v4, %v8801_v58  ;;  %v3399_v61 = vsel %vm3367_vm1, %v3366_v49, %v8802_v38  ;;  %v18594_v4 = vld [vmem:[#allocation183_spill] sm:$0xff]  ;;  %v5469_v38 = vld [vmem:[%s17338_s6 + $0x10] sm:$0xff]  ;;  %v18606_v49 = vld [vmem:[#allocation186_spill] sm:$0xff] }
 0x4f6   : > { %4688 = vrot.lane.b32.xlu1 %v9630_v51, %s9818_s18  ;;  %v18589_v51 = vld [vmem:[#allocation152_spill] sm:$0xff]  ;;  %8397 = vmatprep.subr.bf16.mxu0 %v8396_v33  ;;  %v18611_v42 = vld [vmem:[#allocation137_spill] sm:$0xff] }
 0x4f7   : > { %v14667_v62 = vpop.permute.xlu0 %4546  ;;  %v14669_v36 = vpop.permute.xlu1 %4544  ;;  %8399 = vmatpush3.bf16.msra.mxu0 %v8396_v33 }
 0x4f8   : > { %3818 = vmatmul.mubr.f32.gmra.mrb[48].mxu1 %v3398_v57  ;;  %v5470_v57 = vld [vmem:[%s17338_s6 + $0x18] sm:$0x7] }
 0x4f9   : > { %4726 = vrot.lane.b32.xlu0 %v18589_v51, %s9807_s29  ;;  %3822 = vmatprep.mubr.f32.mxu1 %v3495_v52  ;;  %v18599_v52 = vld [vmem:[#allocation48_spill] sm:$0xff] }
 0x4fa   : > { %4692 = vrot.lane.b32.xlu1 %v4199_v0, %s9818_s18  ;;  %s9819_s18 = smov 15  }
 0x4fb   : > { %v14679_v44 = vpop.permute.xlu0 %4550  ;;  %v14681_v58 = vpop.permute.xlu1 %4548 }
 0x4fc   : > { %3823 = vmatmul.mubr.f32.gmra.mrb[50].mxu1 %v3399_v61 }
 0x4fd   : > { %4730 = vrot.lane.b32.xlu0 %v18590_v21, %s9807_s29 }
 0x4fe   : > { %4728 = vrot.lane.b32.xlu1 %v18591_v54, %s9807_s29 }
 0x4ff   : > { %v14688_v43 = vpop.permute.xlu0 %4554  ;;  %v14690_v30 = vpop.permute.xlu1 %4552 }
 0x500   : > { %18592 = vst [vmem:[#allocation30_spill] sm:$0xff] %v14688_v43  ;;  %18593 = vst [vmem:[#allocation94_spill] sm:$0xff] %v14690_v30 }
 0x501   : > { %4824 = vrot.lane.b32.xlu0 %v13785_v24, %s9819_s18  ;;  %v8400_v24 = vpack.c.bf16 %v5470_v57, %v5469_v38  ;;  %v18614_v38 = vld [vmem:[#allocation185_spill] sm:$0xff] }
 0x502   : > { %4822 = vrot.lane.b32.xlu1 %v18594_v4, %s9819_s18 }
 0x503   : > { %v14702_v48 = vpop.permute.xlu0 %4558  ;;  %8402 = vmatprep.subr.msk.bf16.mxu0 %vm8401_vm7, %v8400_v24 }
 0x504   : > { %18595 = vst [vmem:[#allocation88_spill] sm:$0xff] %v14702_v48  ;;  %v14704_v39 = vpop.permute.xlu1 %4556  ;;  %8405 = vmatpush3.bf16.msk.msra.mxu0 %vm8401_vm7, %v8400_v24 }
 0x505   : > { %18596 = vst [vmem:[#allocation83_spill] sm:$0xff] %v14704_v39  ;;  %4920 = vrot.lane.b32.xlu0 %v14332_v27, %s17701_s28 }
 0x506   : > { %4918 = vrot.lane.b32.xlu1 %v14299_v40, %s17701_s28  ;;  %v18603_v40 = vld [vmem:[#allocation184_spill] sm:$0xff] }
 0x507   : > { %v14716_v0 = vpop.permute.xlu0 %4562 }
 0x508   : > { %18597 = vst [vmem:[#allocation149_spill] sm:$0xff] %v14716_v0  ;;  %v14718_v50 = vpop.permute.xlu1 %4560 }
 0x509   : > { %18598 = vst [vmem:[#allocation161_spill] sm:$0xff] %v14718_v50  ;;  %5016 = vrot.lane.b32.xlu0 %v18599_v52, %s17699_s16 }
 0x50a   : > { %5014 = vrot.lane.b32.xlu1 %v18590_v21, %s17699_s16 }
 0x50b   : > { %v14724_v27 = vpop.permute.xlu0 %4566 }
 0x50c   : > { %18600 = vst [vmem:[#allocation181_spill] sm:$0xff] %v14724_v27  ;;  %v14726_v51 = vpop.permute.xlu1 %4564 }
 0x50d   : > { %18601 = vst [vmem:[#allocation29_spill] sm:$0xff] %v14726_v51  ;;  %4732 = vrot.lane.b32.xlu0 %v18599_v52, %s9807_s29  ;;  %v18618_v52 = vld [vmem:[#allocation188_spill] sm:$0xff] }
 0x50e   : > { %5110 = vrot.lane.b32.xlu1 %v18603_v40, %s18602_s19 }
 0x50f   : > { %v14732_v26 = vpop.permute.xlu0 %4570 }
 0x510   : > { %18604 = vst [vmem:[#allocation101_spill] sm:$0xff] %v14732_v26  ;;  %v14734_v25 = vpop.permute.xlu1 %4568 }
 0x511   : > { %18605 = vst [vmem:[#allocation123_spill] sm:$0xff] %v14734_v25  ;;  %5112 = vrot.lane.b32.xlu0 %v18606_v49, %s18602_s19 }
 0x512   : > { %4826 = vrot.lane.b32.xlu1 %v18603_v40, %s9819_s18 }
 0x513   : > { %v14740_v61 = vpop.permute.xlu0 %4574 }
 0x514   : > { %18607 = vst [vmem:[#allocation91_spill] sm:$0xff] %v14740_v61  ;;  %v14742_v21 = vpop.permute.xlu1 %4572 }
 0x515   : > { %18608 = vst [vmem:[#allocation46_spill] sm:$0xff] %v14742_v21  ;;  %4922 = vrot.lane.b32.xlu0 %v14325_v41, %s17701_s28  ;;  %v18615_v41 = vld [vmem:[#allocation155_spill] sm:$0xff]  ;;  %v18638_v21 = vld [vmem:[#allocation192_spill] sm:$0xff] }
 0x516   : > { %4828 = vrot.lane.b32.xlu1 %v18606_v49, %s9819_s18 }
 0x517   : > { %v14748_v54 = vpop.permute.xlu0 %4578 }
 0x518   : > { %18609 = vst [vmem:[#allocation39_spill] sm:$0xff] %v14748_v54  ;;  %v14750_v1 = vpop.permute.xlu1 %4576  ;;  %v18631_v54 = vld [vmem:[#allocation24_spill] sm:$0xff] }
 0x519   : > { %18610 = vst [vmem:[#allocation141_spill] sm:$0xff] %v14750_v1  ;;  %5018 = vrot.lane.b32.xlu0 %v18611_v42, %s17699_s16  ;;  %v18634_v1 = vld [vmem:[#allocation189_spill] sm:$0xff] }
 0x51a   : > { %4924 = vrot.lane.b32.xlu1 %v14361_v59, %s17701_s28 }
 0x51b   : > { %v14756_v33 = vpop.permute.xlu0 %4582 }
 0x51c   : > { %18612 = vst [vmem:[#allocation166_spill] sm:$0xff] %v14756_v33  ;;  %v14758_v4 = vpop.permute.xlu1 %4580 }
 0x51d   : > { %18613 = vst [vmem:[#allocation103_spill] sm:$0xff] %v14758_v4  ;;  %5114 = vrot.lane.b32.xlu0 %v18614_v38, %s18602_s19 }
 0x51e   : > { %5020 = vrot.lane.b32.xlu1 %v18615_v41, %s17699_s16 }
 0x51f   : > { %v14764_v57 = vpop.permute.xlu0 %4586 }
 0x520   : > { %18616 = vst [vmem:[#allocation144_spill] sm:$0xff] %v14764_v57  ;;  %v14766_v24 = vpop.permute.xlu1 %4584 }
 0x521   : > { %18617 = vst [vmem:[#allocation119_spill] sm:$0xff] %v14766_v24  ;;  %4734 = vrot.lane.b32.xlu0 %v18611_v42, %s9807_s29 }
 0x522   : > { %5116 = vrot.lane.b32.xlu1 %v18618_v52, %s18602_s19 }
 0x523   : > { %v14772_v59 = vpop.permute.xlu0 %4590 }
 0x524   : > { %18619 = vst [vmem:[#allocation173_spill] sm:$0xff] %v14772_v59  ;;  %v14774_v40 = vpop.permute.xlu1 %4588 }
 0x525   : > { %18620 = vst [vmem:[#allocation102_spill] sm:$0xff] %v14774_v40  ;;  %4830 = vrot.lane.b32.xlu0 %v18614_v38, %s9819_s18  ;;  %v18624_v40 = vld [vmem:[#allocation175_spill] sm:$0xff] }
 0x526   : > { %4736 = vrot.lane.b32.xlu1 %v18615_v41, %s9807_s29 }
 0x527   : > { %v14780_v49 = vpop.permute.xlu0 %4594 }
 0x528   : > { %18621 = vst [vmem:[#allocation60_spill] sm:$0xff] %v14780_v49  ;;  %v14782_v28 = vpop.permute.xlu1 %4592  ;;  %v18625_v49 = vld [vmem:[#allocation187_spill] sm:$0xff] }
 0x529   : > { %18622 = vst [vmem:[#allocation122_spill] sm:$0xff] %v14782_v28  ;;  %4926 = vrot.lane.b32.xlu0 %v14354_v20, %s17701_s28  ;;  %v18626_v20 = vld [vmem:[#allocation84_spill] sm:$0xff] }
 0x52a   : > { %4832 = vrot.lane.b32.xlu1 %v18618_v52, %s9819_s18 }
 0x52b   : > { %v14788_v42 = vpop.permute.xlu0 %4630 }
 0x52c   : > { %v14790_v59 = vpop.permute.xlu1 %4596 }
 0x52d   : > { %18623 = vst [vmem:[#allocation53_spill] sm:$0xff] %v14790_v59  ;;  %5022 = vrot.lane.b32.xlu0 %v18624_v40, %s17699_s16  ;;  %v18627_v59 = vld [vmem:[#allocation190_spill] sm:$0xff] }
 0x52e   : > { %4928 = vrot.lane.b32.xlu1 %v14390_v17, %s17701_s28 }
 0x52f   : > { %v14796_v38 = vpop.permute.xlu0 %4634 }
 0x530   : > { %v14798_v41 = vpop.permute.xlu1 %4632 }
 0x531   : > { %5118 = vrot.lane.b32.xlu0 %v18625_v49, %s18602_s19 }
 0x532   : > { %5024 = vrot.lane.b32.xlu1 %v18626_v20, %s17699_s16 }
 0x533   : > { %v14804_v52 = vpop.permute.xlu0 %4638 }
 0x534   : > { %v14806_v28 = vpop.permute.xlu1 %4636 }
 0x535   : > { %4738 = vrot.lane.b32.xlu0 %v18624_v40, %s9807_s29 }
 0x536   : > { %5120 = vrot.lane.b32.xlu1 %v18627_v59, %s18602_s19 }
 0x537   : > { %v14812_v17 = vpop.permute.xlu0 %4642 }
 0x538   : > { %v14814_v57 = vpop.permute.xlu1 %4640 }
 0x539   : > { %4834 = vrot.lane.b32.xlu0 %v18625_v49, %s9819_s18 }
 0x53a   : > { %4740 = vrot.lane.b32.xlu1 %v18626_v20, %s9807_s29 }
 0x53b   : > { %v14820_v24 = vpop.permute.xlu0 %4646 }
 0x53c   : > { %18628 = vst [vmem:[#allocation40_spill] sm:$0xff] %v14820_v24  ;;  %v14822_v33 = vpop.permute.xlu1 %4644  ;;  %v18661_v24 = vld [vmem:[#allocation26_spill] sm:$0xff] }
 0x53d   : > { %4930 = vrot.lane.b32.xlu0 %v14383_v16, %s17701_s28  ;;  %v18635_v16 = vld [vmem:[#allocation51_spill] sm:$0xff] }
 0x53e   : > { %4836 = vrot.lane.b32.xlu1 %v18627_v59, %s9819_s18 }
 0x53f   : > { %v14828_v40 = vpop.permute.xlu0 %4650 }
 0x540   : > { %18629 = vst [vmem:[#allocation65_spill] sm:$0xff] %v14828_v40  ;;  %v14830_v4 = vpop.permute.xlu1 %4648 }
 0x541   : > { %18630 = vst [vmem:[#allocation95_spill] sm:$0xff] %v14830_v4  ;;  %5026 = vrot.lane.b32.xlu0 %v18631_v54, %s17699_s16 }
 0x542   : > { %4932 = vrot.lane.b32.xlu1 %v14419_v6, %s17701_s28 }
 0x543   : > { %v14836_v49 = vpop.permute.xlu0 %4654 }
 0x544   : > { %18632 = vst [vmem:[#allocation130_spill] sm:$0xff] %v14836_v49  ;;  %v14838_v20 = vpop.permute.xlu1 %4652 }
 0x545   : > { %18633 = vst [vmem:[#allocation169_spill] sm:$0xff] %v14838_v20  ;;  %5122 = vrot.lane.b32.xlu0 %v18634_v1, %s18602_s19  ;;  %v14948_v20 = vld [vmem:[%s17337_s5] ss:$0 sm:$0xff] }
 0x546   : > { %5028 = vrot.lane.b32.xlu1 %v18635_v16, %s17699_s16 }
 0x547   : > { %v14844_v59 = vpop.permute.xlu0 %4658 }
 0x548   : > { %18636 = vst [vmem:[#allocation133_spill] sm:$0xff] %v14844_v59  ;;  %v14846_v61 = vpop.permute.xlu1 %4656 }
 0x549   : > { %18637 = vst [vmem:[#allocation75_spill] sm:$0xff] %v14846_v61  ;;  %4742 = vrot.lane.b32.xlu0 %v18631_v54, %s9807_s29 }
 0x54a   : > { %5124 = vrot.lane.b32.xlu1 %v18638_v21, %s18602_s19 }
 0x54b   : > { %v14852_v6 = vpop.permute.xlu0 %4662 }
 0x54c   : > { %18639 = vst [vmem:[#allocation64_spill] sm:$0xff] %v14852_v6  ;;  %v14854_v26 = vpop.permute.xlu1 %4660 }
 0x54d   : > { %18640 = vst [vmem:[#allocation12_spill] sm:$0xff] %v14854_v26  ;;  %4838 = vrot.lane.b32.xlu0 %v18634_v1, %s9819_s18  ;;  %v18645_v26 = vld [vmem:[#allocation114_spill] sm:$0xff] }
 0x54e   : > { %4744 = vrot.lane.b32.xlu1 %v18635_v16, %s9807_s29 }
 0x54f   : > { %v14860_v25 = vpop.permute.xlu0 %4666 }
 0x550   : > { %18641 = vst [vmem:[#allocation82_spill] sm:$0xff] %v14860_v25  ;;  %v14862_v27 = vpop.permute.xlu1 %4664  ;;  %v18648_v25 = vld [vmem:[#allocation191_spill] sm:$0xff] }
 0x551   : > { %18642 = vst [vmem:[#allocation74_spill] sm:$0xff] %v14862_v27  ;;  %4934 = vrot.lane.b32.xlu0 %v14412_v5, %s17701_s28  ;;  %v18649_v5 = vld [vmem:[#allocation138_spill] sm:$0xff] }
 0x552   : > { %4840 = vrot.lane.b32.xlu1 %v18638_v21, %s9819_s18 }
 0x553   : > { %v14868_v54 = vpop.permute.xlu0 %4670 }
 0x554   : > { %18643 = vst [vmem:[#allocation180_spill] sm:$0xff] %v14868_v54  ;;  %v14870_v6 = vpop.permute.xlu1 %4668 }
 0x555   : > { %18644 = vst [vmem:[#allocation105_spill] sm:$0xff] %v14870_v6  ;;  %5030 = vrot.lane.b32.xlu0 %v18645_v26, %s17699_s16 }
 0x556   : > { %4936 = vrot.lane.b32.xlu1 %v14448_v29, %s17701_s28 }
 0x557   : > { %v14876_v1 = vpop.permute.xlu0 %4674 }
 0x558   : > { %18646 = vst [vmem:[#allocation97_spill] sm:$0xff] %v14876_v1  ;;  %v14878_v16 = vpop.permute.xlu1 %4672 }
 0x559   : > { %18647 = vst [vmem:[#allocation14_spill] sm:$0xff] %v14878_v16  ;;  %5126 = vrot.lane.b32.xlu0 %v18648_v25, %s18602_s19 }
 0x55a   : > { %5032 = vrot.lane.b32.xlu1 %v18649_v5, %s17699_s16 }
 0x55b   : > { %v14884_v21 = vpop.permute.xlu0 %4678 }
 0x55c   : > { %18650 = vst [vmem:[#allocation79_spill] sm:$0xff] %v14884_v21  ;;  %v14886_v54 = vpop.permute.xlu1 %4676 }
 0x55d   : > { %18651 = vst [vmem:[#allocation172_spill] sm:$0xff] %v14886_v54  ;;  %4746 = vrot.lane.b32.xlu0 %v18645_v26, %s9807_s29 }
 0x55e   : > { %5128 = vrot.lane.b32.xlu1 %v13911_v2, %s18602_s19 }
 0x55f   : > { %v14892_v29 = vpop.permute.xlu0 %4682 }
 0x560   : > { %18652 = vst [vmem:[#allocation42_spill] sm:$0xff] %v14892_v29  ;;  %v14894_v1 = vpop.permute.xlu1 %4680 }
 0x561   : > { %18653 = vst [vmem:[#allocation38_spill] sm:$0xff] %v14894_v1  ;;  %4842 = vrot.lane.b32.xlu0 %v18648_v25, %s9819_s18 }
 0x562   : > { %4748 = vrot.lane.b32.xlu1 %v18649_v5, %s9807_s29  ;;  %v18658_v5 = vld [vmem:[#allocation178_spill] sm:$0xff] }
 0x563   : > { %v3669_v16 = vpop.f32.mrb[32].mxu0  ;;  %v14900_v21 = vpop.permute.xlu0 %4686 }
 0x564   : > { %18654 = vst [vmem:[#allocation22_spill] sm:$0xff] %v14900_v21  ;;  %v14902_v54 = vpop.permute.xlu1 %4684  ;;  %v3671_v6 = vpop.f32.mrb[33].mxu0  ;;  %v3670_v43 = vadd.f32 %v14948_v20, %v3669_v16 }
 0x565   : > { %18655 = vst [vmem:[#allocation34_spill] sm:$0xff] %v14902_v54  ;;  %4938 = vrot.lane.b32.xlu0 %v14441_v14, %s17701_s28 }
 0x566   : > { %4844 = vrot.lane.b32.xlu1 %v13911_v2, %s9819_s18 }
 0x567   : > { %v3674_v26 = vpop.f32.mrb[34].mxu0  ;;  %v14908_v29 = vpop.permute.xlu0 %4690 }
 0x568   : > { %18656 = vst [vmem:[#allocation27_spill] sm:$0xff] %v14908_v29  ;;  %v14910_v1 = vpop.permute.xlu1 %4688  ;;  %v3676_v25 = vpop.f32.mrb[35].mxu0  ;;  %v3675_v40 = vadd.f32 %v14948_v20, %v3674_v26 }
 0x569   : > { %18657 = vst [vmem:[#allocation35_spill] sm:$0xff] %v14910_v1  ;;  %5034 = vrot.lane.b32.xlu0 %v18658_v5, %s17699_s16  ;;  %v18660_v25 = vld [vmem:[#allocation156_spill] sm:$0xff] }
 0x56a   : > { %4940 = vrot.lane.b32.xlu1 %v14478_v35, %s17701_s28 }
 0x56b   : > { %v4727_v21 = vpop.permute.xlu0 %4726  ;;  %v14916_v6 = vpop.f32.mrb[36].mxu0 }
 0x56c   : > { %v14918_v54 = vpop.permute.xlu1 %4692  ;;  %v14920_v14 = vpop.f32.mrb[0].mxu1 }
 0x56d   : > { %18659 = vst [vmem:[#allocation124_spill] sm:$0xff] %v14918_v54  ;;  %v3681_v2 = vpop.f32.mrb[37].mxu0  ;;  %v3701_v27 = vpop.f32.mrb[1].mxu1  ;;  %5130 = vrot.lane.b32.xlu0 %v13890_v45, %s18602_s19 }
 0x56e   : > { %5036 = vrot.lane.b32.xlu1 %v18660_v25, %s17699_s16 }
 0x56f   : > { %v14926_v29 = vpop.permute.xlu0 %4730  ;;  %v3684_v1 = vpop.f32.mrb[38].mxu0 }
 0x570   : > { %v4729_v35 = vpop.permute.xlu1 %4728  ;;  %v14928_v51 = vpop.f32.mrb[2].mxu1 }
 0x571   : > { %v3686_v59 = vpop.f32.mrb[39].mxu0  ;;  %v3706_v0 = vpop.f32.mrb[3].mxu1  ;;  %4750 = vrot.lane.b32.xlu0 %v18658_v5, %s9807_s29 }
 0x572   : > { %5132 = vrot.lane.b32.xlu1 %v13921_v10, %s18602_s19 }
 0x573   : > { %v4825_v27 = vpop.permute.xlu0 %4824  ;;  %v14934_v2 = vpop.f32.mrb[40].mxu0 }
 0x574   : > { %v4823_v54 = vpop.permute.xlu1 %4822  ;;  %v14936_v61 = vpop.f32.mrb[4].mxu1 }
 0x575   : > { %v3691_v50 = vpop.f32.mrb[41].mxu0  ;;  %v3711_v49 = vpop.f32.mrb[5].mxu1  ;;  %4846 = vrot.lane.b32.xlu0 %v13890_v45, %s9819_s18  ;;  %v9632_v45 = vld [vmem:[#allocation3] sm:$0xff] }
 0x576   : > { %4752 = vrot.lane.b32.xlu1 %v18660_v25, %s9807_s29  ;;  %v5206_v25 = vsel %vm506_vm14, %v9632_v45, %v14169_v23  ;;  %v9633_v45 = vld [vmem:[#allocation3 + $0x8] sm:$0xff] }
 0x577   : > { %v4921_v0 = vpop.permute.xlu0 %4920  ;;  %v3694_v59 = vpop.f32.mrb[42].mxu0  ;;  %v5239_v39 = vsel %vm5238_vm9, %v5206_v25, %v14612_v60 }
 0x578   : > { %v4919_v5 = vpop.permute.xlu1 %4918  ;;  %v14943_v48 = vpop.f32.mrb[6].mxu1 }
 0x579   : > { %v3696_v50 = vpop.f32.mrb[43].mxu0  ;;  %v3716_v49 = vpop.f32.mrb[7].mxu1  ;;  %4942 = vrot.lane.b32.xlu0 %v14471_v37, %s17701_s28  ;;  %v5272_v37 = vsel %vm5271_vm10, %v5239_v39, %v14788_v42 }
 0x57a   : > { %4848 = vrot.lane.b32.xlu1 %v13921_v10, %s9819_s18  ;;  %v5207_v10 = vsel %vm506_vm14, %v9633_v45, %v14204_v53  ;;  %v5304_v60 = vsel %vm1806_vm8, %v5272_v37, %v4727_v21 }
 0x57b   : > { %v5017_v50 = vpop.permute.xlu0 %5016  ;;  %v14963_v49 = vpop.f32.mrb[8].mxu1  ;;  %v5240_v39 = vsel %vm5238_vm9, %v5207_v10, %v14633_v31  ;;  %v5337_v42 = vsel %vm5336_vm12, %v5304_v60, %v4823_v54 }
 0x57c   : > { %v5015_v4 = vpop.permute.xlu1 %5014  ;;  %v8174_v23 = vpop.f32.mrb[44].mxu0  ;;  %v5273_v53 = vsel %vm5271_vm10, %v5240_v39, %v14798_v41  ;;  %v5370_v21 = vsel %vm5369_vm13, %v5337_v42, %v4919_v5 }
 0x57d   : > { %v14971_v26 = vadd.f32 %v8174_v23, %v3675_v40  ;;  %v3721_v25 = vpop.f32.mrb[9].mxu1  ;;  %v3894_v30 = vpop.f32.mrb[45].mxu0  ;;  %5038 = vrot.lane.b32.xlu0 %v18661_v24, %s17699_s16  ;;  %v3685_v40 = vadd.f32 %v14948_v20, %v3684_v1  ;;  %v5403_v41 = vsel %vm5402_vm15, %v5370_v21, %v5015_v4 }
 0x57e   : > { %v14978_v16 = vadd.f32 %v3894_v30, %v3670_v43  ;;  %4944 = vrot.lane.b32.xlu1 %v14508_v12, %s17701_s28  ;;  %v3680_v12 = vadd.f32 %v14948_v20, %v14916_v6  ;;  %v5305_v30 = vsel %vm1806_vm8, %v5273_v53, %v4729_v35  ;;  %v18662_v35 = vld [vmem:[#allocation163_spill] sm:$0xff] }
 0x57f   : > { %4054 = vst.msk [vmem:[%s14987_s26 + $0x8] sm:$0xff] %vm562_vm4, %v14971_v26  ;;  %v14992_v31 = vpop.permute.xlu0 %4732  ;;  %v14994_v43 = vpop.f32.mrb[10].mxu1  ;;  %v5338_v5 = vsel %vm5336_vm12, %v5305_v30, %v4825_v27  ;;  %v3695_v27 = vadd.f32 %v14948_v20, %v3694_v59 }
 0x580   : > { %4053 = vst.msk [vmem:[%s14987_s26] sm:$0xff] %vm562_vm4, %v14978_v16  ;;  %v5111_v54 = vpop.permute.xlu1 %5110  ;;  %v8177_v1 = vpop.f32.mrb[46].mxu0  ;;  %v5371_v4 = vsel %vm5369_vm13, %v5338_v5, %v4921_v0  ;;  %v3690_v0 = vadd.f32 %v14948_v20, %v14934_v2  ;;  %v3705_v2 = vadd.f32 %v14948_v20, %v14928_v51  ;;  %v9634_v5 = vld [vmem:[#allocation3 + $0x18] sm:$0xff] }
 0x581   : > { %v5435_v37 = vsel %vm1905_vm11, %v5403_v41, %v5111_v54  ;;  %v15005_v23 = vadd.f32 %v8177_v1, %v3685_v40  ;;  %v3726_v45 = vpop.f32.mrb[11].mxu1  ;;  %v3904_v10 = vpop.f32.mrb[47].mxu0  ;;  %5134 = vrot.lane.b32.xlu0 %v13914_v7, %s18602_s19  ;;  %v5404_v60 = vsel %vm5402_vm15, %v5371_v4, %v5017_v50  ;;  %v3700_v54 = vadd.f32 %v14948_v20, %v14920_v14 }
 0x582   : > { %v15010_v6 = vadd.f32 %v3904_v10, %v3680_v12  ;;  %5040 = vrot.lane.b32.xlu1 %v18662_v35, %s17699_s16  ;;  %8228 = vmatprep.mubr.msk.f32.mxu0 %vm5478_vm5, %v5435_v37  ;;  %v5208_v37 = vsel %vm506_vm14, %v9634_v5, %v14202_v47  ;;  %v3715_v47 = vadd.f32 %v14948_v20, %v14943_v48 }
 0x583   : > { %4056 = vst.msk [vmem:[%s14987_s26 + $0x18] sm:$0xff] %vm562_vm4, %v15005_v23  ;;  %v5113_v25 = vpop.permute.xlu0 %5112  ;;  %v15020_v39 = vpop.f32.mrb[12].mxu1  ;;  %v5241_v14 = vsel %vm5238_vm9, %v5208_v37, %v14631_v46  ;;  %v3710_v46 = vadd.f32 %v14948_v20, %v14936_v61 }
 0x584   : > { %4055 = vst.msk [vmem:[%s14987_s26 + $0x10] sm:$0xff] %vm562_vm4, %v15010_v6  ;;  %v5436_v42 = vsel %vm1905_vm11, %v5404_v60, %v5113_v25  ;;  %v4827_v53 = vpop.permute.xlu1 %4826  ;;  %v8180_v59 = vpop.f32.mrb[48].mxu0 }
 0x585   : > { %v15028_v40 = vadd.f32 %v8180_v59, %v3695_v27  ;;  %v3731_v50 = vpop.f32.mrb[13].mxu1  ;;  %v3914_v21 = vpop.f32.mrb[49].mxu0  ;;  %4754 = vrot.lane.b32.xlu0 %v18661_v24, %s9807_s29  ;;  %8229 = vmatmul.mubr.msk.f32.vlgmr.msra.gmra.mrb[76].mxu0 %vm5478_vm5, %v5436_v42  ;;  %v5274_v27 = vsel %vm5271_vm10, %v5241_v14, %v14796_v38 }
 0x586   : > { %v15033_v12 = vadd.f32 %v3914_v21, %v3690_v0  ;;  %5136 = vrot.lane.b32.xlu1 %v13942_v3, %s18602_s19 }
 0x587   : > { %4058 = vst.msk [vmem:[%s14987_s26 + $0x28] sm:$0xff] %vm562_vm4, %v15028_v40  ;;  %v4923_v30 = vpop.permute.xlu0 %4922  ;;  %v3734_v41 = vpop.f32.mrb[14].mxu1 }
 0x588   : > { %4057 = vst.msk [vmem:[%s14987_s26 + $0x20] sm:$0xff] %vm562_vm4, %v15033_v12  ;;  %v4829_v24 = vpop.permute.xlu1 %4828  ;;  %v8183_v1 = vpop.f32.mrb[50].mxu0 }
 0x589   : > { %v15049_v51 = vadd.f32 %v8183_v1, %v3705_v2  ;;  %v3736_v45 = vpop.f32.mrb[15].mxu1  ;;  %v3924_v10 = vpop.f32.mrb[51].mxu0  ;;  %4850 = vrot.lane.b32.xlu0 %v13914_v7, %s9819_s18  ;;  %v5306_v7 = vsel %vm1806_vm8, %v5274_v27, %v14926_v29  ;;  %v9635_v29 = vld [vmem:[#allocation3 + $0x20] sm:$0xff]  ;;  %v3725_v2 = vadd.f32 %v14948_v20, %v14994_v43  ;;  %v3720_v1 = vadd.f32 %v14948_v20, %v14963_v49 }
 0x58a   : > { %v15055_v4 = vadd.f32 %v3924_v10, %v3700_v54  ;;  %4756 = vrot.lane.b32.xlu1 %v18662_v35, %s9807_s29  ;;  %v5339_v0 = vsel %vm5336_vm12, %v5306_v7, %v4827_v53  ;;  %v5209_v61 = vsel %vm506_vm14, %v9635_v29, %v14238_v56  ;;  %v3735_v27 = vadd.f32 %v14948_v20, %v3734_v41 }
 0x58b   : > { %4060 = vst.msk [vmem:[%s14987_s26 + $0x38] sm:$0xff] %vm562_vm4, %v15049_v51  ;;  %v5019_v60 = vpop.permute.xlu0 %5018  ;;  %v3739_v25 = vpop.f32.mrb[16].mxu1  ;;  %v5372_v50 = vsel %vm5369_vm13, %v5339_v0, %v4923_v30  ;;  %v5242_v53 = vsel %vm5238_vm9, %v5209_v61, %v14652_v63  ;;  %v3730_v7 = vadd.f32 %v14948_v20, %v15020_v39  ;;  %v18670_v39 = vld [vmem:[#allocation158_spill] sm:$0xff] }
 0x58c   : > { %4059 = vst.msk [vmem:[%s14987_s26 + $0x30] sm:$0xff] %vm562_vm4, %v15055_v4  ;;  %v4925_v35 = vpop.permute.xlu1 %4924  ;;  %v8186_v38 = vpop.f32.mrb[52].mxu0  ;;  %v5405_v54 = vsel %vm5402_vm15, %v5372_v50, %v5019_v60  ;;  %v5275_v30 = vsel %vm5271_vm10, %v5242_v53, %v14806_v28  ;;  %v18666_v28 = vld [vmem:[#allocation54_spill] sm:$0xff]  ;;  %v3740_v50 = vadd.f32 %v14948_v20, %v3739_v25 }
 0x58d   : > { %v15074_v48 = vadd.f32 %v8186_v38, %v3715_v47  ;;  %v3741_v42 = vpop.f32.mrb[17].mxu1  ;;  %v3934_v59 = vpop.f32.mrb[53].mxu0  ;;  %4946 = vrot.lane.b32.xlu0 %v14501_v11, %s17701_s28  ;;  %v5307_v5 = vsel %vm1806_vm8, %v5275_v30, %v14992_v31 }
 0x58e   : > { %v15081_v21 = vadd.f32 %v3934_v59, %v3710_v46  ;;  %4852 = vrot.lane.b32.xlu1 %v13942_v3, %s9819_s18  ;;  %v5340_v49 = vsel %vm5336_vm12, %v5307_v5, %v4829_v24 }
 0x58f   : > { %18663 = vst [vmem:[#allocation104_spill] sm:$0xff] %v15074_v48  ;;  %4062 = vst.msk [vmem:[%s14987_s26 + $0x48] sm:$0xff] %vm562_vm4, %v15074_v48  ;;  %v5115_v11 = vpop.permute.xlu0 %5114  ;;  %v3744_v56 = vpop.f32.mrb[18].mxu1  ;;  %v5373_v31 = vsel %vm5369_vm13, %v5340_v49, %v4925_v35 }
 0x590   : > { %18664 = vst [vmem:[#allocation148_spill] sm:$0xff] %v15081_v21  ;;  %4061 = vst.msk [vmem:[%s14987_s26 + $0x40] sm:$0xff] %vm562_vm4, %v15081_v21  ;;  %v5437_v3 = vsel %vm1905_vm11, %v5405_v54, %v5115_v11  ;;  %v5021_v63 = vpop.permute.xlu1 %5020  ;;  %v8189_v43 = vpop.f32.mrb[54].mxu0  ;;  %v3745_v59 = vadd.f32 %v14948_v20, %v3744_v56 }
 0x591   : > { %v15103_v37 = vadd.f32 %v8189_v43, %v3725_v2  ;;  %v3746_v45 = vpop.f32.mrb[19].mxu1  ;;  %v3944_v10 = vpop.f32.mrb[55].mxu0  ;;  %5042 = vrot.lane.b32.xlu0 %v18666_v28, %s17699_s16  ;;  %8231 = vmatprep.mubr.msk.f32.mxu0 %vm5478_vm5, %v5437_v3  ;;  %v5406_v24 = vsel %vm5402_vm15, %v5373_v31, %v5021_v63 }
 0x592   : > { %v15109_v14 = vadd.f32 %v3944_v10, %v3720_v1  ;;  %4948 = vrot.lane.b32.xlu1 %v14536_v34, %s17701_s28  ;;  %v9636_v45 = vld [vmem:[#allocation3 + $0x30] sm:$0xff] }
 0x593   : > { %18665 = vst [vmem:[#allocation171_spill] sm:$0xff] %v15103_v37  ;;  %4064 = vst.msk [vmem:[%s14987_s26 + $0x58] sm:$0xff] %vm562_vm4, %v15103_v37  ;;  %v4735_v47 = vpop.permute.xlu0 %4734  ;;  %v3749_v60 = vpop.f32.mrb[20].mxu1  ;;  %v5210_v10 = vsel %vm506_vm14, %v9636_v45, %v14236_v8 }
 0x594   : > { %18667 = vst [vmem:[#allocation168_spill] sm:$0xff] %v15109_v14  ;;  %4063 = vst.msk [vmem:[%s14987_s26 + $0x50] sm:$0xff] %vm562_vm4, %v15109_v14  ;;  %v5117_v34 = vpop.permute.xlu1 %5116  ;;  %v8192_v46 = vpop.f32.mrb[56].mxu0  ;;  %v3750_v63 = vadd.f32 %v14948_v20, %v3749_v60  ;;  %v5243_v31 = vsel %vm5238_vm9, %v5210_v10, %v14650_v15 }
 0x595   : > { %v5438_v41 = vsel %vm1905_vm11, %v5406_v24, %v5117_v34  ;;  %v15125_v35 = vadd.f32 %v8192_v46, %v3735_v27  ;;  %v3751_v38 = vpop.f32.mrb[21].mxu1  ;;  %v3954_v0 = vpop.f32.mrb[57].mxu0  ;;  %5138 = vrot.lane.b32.xlu0 %v13924_v19, %s18602_s19 }
 0x596   : > { %v15129_v42 = vadd.f32 %v3954_v0, %v3730_v7  ;;  %5044 = vrot.lane.b32.xlu1 %v18670_v39, %s17699_s16  ;;  %8232 = vmatmul.mubr.msk.f32.gmra.mrb[78].mxu0 %vm5478_vm5, %v5438_v41  ;;  %v5276_v7 = vsel %vm5271_vm10, %v5243_v31, %v14804_v52 }
 0x597   : > { %18668 = vst [vmem:[#allocation145_spill] sm:$0xff] %v15125_v35  ;;  %4066 = vst.msk [vmem:[%s14987_s26 + $0x68] sm:$0xff] %vm562_vm4, %v15125_v35  ;;  %v4831_v29 = vpop.permute.xlu0 %4830  ;;  %v3754_v61 = vpop.f32.mrb[22].mxu1  ;;  %v5308_v34 = vsel %vm1806_vm8, %v5276_v7, %v4735_v47 }
 0x598   : > { %18669 = vst [vmem:[#allocation112_spill] sm:$0xff] %v15129_v42  ;;  %4065 = vst.msk [vmem:[%s14987_s26 + $0x60] sm:$0xff] %vm562_vm4, %v15129_v42  ;;  %v4737_v53 = vpop.permute.xlu1 %4736  ;;  %v8195_v2 = vpop.f32.mrb[58].mxu0  ;;  %v3755_v1 = vadd.f32 %v14948_v20, %v3754_v61  ;;  %v5341_v38 = vsel %vm5336_vm12, %v5308_v34, %v4831_v29 }
 0x599   : > { %v15142_v54 = vadd.f32 %v8195_v2, %v3745_v59  ;;  %v3756_v11 = vpop.f32.mrb[23].mxu1  ;;  %v3964_v30 = vpop.f32.mrb[59].mxu0  ;;  %4758 = vrot.lane.b32.xlu0 %v18666_v28, %s9807_s29 }
 0x59a   : > { %v15146_v56 = vadd.f32 %v3964_v30, %v3740_v50  ;;  %5140 = vrot.lane.b32.xlu1 %v13962_v22, %s18602_s19 }
 0x59b   : > { %18671 = vst [vmem:[#allocation131_spill] sm:$0xff] %v15142_v54  ;;  %4068 = vst.msk [vmem:[%s14987_s26 + $0x78] sm:$0xff] %vm562_vm4, %v15142_v54  ;;  %v4927_v25 = vpop.permute.xlu0 %4926  ;;  %v3759_v3 = vpop.f32.mrb[24].mxu1 }
 0x59c   : > { %18672 = vst [vmem:[#allocation117_spill] sm:$0xff] %v15146_v56  ;;  %4067 = vst.msk [vmem:[%s14987_s26 + $0x70] sm:$0xff] %vm562_vm4, %v15146_v56  ;;  %v4833_v43 = vpop.permute.xlu1 %4832  ;;  %v8198_v5 = vpop.f32.mrb[60].mxu0  ;;  %v5374_v59 = vsel %vm5369_vm13, %v5341_v38, %v4927_v25 }
 0x59d   : > { %v15160_v28 = vadd.f32 %v8198_v5, %v3755_v1  ;;  %v3761_v49 = vpop.f32.mrb[25].mxu1  ;;  %v3974_v27 = vpop.f32.mrb[61].mxu0  ;;  %4854 = vrot.lane.b32.xlu0 %v13924_v19, %s9819_s18  ;;  %v3760_v19 = vadd.f32 %v14948_v20, %v3759_v3  ;;  %v18677_v5 = vld [vmem:[#allocation28_spill] sm:$0xff] }
 0x59e   : > { %v15166_v60 = vadd.f32 %v3974_v27, %v3750_v63  ;;  %4760 = vrot.lane.b32.xlu1 %v18670_v39, %s9807_s29  ;;  %v9637_v39 = vld [vmem:[#allocation3 + $0x38] sm:$0xff] }
 0x59f   : > { %18673 = vst [vmem:[#allocation147_spill] sm:$0xff] %v15160_v28  ;;  %4070 = vst.msk [vmem:[%s14987_s26 + $0x88] sm:$0xff] %vm562_vm4, %v15160_v28  ;;  %v5023_v8 = vpop.permute.xlu0 %5022  ;;  %v3764_v24 = vpop.f32.mrb[26].mxu1  ;;  %v5211_v47 = vsel %vm506_vm14, %v9637_v39, %v14266_v9 }
 0x5a0   : > { %18674 = vst [vmem:[#allocation66_spill] sm:$0xff] %v15166_v60  ;;  %4069 = vst.msk [vmem:[%s14987_s26 + $0x80] sm:$0xff] %vm562_vm4, %v15166_v60  ;;  %v4929_v15 = vpop.permute.xlu1 %4928  ;;  %v3765_v46 = vadd.f32 %v14948_v20, %v3764_v24  ;;  %v8201_v41 = vpop.f32.mrb[62].mxu0  ;;  %v5244_v29 = vsel %vm5238_vm9, %v5211_v47, %v14669_v36  ;;  %v5407_v2 = vsel %vm5402_vm15, %v5374_v59, %v5023_v8 }
 0x5a1   : > { %v3766_v52 = vpop.f32.mrb[27].mxu1  ;;  %v3984_v0 = vpop.f32.mrb[63].mxu0  ;;  %4950 = vrot.lane.b32.xlu0 %v14529_v55, %s17701_s28  ;;  %v5277_v30 = vsel %vm5271_vm10, %v5244_v29, %v14814_v57 }
 0x5a2   : > { %v15187_v61 = vadd.f32 %v8201_v41, %v3765_v46  ;;  %v15189_v50 = vadd.f32 %v3984_v0, %v3760_v19  ;;  %4856 = vrot.lane.b32.xlu1 %v13962_v22, %s9819_s18  ;;  %v5309_v25 = vsel %vm1806_vm8, %v5277_v30, %v4737_v53  ;;  %v18680_v19 = vld [vmem:[#allocation165_spill] sm:$0xff] }
 0x5a3   : > { %v5119_v11 = vpop.permute.xlu0 %5118  ;;  %v3769_v55 = vpop.f32.mrb[28].mxu1  ;;  %v5342_v57 = vsel %vm5336_vm12, %v5309_v25, %v4833_v43  ;;  %v9638_v30 = vld [vmem:[#allocation3 + $0x48] sm:$0xff] }
 0x5a4   : > { %18675 = vst [vmem:[#allocation167_spill] sm:$0xff] %v15187_v61  ;;  %18676 = vst [vmem:[#allocation18_spill] sm:$0xff] %v15189_v50  ;;  %v5439_v9 = vsel %vm1905_vm11, %v5407_v2, %v5119_v11  ;;  %v5025_v22 = vpop.permute.xlu1 %5024  ;;  %v3770_v1 = vadd.f32 %v14948_v20, %v3769_v55  ;;  %v8204_v36 = vpop.f32.mrb[64].mxu0  ;;  %v5375_v10 = vsel %vm5369_vm13, %v5342_v57, %v4929_v15 }
 0x5a5   : > { %4072 = vst.msk [vmem:[%s14987_s26 + $0x98] sm:$0xff] %vm562_vm4, %v15187_v61  ;;  %4071 = vst.msk [vmem:[%s14987_s26 + $0x90] sm:$0xff] %vm562_vm4, %v15189_v50  ;;  %v3771_v3 = vpop.f32.mrb[29].mxu1  ;;  %v3994_v63 = vpop.f32.mrb[65].mxu0  ;;  %5046 = vrot.lane.b32.xlu0 %v18677_v5, %s17699_s16  ;;  %8234 = vmatprep.mubr.msk.f32.mxu0 %vm5478_vm5, %v5439_v9  ;;  %v5408_v53 = vsel %vm5402_vm15, %v5375_v10, %v5025_v22  ;;  %v18682_v9 = vld [vmem:[#allocation59_spill] sm:$0xff]  ;;  %v18790_v61 = vld [vmem:[#allocation53_spill] sm:$0xff] }
 0x5a6   : > { %v15211_v45 = vadd.f32 %v3994_v63, %v3770_v1  ;;  %4952 = vrot.lane.b32.xlu1 %v14563_v13, %s17701_s28  ;;  %v5212_v22 = vsel %vm506_vm14, %v9638_v30, %v18682_v9 }
 0x5a7   : > { %v4739_v49 = vpop.permute.xlu0 %4738  ;;  %v3774_v27 = vpop.f32.mrb[30].mxu1  ;;  %v5245_v25 = vsel %vm5238_vm9, %v5212_v22, %v14667_v62  ;;  %v15295_v22 = vld [vmem:[#allocation3 + $0x110] sm:$0xff] }
 0x5a8   : > { %18678 = vst [vmem:[#allocation151_spill] sm:$0xff] %v15211_v45  ;;  %4073 = vst.msk [vmem:[%s14987_s26 + $0xa0] sm:$0xff] %vm562_vm4, %v15211_v45  ;;  %v5121_v31 = vpop.permute.xlu1 %5120  ;;  %v3775_v7 = vadd.f32 %v14948_v20, %v3774_v27  ;;  %v8207_v8 = vpop.f32.mrb[66].mxu0  ;;  %v5278_v63 = vsel %vm5271_vm10, %v5245_v25, %v14812_v17  ;;  %v9640_v17 = vld [vmem:[#allocation3 + $0x50] sm:$0xff] }
 0x5a9   : > { %v5440_v43 = vsel %vm1905_vm11, %v5408_v53, %v5121_v31  ;;  %v3776_v24 = vpop.f32.mrb[31].mxu1  ;;  %v4004_v34 = vpop.f32.mrb[67].mxu0  ;;  %5142 = vrot.lane.b32.xlu0 %v13947_v32, %s18602_s19  ;;  %v5310_v10 = vsel %vm1806_vm8, %v5278_v63, %v4739_v49  ;;  %v18684_v49 = vld [vmem:[#allocation67_spill] sm:$0xff] }
 0x5aa   : > { %v15224_v13 = vadd.f32 %v8204_v36, %v3775_v7  ;;  %5048 = vrot.lane.b32.xlu1 %v18680_v19, %s17699_s16  ;;  %8235 = vmatmul.mubr.msk.f32.gmra.mrb[80].mxu0 %vm5478_vm5, %v5440_v43  ;;  %v5213_v43 = vsel %vm506_vm14, %v9640_v17, %v18684_v49 }
 0x5ab   : > { %v4835_v15 = vpop.permute.xlu0 %4834  ;;  %v3779_v46 = vpop.f32.mrb[32].mxu1 }
 0x5ac   : > { %18679 = vst [vmem:[#allocation77_spill] sm:$0xff] %v15224_v13  ;;  %4074 = vst.msk [vmem:[%s14987_s26 + $0xa8] sm:$0xff] %vm562_vm4, %v15224_v13  ;;  %v4741_v41 = vpop.permute.xlu1 %4740  ;;  %v3780_v38 = vadd.f32 %v14948_v20, %v3779_v46  ;;  %v8210_v52 = vpop.f32.mrb[68].mxu0  ;;  %v5343_v62 = vsel %vm5336_vm12, %v5310_v10, %v4835_v15 }
 0x5ad   : > { %v3781_v0 = vpop.f32.mrb[33].mxu1  ;;  %v4014_v39 = vpop.f32.mrb[69].mxu0  ;;  %4762 = vrot.lane.b32.xlu0 %v18677_v5, %s9807_s29 }
 0x5ae   : > { %v15235_v47 = vadd.f32 %v4004_v34, %v3780_v38  ;;  %5144 = vrot.lane.b32.xlu1 %v14084_v18, %s18602_s19 }
 0x5af   : > { %v4931_v59 = vpop.permute.xlu0 %4930  ;;  %v3784_v29 = vpop.f32.mrb[34].mxu1 }
 0x5b0   : > { %18681 = vst [vmem:[#allocation98_spill] sm:$0xff] %v15235_v47  ;;  %4075 = vst.msk [vmem:[%s14987_s26 + $0xb0] sm:$0xff] %vm562_vm4, %v15235_v47  ;;  %v4837_v2 = vpop.permute.xlu1 %4836  ;;  %v3785_v11 = vadd.f32 %v14948_v20, %v3784_v29  ;;  %v15243_v55 = vpop.f32.mrb[70].mxu0  ;;  %v5376_v24 = vsel %vm5369_vm13, %v5343_v62, %v4931_v59  ;;  %v18779_v47 = vld [vmem:[#allocation34_spill] sm:$0xff] }
 0x5b1   : > { %v3786_v1 = vpop.f32.mrb[35].mxu1  ;;  %v4024_v36 = vpop.f32.mrb[71].mxu0  ;;  %4858 = vrot.lane.b32.xlu0 %v13947_v32, %s9819_s18 }
 0x5b2   : > { %v15251_v3 = vadd.f32 %v8207_v8, %v3785_v11  ;;  %4764 = vrot.lane.b32.xlu1 %v18680_v19, %s9807_s29  ;;  %v15265_v8 = vld [vmem:[#allocation3 + $0x108] sm:$0xff]  ;;  %v5246_v19 = vsel %vm5238_vm9, %v5213_v43, %v14681_v58  ;;  %v18686_v58 = vld [vmem:[#allocation139_spill] sm:$0xff] }
 0x5b3   : > { %v5027_v5 = vpop.permute.xlu0 %5026  ;;  %v3789_v57 = vpop.f32.mrb[36].mxu1  ;;  %v5279_v0 = vsel %vm5271_vm10, %v5246_v19, %v14822_v33  ;;  %v18692_v19 = vld [vmem:[#allocation87_spill] sm:$0xff] }
 0x5b4   : > { %18683 = vst [vmem:[#allocation49_spill] sm:$0xff] %v15251_v3  ;;  %4076 = vst.msk [vmem:[%s14987_s26 + $0xb8] sm:$0xff] %vm562_vm4, %v15251_v3  ;;  %v4933_v27 = vpop.permute.xlu1 %4932  ;;  %v3790_v32 = vadd.f32 %v14948_v20, %v3789_v57  ;;  %v15262_v53 = vpop.f32.mrb[72].mxu0  ;;  %v5409_v15 = vsel %vm5402_vm15, %v5376_v24, %v5027_v5  ;;  %v5311_v11 = vsel %vm1806_vm8, %v5279_v0, %v4741_v41 }
 0x5b5   : > { %v3791_v31 = vpop.f32.mrb[37].mxu1  ;;  %v4034_v7 = vpop.f32.mrb[73].mxu0  ;;  %4954 = vrot.lane.b32.xlu0 %v15265_v8, %s17701_s28  ;;  %v5344_v33 = vsel %vm5336_vm12, %v5311_v11, %v4837_v2 }
 0x5b6   : > { %v15272_v34 = vadd.f32 %v4014_v39, %v3790_v32  ;;  %4860 = vrot.lane.b32.xlu1 %v14084_v18, %s9819_s18  ;;  %v5377_v41 = vsel %vm5369_vm13, %v5344_v33, %v4933_v27  ;;  %v18688_v32 = vld [vmem:[#allocation115_spill] sm:$0xff]  ;;  %v18690_v27 = vld [vmem:[#allocation160_spill] sm:$0xff] }
 0x5b7   : > { %v5123_v46 = vpop.permute.xlu0 %5122  ;;  %v3794_v38 = vpop.f32.mrb[38].mxu1 }
 0x5b8   : > { %18685 = vst [vmem:[#allocation146_spill] sm:$0xff] %v15272_v34  ;;  %4077 = vst.msk [vmem:[%s14987_s26 + $0xc0] sm:$0xff] %vm562_vm4, %v15272_v34  ;;  %v5441_v59 = vsel %vm1905_vm11, %v5409_v15, %v5123_v46  ;;  %v5029_v39 = vpop.permute.xlu1 %5028  ;;  %v3795_v29 = vadd.f32 %v14948_v20, %v3794_v38  ;;  %v3796_v18 = vpop.f32.mrb[39].mxu1 }
 0x5b9   : > { %5050 = vrot.lane.b32.xlu0 %v18686_v58, %s17699_s16  ;;  %8237 = vmatprep.mubr.msk.f32.mxu0 %vm5478_vm5, %v5441_v59  ;;  %v15290_v30 = vpop.f32.mrb[74].mxu0  ;;  %v5410_v5 = vsel %vm5402_vm15, %v5377_v41, %v5029_v39  ;;  %v9642_v39 = vld [vmem:[#allocation3 + $0x60] sm:$0xff] }
 0x5ba   : > { %v15293_v9 = vadd.f32 %v8210_v52, %v3795_v29  ;;  %4956 = vrot.lane.b32.xlu1 %v15295_v22, %s17701_s28  ;;  %v15299_v1 = vpop.f32.mrb[75].mxu0  ;;  %v18693_v29 = vld [vmem:[#allocation177_spill] sm:$0xff] }
 0x5bb   : > { %v4743_v25 = vpop.permute.xlu0 %4742  ;;  %v3799_v63 = vpop.f32.mrb[40].mxu1  ;;  %v5214_v18 = vsel %vm506_vm14, %v9642_v39, %v18693_v29 }
 0x5bc   : > { %18687 = vst [vmem:[#allocation55_spill] sm:$0xff] %v15293_v9  ;;  %4078 = vst.msk [vmem:[%s14987_s26 + $0xc8] sm:$0xff] %vm562_vm4, %v15293_v9  ;;  %v5125_v2 = vpop.permute.xlu1 %5124  ;;  %v3800_v52 = vadd.f32 %v14948_v20, %v3799_v63  ;;  %v3801_v57 = vpop.f32.mrb[41].mxu1 }
 0x5bd   : > { %v5442_v10 = vsel %vm1905_vm11, %v5410_v5, %v5125_v2  ;;  %5146 = vrot.lane.b32.xlu0 %v18688_v32, %s18602_s19  ;;  %v15348_v57 = vld [vmem:[#allocation3 + $0x120] sm:$0xff] }
 0x5be   : > { %v15310_v62 = vadd.f32 %v4024_v36, %v3800_v52  ;;  %5052 = vrot.lane.b32.xlu1 %v18690_v27, %s17699_s16  ;;  %8238 = vmatmul.mubr.msk.f32.gmra.mrb[82].mxu0 %vm5478_vm5, %v5442_v10  ;;  %v9644_v10 = vld [vmem:[#allocation3 + $0x68] sm:$0xff] }
 0x5bf   : > { %v4839_v31 = vpop.permute.xlu0 %4838  ;;  %v3804_v17 = vpop.f32.mrb[42].mxu1 }
 0x5c0   : > { %18689 = vst [vmem:[#allocation16_spill] sm:$0xff] %v15310_v62  ;;  %4079 = vst.msk [vmem:[%s14987_s26 + $0xd0] sm:$0xff] %vm562_vm4, %v15310_v62  ;;  %v4745_v49 = vpop.permute.xlu1 %4744  ;;  %v3805_v43 = vadd.f32 %v14948_v20, %v3804_v17  ;;  %v3806_v24 = vpop.f32.mrb[43].mxu1  ;;  %v18769_v62 = vld [vmem:[#allocation38_spill] sm:$0xff] }
 0x5c1   : > { %4766 = vrot.lane.b32.xlu0 %v18686_v58, %s9807_s29  ;;  %v18695_v58 = vld [vmem:[#allocation40_spill] sm:$0xff] }
 0x5c2   : > { %v15322_v36 = vadd.f32 %v15243_v55, %v3805_v43  ;;  %5148 = vrot.lane.b32.xlu1 %v18692_v19, %s18602_s19  ;;  %v5247_v55 = vsel %vm5238_vm9, %v5214_v18, %v14679_v44  ;;  %v18698_v43 = vld [vmem:[#allocation94_spill] sm:$0xff] }
 0x5c3   : > { %v4935_v15 = vpop.permute.xlu0 %4934  ;;  %v3809_v46 = vpop.f32.mrb[44].mxu1  ;;  %v5280_v33 = vsel %vm5271_vm10, %v5247_v55, %v18695_v58  ;;  %v18700_v55 = vld [vmem:[#allocation32_spill] sm:$0xff] }
 0x5c4   : > { %18691 = vst [vmem:[#allocation126_spill] sm:$0xff] %v15322_v36  ;;  %4080 = vst.msk [vmem:[%s14987_s26 + $0xd8] sm:$0xff] %vm562_vm4, %v15322_v36  ;;  %v4841_v38 = vpop.permute.xlu1 %4840  ;;  %v3810_v0 = vadd.f32 %v14948_v20, %v3809_v46  ;;  %v3811_v59 = vpop.f32.mrb[45].mxu1  ;;  %v5312_v5 = vsel %vm1806_vm8, %v5280_v33, %v4743_v25  ;;  %v15375_v33 = vld [vmem:[#allocation3 + $0x128] sm:$0xff] }
 0x5c5   : > { %4862 = vrot.lane.b32.xlu0 %v18688_v32, %s9819_s18  ;;  %v18696_v32 = vld [vmem:[#allocation135_spill] sm:$0xff] }
 0x5c6   : > { %v15336_v11 = vadd.f32 %v4034_v7, %v3810_v0  ;;  %4768 = vrot.lane.b32.xlu1 %v18690_v27, %s9807_s29  ;;  %v5345_v7 = vsel %vm5336_vm12, %v5312_v5, %v4839_v31  ;;  %v5215_v27 = vsel %vm506_vm14, %v9644_v10, %v18696_v32  ;;  %v18699_v59 = vld [vmem:[#allocation95_spill] sm:$0xff]  ;;  %v18702_v32 = vld [vmem:[#allocation90_spill] sm:$0xff] }
 0x5c7   : > { %v5031_v41 = vpop.permute.xlu0 %5030  ;;  %v3814_v63 = vpop.f32.mrb[46].mxu1  ;;  %v5378_v25 = vsel %vm5369_vm13, %v5345_v7, %v4935_v15  ;;  %v5248_v31 = vsel %vm5238_vm9, %v5215_v27, %v18698_v43 }
 0x5c8   : > { %18694 = vst [vmem:[#allocation76_spill] sm:$0xff] %v15336_v11  ;;  %4081 = vst.msk [vmem:[%s14987_s26 + $0xe0] sm:$0xff] %vm562_vm4, %v15336_v11  ;;  %v4937_v2 = vpop.permute.xlu1 %4936  ;;  %v3815_v52 = vadd.f32 %v14948_v20, %v3814_v63  ;;  %v3816_v44 = vpop.f32.mrb[47].mxu1  ;;  %v5411_v24 = vsel %vm5402_vm15, %v5378_v25, %v5031_v41  ;;  %v5281_v39 = vsel %vm5271_vm10, %v5248_v31, %v18699_v59 }
 0x5c9   : > { %4958 = vrot.lane.b32.xlu0 %v15348_v57, %s17701_s28  ;;  %v5313_v18 = vsel %vm1806_vm8, %v5281_v39, %v4745_v49  ;;  %v18708_v39 = vld [vmem:[#allocation65_spill] sm:$0xff] }
 0x5ca   : > { %v15356_v17 = vadd.f32 %v15262_v53, %v3815_v52  ;;  %4864 = vrot.lane.b32.xlu1 %v18692_v19, %s9819_s18  ;;  %v5346_v58 = vsel %vm5336_vm12, %v5313_v18, %v4841_v38 }
 0x5cb   : > { %v5127_v46 = vpop.permute.xlu0 %5126  ;;  %v3819_v0 = vpop.f32.mrb[48].mxu1  ;;  %v5379_v63 = vsel %vm5369_vm13, %v5346_v58, %v4937_v2  ;;  %v18704_v2 = vld [vmem:[#allocation162_spill] sm:$0xff]  ;;  %v9648_v58 = vld [vmem:[#allocation3 + $0x80] sm:$0xff] }
 0x5cc   : > { %18697 = vst [vmem:[#allocation78_spill] sm:$0xff] %v15356_v17  ;;  %4082 = vst.msk [vmem:[%s14987_s26 + $0xe8] sm:$0xff] %vm562_vm4, %v15356_v17  ;;  %v5443_v53 = vsel %vm1905_vm11, %v5411_v24, %v5127_v46  ;;  %v5033_v15 = vpop.permute.xlu1 %5032  ;;  %v3820_v29 = vadd.f32 %v14948_v20, %v3819_v0  ;;  %v3821_v19 = vpop.f32.mrb[49].mxu1  ;;  %v18706_v24 = vld [vmem:[#allocation159_spill] sm:$0xff]  ;;  %v18707_v0 = vld [vmem:[#allocation30_spill] sm:$0xff] }
 0x5cd   : > { %5054 = vrot.lane.b32.xlu0 %v18700_v55, %s17699_s16  ;;  %8240 = vmatprep.mubr.msk.f32.mxu0 %vm5478_vm5, %v5443_v53  ;;  %v5412_v52 = vsel %vm5402_vm15, %v5379_v63, %v5033_v15  ;;  %v18709_v63 = vld [vmem:[#allocation179_spill] sm:$0xff] }
 0x5ce   : > { %4960 = vrot.lane.b32.xlu1 %v15375_v33, %s17701_s28  ;;  %v15380_v41 = vadd.f32 %v15299_v1, %v3820_v29 }
 0x5cf   : > { %v4747_v5 = vpop.permute.xlu0 %4746  ;;  %v3824_v49 = vpop.f32.mrb[50].mxu1 }
 0x5d0   : > { %18701 = vst [vmem:[#allocation20_spill] sm:$0xff] %v15380_v41  ;;  %4083 = vst.msk [vmem:[%s14987_s26 + $0xf0] sm:$0xff] %vm562_vm4, %v15380_v41  ;;  %v5129_v44 = vpop.permute.xlu1 %5128  ;;  %v3825_v38 = vadd.f32 %v14948_v20, %v3824_v49  ;;  %v3826_v7 = vpop.f32.mrb[51].mxu1  ;;  %v18705_v20 = vld [vmem:[#allocation116_spill] sm:$0xff]  ;;  %v5217_v49 = vsel %vm506_vm14, %v9648_v58, %v18709_v63  ;;  %v9650_v63 = vld [vmem:[#allocation3 + $0x90] sm:$0xff] }
 0x5d1   : > { %v5444_v10 = vsel %vm1905_vm11, %v5412_v52, %v5129_v44  ;;  %5150 = vrot.lane.b32.xlu0 %v18702_v32, %s18602_s19  ;;  %v18710_v44 = vld [vmem:[#allocation83_spill] sm:$0xff]  ;;  %v18739_v41 = vld [vmem:[#allocation93_spill] sm:$0xff] }
 0x5d2   : > { %v15392_v1 = vadd.f32 %v15290_v30, %v3825_v38  ;;  %5056 = vrot.lane.b32.xlu1 %v18704_v2, %s17699_s16  ;;  %8241 = vmatmul.mubr.msk.f32.gmra.mrb[84].mxu0 %vm5478_vm5, %v5444_v10  ;;  %v9646_v30 = vld [vmem:[#allocation3 + $0x78] sm:$0xff]  ;;  %v18711_v10 = vld [vmem:[#allocation169_spill] sm:$0xff] }
 0x5d3   : > { %v4843_v27 = vpop.permute.xlu0 %4842  ;;  %v5216_v46 = vsel %vm506_vm14, %v9646_v30, %v18706_v24  ;;  %v18712_v24 = vld [vmem:[#allocation118_spill] sm:$0xff] }
 0x5d4   : > { %18703 = vst [vmem:[#allocation15_spill] sm:$0xff] %v15392_v1  ;;  %4084 = vst.msk [vmem:[%s14987_s26 + $0xf8] sm:$0xff] %vm562_vm4, %v15392_v1  ;;  %v4749_v25 = vpop.permute.xlu1 %4748  ;;  %v5249_v59 = vsel %vm5238_vm9, %v5216_v46, %v18707_v0  ;;  %v9661_v1 = vld [vmem:[#allocation3 + $0xc8] sm:$0xff] }
 0x5d5   : > { %4770 = vrot.lane.b32.xlu0 %v18700_v55, %s9807_s29  ;;  %v5282_v53 = vsel %vm5271_vm10, %v5249_v59, %v18708_v39  ;;  %v15416_v55 = vld [vmem:[#allocation3 + $0x138] sm:$0xff] }
 0x5d6   : > { %5152 = vrot.lane.b32.xlu1 %v18705_v20, %s18602_s19  ;;  %v5314_v29 = vsel %vm1806_vm8, %v5282_v53, %v4747_v5  ;;  %v5250_v5 = vsel %vm5238_vm9, %v5217_v49, %v18710_v44  ;;  %v18713_v53 = vld [vmem:[#allocation164_spill] sm:$0xff] }
 0x5d7   : > { %v4939_v43 = vpop.permute.xlu0 %4938  ;;  %v5347_v18 = vsel %vm5336_vm12, %v5314_v29, %v4843_v27  ;;  %v18716_v49 = vld [vmem:[#allocation72_spill] sm:$0xff] }
 0x5d8   : > { %v4845_v31 = vpop.permute.xlu1 %4844  ;;  %v5380_v52 = vsel %vm5369_vm13, %v5347_v18, %v4939_v43  ;;  %v15436_v43 = vld [vmem:[#allocation3 + $0x140] sm:$0xff] }
 0x5d9   : > { %4866 = vrot.lane.b32.xlu0 %v18702_v32, %s9819_s18  ;;  %v5283_v32 = vsel %vm5271_vm10, %v5250_v5, %v18711_v10  ;;  %v18717_v44 = vld [vmem:[#allocation88_spill] sm:$0xff] }
 0x5da   : > { %4772 = vrot.lane.b32.xlu1 %v18704_v2, %s9807_s29  ;;  %v5315_v30 = vsel %vm1806_vm8, %v5283_v32, %v4749_v25 }
 0x5db   : > { %v5035_v15 = vpop.permute.xlu0 %5034 }
 0x5dc   : > { %v4941_v19 = vpop.permute.xlu1 %4940  ;;  %v5413_v38 = vsel %vm5402_vm15, %v5380_v52, %v5035_v15  ;;  %v18714_v15 = vld [vmem:[#allocation96_spill] sm:$0xff]  ;;  %v5218_v52 = vsel %vm506_vm14, %v9650_v63, %v18716_v49 }
 0x5dd   : > { %4962 = vrot.lane.b32.xlu0 %v15416_v55, %s17701_s28  ;;  %v5251_v5 = vsel %vm5238_vm9, %v5218_v52, %v18717_v44  ;;  %v18722_v44 = vld [vmem:[#allocation143_spill] sm:$0xff] }
 0x5de   : > { %4868 = vrot.lane.b32.xlu1 %v18705_v20, %s9819_s18  ;;  %v5348_v20 = vsel %vm5336_vm12, %v5315_v30, %v4845_v31  ;;  %v15464_v30 = vld [vmem:[#allocation3 + $0x150] sm:$0xff] }
 0x5df   : > { %v5131_v7 = vpop.permute.xlu0 %5130  ;;  %v5381_v46 = vsel %vm5369_vm13, %v5348_v20, %v4941_v19  ;;  %v18715_v19 = vld [vmem:[#allocation19_spill] sm:$0xff]  ;;  %v18719_v20 = vld [vmem:[#allocation61_spill] sm:$0xff] }
 0x5e0   : > { %v5445_v2 = vsel %vm1905_vm11, %v5413_v38, %v5131_v7  ;;  %v5037_v27 = vpop.permute.xlu1 %5036  ;;  %v18718_v38 = vld [vmem:[#allocation130_spill] sm:$0xff] }
 0x5e1   : > { %5058 = vrot.lane.b32.xlu0 %v18712_v24, %s17699_s16  ;;  %8243 = vmatprep.mubr.msk.f32.mxu0 %vm5478_vm5, %v5445_v2  ;;  %v5414_v59 = vsel %vm5402_vm15, %v5381_v46, %v5037_v27  ;;  %v5284_v7 = vsel %vm5271_vm10, %v5251_v5, %v18718_v38 }
 0x5e2   : > { %4964 = vrot.lane.b32.xlu1 %v15436_v43, %s17701_s28 }
 0x5e3   : > { %v4751_v0 = vpop.permute.xlu0 %4750 }
 0x5e4   : > { %v5133_v39 = vpop.permute.xlu1 %5132  ;;  %v5316_v32 = vsel %vm1806_vm8, %v5284_v7, %v4751_v0 }
 0x5e5   : > { %v5446_v25 = vsel %vm1905_vm11, %v5414_v59, %v5133_v39  ;;  %5154 = vrot.lane.b32.xlu0 %v18713_v53, %s18602_s19  ;;  %v18720_v39 = vld [vmem:[#allocation161_spill] sm:$0xff] }
 0x5e6   : > { %5060 = vrot.lane.b32.xlu1 %v18714_v15, %s17699_s16  ;;  %8244 = vmatmul.mubr.msk.f32.gmra.mrb[86].mxu0 %vm5478_vm5, %v5446_v25 }
 0x5e7   : > { %v4847_v31 = vpop.permute.xlu0 %4846 }
 0x5e8   : > { %v4753_v29 = vpop.permute.xlu1 %4752  ;;  %v5349_v27 = vsel %vm5336_vm12, %v5316_v32, %v4847_v31  ;;  %v18723_v32 = vld [vmem:[#allocation41_spill] sm:$0xff] }
 0x5e9   : > { %4774 = vrot.lane.b32.xlu0 %v18712_v24, %s9807_s29  ;;  %v9652_v24 = vld [vmem:[#allocation3 + $0x98] sm:$0xff] }
 0x5ea   : > { %5156 = vrot.lane.b32.xlu1 %v18715_v19, %s18602_s19  ;;  %v5219_v46 = vsel %vm506_vm14, %v9652_v24, %v18719_v20 }
 0x5eb   : > { %v4943_v18 = vpop.permute.xlu0 %4942  ;;  %v5252_v0 = vsel %vm5238_vm9, %v5219_v46, %v18720_v39  ;;  %v18726_v39 = vld [vmem:[#allocation153_spill] sm:$0xff] }
 0x5ec   : > { %v4849_v58 = vpop.permute.xlu1 %4848  ;;  %v5382_v59 = vsel %vm5369_vm13, %v5349_v27, %v4943_v18  ;;  %v15484_v18 = vld [vmem:[#allocation3 + $0x158] sm:$0xff]  ;;  %v18724_v27 = vld [vmem:[#allocation13_spill] sm:$0xff] }
 0x5ed   : > { %4870 = vrot.lane.b32.xlu0 %v18713_v53, %s9819_s18 }
 0x5ee   : > { %4776 = vrot.lane.b32.xlu1 %v18714_v15, %s9807_s29  ;;  %v18721_v15 = vld [vmem:[#allocation75_spill] sm:$0xff] }
 0x5ef   : > { %v5039_v10 = vpop.permute.xlu0 %5038  ;;  %v5285_v31 = vsel %vm5271_vm10, %v5252_v0, %v18721_v15  ;;  %v18728_v15 = vld [vmem:[#allocation133_spill] sm:$0xff] }
 0x5f0   : > { %v4945_v2 = vpop.permute.xlu1 %4944  ;;  %v5415_v25 = vsel %vm5402_vm15, %v5382_v59, %v5039_v10  ;;  %v5317_v52 = vsel %vm1806_vm8, %v5285_v31, %v4753_v29  ;;  %v9654_v59 = vld [vmem:[#allocation3 + $0xa8] sm:$0xff] }
 0x5f1   : > { %4966 = vrot.lane.b32.xlu0 %v15464_v30, %s17701_s28  ;;  %v5220_v0 = vsel %vm506_vm14, %v9654_v59, %v18726_v39  ;;  %v18731_v59 = vld [vmem:[#allocation12_spill] sm:$0xff] }
 0x5f2   : > { %4872 = vrot.lane.b32.xlu1 %v18715_v19, %s9819_s18  ;;  %v5350_v19 = vsel %vm5336_vm12, %v5317_v52, %v4849_v58 }
 0x5f3   : > { %v5135_v53 = vpop.permute.xlu0 %5134  ;;  %v5383_v5 = vsel %vm5369_vm13, %v5350_v19, %v4945_v2  ;;  %v18725_v2 = vld [vmem:[#allocation86_spill] sm:$0xff]  ;;  %v15512_v19 = vld [vmem:[#allocation3 + $0x168] sm:$0xff] }
 0x5f4   : > { %v5447_v63 = vsel %vm1905_vm11, %v5415_v25, %v5135_v53  ;;  %v5041_v49 = vpop.permute.xlu1 %5040  ;;  %v18727_v25 = vld [vmem:[#allocation149_spill] sm:$0xff] }
 0x5f5   : > { %5062 = vrot.lane.b32.xlu0 %v18722_v44, %s17699_s16  ;;  %8246 = vmatprep.mubr.msk.f32.mxu0 %vm5478_vm5, %v5447_v63  ;;  %v5416_v7 = vsel %vm5402_vm15, %v5383_v5, %v5041_v49  ;;  %v5253_v53 = vsel %vm5238_vm9, %v5220_v0, %v18727_v25  ;;  %v9656_v5 = vld [vmem:[#allocation3 + $0xb0] sm:$0xff] }
 0x5f6   : > { %4968 = vrot.lane.b32.xlu1 %v15484_v18, %s17701_s28  ;;  %v5286_v31 = vsel %vm5271_vm10, %v5253_v53, %v18728_v15  ;;  %v18732_v15 = vld [vmem:[#allocation125_spill] sm:$0xff] }
 0x5f7   : > { %v4755_v38 = vpop.permute.xlu0 %4754 }
 0x5f8   : > { %v5137_v10 = vpop.permute.xlu1 %5136  ;;  %v5318_v49 = vsel %vm1806_vm8, %v5286_v31, %v4755_v38 }
 0x5f9   : > { %v5448_v29 = vsel %vm1905_vm11, %v5416_v7, %v5137_v10  ;;  %5158 = vrot.lane.b32.xlu0 %v18723_v32, %s18602_s19  ;;  %v18729_v7 = vld [vmem:[#allocation120_spill] sm:$0xff] }
 0x5fa   : > { %5064 = vrot.lane.b32.xlu1 %v18724_v27, %s17699_s16  ;;  %8247 = vmatmul.mubr.msk.f32.gmra.mrb[88].mxu0 %vm5478_vm5, %v5448_v29  ;;  %v5221_v10 = vsel %vm506_vm14, %v9656_v5, %v18729_v7  ;;  %v18733_v5 = vld [vmem:[#allocation140_spill] sm:$0xff]  ;;  %v18734_v7 = vld [vmem:[#allocation182_spill] sm:$0xff] }
 0x5fb   : > { %v4851_v58 = vpop.permute.xlu0 %4850 }
 0x5fc   : > { %v4757_v24 = vpop.permute.xlu1 %4756 }
 0x5fd   : > { %4778 = vrot.lane.b32.xlu0 %v18722_v44, %s9807_s29  ;;  %v5351_v44 = vsel %vm5336_vm12, %v5318_v49, %v4851_v58 }
 0x5fe   : > { %5160 = vrot.lane.b32.xlu1 %v18725_v2, %s18602_s19 }
 0x5ff   : > { %v4947_v20 = vpop.permute.xlu0 %4946 }
 0x600   : > { %v4853_v46 = vpop.permute.xlu1 %4852  ;;  %v5384_v29 = vsel %vm5369_vm13, %v5351_v44, %v4947_v20  ;;  %v15532_v20 = vld [vmem:[#allocation3 + $0x170] sm:$0xff] }
 0x601   : > { %4874 = vrot.lane.b32.xlu0 %v18723_v32, %s9819_s18  ;;  %v18730_v32 = vld [vmem:[#allocation29_spill] sm:$0xff] }
 0x602   : > { %4780 = vrot.lane.b32.xlu1 %v18724_v27, %s9807_s29  ;;  %v5254_v38 = vsel %vm5238_vm9, %v5221_v10, %v18730_v32 }
 0x603   : > { %v5043_v63 = vpop.permute.xlu0 %5042  ;;  %v5287_v39 = vsel %vm5271_vm10, %v5254_v38, %v18731_v59  ;;  %v9658_v38 = vld [vmem:[#allocation3 + $0xc0] sm:$0xff] }
 0x604   : > { %v4949_v52 = vpop.permute.xlu1 %4948  ;;  %v5417_v27 = vsel %vm5402_vm15, %v5384_v29, %v5043_v63  ;;  %v5319_v53 = vsel %vm1806_vm8, %v5287_v39, %v4757_v24  ;;  %v9659_v59 = vld [vmem:[#allocation3 + $0x180] sm:$0xff] }
 0x605   : > { %4970 = vrot.lane.b32.xlu0 %v15512_v19, %s17701_s28  ;;  %v4415_v39 = vrot.slane %v9659_v59, 1 }
 0x606   : > { %4876 = vrot.lane.b32.xlu1 %v18725_v2, %s9819_s18  ;;  %v5352_v2 = vsel %vm5336_vm12, %v5319_v53, %v4853_v46  ;;  %v18737_v53 = vld [vmem:[#allocation181_spill] sm:$0xff] }
 0x607   : > { %v5139_v58 = vpop.permute.xlu0 %5138  ;;  %v5385_v31 = vsel %vm5369_vm13, %v5352_v2, %v4949_v52  ;;  %v18735_v52 = vld [vmem:[#allocation50_spill] sm:$0xff] }
 0x608   : > { %v5449_v0 = vsel %vm1905_vm11, %v5417_v27, %v5139_v58  ;;  %v5045_v25 = vpop.permute.xlu1 %5044  ;;  %v18736_v27 = vld [vmem:[#allocation81_spill] sm:$0xff] }
 0x609   : > { %5066 = vrot.lane.b32.xlu0 %v18732_v15, %s17699_s16  ;;  %8249 = vmatprep.mubr.msk.f32.mxu0 %vm5478_vm5, %v5449_v0  ;;  %v5418_v49 = vsel %vm5402_vm15, %v5385_v31, %v5045_v25  ;;  %v5222_v58 = vsel %vm506_vm14, %v9658_v38, %v18736_v27  ;;  %v9660_v0 = vld [vmem:[#allocation3 + $0x188] sm:$0xff]  ;;  %v4200_v38 = vld [vmem:[#allocation3 + $0x190] sm:$0x3]  ;;  %v4420_v27 = vrot.slane %v9659_v59, 2 }
 0x60a   : > { %4972 = vrot.lane.b32.xlu1 %v15532_v20, %s17701_s28  ;;  %v4416_v25 = vrot.slane %v9660_v0, 1  ;;  %v5255_v2 = vsel %vm5238_vm9, %v5222_v58, %v18737_v53  ;;  %v5223_v58 = vsel %vm506_vm14, %v9661_v1, %v18739_v41  ;;  %v4421_v53 = vrot.slane %v9660_v0, 2 }
 0x60b   : > { %v4759_v63 = vpop.permute.xlu0 %4758 }
 0x60c   : > { %v5141_v44 = vpop.permute.xlu1 %5140 }
 0x60d   : > { %v5450_v24 = vsel %vm1905_vm11, %v5418_v49, %v5141_v44  ;;  %5162 = vrot.lane.b32.xlu0 %v18733_v5, %s18602_s19 }
 0x60e   : > { %5068 = vrot.lane.b32.xlu1 %v18734_v7, %s17699_s16  ;;  %8250 = vmatmul.mubr.msk.f32.gmra.mrb[90].mxu0 %vm5478_vm5, %v5450_v24 }
 0x60f   : > { %v4855_v46 = vpop.permute.xlu0 %4854 }
 0x610   : > { %v4761_v10 = vpop.permute.xlu1 %4760 }
 0x611   : > { %4782 = vrot.lane.b32.xlu0 %v18732_v15, %s9807_s29  ;;  %v18738_v15 = vld [vmem:[#allocation64_spill] sm:$0xff] }
 0x612   : > { %5164 = vrot.lane.b32.xlu1 %v18735_v52, %s18602_s19  ;;  %v5288_v31 = vsel %vm5271_vm10, %v5255_v2, %v18738_v15  ;;  %v4417_v2 = vsel %vm785_vm2, %v4415_v39, %v4416_v25  ;;  %v4422_v39 = vsel %vm866_vm3, %v4420_v27, %v4421_v53 }
 0x613   : > { %v4951_v29 = vpop.permute.xlu0 %4950  ;;  %v5320_v44 = vsel %vm1806_vm8, %v5288_v31, %v4759_v63  ;;  %v18740_v63 = vld [vmem:[#allocation123_spill] sm:$0xff] }
 0x614   : > { %v4857_v32 = vpop.permute.xlu1 %4856  ;;  %v5256_v15 = vsel %vm5238_vm9, %v5223_v58, %v18740_v63 }
 0x615   : > { %4878 = vrot.lane.b32.xlu0 %v18733_v5, %s9819_s18  ;;  %v5353_v5 = vsel %vm5336_vm12, %v5320_v44, %v4855_v46  ;;  %v4418_v44 = vrot.slane %v4200_v38, 1 }
 0x616   : > { %4784 = vrot.lane.b32.xlu1 %v18734_v7, %s9807_s29  ;;  %v5386_v7 = vsel %vm5369_vm13, %v5353_v5, %v4951_v29 }
 0x617   : > { %v5047_v49 = vpop.permute.xlu0 %5046  ;;  %v4419_v58 = vsel %vm785_vm2, %v4416_v25, %v4418_v44 }
 0x618   : > { %v4953_v24 = vpop.permute.xlu1 %4952  ;;  %v5419_v31 = vsel %vm5402_vm15, %v5386_v7, %v5047_v49  ;;  %v4423_v7 = vrot.slane %v4200_v38, 2  ;;  %v4202_v38 = vld [vmem:[#allocation3 + $0x1a0] sm:$0xff] }
 0x619   : > { %4974 = vrot.lane.b32.xlu0 %v9659_v59, %s17701_s28  ;;  %v18741_v59 = vld [vmem:[#allocation74_spill] sm:$0xff]  ;;  %v4434_v11 = vrot.slane %v4202_v38, 2 }
 0x61a   : > { %4880 = vrot.lane.b32.xlu1 %v18735_v52, %s9819_s18  ;;  %v5289_v17 = vsel %vm5271_vm10, %v5256_v15, %v18741_v59  ;;  %v18743_v59 = vld [vmem:[#allocation101_spill] sm:$0xff] }
 0x61b   : > { %v5143_v46 = vpop.permute.xlu0 %5142  ;;  %v5321_v29 = vsel %vm1806_vm8, %v5289_v17, %v4761_v10 }
 0x61c   : > { %v5451_v41 = vsel %vm1905_vm11, %v5419_v31, %v5143_v46  ;;  %v5049_v1 = vpop.permute.xlu1 %5048  ;;  %v5354_v52 = vsel %vm5336_vm12, %v5321_v29, %v4857_v32  ;;  %v4424_v32 = vsel %vm866_vm3, %v4421_v53, %v4423_v7  ;;  %v9662_v31 = vld [vmem:[#allocation3 + $0xd8] sm:$0xff]  ;;  %v18742_v46 = vld [vmem:[#allocation52_spill] sm:$0xff] }
 0x61d   : > { %5070 = vrot.lane.b32.xlu0 %v4417_v2, %s17699_s16  ;;  %8252 = vmatprep.mubr.msk.f32.mxu0 %vm5478_vm5, %v5451_v41  ;;  %v5387_v49 = vsel %vm5369_vm13, %v5354_v52, %v4953_v24  ;;  %v4201_v24 = vld [vmem:[#allocation3 + $0x198] sm:$0xff]  ;;  %v5224_v44 = vsel %vm506_vm14, %v9662_v31, %v18742_v46 }
 0x61e   : > { %4976 = vrot.lane.b32.xlu1 %v9660_v0, %s17701_s28  ;;  %v5420_v63 = vsel %vm5402_vm15, %v5387_v49, %v5049_v1  ;;  %v5257_v41 = vsel %vm5238_vm9, %v5224_v44, %v18743_v59  ;;  %v4428_v53 = vrot.slane %v4201_v24, 1  ;;  %v4429_v1 = vrot.slane %v4202_v38, 1  ;;  %v6988_v49 = vld [vmem:[%s17340_s8 + $0x100] sm:$0xff]  ;;  %v6989_v7 = vld [vmem:[%s17340_s8 + $0x108] sm:$0xff]  ;;  %s18776_s28 = smov 96  }
 0x61f   : > { %v4763_v5 = vpop.permute.xlu0 %4762  ;;  %v18745_v31 = vld [vmem:[#allocation99_spill] sm:$0xff] }
 0x620   : > { %v5145_v15 = vpop.permute.xlu1 %5144 }
 0x621   : > { %v5452_v17 = vsel %vm1905_vm11, %v5420_v63, %v5145_v15  ;;  %5166 = vrot.lane.b32.xlu0 %v4422_v39, %s18602_s19  ;;  %v4203_v15 = vld [vmem:[#allocation3 + $0x1a8] sm:$0x3] }
 0x622   : > { %5072 = vrot.lane.b32.xlu1 %v4419_v58, %s17699_s16  ;;  %8253 = vmatmul.mubr.msk.f32.gmra.mrb[92].mxu0 %vm5478_vm5, %v5452_v17  ;;  %v8454_v17 = vpack.c.bf16 %v6989_v7, %v6988_v49  ;;  %v4431_v7 = vrot.slane %v4203_v15, 1 }
 0x623   : > { %v4859_v10 = vpop.permute.xlu0 %4858 }
 0x624   : > { %v4765_v0 = vpop.permute.xlu1 %4764  ;;  %8455 = vmatprep.subr.bf16.mxu0 %v8454_v17 }
 0x625   : > { %4786 = vrot.lane.b32.xlu0 %v4417_v2, %s9807_s29  ;;  %v18744_v2 = vld [vmem:[#allocation82_spill] sm:$0xff]  ;;  %8457 = vmatpush3.bf16.msra.mxu0 %v8454_v17 }
 0x626   : > { %5168 = vrot.lane.b32.xlu1 %v4424_v32, %s18602_s19  ;;  %v5290_v29 = vsel %vm5271_vm10, %v5257_v41, %v18744_v2  ;;  %v4433_v41 = vrot.slane %v4201_v24, 2  ;;  %v4430_v2 = vsel %vm785_vm2, %v4428_v53, %v4429_v1  ;;  %v18748_v53 = vld [vmem:[#allocation105_spill] sm:$0xff] }
 0x627   : > { %v4955_v25 = vpop.permute.xlu0 %4954 }
 0x628   : > { %v4861_v27 = vpop.permute.xlu1 %4860 }
 0x629   : > { %4882 = vrot.lane.b32.xlu0 %v4422_v39, %s9819_s18  ;;  %v5322_v39 = vsel %vm1806_vm8, %v5290_v29, %v4763_v5  ;;  %v6990_v5 = vld [vmem:[%s17340_s8 + $0x110] sm:$0xff]  ;;  %v6991_v29 = vld [vmem:[%s17340_s8 + $0x118] sm:$0xff] }
 0x62a   : > { %4788 = vrot.lane.b32.xlu1 %v4419_v58, %s9807_s29  ;;  %v9663_v58 = vld [vmem:[#allocation3 + $0xe0] sm:$0xff]  ;;  %v5355_v44 = vsel %vm5336_vm12, %v5322_v39, %v4859_v10  ;;  %s18746_s29 = smov 18   ;;  %v18747_v10 = vld [vmem:[#allocation46_spill] sm:$0xff] }
 0x62b   : > { %v5051_v52 = vpop.permute.xlu0 %5050  ;;  %v5225_v46 = vsel %vm506_vm14, %v9663_v58, %v18745_v31  ;;  %v5388_v59 = vsel %vm5369_vm13, %v5355_v44, %v4955_v25 }
 0x62c   : > { %v4957_v63 = vpop.permute.xlu1 %4956  ;;  %v5258_v49 = vsel %vm5238_vm9, %v5225_v46, %v18747_v10  ;;  %v5421_v25 = vsel %vm5402_vm15, %v5388_v59, %v5051_v52  ;;  %v4435_v52 = vsel %vm866_vm3, %v4433_v41, %v4434_v11 }
 0x62d   : > { %4978 = vrot.lane.b32.xlu0 %v4201_v24, %s18746_s29  ;;  %v5291_v39 = vsel %vm5271_vm10, %v5258_v49, %v18748_v53  ;;  %v6959_v49 = vld [vmem:[%s17340_s8 + $0x18] sm:$0xff] }
 0x62e   : > { %4884 = vrot.lane.b32.xlu1 %v4424_v32, %s9819_s18  ;;  %v8458_v32 = vpack.c.bf16 %v6991_v29, %v6990_v5  ;;  %v5323_v44 = vsel %vm1806_vm8, %v5291_v39, %v4765_v0  ;;  %s18749_s18 = smov 21   ;;  %v4432_v5 = vsel %vm785_vm2, %v4429_v1, %v4431_v7  ;;  %v4436_v29 = vrot.slane %v4203_v15, 2  ;;  %v6956_v0 = vld [vmem:[%s17340_s8] sm:$0xff]  ;;  %v6958_v15 = vld [vmem:[%s17340_s8 + $0x10] sm:$0xff]  ;;  %v18751_v39 = vld [vmem:[#allocation157_spill] sm:$0xff] }
 0x62f   : > { %v5147_v24 = vpop.permute.xlu0 %5146  ;;  %v5356_v46 = vsel %vm5336_vm12, %v5323_v44, %v4861_v27  ;;  %v6957_v27 = vld [vmem:[%s17340_s8 + $0x8] sm:$0xff]  ;;  %v8410_v7 = vpack.c.bf16 %v6959_v49, %v6958_v15 }
 0x630   : > { %v5453_v58 = vsel %vm1905_vm11, %v5421_v25, %v5147_v24  ;;  %v5053_v31 = vpop.permute.xlu1 %5052  ;;  %8459 = vmatprep.subr.bf16.mxu0 %v8458_v32  ;;  %v5389_v17 = vsel %vm5369_vm13, %v5356_v46, %v4957_v63  ;;  %v8407_v41 = vpack.c.bf16 %v6957_v27, %v6956_v0  ;;  %v4437_v63 = vsel %vm866_vm3, %v4434_v11, %v4436_v29  ;;  %v9664_v11 = vld [vmem:[#allocation3 + $0xf0] sm:$0xff]  ;;  %v18753_v46 = vld [vmem:[#allocation180_spill] sm:$0xff]  ;;  %v6961_v29 = vld [vmem:[%s17340_s8 + $0x28] sm:$0xff] }
 0x631   : > { %5074 = vrot.lane.b32.xlu0 %v4430_v2, %s18749_s18  ;;  %8255 = vmatprep.mubr.msk.f32.mxu0 %vm5478_vm5, %v5453_v58  ;;  %v18750_v24 = vmov 0.0|0.0   ;;  %v5226_v58 = vsel %vm506_vm14, %v9664_v11, %v18751_v39  ;;  %v6962_v0 = vld [vmem:[%s17340_s8 + $0x30] sm:$0xff]  ;;  %v18754_v15 = vld [vmem:[#allocation127_spill] sm:$0xff]  ;;  %v18755_v39 = vld [vmem:[#allocation141_spill] sm:$0xff] }
 0x632   : > { %4980 = vrot.lane.b32.xlu1 %v4202_v38, %s18746_s29  ;;  %8461 = vmatpush3.bf16.msra.mxu0 %v8458_v32  ;;  %v5422_v38 = vsel %vm5402_vm15, %v5389_v17, %v5053_v31  ;;  %v18752_v31 = vld [vmem:[#allocation91_spill] sm:$0xff]  ;;  %s18774_s29 = smov 64  }
 0x633   : > { %v4767_v59 = vpop.permute.xlu0 %4766  ;;  %8408 = vmatpush1.bf16.msra.mxu1 %v8407_v41  ;;  %v5259_v44 = vsel %vm5238_vm9, %v5226_v58, %v18752_v31  ;;  %v6963_v41 = vld [vmem:[%s17340_s8 + $0x38] sm:$0xff] }
 0x634   : > { %v5149_v2 = vpop.permute.xlu1 %5148  ;;  %8409 = vmatprep.subr.bf16.mxu1 %v18750_v24  ;;  %v8416_v11 = vpack.c.bf16 %v6963_v41, %v6962_v0  ;;  %v6966_v41 = vld [vmem:[%s17340_s8 + $0x50] sm:$0xff] }
 0x635   : > { %v5454_v10 = vsel %vm1905_vm11, %v5422_v38, %v5149_v2  ;;  %5170 = vrot.lane.b32.xlu0 %v4435_v52, %s18602_s19  ;;  %v5292_v52 = vsel %vm5271_vm10, %v5259_v44, %v18753_v46  ;;  %v6965_v44 = vld [vmem:[%s17340_s8 + $0x48] sm:$0xff]  ;;  %v18756_v46 = vld [vmem:[#allocation14_spill] sm:$0xff] }
 0x636   : > { %5076 = vrot.lane.b32.xlu1 %v4432_v5, %s18749_s18  ;;  %8256 = vmatmul.mubr.msk.f32.gmra.mrb[94].mxu0 %vm5478_vm5, %v5454_v10  ;;  %v6960_v5 = vld [vmem:[%s17340_s8 + $0x20] sm:$0xff]  ;;  %v5324_v27 = vsel %vm1806_vm8, %v5292_v52, %v4767_v59  ;;  %s16862_s18 = scalar_lea.vmem [#allocation7], %s14954_s17 }
 0x637   : > { %v4863_v1 = vpop.permute.xlu0 %4862  ;;  %8411 = vmatpush1.bf16.msra.mxu1 %v8410_v7  ;;  %v8413_v2 = vpack.c.bf16 %v6961_v29, %v6960_v5 }
 0x638   : > { %v4769_v25 = vpop.permute.xlu1 %4768  ;;  %8412 = vmatprep.subr.bf16.mxu1 %v18750_v24  ;;  %v5357_v10 = vsel %vm5336_vm12, %v5324_v27, %v4863_v1  ;;  %v6964_v1 = vld [vmem:[%s17340_s8 + $0x40] sm:$0xff] }
 0x639   : > { %v8419_v0 = vpack.c.bf16 %v6965_v44, %v6964_v1  ;;  %v18758_v44 = vld [vmem:[#allocation39_spill] sm:$0xff] }
 0x63a   : > { %5172 = vrot.lane.b32.xlu1 %v4437_v63, %s18602_s19  ;;  %v9665_v63 = vld [vmem:[#allocation3 + $0xf8] sm:$0xff]  ;;  %s16872_s19 = scalar_lea.vmem [#allocation9], %s14954_s17  ;;  %s17104_s17 = sshll.u32 %s9913_s25, 12 }
 0x63b   : > { %v4959_v32 = vpop.permute.xlu0 %4958  ;;  %v5227_v49 = vsel %vm506_vm14, %v9665_v63, %v18754_v15  ;;  %8414 = vmatpush1.bf16.msra.mxu1 %v8413_v2  ;;  %s17110_s16 = scalar_lea.hbm %s17342_s10, %s17104_s17 }
 0x63c   : > { %v4865_v53 = vpop.permute.xlu1 %4864  ;;  %v5390_v7 = vsel %vm5369_vm13, %v5357_v10, %v4959_v32  ;;  %v5260_v58 = vsel %vm5238_vm9, %v5227_v49, %v18755_v39  ;;  %8415 = vmatprep.subr.bf16.mxu1 %v18750_v24  ;;  %v6967_v10 = vld [vmem:[%s17340_s8 + $0x58] sm:$0xff]  ;;  %v6968_v49 = vld [vmem:[%s17340_s8 + $0x60] sm:$0xff] }
 0x63d   : > { %v5293_v32 = vsel %vm5271_vm10, %v5260_v58, %v18756_v46 }
 0x63e   : > { %v5325_v29 = vsel %vm1806_vm8, %v5293_v32, %v4769_v25  ;;  %v18759_v32 = vld [vmem:[#allocation97_spill] sm:$0xff] }
 0x63f   : > { %v5055_v17 = vpop.permute.xlu0 %5054  ;;  %8417 = vmatpush1.bf16.msra.mxu1 %v8416_v11 }
 0x640   : > { %v4961_v38 = vpop.permute.xlu1 %4960  ;;  %v5423_v59 = vsel %vm5402_vm15, %v5390_v7, %v5055_v17  ;;  %v5358_v17 = vsel %vm5336_vm12, %v5325_v29, %v4865_v53  ;;  %8418 = vmatprep.subr.bf16.mxu1 %v18750_v24  ;;  %v6969_v7 = vld [vmem:[%s17340_s8 + $0x68] sm:$0xff]  ;;  %v6970_v29 = vld [vmem:[%s17340_s8 + $0x70] sm:$0xff] }
 0x641   : > { %v5391_v27 = vsel %vm5369_vm13, %v5358_v17, %v4961_v38  ;;  %v8422_v38 = vpack.c.bf16 %v6967_v10, %v6966_v41  ;;  %v8425_v39 = vpack.c.bf16 %v6969_v7, %v6968_v49  ;;  %v6971_v17 = vld [vmem:[%s17340_s8 + $0x78] sm:$0xff]  ;;  %v6973_v10 = vld [vmem:[%s17340_s8 + $0x88] sm:$0xff]  ;;  %v15739_v49 = vld [vmem:[%s17339_s7] ss:$0 sm:$0xff] }
 0x642   : > { %v8428_v41 = vpack.c.bf16 %v6971_v17, %v6970_v29  ;;  %v18761_v7 = vld [vmem:[#allocation103_spill] sm:$0xff] }
 0x643   : > { %v5151_v31 = vpop.permute.xlu0 %5150  ;;  %8420 = vmatpush1.bf16.msra.mxu1 %v8419_v0 }
 0x644   : > { %v5455_v52 = vsel %vm1905_vm11, %v5423_v59, %v5151_v31  ;;  %v5057_v5 = vpop.permute.xlu1 %5056  ;;  %8421 = vmatprep.subr.bf16.mxu1 %v18750_v24  ;;  %v18757_v31 = vld [vmem:[#allocation63_spill] sm:$0xff] }
 0x645   : > { %8258 = vmatprep.mubr.msk.f32.mxu0 %vm5478_vm5, %v5455_v52  ;;  %v5424_v25 = vsel %vm5402_vm15, %v5391_v27, %v5057_v5  ;;  %v5228_v1 = vsel %vm506_vm14, %v15265_v8, %v18757_v31  ;;  %v6972_v8 = vld [vmem:[%s17340_s8 + $0x80] sm:$0xff] }
 0x646   : > { %v5261_v46 = vsel %vm5238_vm9, %v5228_v1, %v18758_v44 }
 0x647   : > { %v4771_v2 = vpop.permute.xlu0 %4770  ;;  %8423 = vmatpush1.bf16.msra.mxu1 %v8422_v38  ;;  %v5294_v52 = vsel %vm5271_vm10, %v5261_v46, %v18759_v32 }
 0x648   : > { %v5153_v63 = vpop.permute.xlu1 %5152  ;;  %8424 = vmatprep.subr.bf16.mxu1 %v18750_v24  ;;  %v5326_v0 = vsel %vm1806_vm8, %v5294_v52, %v4771_v2  ;;  %v8431_v2 = vpack.c.bf16 %v6973_v10, %v6972_v8 }
 0x649   : > { %v5456_v53 = vsel %vm1905_vm11, %v5424_v25, %v5153_v63  ;;  %v18760_v63 = vld [vmem:[#allocation134_spill] sm:$0xff] }
 0x64a   : > { %8259 = vmatmul.mubr.msk.f32.gmra.mrb[96].mxu0 %vm5478_vm5, %v5456_v53  ;;  %v5229_v53 = vsel %vm506_vm14, %v15295_v22, %v18760_v63  ;;  %v6974_v22 = vld [vmem:[%s17340_s8 + $0x90] sm:$0xff] }
 0x64b   : > { %v4867_v15 = vpop.permute.xlu0 %4866  ;;  %8426 = vmatpush1.bf16.msra.mxu1 %v8425_v39  ;;  %v5262_v39 = vsel %vm5238_vm9, %v5229_v53, %v18761_v7  ;;  %v6977_v53 = vld [vmem:[%s17340_s8 + $0xa8] sm:$0xff] }
 0x64c   : > { %v4773_v11 = vpop.permute.xlu1 %4772  ;;  %8427 = vmatprep.subr.bf16.mxu1 %v18750_v24  ;;  %v5359_v25 = vsel %vm5336_vm12, %v5326_v0, %v4867_v15  ;;  %v6975_v15 = vld [vmem:[%s17340_s8 + $0x98] sm:$0xff] }
 0x64f   : > { %v4963_v58 = vpop.permute.xlu0 %4962  ;;  %8429 = vmatpush1.bf16.msra.mxu1 %v8428_v41  ;;  %v8434_v41 = vpack.c.bf16 %v6975_v15, %v6974_v22  ;;  %v6978_v15 = vld [vmem:[%s17340_s8 + $0xb0] sm:$0xff] }
 0x650   : > { %v4869_v59 = vpop.permute.xlu1 %4868  ;;  %v5392_v38 = vsel %vm5369_vm13, %v5359_v25, %v4963_v58  ;;  %8430 = vmatprep.subr.bf16.mxu1 %v18750_v24  ;;  %v18762_v58 = vld [vmem:[#allocation172_spill] sm:$0xff] }
 0x651   : > { %v5295_v44 = vsel %vm5271_vm10, %v5262_v39, %v18762_v58  ;;  %v6979_v58 = vld [vmem:[%s17340_s8 + $0xb8] sm:$0xff] }
 0x653   : > { %v5059_v5 = vpop.permute.xlu0 %5058  ;;  %8432 = vmatpush1.bf16.msra.mxu1 %v8431_v2 }
 0x654   : > { %v4965_v27 = vpop.permute.xlu1 %4964  ;;  %v5425_v31 = vsel %vm5402_vm15, %v5392_v38, %v5059_v5  ;;  %v5327_v5 = vsel %vm1806_vm8, %v5295_v44, %v4773_v11  ;;  %8433 = vmatprep.subr.bf16.mxu1 %v18750_v24  ;;  %v6976_v11 = vld [vmem:[%s17340_s8 + $0xa0] sm:$0xff] }
 0x655   : > { %v5360_v8 = vsel %vm5336_vm12, %v5327_v5, %v4869_v59  ;;  %v8437_v2 = vpack.c.bf16 %v6977_v53, %v6976_v11 }
 0x656   : > { %v5393_v10 = vsel %vm5369_vm13, %v5360_v8, %v4965_v27 }
 0x657   : > { %v5155_v1 = vpop.permute.xlu0 %5154  ;;  %8435 = vmatpush1.bf16.msra.mxu1 %v8434_v41  ;;  %v18764_v41 = vld [vmem:[#allocation166_spill] sm:$0xff] }
 0x658   : > { %v5457_v46 = vsel %vm1905_vm11, %v5425_v31, %v5155_v1  ;;  %v5061_v32 = vpop.permute.xlu1 %5060  ;;  %v8230_v52 = vpop.f32.mrb[76].mxu0  ;;  %v15772_v31 = vld [vmem:[#allocation4] sm:$0xff]  ;;  %v15774_v1 = vld [vmem:[#allocation4 + $0x8] sm:$0xff]  ;;  %8436 = vmatprep.subr.bf16.mxu1 %v18750_v24 }
 0x659   : > { %v5651_v29 = vadd.f32 %v8230_v52, %v15739_v49  ;;  %v5645_v17 = vpop.f32.mrb[77].mxu0  ;;  %8261 = vmatprep.mubr.msk.f32.mxu0 %vm5478_vm5, %v5457_v46  ;;  %v5426_v59 = vsel %vm5402_vm15, %v5393_v10, %v5061_v32  ;;  %v5970_v44 = vrot.slane %v15772_v31, 1  ;;  %v17705_v46 = vrot.slane %v15774_v1, 1 }
 0x65a   : > { %v5646_v0 = vadd.f32 %v15739_v49, %v5645_v17  ;;  %v8440_v32 = vpack.c.bf16 %v6979_v58, %v6978_v15 }
 0x65b   : > { %v5805_v25 = vmax.f32 %v5651_v29, 0.0  ;;  %v4775_v63 = vpop.permute.xlu0 %4774  ;;  %8438 = vmatpush1.bf16.msra.mxu1 %v8437_v2  ;;  %v18763_v29 = vld [vmem:[#allocation110_spill] sm:$0xff] }
 0x65c   : > { %v5804_v38 = vmax.f32 %v5646_v0, 0.0  ;;  %v5157_v7 = vpop.permute.xlu1 %5156  ;;  %8439 = vmatprep.subr.bf16.mxu1 %v18750_v24  ;;  %v5230_v17 = vsel %vm506_vm14, %v15348_v57, %v18763_v29 }
 0x65d   : > { %5837 = vst.msk [vmem:[#allocation4 + $0x21] sm:$0xff] %vm562_vm4, %v5805_v25  ;;  %v5458_v27 = vsel %vm1905_vm11, %v5426_v59, %v5157_v7  ;;  %v5263_v10 = vsel %vm5238_vm9, %v5230_v17, %v18764_v41  ;;  %v5972_v25 = vsel %vm785_vm2, %v5970_v44, %v17705_v46  ;;  %v18765_v59 = vld [vmem:[#allocation79_spill] sm:$0xff]  ;;  %v6980_v7 = vld [vmem:[%s17340_s8 + $0xc0] sm:$0xff]  ;;  %v6982_v17 = vld [vmem:[%s17340_s8 + $0xd0] sm:$0xff] }
 0x65e   : > { %5836 = vst.msk [vmem:[#allocation4 + $0x19] sm:$0xff] %vm562_vm4, %v5804_v38  ;;  %8262 = vmatmul.mubr.msk.f32.gmra.mrb[98].mxu0 %vm5478_vm5, %v5458_v27  ;;  %v5296_v38 = vsel %vm5271_vm10, %v5263_v10, %v18765_v59  ;;  %v6981_v27 = vld [vmem:[%s17340_s8 + $0xc8] sm:$0xff]  ;;  %v6983_v41 = vld [vmem:[%s17340_s8 + $0xd8] sm:$0xff] }
 0x65f   : > { %v4871_v39 = vpop.permute.xlu0 %4870  ;;  %8441 = vmatpush1.bf16.msra.mxu1 %v8440_v32  ;;  %v5328_v2 = vsel %vm1806_vm8, %v5296_v38, %v4775_v63  ;;  %v18766_v63 = vld [vmem:[#allocation142_spill] sm:$0xff]  ;;  %v8443_v38 = vpack.c.bf16 %v6981_v27, %v6980_v7 }
 0x660   : > { %v4777_v22 = vpop.permute.xlu1 %4776  ;;  %8442 = vmatprep.subr.bf16.mxu1 %v18750_v24  ;;  %v5361_v44 = vsel %vm5336_vm12, %v5328_v2, %v4871_v39  ;;  %v5231_v10 = vsel %vm506_vm14, %v15375_v33, %v18766_v63  ;;  %v18767_v2 = vld [vmem:[#allocation119_spill] sm:$0xff] }
 0x663   : > { %v4967_v52 = vpop.permute.xlu0 %4966  ;;  %8444 = vmatpush1.bf16.msra.mxu1 %v8443_v38 }
 0x664   : > { %v4873_v5 = vpop.permute.xlu1 %4872  ;;  %8445 = vmatprep.subr.bf16.mxu1 %v18750_v24 }
 0x665   : > { %v15789_v8 = vld [vmem:[#allocation4 + $0x18] sm:$0xff]  ;;  %v15791_v0 = vld [vmem:[#allocation4 + $0x20] sm:$0xff] }
 0x666   : > { %v6055_v11 = vrot.slane %v15789_v8, 2  ;;  %v17704_v53 = vrot.slane %v15791_v0, 2 }
 0x667   : > { %v5063_v57 = vpop.permute.xlu0 %5062 }
 0x668   : > { %v4969_v15 = vpop.permute.xlu1 %4968  ;;  %v15813_v58 = vsel %vm866_vm3, %v6055_v11, %v17704_v53  ;;  %v5394_v11 = vsel %vm5369_vm13, %v5361_v44, %v4967_v52 }
 0x669   : > { %v8233_v32 = vpop.f32.mrb[78].mxu0  ;;  %v9043_v29 = vpack.i.bf16 %v5972_v25, %v15813_v58  ;;  %v5264_v25 = vsel %vm5238_vm9, %v5231_v10, %v18767_v2  ;;  %v5427_v53 = vsel %vm5402_vm15, %v5394_v11, %v5063_v57  ;;  %v15853_v10 = vld [vmem:[#allocation4 + $0x28] sm:$0x3]  ;;  %v6987_v11 = vld [vmem:[%s17340_s8 + $0xf8] sm:$0xff] }
 0x66a   : > { %v5661_v59 = vadd.f32 %v8233_v32, %v15739_v49  ;;  %v5655_v39 = vpop.f32.mrb[79].mxu0  ;;  %v5297_v9 = vsel %vm5271_vm10, %v5264_v25, %v18769_v62  ;;  %v8446_v32 = vpack.c.bf16 %v6983_v41, %v6982_v17  ;;  %v6984_v62 = vld [vmem:[%s17340_s8 + $0xe0] sm:$0xff]  ;;  %v5870_v17 = vld [vmem:[#allocation4 + $0x10] sm:$0x3]  ;;  %v6058_v25 = vrot.slane %v15853_v10, 2 }
 0x66b   : > { %v5656_v46 = vadd.f32 %v15739_v49, %v5655_v39  ;;  %v5159_v36 = vpop.permute.xlu0 %5158  ;;  %9044 = vrot.lane.b32.xlu0 %v9043_v29, %s18768_s15  ;;  %v5329_v7 = vsel %vm1806_vm8, %v5297_v9, %v4777_v22  ;;  %v6051_v29 = vrot.slane %v15774_v1, 2  ;;  %v5973_v2 = vrot.slane %v5870_v17, 1 }
 0x66c   : > { %v5807_v33 = vmax.f32 %v5661_v59, 0.0  ;;  %v5459_v52 = vsel %vm1905_vm11, %v5427_v53, %v5159_v36  ;;  %v5065_v44 = vpop.permute.xlu1 %5064  ;;  %v5362_v57 = vsel %vm5336_vm12, %v5329_v7, %v4873_v5  ;;  %v6985_v36 = vld [vmem:[%s17340_s8 + $0xe8] sm:$0xff]  ;;  %v6050_v5 = vrot.slane %v15772_v31, 2  ;;  %8447 = vmatpush1.bf16.msra.mxu1 %v8446_v32 }
 0x66d   : > { %v5806_v27 = vmax.f32 %v5656_v46, 0.0  ;;  %8264 = vmatprep.mubr.msk.f32.mxu0 %vm5478_vm5, %v5459_v52  ;;  %v5395_v53 = vsel %vm5369_vm13, %v5362_v57, %v4969_v15  ;;  %v8449_v41 = vpack.c.bf16 %v6985_v36, %v6984_v62  ;;  %8448 = vmatprep.subr.bf16.mxu1 %v18750_v24  ;;  %v6986_v15 = vld [vmem:[%s17340_s8 + $0xf0] sm:$0xff]  ;;  %v6053_v36 = vrot.slane %v5870_v17, 2 }
 0x66e   : > { %5839 = vst.msk [vmem:[#allocation4 + $0x39] sm:$0xff] %vm562_vm4, %v5807_v33  ;;  %v5428_v22 = vsel %vm5402_vm15, %v5395_v53, %v5065_v44  ;;  %v6052_v38 = vsel %vm866_vm3, %v6050_v5, %v6051_v29  ;;  %v8452_v33 = vpack.c.bf16 %v6987_v11, %v6986_v15  ;;  %v18770_v53 = vld [vmem:[#allocation92_spill] sm:$0xff]  ;;  %v18771_v5 = vrot.slane %v15774_v1, 1 }
 0x66f   : > { %5838 = vst.msk [vmem:[#allocation4 + $0x31] sm:$0xff] %vm562_vm4, %v5806_v27  ;;  %v4779_v9 = vpop.permute.xlu0 %4778  ;;  %v18773_v11 = vld [vmem:[#allocation144_spill] sm:$0xff] }
 0x670   : > { %v5161_v46 = vpop.permute.xlu1 %5160  ;;  %8450 = vmatpush1.bf16.msra.mxu1 %v8449_v41  ;;  %v18772_v41 = vrot.slane %v15791_v0, 2 }
 0x671   : > { %v5460_v63 = vsel %vm1905_vm11, %v5428_v22, %v5161_v46  ;;  %8451 = vmatprep.subr.bf16.mxu1 %v18750_v24  ;;  %v5232_v22 = vsel %vm506_vm14, %v15416_v55, %v18770_v53  ;;  %v5974_v24 = vsel %vm785_vm2, %v18771_v5, %v5973_v2 }
 0x672   : > { %8265 = vmatmul.mubr.msk.f32.gmra.mrb[100].mxu0 %vm5478_vm5, %v5460_v63  ;;  %v15884_v63 = vsel %vm866_vm3, %v18772_v41, %v6058_v25  ;;  %v5265_v17 = vsel %vm5238_vm9, %v5232_v22, %v18773_v11  ;;  %v6054_v41 = vsel %vm866_vm3, %v6051_v29, %v6053_v36  ;;  %v5975_v29 = vrot.slane %v15789_v8, 1 }
 0x673   : > { %v4875_v59 = vpop.permute.xlu0 %4874  ;;  %v9058_v25 = vpack.i.bf16 %v5974_v24, %v15884_v63  ;;  %v5976_v36 = vrot.slane %v15791_v0, 1 }
 0x674   : > { %v4781_v39 = vpop.permute.xlu1 %4780  ;;  %8453 = vmatpush1.bf16.msra.mxu1 %v8452_v33 }
 0x675   : > { %v15865_v52 = vld [vmem:[#allocation4 + $0x40] sm:$0x3] }
 0x676   : > { %v15868_v44 = vld [vmem:[#allocation4 + $0x30] sm:$0xff]  ;;  %v15870_v32 = vld [vmem:[#allocation4 + $0x38] sm:$0xff]  ;;  %v5983_v15 = vrot.slane %v15865_v52, 1 }
 0x677   : > { %v4971_v7 = vpop.permute.xlu0 %4970  ;;  %v9048_v27 = vpack.i.bf16 %v6052_v38, %v15868_v44  ;;  %v5980_v57 = vrot.slane %v15868_v44, 1  ;;  %v5981_v62 = vrot.slane %v15870_v32, 1  ;;  %v18775_v38 = vld [vmem:[#allocation42_spill] sm:$0xff]  ;;  %v6060_v33 = vrot.slane %v15868_v44, 2 }
 0x678   : > { %v4877_v46 = vpop.permute.xlu1 %4876  ;;  %v5298_v53 = vsel %vm5271_vm10, %v5265_v17, %v18775_v38  ;;  %v6061_v22 = vrot.slane %v15870_v32, 2  ;;  %v18777_v17 = vld [vmem:[#allocation25_spill] sm:$0xff]  ;;  %v9063_v3 = vpack.i.bf16 %v6054_v41, %v15870_v32 }
 0x679   : > { %9049 = vrot.lane.b32.xlu1 %v9048_v27, %s18774_s29  ;;  %v15891_v55 = vsel %vm785_vm2, %v5980_v57, %v5981_v62  ;;  %v5330_v27 = vsel %vm1806_vm8, %v5298_v53, %v4779_v9  ;;  %v15904_v57 = vsel %vm785_vm2, %v5981_v62, %v5983_v15  ;;  %v5233_v38 = vsel %vm506_vm14, %v15436_v43, %v18777_v17  ;;  %v18778_v9 = vld [vmem:[#allocation102_spill] sm:$0xff] }
 0x67a   : > { %v9053_v2 = vpack.i.bf16 %v15789_v8, %v15891_v55  ;;  %v5363_v24 = vsel %vm5336_vm12, %v5330_v27, %v4875_v59  ;;  %v5266_v53 = vsel %vm5238_vm9, %v5233_v38, %v18778_v9  ;;  %v15923_v17 = vsel %vm866_vm3, %v6060_v33, %v6061_v22 }
 0x67b   : > { %v5067_v5 = vpop.permute.xlu0 %5066  ;;  %v5299_v38 = vsel %vm5271_vm10, %v5266_v53, %v18779_v47  ;;  %v15933_v9 = vsel %vm785_vm2, %v5975_v29, %v5976_v36 }
 0x67c   : > { %v4973_v11 = vpop.permute.xlu1 %4972  ;;  %9054 = vrot.lane.b32.xlu0 %v9053_v2, %s18776_s28  ;;  %v5396_v2 = vsel %vm5369_vm13, %v5363_v24, %v4971_v7  ;;  %v9073_v47 = vpack.i.bf16 %v15933_v9, %v15923_v17 }
 0x67d   : > { %v8236_v34 = vpop.f32.mrb[80].mxu0  ;;  %9059 = vrot.lane.b32.xlu1 %v9058_v25, %s18768_s15  ;;  %v5429_v43 = vsel %vm5402_vm15, %v5396_v2, %v5067_v5  ;;  %v9068_v25 = vpack.i.bf16 %v15791_v0, %v15904_v57  ;;  %v5331_v5 = vsel %vm1806_vm8, %v5299_v38, %v4781_v39 }
 0x67e   : > { %v5671_v62 = vadd.f32 %v8236_v34, %v15739_v49  ;;  %v5665_v15 = vpop.f32.mrb[81].mxu0  ;;  %v5364_v33 = vsel %vm5336_vm12, %v5331_v5, %v4877_v46 }
 0x67f   : > { %v5666_v59 = vadd.f32 %v15739_v49, %v5665_v15  ;;  %v5163_v27 = vpop.permute.xlu0 %5162  ;;  %v5397_v53 = vsel %vm5369_vm13, %v5364_v33, %v4973_v11  ;;  %v6063_v15 = vrot.slane %v15865_v52, 2 }
 0x680   : > { %v5809_v7 = vmax.f32 %v5671_v62, 0.0  ;;  %v5461_v34 = vsel %vm1905_vm11, %v5429_v43, %v5163_v27  ;;  %v5069_v24 = vpop.permute.xlu1 %5068  ;;  %9064 = vrot.lane.b32.xlu0 %v9063_v3, %s18774_s29  ;;  %v5978_v27 = vrot.slane %v15853_v10, 1 }
 0x681   : > { %v5808_v41 = vmax.f32 %v5666_v59, 0.0  ;;  %9069 = vrot.lane.b32.xlu1 %v9068_v25, %s18776_s28  ;;  %8267 = vmatprep.mubr.msk.f32.mxu0 %vm5478_vm5, %v5461_v34  ;;  %v5430_v39 = vsel %vm5402_vm15, %v5397_v53, %v5069_v24  ;;  %v15958_v5 = vsel %vm866_vm3, %v6061_v22, %v6063_v15 }
 0x682   : > { %5841 = vst.msk [vmem:[#allocation4 + $0x51] sm:$0xff] %vm562_vm4, %v5809_v7  ;;  %v15973_v22 = vsel %vm785_vm2, %v5976_v36, %v5978_v27  ;;  %v18783_v36 = vld [vmem:[#allocation62_spill] sm:$0xff] }
 0x683   : > { %5840 = vst.msk [vmem:[#allocation4 + $0x49] sm:$0xff] %vm562_vm4, %v5808_v41  ;;  %v4783_v3 = vpop.permute.xlu0 %4782  ;;  %v18780_v41 = vld [vmem:[#allocation89_spill] sm:$0xff]  ;;  %v5235_v27 = vsel %vm506_vm14, %v15484_v18, %v18783_v36 }
 0x684   : > { %v5165_v2 = vpop.permute.xlu1 %5164  ;;  %9074 = vrot.lane.b32.xlu0 %v9073_v47, %s18768_s15  ;;  %v5234_v33 = vsel %vm506_vm14, %v15464_v30, %v18780_v41  ;;  %v9088_v30 = vpack.i.bf16 %v15973_v22, %v15958_v5 }
 0x685   : > { %v5462_v29 = vsel %vm1905_vm11, %v5430_v39, %v5165_v2  ;;  %v18782_v39 = vld [vmem:[#allocation22_spill] sm:$0xff] }
 0x686   : > { %8268 = vmatmul.mubr.msk.f32.gmra.mrb[102].mxu0 %vm5478_vm5, %v5462_v29 }
 0x687   : > { %v4879_v46 = vpop.permute.xlu0 %4878 }
 0x688   : > { %v4785_v62 = vpop.permute.xlu1 %4784 }
 0x689   : > { %v15946_v43 = vld [vmem:[#allocation4 + $0x58] sm:$0x3] }
 0x68a   : > { %v15948_v59 = vld [vmem:[#allocation4 + $0x48] sm:$0xff]  ;;  %v15950_v11 = vld [vmem:[#allocation4 + $0x50] sm:$0xff]  ;;  %v5988_v52 = vrot.slane %v15946_v43, 1 }
 0x68b   : > { %v4975_v25 = vpop.permute.xlu0 %4974  ;;  %v9078_v38 = vpack.i.bf16 %v15813_v58, %v15948_v59  ;;  %v5985_v7 = vrot.slane %v15948_v59, 1  ;;  %v5986_v34 = vrot.slane %v15950_v11, 1  ;;  %v18781_v58 = vld [vmem:[#allocation173_spill] sm:$0xff]  ;;  %v6065_v15 = vrot.slane %v15948_v59, 2 }
 0x68c   : > { %v4881_v24 = vpop.permute.xlu1 %4880  ;;  %v5267_v47 = vsel %vm5238_vm9, %v5234_v33, %v18781_v58 }
 0x68d   : > { %9079 = vrot.lane.b32.xlu1 %v9078_v38, %s18774_s29  ;;  %v15966_v10 = vsel %vm785_vm2, %v5985_v7, %v5986_v34  ;;  %v5300_v2 = vsel %vm5271_vm10, %v5267_v47, %v18782_v39  ;;  %v6066_v38 = vrot.slane %v15950_v11, 2  ;;  %v15984_v33 = vsel %vm785_vm2, %v5986_v34, %v5988_v52  ;;  %v18784_v39 = vld [vmem:[#allocation122_spill] sm:$0xff] }
 0x68e   : > { %v9083_v53 = vpack.i.bf16 %v15868_v44, %v15966_v10  ;;  %v5332_v7 = vsel %vm1806_vm8, %v5300_v2, %v4783_v3  ;;  %v5268_v13 = vsel %vm5238_vm9, %v5235_v27, %v18784_v39  ;;  %v9093_v34 = vpack.i.bf16 %v15884_v63, %v15950_v11 }
 0x68f   : > { %v5071_v29 = vpop.permute.xlu0 %5070  ;;  %v5365_v58 = vsel %vm5336_vm12, %v5332_v7, %v4879_v46  ;;  %v9098_v46 = vpack.i.bf16 %v15870_v32, %v15984_v33  ;;  %v18785_v7 = vld [vmem:[#allocation35_spill] sm:$0xff] }
 0x690   : > { %v4977_v41 = vpop.permute.xlu1 %4976  ;;  %9084 = vrot.lane.b32.xlu0 %v9083_v53, %s18776_s28  ;;  %v5398_v3 = vsel %vm5369_vm13, %v5365_v58, %v4975_v25  ;;  %v5301_v25 = vsel %vm5271_vm10, %v5268_v13, %v18785_v7 }
 0x691   : > { %v8239_v47 = vpop.f32.mrb[82].mxu0  ;;  %9089 = vrot.lane.b32.xlu1 %v9088_v30, %s18768_s15  ;;  %v5431_v52 = vsel %vm5402_vm15, %v5398_v3, %v5071_v29  ;;  %v16002_v30 = vsel %vm866_vm3, %v6065_v15, %v6066_v38  ;;  %v5333_v63 = vsel %vm1806_vm8, %v5301_v25, %v4785_v62 }
 0x692   : > { %v5681_v2 = vadd.f32 %v8239_v47, %v15739_v49  ;;  %v5675_v53 = vpop.f32.mrb[83].mxu0  ;;  %v5366_v39 = vsel %vm5336_vm12, %v5333_v63, %v4881_v24  ;;  %v9103_v13 = vpack.i.bf16 %v15891_v55, %v16002_v30  ;;  %v18786_v63 = vld [vmem:[#allocation121_spill] sm:$0xff] }
 0x693   : > { %v5676_v18 = vadd.f32 %v15739_v49, %v5675_v53  ;;  %v5167_v36 = vpop.permute.xlu0 %5166  ;;  %v5399_v15 = vsel %vm5369_vm13, %v5366_v39, %v4977_v41 }
 0x694   : > { %v5811_v27 = vmax.f32 %v5681_v2, 0.0  ;;  %v5463_v58 = vsel %vm1905_vm11, %v5431_v52, %v5167_v36  ;;  %v5073_v47 = vpop.permute.xlu1 %5072  ;;  %9094 = vrot.lane.b32.xlu0 %v9093_v34, %s18774_s29  ;;  %v6068_v52 = vrot.slane %v15946_v43, 2 }
 0x695   : > { %v5810_v29 = vmax.f32 %v5676_v18, 0.0  ;;  %9099 = vrot.lane.b32.xlu1 %v9098_v46, %s18776_s28  ;;  %8270 = vmatprep.mubr.msk.f32.mxu0 %vm5478_vm5, %v5463_v58  ;;  %v5432_v2 = vsel %vm5402_vm15, %v5399_v15, %v5073_v47 }
 0x696   : > { %5843 = vst.msk [vmem:[#allocation4 + $0x69] sm:$0xff] %vm562_vm4, %v5811_v27  ;;  %v16033_v47 = vsel %vm866_vm3, %v6066_v38, %v6068_v52 }
 0x697   : > { %5842 = vst.msk [vmem:[#allocation4 + $0x61] sm:$0xff] %vm562_vm4, %v5810_v29  ;;  %v4787_v3 = vpop.permute.xlu0 %4786  ;;  %v5236_v29 = vsel %vm506_vm14, %v15512_v19, %v18786_v63  ;;  %v9118_v52 = vpack.i.bf16 %v15904_v57, %v16033_v47 }
 0x698   : > { %v5169_v62 = vpop.permute.xlu1 %5168  ;;  %9104 = vrot.lane.b32.xlu0 %v9103_v13, %s18768_s15  ;;  %v18787_v13 = vld [vmem:[#allocation60_spill] sm:$0xff] }
 0x699   : > { %v5464_v53 = vsel %vm1905_vm11, %v5432_v2, %v5169_v62  ;;  %v5269_v15 = vsel %vm5238_vm9, %v5236_v29, %v18787_v13  ;;  %v18788_v62 = vld [vmem:[#allocation27_spill] sm:$0xff]  ;;  %v18789_v13 = vld [vmem:[#allocation56_spill] sm:$0xff] }
 0x69a   : > { %8271 = vmatmul.mubr.msk.f32.gmra.mrb[104].mxu0 %vm5478_vm5, %v5464_v53  ;;  %v5302_v38 = vsel %vm5271_vm10, %v5269_v15, %v18788_v62  ;;  %v5237_v15 = vsel %vm506_vm14, %v15532_v20, %v18789_v13 }
 0x69b   : > { %v4883_v24 = vpop.permute.xlu0 %4882  ;;  %v5270_v50 = vsel %vm5238_vm9, %v5237_v15, %v18790_v61  ;;  %v18791_v61 = vld [vmem:[#allocation124_spill] sm:$0xff] }
 0x69c   : > { %v4789_v34 = vpop.permute.xlu1 %4788 }
 0x69d   : > { %v16022_v18 = vld [vmem:[#allocation4 + $0x70] sm:$0x3] }
 0x69e   : > { %v16024_v36 = vld [vmem:[#allocation4 + $0x60] sm:$0xff]  ;;  %v16026_v41 = vld [vmem:[#allocation4 + $0x68] sm:$0xff]  ;;  %v5993_v43 = vrot.slane %v16022_v18, 1 }
 0x69f   : > { %v4979_v46 = vpop.permute.xlu0 %4978  ;;  %v9108_v7 = vpack.i.bf16 %v15923_v17, %v16024_v36  ;;  %v5990_v25 = vrot.slane %v16024_v36, 1  ;;  %v5991_v27 = vrot.slane %v16026_v41, 1  ;;  %v6070_v19 = vrot.slane %v16024_v36, 2 }
 0x6a0   : > { %v4885_v58 = vpop.permute.xlu1 %4884 }
 0x6a1   : > { %9109 = vrot.lane.b32.xlu1 %v9108_v7, %s18774_s29  ;;  %v16041_v39 = vsel %vm785_vm2, %v5990_v25, %v5991_v27  ;;  %v6071_v7 = vrot.slane %v16026_v41, 2  ;;  %v5334_v25 = vsel %vm1806_vm8, %v5302_v38, %v4787_v3  ;;  %v16056_v29 = vsel %vm785_vm2, %v5991_v27, %v5993_v43 }
 0x6a2   : > { %v9113_v2 = vpack.i.bf16 %v15948_v59, %v16041_v39  ;;  %v5367_v62 = vsel %vm5336_vm12, %v5334_v25, %v4883_v24  ;;  %v9123_v27 = vpack.i.bf16 %v15958_v5, %v16026_v41  ;;  %v9128_v24 = vpack.i.bf16 %v15950_v11, %v16056_v29 }
 0x6a3   : > { %v5075_v53 = vpop.permute.xlu0 %5074  ;;  %v5400_v3 = vsel %vm5369_vm13, %v5367_v62, %v4979_v46  ;;  %v5303_v46 = vsel %vm5271_vm10, %v5270_v50, %v18791_v61 }
 0x6a4   : > { %v4981_v63 = vpop.permute.xlu1 %4980  ;;  %9114 = vrot.lane.b32.xlu0 %v9113_v2, %s18776_s28  ;;  %v5433_v43 = vsel %vm5402_vm15, %v5400_v3, %v5075_v53  ;;  %v5335_v53 = vsel %vm1806_vm8, %v5303_v46, %v4789_v34 }
 0x6a5   : > { %v8242_v45 = vpop.f32.mrb[84].mxu0  ;;  %9119 = vrot.lane.b32.xlu1 %v9118_v52, %s18768_s15  ;;  %v16074_v52 = vsel %vm866_vm3, %v6070_v19, %v6071_v7  ;;  %v5368_v3 = vsel %vm5336_vm12, %v5335_v53, %v4885_v58  ;;  %v6073_v58 = vrot.slane %v16022_v18, 2 }
 0x6a6   : > { %v5691_v38 = vadd.f32 %v8242_v45, %v15739_v49  ;;  %v5685_v2 = vpop.f32.mrb[85].mxu0  ;;  %v9133_v50 = vpack.i.bf16 %v15966_v10, %v16074_v52  ;;  %v5401_v19 = vsel %vm5369_vm13, %v5368_v3, %v4981_v63 }
 0x6a7   : > { %v5686_v20 = vadd.f32 %v15739_v49, %v5685_v2  ;;  %v5171_v13 = vpop.permute.xlu0 %5170  ;;  %v6074_v18 = vsel %vm866_vm3, %v6071_v7, %v6073_v58 }
 0x6a8   : > { %v5813_v25 = vmax.f32 %v5691_v38, 0.0  ;;  %v5465_v45 = vsel %vm1905_vm11, %v5433_v43, %v5171_v13  ;;  %v5077_v15 = vpop.permute.xlu1 %5076  ;;  %9124 = vrot.lane.b32.xlu0 %v9123_v27, %s18774_s29  ;;  %v9148_v7 = vpack.i.bf16 %v15984_v33, %v6074_v18 }
 0x6a9   : > { %v5812_v62 = vmax.f32 %v5686_v20, 0.0  ;;  %9129 = vrot.lane.b32.xlu1 %v9128_v24, %s18776_s28  ;;  %8273 = vmatprep.mubr.msk.f32.mxu0 %vm5478_vm5, %v5465_v45  ;;  %v5434_v38 = vsel %vm5402_vm15, %v5401_v19, %v5077_v15 }
 0x6aa   : > { %5845 = vst.msk [vmem:[#allocation4 + $0x81] sm:$0xff] %vm562_vm4, %v5813_v25 }
 0x6ab   : > { %5844 = vst.msk [vmem:[#allocation4 + $0x79] sm:$0xff] %vm562_vm4, %v5812_v62 }
 0x6ac   : > { %v5173_v2 = vpop.permute.xlu1 %5172  ;;  %9134 = vrot.lane.b32.xlu0 %v9133_v50, %s18768_s15 }
 0x6ad   : > { %v5466_v34 = vsel %vm1905_vm11, %v5434_v38, %v5173_v2 }
 0x6ae   : > { %8274 = vmatmul.mubr.msk.f32.gmra.mrb[106].mxu0 %vm5478_vm5, %v5466_v34 }
 0x6af   : > { %8284 = vmatprep.mubr.msk.f32.mxu0 %vm562_vm4, %v15923_v17 }
 0x6b1   : > { %v5885_v27 = vld [vmem:[#allocation4 + $0x88] sm:$0x3] }
 0x6b2   : > { %8285 = vmatmul.mubr.msk.f32.vlgmr.msra.gmra.mrb[108].mxu0 %vm562_vm4, %v15958_v5  ;;  %v16098_v63 = vld [vmem:[#allocation4 + $0x78] sm:$0xff]  ;;  %v16100_v43 = vld [vmem:[#allocation4 + $0x80] sm:$0xff]  ;;  %v5998_v24 = vrot.slane %v5885_v27, 1  ;;  %v6078_v15 = vrot.slane %v5885_v27, 2 }
 0x6b3   : > { %8287 = vmatprep.mubr.msk.f32.mxu0 %vm562_vm4, %v16002_v30  ;;  %v9138_v20 = vpack.i.bf16 %v16002_v30, %v16098_v63  ;;  %v5995_v13 = vrot.slane %v16098_v63, 1  ;;  %v5996_v17 = vrot.slane %v16100_v43, 1  ;;  %v6075_v30 = vrot.slane %v16098_v63, 2 }
 0x6b4   : > { %v6076_v46 = vrot.slane %v16100_v43, 2  ;;  %v9153_v50 = vpack.i.bf16 %v16033_v47, %v16100_v43 }
 0x6b5   : > { %9139 = vrot.lane.b32.xlu1 %v9138_v20, %s18774_s29  ;;  %v16111_v5 = vsel %vm785_vm2, %v5995_v13, %v5996_v17  ;;  %v16124_v25 = vsel %vm785_vm2, %v5996_v17, %v5998_v24 }
 0x6b6   : > { %8288 = vmatmul.mubr.msk.f32.gmra.mrb[110].mxu0 %vm562_vm4, %v16033_v47  ;;  %v9143_v61 = vpack.i.bf16 %v16024_v36, %v16111_v5  ;;  %v6077_v3 = vsel %vm866_vm3, %v6075_v30, %v6076_v46  ;;  %v9158_v38 = vpack.i.bf16 %v16026_v41, %v16124_v25  ;;  %v16139_v58 = vsel %vm866_vm3, %v6076_v46, %v6078_v15 }
 0x6b7   : > { %8290 = vmatprep.mubr.msk.f32.mxu0 %vm562_vm4, %v16074_v52  ;;  %v9163_v47 = vpack.i.bf16 %v16041_v39, %v6077_v3 }
 0x6b8   : > { %9144 = vrot.lane.b32.xlu0 %v9143_v61, %s18776_s28 }
 0x6b9   : > { %v8245_v45 = vpop.f32.mrb[86].mxu0  ;;  %9149 = vrot.lane.b32.xlu1 %v9148_v7, %s18768_s15 }
 0x6ba   : > { %v5701_v53 = vadd.f32 %v8245_v45, %v15739_v49  ;;  %v5695_v62 = vpop.f32.mrb[87].mxu0  ;;  %8291 = vmatmul.mubr.msk.f32.gmra.mrb[112].mxu0 %vm562_vm4, %v6074_v18 }
 0x6bb   : > { %v5696_v19 = vadd.f32 %v15739_v49, %v5695_v62  ;;  %8293 = vmatprep.mubr.msk.f32.mxu0 %vm562_vm4, %v6077_v3  ;;  %v9178_v62 = vpack.i.bf16 %v16056_v29, %v16139_v58 }
 0x6bc   : > { %v5815_v2 = vmax.f32 %v5701_v53, 0.0  ;;  %9154 = vrot.lane.b32.xlu0 %v9153_v50, %s18774_s29 }
 0x6bd   : > { %v5814_v34 = vmax.f32 %v5696_v19, 0.0  ;;  %9159 = vrot.lane.b32.xlu1 %v9158_v38, %s18776_s28 }
 0x6be   : > { %5847 = vst.msk [vmem:[#allocation4 + $0x99] sm:$0xff] %vm562_vm4, %v5815_v2  ;;  %8294 = vmatmul.mubr.msk.f32.gmra.mrb[114].mxu0 %vm562_vm4, %v16139_v58 }
 0x6bf   : > { %5846 = vst.msk [vmem:[#allocation4 + $0x91] sm:$0xff] %vm562_vm4, %v5814_v34 }
 0x6c0   : > { %9164 = vrot.lane.b32.xlu0 %v9163_v47, %s18768_s15 }
 0x6c5   : > { %v5888_v27 = vld [vmem:[#allocation4 + $0xa0] sm:$0x3] }
 0x6c6   : > { %v16147_v20 = vld [vmem:[#allocation4 + $0x90] sm:$0xff]  ;;  %v5887_v13 = vld [vmem:[#allocation4 + $0x98] sm:$0xff]  ;;  %v6083_v17 = vrot.slane %v5888_v27, 2  ;;  %v6003_v7 = vrot.slane %v5888_v27, 1 }
 0x6c7   : > { %v9168_v24 = vpack.i.bf16 %v16074_v52, %v16147_v20  ;;  %v6080_v61 = vrot.slane %v16147_v20, 2  ;;  %v6081_v30 = vrot.slane %v5887_v13, 2  ;;  %v6000_v46 = vrot.slane %v16147_v20, 1 }
 0x6c8   : > { %v6001_v45 = vrot.slane %v5887_v13, 1  ;;  %v9183_v27 = vpack.i.bf16 %v6074_v18, %v5887_v13 }
 0x6c9   : > { %9169 = vrot.lane.b32.xlu1 %v9168_v24, %s18774_s29  ;;  %v16155_v15 = vsel %vm866_vm3, %v6080_v61, %v6081_v30  ;;  %v16158_v53 = vsel %vm866_vm3, %v6081_v30, %v6083_v17 }
 0x6ca   : > { %8296 = vmatprep.mubr.msk.f32.mxu0 %vm562_vm4, %v16155_v15  ;;  %v16163_v52 = vsel %vm785_vm2, %v6000_v46, %v6001_v45  ;;  %v16172_v19 = vsel %vm785_vm2, %v6001_v45, %v6003_v7  ;;  %v9193_v30 = vpack.i.bf16 %v16111_v5, %v16155_v15 }
 0x6cb   : > { %8297 = vmatmul.mubr.msk.f32.gmra.mrb[116].mxu0 %vm562_vm4, %v16158_v53  ;;  %v9173_v50 = vpack.i.bf16 %v16098_v63, %v16163_v52  ;;  %v9188_v17 = vpack.i.bf16 %v16100_v43, %v16172_v19 }
 0x6cd   : > { %9174 = vrot.lane.b32.xlu0 %v9173_v50, %s18776_s28  ;;  %v8248_v38 = vpop.f32.mrb[88].mxu0  ;;  %9179 = vrot.lane.b32.xlu1 %v9178_v62, %s18768_s15 }
 0x6ce   : > { %v5711_v2 = vadd.f32 %v8248_v38, %v15739_v49  ;;  %v5705_v34 = vpop.f32.mrb[89].mxu0 }
 0x6cf   : > { %v5706_v47 = vadd.f32 %v15739_v49, %v5705_v34 }
 0x6d0   : > { %v5817_v24 = vmax.f32 %v5711_v2, 0.0 }
 0x6d1   : > { %v5816_v61 = vmax.f32 %v5706_v47, 0.0  ;;  %9184 = vrot.lane.b32.xlu0 %v9183_v27, %s18774_s29  ;;  %9189 = vrot.lane.b32.xlu1 %v9188_v17, %s18776_s28 }
 0x6d2   : > { %5849 = vst.msk [vmem:[#allocation4 + $0xb1] sm:$0xff] %vm562_vm4, %v5817_v24 }
 0x6d3   : > { %5848 = vst.msk [vmem:[#allocation4 + $0xa9] sm:$0xff] %vm562_vm4, %v5816_v61 }
 0x6d5   : > { %9194 = vrot.lane.b32.xlu0 %v9193_v30, %s18768_s15 }
 0x6d9   : > { %v5891_v46 = vld [vmem:[#allocation4 + $0xb8] sm:$0x3] }
 0x6da   : > { %v16187_v18 = vld [vmem:[#allocation4 + $0xa8] sm:$0xff]  ;;  %v16189_v7 = vld [vmem:[#allocation4 + $0xb0] sm:$0xff]  ;;  %v6088_v45 = vrot.slane %v5891_v46, 2  ;;  %v6008_v34 = vrot.slane %v5891_v46, 1 }
 0x6db   : > { %v9198_v62 = vpack.i.bf16 %v6077_v3, %v16187_v18  ;;  %v6085_v50 = vrot.slane %v16187_v18, 2  ;;  %v6086_v38 = vrot.slane %v16189_v7, 2  ;;  %v6005_v2 = vrot.slane %v16187_v18, 1 }
 0x6dc   : > { %v6006_v47 = vrot.slane %v16189_v7, 1  ;;  %v9208_v3 = vpack.i.bf16 %v16124_v25, %v16158_v53  ;;  %v9213_v28 = vpack.i.bf16 %v16139_v58, %v16189_v7 }
 0x6dd   : > { %9199 = vrot.lane.b32.xlu1 %v9198_v62, %s18774_s29  ;;  %v16198_v27 = vsel %vm866_vm3, %v6085_v50, %v6086_v38  ;;  %v16201_v17 = vsel %vm866_vm3, %v6086_v38, %v6088_v45 }
 0x6de   : > { %8299 = vmatprep.mubr.msk.f32.mxu0 %vm562_vm4, %v16198_v27  ;;  %v16210_v24 = vsel %vm785_vm2, %v6005_v2, %v6006_v47  ;;  %v16215_v30 = vsel %vm785_vm2, %v6006_v47, %v6008_v34  ;;  %v9045_v34 = vpop.permute.xlu0 %9044  ;;  %v9223_v47 = vpack.i.bf16 %v16163_v52, %v16198_v27 }
 0x6df   : > { %8300 = vmatmul.mubr.msk.f32.gmra.mrb[118].mxu0 %vm562_vm4, %v16201_v17  ;;  %v9203_v61 = vpack.i.bf16 %v16147_v20, %v16210_v24  ;;  %v9218_v38 = vpack.i.bf16 %v5887_v13, %v16215_v30 }
 0x6e1   : > { %v8251_v46 = vpop.f32.mrb[90].mxu0  ;;  %9209 = vrot.lane.b32.xlu1 %v9208_v3, %s18768_s15  ;;  %9204 = vrot.lane.b32.xlu0 %v9203_v61, %s18776_s28  ;;  %v9047_v3 = vunpack.i.h.bf16 %v9045_v34  ;;  %v9046_v61 = vunpack.i.l.bf16 %v9045_v34 }
 0x6e2   : > { %v5721_v45 = vadd.f32 %v8251_v46, %v15739_v49  ;;  %v5715_v62 = vpop.f32.mrb[91].mxu0 }
 0x6e3   : > { %v5716_v50 = vadd.f32 %v15739_v49, %v5715_v62  ;;  %v6860_v62 = vsel %vm562_vm4, %v15933_v9, %v9046_v61 }
 0x6e4   : > { %v5819_v2 = vmax.f32 %v5721_v45, 0.0  ;;  %v6764_v45 = vsel %vm562_vm4, %v15772_v31, %v9047_v3 }
 0x6e5   : > { %v5818_v60 = vmax.f32 %v5716_v50, 0.0  ;;  %9219 = vrot.lane.b32.xlu1 %v9218_v38, %s18776_s28  ;;  %9214 = vrot.lane.b32.xlu0 %v9213_v28, %s18774_s29 }
 0x6e6   : > { %5851 = vst.msk [vmem:[#allocation4 + $0xc9] sm:$0xff] %vm562_vm4, %v5819_v2 }
 0x6e7   : > { %5850 = vst.msk [vmem:[#allocation4 + $0xc1] sm:$0xff] %vm562_vm4, %v5818_v60 }
 0x6e9   : > { %9224 = vrot.lane.b32.xlu0 %v9223_v47, %s18768_s15 }
 0x6eb   : > { %v9050_v13 = vpop.permute.xlu1 %9049 }
 0x6ec   : > { %v9052_v46 = vunpack.i.h.bf16 %v9050_v13  ;;  %v9051_v58 = vunpack.i.l.bf16 %v9050_v13 }
 0x6ed   : > { %v5894_v50 = vld [vmem:[#allocation4 + $0xd0] sm:$0x3] }
 0x6ee   : > { %v6796_v28 = vsel %vm3334_vm0, %v6764_v45, %v9052_v46  ;;  %v9055_v60 = vpop.permute.xlu0 %9054  ;;  %v16236_v38 = vld [vmem:[#allocation4 + $0xc0] sm:$0xff]  ;;  %v16238_v2 = vld [vmem:[#allocation4 + $0xc8] sm:$0xff]  ;;  %v6892_v34 = vsel %vm3334_vm0, %v6860_v62, %v9051_v58  ;;  %v6013_v47 = vrot.slane %v5894_v50, 1  ;;  %v6093_v54 = vrot.slane %v5894_v50, 2 }
 0x6ef   : > { %v9057_v56 = vunpack.i.h.bf16 %v9055_v60  ;;  %v9056_v13 = vunpack.i.l.bf16 %v9055_v60  ;;  %v9060_v35 = vpop.permute.xlu1 %9059  ;;  %v9228_v31 = vpack.i.bf16 %v16155_v15, %v16236_v38  ;;  %v6090_v9 = vrot.slane %v16236_v38, 2  ;;  %v9670_v14 = vld [vmem:[#allocation4 + $0xc0] sm:$0xff] }
 0x6f0   : > { %v9062_v3 = vunpack.i.h.bf16 %v9060_v35  ;;  %v9061_v61 = vunpack.i.l.bf16 %v9060_v35  ;;  %v6091_v46 = vrot.slane %v16238_v2, 2  ;;  %v6010_v45 = vrot.slane %v16236_v38, 1 }
 0x6f1   : > { %9229 = vrot.lane.b32.xlu1 %v9228_v31, %s18774_s29  ;;  %v6924_v58 = vsel %vm3367_vm1, %v6892_v34, %v9056_v13  ;;  %v6828_v62 = vsel %vm3367_vm1, %v6796_v28, %v9057_v56  ;;  %v6011_v50 = vrot.slane %v16238_v2, 1  ;;  %v9238_v60 = vpack.i.bf16 %v16172_v19, %v16201_v17 }
 0x6f2   : > { %v16253_v15 = vsel %vm866_vm3, %v6090_v9, %v6091_v46  ;;  %v9065_v42 = vpop.permute.xlu0 %9064  ;;  %7127 = vmatprep.mubr.f32.mxu1 %v6924_v58  ;;  %v16256_v35 = vsel %vm866_vm3, %v6091_v46, %v6093_v54  ;;  %v6861_v56 = vsel %vm562_vm4, %v15973_v22, %v9061_v61  ;;  %v6765_v28 = vsel %vm562_vm4, %v15774_v1, %v9062_v3 }
 0x6f3   : > { %8302 = vmatprep.mubr.msk.f32.mxu0 %vm562_vm4, %v16253_v15  ;;  %v9067_v31 = vunpack.i.h.bf16 %v9065_v42  ;;  %v9066_v34 = vunpack.i.l.bf16 %v9065_v42  ;;  %v9070_v13 = vpop.permute.xlu1 %9069  ;;  %7128 = vmatmul.mubr.f32.vlgmr.msra.gmra.mrb[52].mxu1 %v6828_v62  ;;  %v16267_v54 = vsel %vm785_vm2, %v6010_v45, %v6011_v50  ;;  %v16270_v46 = vsel %vm785_vm2, %v6011_v50, %v6013_v47 }
 0x6f4   : > { %8303 = vmatmul.mubr.msk.f32.gmra.mrb[120].mxu0 %vm562_vm4, %v16256_v35  ;;  %v9072_v9 = vunpack.i.h.bf16 %v9070_v13  ;;  %v9071_v58 = vunpack.i.l.bf16 %v9070_v13  ;;  %v9233_v42 = vpack.i.bf16 %v16187_v18, %v16267_v54  ;;  %v9248_v18 = vpack.i.bf16 %v16189_v7, %v16270_v46 }
 0x6f5   : > { %v8254_v62 = vpop.f32.mrb[92].mxu0  ;;  %9239 = vrot.lane.b32.xlu1 %v9238_v60, %s18768_s15  ;;  %v6893_v22 = vsel %vm3334_vm0, %v6861_v56, %v9066_v34  ;;  %v6797_v1 = vsel %vm3334_vm0, %v6765_v28, %v9067_v31  ;;  %v9243_v31 = vpack.i.bf16 %v16158_v53, %v16238_v2 }
 0x6f6   : > { %v5731_v3 = vadd.f32 %v8254_v62, %v15739_v49  ;;  %v5725_v61 = vpop.f32.mrb[93].mxu0  ;;  %v6925_v13 = vsel %vm3367_vm1, %v6893_v22, %v9071_v58  ;;  %v6829_v45 = vsel %vm3367_vm1, %v6797_v1, %v9072_v9  ;;  %9234 = vrot.lane.b32.xlu0 %v9233_v42, %s18776_s28  ;;  %v9075_v34 = vpop.permute.xlu0 %9074 }
 0x6f7   : > { %v5726_v47 = vadd.f32 %v15739_v49, %v5725_v61  ;;  %7132 = vmatprep.mubr.f32.mxu1 %v6925_v13  ;;  %v9253_v49 = vpack.i.bf16 %v16210_v24, %v16253_v15  ;;  %v9077_v56 = vunpack.i.h.bf16 %v9075_v34  ;;  %v9076_v7 = vunpack.i.l.bf16 %v9075_v34 }
 0x6f8   : > { %v5821_v50 = vmax.f32 %v5731_v3, 0.0  ;;  %7133 = vmatmul.mubr.f32.gmra.mrb[54].mxu1 %v6829_v45 }
 0x6f9   : > { %v5820_v60 = vmax.f32 %v5726_v47, 0.0  ;;  %9249 = vrot.lane.b32.xlu1 %v9248_v18, %s18776_s28  ;;  %v6862_v53 = vsel %vm562_vm4, %v15891_v55, %v9076_v7  ;;  %v6766_v62 = vsel %vm562_vm4, %v15789_v8, %v9077_v56 }
 0x6fa   : > { %5853 = vst.msk [vmem:[#allocation4 + $0xe1] sm:$0xff] %vm562_vm4, %v5821_v50  ;;  %9244 = vrot.lane.b32.xlu0 %v9243_v31, %s18774_s29 }
 0x6fb   : > { %5852 = vst.msk [vmem:[#allocation4 + $0xd9] sm:$0xff] %vm562_vm4, %v5820_v60 }
 0x6fe   : > { %9254 = vrot.lane.b32.xlu0 %v9253_v49, %s18768_s15 }
 0x6ff   : > { %v9080_v28 = vpop.permute.xlu1 %9079 }
 0x700   : > { %v9082_v9 = vunpack.i.h.bf16 %v9080_v28  ;;  %v9081_v58 = vunpack.i.l.bf16 %v9080_v28 }
 0x701   : > { %v5897_v42 = vld [vmem:[#allocation4 + $0xe8] sm:$0x3] }
 0x702   : > { %v9085_v22 = vpop.permute.xlu0 %9084  ;;  %v16297_v1 = vld [vmem:[#allocation4 + $0xd8] sm:$0xff]  ;;  %v16299_v3 = vld [vmem:[#allocation4 + $0xe0] sm:$0xff]  ;;  %v6894_v61 = vsel %vm3334_vm0, %v6862_v53, %v9081_v58  ;;  %v6018_v13 = vrot.slane %v5897_v42, 1  ;;  %v6098_v45 = vrot.slane %v5897_v42, 2  ;;  %v6798_v47 = vsel %vm3334_vm0, %v6766_v62, %v9082_v9 }
 0x703   : > { %v9087_v18 = vunpack.i.h.bf16 %v9085_v22  ;;  %v9086_v50 = vunpack.i.l.bf16 %v9085_v22  ;;  %v9090_v60 = vpop.permute.xlu1 %9089  ;;  %v9258_v55 = vpack.i.bf16 %v16198_v27, %v16297_v1  ;;  %v6095_v31 = vrot.slane %v16297_v1, 2 }
 0x704   : > { %v9092_v8 = vunpack.i.h.bf16 %v9090_v60  ;;  %v9091_v34 = vunpack.i.l.bf16 %v9090_v60  ;;  %v6096_v49 = vrot.slane %v16299_v3, 2  ;;  %v6015_v56 = vrot.slane %v16297_v1, 1 }
 0x705   : > { %9259 = vrot.lane.b32.xlu1 %v9258_v55, %s18774_s29  ;;  %v6926_v7 = vsel %vm3367_vm1, %v6894_v61, %v9086_v50  ;;  %v6830_v28 = vsel %vm3367_vm1, %v6798_v47, %v9087_v18  ;;  %v6016_v9 = vrot.slane %v16299_v3, 1  ;;  %v9268_v58 = vpack.i.bf16 %v16215_v30, %v16256_v35 }
 0x706   : > { %v16315_v27 = vsel %vm866_vm3, %v6095_v31, %v6096_v49  ;;  %v9095_v53 = vpop.permute.xlu0 %9094  ;;  %7137 = vmatprep.mubr.f32.mxu1 %v6926_v7  ;;  %v16318_v42 = vsel %vm866_vm3, %v6096_v49, %v6098_v45  ;;  %v6863_v47 = vsel %vm562_vm4, %v15904_v57, %v9091_v34  ;;  %v6767_v18 = vsel %vm562_vm4, %v15791_v0, %v9092_v8  ;;  %v16342_v8 = vld [vmem:[%s17339_s7] ss:$0 sm:$0xff] }
 0x707   : > { %8305 = vmatprep.mubr.msk.f32.mxu0 %vm562_vm4, %v16315_v27  ;;  %v9097_v62 = vunpack.i.h.bf16 %v9095_v53  ;;  %v9096_v22 = vunpack.i.l.bf16 %v9095_v53  ;;  %v9100_v61 = vpop.permute.xlu1 %9099  ;;  %7138 = vmatmul.mubr.f32.gmra.mrb[56].mxu1 %v6830_v28  ;;  %v16329_v45 = vsel %vm785_vm2, %v6015_v56, %v6016_v9  ;;  %v16332_v55 = vsel %vm785_vm2, %v6016_v9, %v6018_v13 }
 0x708   : > { %8306 = vmatmul.mubr.msk.f32.gmra.mrb[122].mxu0 %vm562_vm4, %v16318_v42  ;;  %v9102_v50 = vunpack.i.h.bf16 %v9100_v61  ;;  %v9101_v60 = vunpack.i.l.bf16 %v9100_v61  ;;  %v9263_v31 = vpack.i.bf16 %v16236_v38, %v16329_v45  ;;  %v9278_v28 = vpack.i.bf16 %v16238_v2, %v16332_v55 }
 0x709   : > { %v8257_v49 = vpop.f32.mrb[94].mxu0  ;;  %9269 = vrot.lane.b32.xlu1 %v9268_v58, %s18768_s15  ;;  %v6895_v57 = vsel %vm3334_vm0, %v6863_v47, %v9096_v22  ;;  %v6799_v0 = vsel %vm3334_vm0, %v6767_v18, %v9097_v62  ;;  %v9273_v53 = vpack.i.bf16 %v16201_v17, %v16299_v3  ;;  %v9283_v22 = vpack.i.bf16 %v16267_v54, %v16315_v27 }
 0x70a   : > { %v5741_v34 = vadd.f32 %v16342_v8, %v8257_v49  ;;  %v5735_v56 = vpop.f32.mrb[95].mxu0  ;;  %v6927_v13 = vsel %vm3367_vm1, %v6895_v57, %v9101_v60  ;;  %v6831_v7 = vsel %vm3367_vm1, %v6799_v0, %v9102_v50  ;;  %9264 = vrot.lane.b32.xlu0 %v9263_v31, %s18776_s28  ;;  %v9105_v62 = vpop.permute.xlu0 %9104 }
 0x70b   : > { %v5736_v38 = vadd.f32 %v16342_v8, %v5735_v56  ;;  %7142 = vmatprep.mubr.f32.mxu1 %v6927_v13  ;;  %v9107_v61 = vunpack.i.h.bf16 %v9105_v62  ;;  %v9106_v2 = vunpack.i.l.bf16 %v9105_v62 }
 0x70c   : > { %v5823_v9 = vmax.f32 %v5741_v34, 0.0  ;;  %7143 = vmatmul.mubr.f32.gmra.mrb[58].mxu1 %v6831_v7 }
 0x70d   : > { %v5822_v58 = vmax.f32 %v5736_v38, 0.0  ;;  %9279 = vrot.lane.b32.xlu1 %v9278_v28, %s18776_s28  ;;  %v6864_v17 = vsel %vm562_vm4, %v15966_v10, %v9106_v2  ;;  %v6768_v31 = vsel %vm562_vm4, %v15868_v44, %v9107_v61 }
 0x70e   : > { %5855 = vst.msk [vmem:[#allocation4 + $0xf9] sm:$0xff] %vm562_vm4, %v5823_v9  ;;  %9274 = vrot.lane.b32.xlu0 %v9273_v53, %s18774_s29 }
 0x70f   : > { %5854 = vst.msk [vmem:[#allocation4 + $0xf1] sm:$0xff] %vm562_vm4, %v5822_v58 }
 0x712   : > { %9284 = vrot.lane.b32.xlu0 %v9283_v22, %s18768_s15 }
 0x713   : > { %v9110_v47 = vpop.permute.xlu1 %9109 }
 0x714   : > { %v9112_v18 = vunpack.i.h.bf16 %v9110_v47  ;;  %v9111_v50 = vunpack.i.l.bf16 %v9110_v47 }
 0x715   : > { %v5900_v60 = vld [vmem:[#allocation4 + $0x100] sm:$0x3] }
 0x716   : > { %v9115_v49 = vpop.permute.xlu0 %9114  ;;  %v16364_v57 = vld [vmem:[#allocation4 + $0xf0] sm:$0xff]  ;;  %v16366_v0 = vld [vmem:[#allocation4 + $0xf8] sm:$0xff]  ;;  %v6896_v34 = vsel %vm3334_vm0, %v6864_v17, %v9111_v50  ;;  %v6023_v56 = vrot.slane %v5900_v60, 1  ;;  %v6103_v13 = vrot.slane %v5900_v60, 2  ;;  %v6800_v7 = vsel %vm3334_vm0, %v6768_v31, %v9112_v18 }
 0x717   : > { %v9117_v38 = vunpack.i.h.bf16 %v9115_v49  ;;  %v9116_v28 = vunpack.i.l.bf16 %v9115_v49  ;;  %v9120_v9 = vpop.permute.xlu1 %9119  ;;  %v9288_v10 = vpack.i.bf16 %v16253_v15, %v16364_v57  ;;  %v6100_v58 = vrot.slane %v16364_v57, 2 }
 0x718   : > { %v9122_v44 = vunpack.i.h.bf16 %v9120_v9  ;;  %v9121_v53 = vunpack.i.l.bf16 %v9120_v9  ;;  %v6101_v62 = vrot.slane %v16366_v0, 2  ;;  %v6020_v22 = vrot.slane %v16364_v57, 1 }
 0x719   : > { %9289 = vrot.lane.b32.xlu1 %v9288_v10, %s18774_s29  ;;  %v6928_v61 = vsel %vm3367_vm1, %v6896_v34, %v9116_v28  ;;  %v6832_v2 = vsel %vm3367_vm1, %v6800_v7, %v9117_v38  ;;  %v6021_v47 = vrot.slane %v16366_v0, 1  ;;  %v9298_v18 = vpack.i.bf16 %v16270_v46, %v16318_v42 }
 0x71a   : > { %v16382_v15 = vsel %vm866_vm3, %v6100_v58, %v6101_v62  ;;  %v9125_v50 = vpop.permute.xlu0 %9124  ;;  %7147 = vmatprep.mubr.f32.mxu1 %v6928_v61  ;;  %v16385_v17 = vsel %vm866_vm3, %v6101_v62, %v6103_v13  ;;  %v6865_v34 = vsel %vm562_vm4, %v15984_v33, %v9121_v53  ;;  %v6769_v7 = vsel %vm562_vm4, %v15870_v32, %v9122_v44 }
 0x71b   : > { %8308 = vmatprep.mubr.msk.f32.mxu0 %vm562_vm4, %v16382_v15  ;;  %v9127_v60 = vunpack.i.h.bf16 %v9125_v50  ;;  %v9126_v31 = vunpack.i.l.bf16 %v9125_v50  ;;  %v9130_v49 = vpop.permute.xlu1 %9129  ;;  %7148 = vmatmul.mubr.f32.gmra.mrb[60].mxu1 %v6832_v2  ;;  %v16396_v13 = vsel %vm785_vm2, %v6020_v22, %v6021_v47  ;;  %v16399_v9 = vsel %vm785_vm2, %v6021_v47, %v6023_v56 }
 0x71c   : > { %8309 = vmatmul.mubr.msk.f32.gmra.mrb[124].mxu0 %vm562_vm4, %v16385_v17  ;;  %v9132_v38 = vunpack.i.h.bf16 %v9130_v49  ;;  %v9131_v28 = vunpack.i.l.bf16 %v9130_v49  ;;  %v9293_v10 = vpack.i.bf16 %v16297_v1, %v16396_v13  ;;  %v9308_v1 = vpack.i.bf16 %v16299_v3, %v16399_v9 }
 0x71d   : > { %v8260_v58 = vpop.f32.mrb[96].mxu0  ;;  %9299 = vrot.lane.b32.xlu1 %v9298_v18, %s18768_s15  ;;  %v6897_v33 = vsel %vm3334_vm0, %v6865_v34, %v9126_v31  ;;  %v6801_v32 = vsel %vm3334_vm0, %v6769_v7, %v9127_v60  ;;  %v9303_v47 = vpack.i.bf16 %v16256_v35, %v16366_v0  ;;  %v9313_v50 = vpack.i.bf16 %v16329_v45, %v16382_v15 }
 0x71e   : > { %v5751_v44 = vadd.f32 %v16342_v8, %v8260_v58  ;;  %v5745_v53 = vpop.f32.mrb[97].mxu0  ;;  %v6929_v62 = vsel %vm3367_vm1, %v6897_v33, %v9131_v28  ;;  %v6833_v22 = vsel %vm3367_vm1, %v6801_v32, %v9132_v38  ;;  %9294 = vrot.lane.b32.xlu0 %v9293_v10, %s18776_s28  ;;  %v9135_v18 = vpop.permute.xlu0 %9134 }
 0x71f   : > { %v5746_v56 = vadd.f32 %v16342_v8, %v5745_v53  ;;  %7152 = vmatprep.mubr.f32.mxu1 %v6929_v62  ;;  %v9137_v60 = vunpack.i.h.bf16 %v9135_v18  ;;  %v9136_v3 = vunpack.i.l.bf16 %v9135_v18 }
 0x720   : > { %v5825_v61 = vmax.f32 %v5751_v44, 0.0  ;;  %7153 = vmatmul.mubr.f32.gmra.mrb[62].mxu1 %v6833_v22 }
 0x721   : > { %v5824_v2 = vmax.f32 %v5746_v56, 0.0  ;;  %9309 = vrot.lane.b32.xlu1 %v9308_v1, %s18776_s28  ;;  %v6866_v35 = vsel %vm562_vm4, %v16041_v39, %v9136_v3  ;;  %v6770_v38 = vsel %vm562_vm4, %v15948_v59, %v9137_v60  ;;  %v9328_v3 = vpack.i.bf16 %v16332_v55, %v16385_v17 }
 0x722   : > { %5857 = vst.msk [vmem:[#allocation4 + $0x111] sm:$0xff] %vm562_vm4, %v5825_v61  ;;  %9304 = vrot.lane.b32.xlu0 %v9303_v47, %s18774_s29 }
 0x723   : > { %5856 = vst.msk [vmem:[#allocation4 + $0x109] sm:$0xff] %vm562_vm4, %v5824_v2 }
 0x726   : > { %9314 = vrot.lane.b32.xlu0 %v9313_v50, %s18768_s15 }
 0x727   : > { %v9140_v31 = vpop.permute.xlu1 %9139 }
 0x728   : > { %v9142_v49 = vunpack.i.h.bf16 %v9140_v31  ;;  %v9141_v34 = vunpack.i.l.bf16 %v9140_v31 }
 0x729   : > { %v5903_v7 = vld [vmem:[#allocation4 + $0x118] sm:$0x3] }
 0x72a   : > { %v9145_v28 = vpop.permute.xlu0 %9144  ;;  %v16426_v10 = vld [vmem:[#allocation4 + $0x108] sm:$0xff]  ;;  %v16428_v58 = vld [vmem:[#allocation4 + $0x110] sm:$0xff]  ;;  %v6898_v33 = vsel %vm3334_vm0, %v6866_v35, %v9141_v34  ;;  %v6028_v32 = vrot.slane %v5903_v7, 1  ;;  %v6108_v44 = vrot.slane %v5903_v7, 2  ;;  %v6802_v53 = vsel %vm3334_vm0, %v6770_v38, %v9142_v49 }
 0x72b   : > { %v9147_v62 = vunpack.i.h.bf16 %v9145_v28  ;;  %v9146_v22 = vunpack.i.l.bf16 %v9145_v28  ;;  %v9150_v56 = vpop.permute.xlu1 %9149  ;;  %v9318_v39 = vpack.i.bf16 %v16315_v27, %v16426_v10  ;;  %v6105_v1 = vrot.slane %v16426_v10, 2 }
 0x72c   : > { %v9152_v59 = vunpack.i.h.bf16 %v9150_v56  ;;  %v9151_v61 = vunpack.i.l.bf16 %v9150_v56  ;;  %v6106_v2 = vrot.slane %v16428_v58, 2  ;;  %v6025_v47 = vrot.slane %v16426_v10, 1 }
 0x72d   : > { %9319 = vrot.lane.b32.xlu1 %v9318_v39, %s18774_s29  ;;  %v6930_v18 = vsel %vm3367_vm1, %v6898_v33, %v9146_v22  ;;  %v6834_v50 = vsel %vm3367_vm1, %v6802_v53, %v9147_v62  ;;  %v6026_v60 = vrot.slane %v16428_v58, 1 }
 0x72e   : > { %v16444_v27 = vsel %vm866_vm3, %v6105_v1, %v6106_v2  ;;  %v9155_v31 = vpop.permute.xlu0 %9154  ;;  %7157 = vmatprep.mubr.f32.mxu1 %v6930_v18  ;;  %v16447_v49 = vsel %vm866_vm3, %v6106_v2, %v6108_v44  ;;  %v6867_v38 = vsel %vm562_vm4, %v16056_v29, %v9151_v61  ;;  %v6771_v28 = vsel %vm562_vm4, %v15950_v11, %v9152_v59 }
 0x72f   : > { %8311 = vmatprep.mubr.msk.f32.mxu0 %vm562_vm4, %v16444_v27  ;;  %v9157_v34 = vunpack.i.h.bf16 %v9155_v31  ;;  %v9156_v35 = vunpack.i.l.bf16 %v9155_v31  ;;  %v9160_v7 = vpop.permute.xlu1 %9159  ;;  %7158 = vmatmul.mubr.f32.gmra.mrb[64].mxu1 %v6834_v50  ;;  %v16458_v44 = vsel %vm785_vm2, %v6025_v47, %v6026_v60  ;;  %v16461_v62 = vsel %vm785_vm2, %v6026_v60, %v6028_v32 }
 0x730   : > { %8312 = vmatmul.mubr.msk.f32.gmra.mrb[126].mxu0 %vm562_vm4, %v16447_v49  ;;  %v9162_v33 = vunpack.i.h.bf16 %v9160_v7  ;;  %v9161_v53 = vunpack.i.l.bf16 %v9160_v7  ;;  %v9323_v22 = vpack.i.bf16 %v16364_v57, %v16458_v44  ;;  %v9338_v57 = vpack.i.bf16 %v16366_v0, %v16461_v62 }
 0x731   : > { %v8263_v56 = vpop.f32.mrb[98].mxu0  ;;  %9329 = vrot.lane.b32.xlu1 %v9328_v3, %s18768_s15  ;;  %v6899_v29 = vsel %vm3334_vm0, %v6867_v38, %v9156_v35  ;;  %v6803_v11 = vsel %vm3334_vm0, %v6771_v28, %v9157_v34  ;;  %v9333_v18 = vpack.i.bf16 %v16318_v42, %v16428_v58  ;;  %v9343_v60 = vpack.i.bf16 %v16396_v13, %v16444_v27 }
 0x732   : > { %v5761_v39 = vadd.f32 %v16342_v8, %v8263_v56  ;;  %v5755_v1 = vpop.f32.mrb[99].mxu0  ;;  %v6931_v59 = vsel %vm3367_vm1, %v6899_v29, %v9161_v53  ;;  %v6835_v61 = vsel %vm3367_vm1, %v6803_v11, %v9162_v33  ;;  %9324 = vrot.lane.b32.xlu0 %v9323_v22, %s18776_s28  ;;  %v9165_v50 = vpop.permute.xlu0 %9164 }
 0x733   : > { %v5756_v32 = vadd.f32 %v16342_v8, %v5755_v1  ;;  %7162 = vmatprep.mubr.f32.mxu1 %v6931_v59  ;;  %v9166_v3 = vunpack.i.l.bf16 %v9165_v50  ;;  %v9167_v0 = vunpack.i.h.bf16 %v9165_v50 }
 0x734   : > { %v5827_v2 = vmax.f32 %v5761_v39, 0.0  ;;  %7163 = vmatmul.mubr.f32.gmra.mrb[66].mxu1 %v6835_v61 }
 0x735   : > { %v5826_v47 = vmax.f32 %v5756_v32, 0.0  ;;  %9339 = vrot.lane.b32.xlu1 %v9338_v57, %s18776_s28  ;;  %v6868_v42 = vsel %vm562_vm4, %v16111_v5, %v9166_v3  ;;  %v6772_v56 = vsel %vm562_vm4, %v16024_v36, %v9167_v0  ;;  %v9358_v3 = vpack.i.bf16 %v16399_v9, %v16447_v49 }
 0x736   : > { %5859 = vst.msk [vmem:[#allocation4 + $0x129] sm:$0xff] %vm562_vm4, %v5827_v2  ;;  %9334 = vrot.lane.b32.xlu0 %v9333_v18, %s18774_s29 }
 0x737   : > { %5858 = vst.msk [vmem:[#allocation4 + $0x121] sm:$0xff] %vm562_vm4, %v5826_v47 }
 0x73a   : > { %9344 = vrot.lane.b32.xlu0 %v9343_v60, %s18768_s15 }
 0x73b   : > { %v9170_v31 = vpop.permute.xlu1 %9169 }
 0x73c   : > { %v9172_v34 = vunpack.i.h.bf16 %v9170_v31  ;;  %v9171_v35 = vunpack.i.l.bf16 %v9170_v31 }
 0x73d   : > { %v5906_v7 = vld [vmem:[#allocation4 + $0x130] sm:$0x3] }
 0x73e   : > { %v16486_v38 = vld [vmem:[#allocation4 + $0x120] sm:$0xff]  ;;  %v16488_v28 = vld [vmem:[#allocation4 + $0x128] sm:$0xff]  ;;  %v6900_v33 = vsel %vm3334_vm0, %v6868_v42, %v9171_v35  ;;  %v6033_v53 = vrot.slane %v5906_v7, 1  ;;  %v6113_v22 = vrot.slane %v5906_v7, 2  ;;  %v6804_v2 = vsel %vm3334_vm0, %v6772_v56, %v9172_v34 }
 0x73f   : > { %v9175_v29 = vpop.permute.xlu0 %9174  ;;  %v9180_v11 = vpop.permute.xlu1 %9179  ;;  %v9348_v39 = vpack.i.bf16 %v16382_v15, %v16486_v38  ;;  %v6110_v1 = vrot.slane %v16486_v38, 2  ;;  %v6111_v5 = vrot.slane %v16488_v28, 2  ;;  %v6030_v59 = vrot.slane %v16486_v38, 1 }
 0x740   : > { %v9177_v61 = vunpack.i.h.bf16 %v9175_v29  ;;  %v9176_v32 = vunpack.i.l.bf16 %v9175_v29  ;;  %v9182_v57 = vunpack.i.h.bf16 %v9180_v11  ;;  %v9181_v47 = vunpack.i.l.bf16 %v9180_v11 }
 0x741   : > { %9349 = vrot.lane.b32.xlu1 %v9348_v39, %s18774_s29  ;;  %v16501_v36 = vsel %vm866_vm3, %v6110_v1, %v6111_v5  ;;  %v16504_v18 = vsel %vm866_vm3, %v6111_v5, %v6113_v22  ;;  %v6031_v15 = vrot.slane %v16488_v28, 1 }
 0x742   : > { %8314 = vmatprep.mubr.msk.f32.mxu0 %vm562_vm4, %v16501_v36  ;;  %v6932_v50 = vsel %vm3367_vm1, %v6900_v33, %v9176_v32  ;;  %v6836_v60 = vsel %vm3367_vm1, %v6804_v2, %v9177_v61  ;;  %v6869_v29 = vsel %vm562_vm4, %v16124_v25, %v9181_v47  ;;  %v6773_v11 = vsel %vm562_vm4, %v16026_v41, %v9182_v57 }
 0x743   : > { %v9185_v0 = vpop.permute.xlu0 %9184  ;;  %7167 = vmatprep.mubr.f32.mxu1 %v6932_v50  ;;  %8315 = vmatmul.mubr.msk.f32.gmra.mrb[128].mxu0 %vm562_vm4, %v16504_v18  ;;  %v9190_v31 = vpop.permute.xlu1 %9189  ;;  %v16516_v34 = vsel %vm785_vm2, %v6030_v59, %v6031_v15  ;;  %v16526_v39 = vsel %vm785_vm2, %v6031_v15, %v6033_v53  ;;  %v9363_v2 = vpack.i.bf16 %v16385_v17, %v16488_v28 }
 0x744   : > { %v9187_v35 = vunpack.i.h.bf16 %v9185_v0  ;;  %v9186_v42 = vunpack.i.l.bf16 %v9185_v0  ;;  %v9192_v7 = vunpack.i.h.bf16 %v9190_v31  ;;  %v9191_v22 = vunpack.i.l.bf16 %v9190_v31  ;;  %7168 = vmatmul.mubr.f32.gmra.mrb[68].mxu1 %v6836_v60 }
 0x745   : > { %v9353_v33 = vpack.i.bf16 %v16426_v10, %v16516_v34  ;;  %v8266_v56 = vpop.f32.mrb[100].mxu0  ;;  %9359 = vrot.lane.b32.xlu1 %v9358_v3, %s18768_s15  ;;  %v9368_v41 = vpack.i.bf16 %v16428_v58, %v16526_v39  ;;  %v9373_v15 = vpack.i.bf16 %v16458_v44, %v16501_v36 }
 0x746   : > { %v5771_v1 = vadd.f32 %v16342_v8, %v8266_v56  ;;  %v5765_v5 = vpop.f32.mrb[101].mxu0  ;;  %v6901_v59 = vsel %vm3334_vm0, %v6869_v29, %v9186_v42  ;;  %v6805_v61 = vsel %vm3334_vm0, %v6773_v11, %v9187_v35 }
 0x747   : > { %9354 = vrot.lane.b32.xlu0 %v9353_v33, %s18776_s28  ;;  %v5766_v10 = vadd.f32 %v16342_v8, %v5765_v5  ;;  %v6933_v32 = vsel %vm3367_vm1, %v6901_v59, %v9191_v22  ;;  %v6837_v25 = vsel %vm3367_vm1, %v6805_v61, %v9192_v7  ;;  %v9195_v47 = vpop.permute.xlu0 %9194 }
 0x748   : > { %v5829_v53 = vmax.f32 %v5771_v1, 0.0  ;;  %7172 = vmatprep.mubr.f32.mxu1 %v6933_v32  ;;  %v9196_v58 = vunpack.i.l.bf16 %v9195_v47  ;;  %v9197_v60 = vunpack.i.h.bf16 %v9195_v47 }
 0x749   : > { %v5828_v57 = vmax.f32 %v5766_v10, 0.0  ;;  %7173 = vmatmul.mubr.f32.gmra.mrb[70].mxu1 %v6837_v25  ;;  %9369 = vrot.lane.b32.xlu1 %v9368_v41, %s18776_s28 }
 0x74a   : > { %5861 = vst.msk [vmem:[#allocation4 + $0x141] sm:$0xff] %vm562_vm4, %v5829_v53  ;;  %v6870_v42 = vsel %vm562_vm4, %v16163_v52, %v9196_v58  ;;  %v6774_v61 = vsel %vm562_vm4, %v16098_v63, %v9197_v60 }
 0x74b   : > { %5860 = vst.msk [vmem:[#allocation4 + $0x139] sm:$0xff] %vm562_vm4, %v5828_v57  ;;  %9364 = vrot.lane.b32.xlu0 %v9363_v2, %s18774_s29 }
 0x74f   : > { %9374 = vrot.lane.b32.xlu0 %v9373_v15, %s18768_s15  ;;  %v9200_v50 = vpop.permute.xlu1 %9199 }
 0x750   : > { %v9201_v3 = vunpack.i.l.bf16 %v9200_v50  ;;  %v9202_v0 = vunpack.i.h.bf16 %v9200_v50  ;;  %v9388_v50 = vpack.i.bf16 %v16461_v62, %v16504_v18 }
 0x751   : > { %v5909_v17 = vld [vmem:[#allocation4 + $0x148] sm:$0x3] }
 0x752   : > { %v16546_v31 = vld [vmem:[#allocation4 + $0x138] sm:$0xff]  ;;  %v16548_v35 = vld [vmem:[#allocation4 + $0x140] sm:$0xff]  ;;  %v6118_v7 = vrot.slane %v5909_v17, 2  ;;  %v6902_v5 = vsel %vm3334_vm0, %v6870_v42, %v9201_v3  ;;  %v6038_v59 = vrot.slane %v5909_v17, 1  ;;  %v6806_v57 = vsel %vm3334_vm0, %v6774_v61, %v9202_v0 }
 0x753   : > { %v9210_v22 = vpop.permute.xlu1 %9209  ;;  %v9378_v33 = vpack.i.bf16 %v16444_v27, %v16546_v31  ;;  %v6115_v56 = vrot.slane %v16546_v31, 2  ;;  %v6116_v29 = vrot.slane %v16548_v35, 2  ;;  %v6035_v11 = vrot.slane %v16546_v31, 1  ;;  %v9205_v1 = vpop.permute.xlu0 %9204 }
 0x754   : > { %v6036_v52 = vrot.slane %v16548_v35, 1  ;;  %v9207_v10 = vunpack.i.h.bf16 %v9205_v1  ;;  %v9206_v32 = vunpack.i.l.bf16 %v9205_v1  ;;  %v9212_v41 = vunpack.i.h.bf16 %v9210_v22 }
 0x755   : > { %9379 = vrot.lane.b32.xlu1 %v9378_v33, %s18774_s29  ;;  %v16563_v27 = vsel %vm866_vm3, %v6115_v56, %v6116_v29  ;;  %v16566_v25 = vsel %vm866_vm3, %v6116_v29, %v6118_v7  ;;  %v9211_v53 = vunpack.i.l.bf16 %v9210_v22 }
 0x756   : > { %8317 = vmatprep.mubr.msk.f32.mxu0 %vm562_vm4, %v16563_v27  ;;  %v16572_v63 = vsel %vm785_vm2, %v6035_v11, %v6036_v52  ;;  %v6934_v2 = vsel %vm3367_vm1, %v6902_v5, %v9206_v32  ;;  %v6838_v15 = vsel %vm3367_vm1, %v6806_v57, %v9207_v10  ;;  %v16584_v22 = vsel %vm785_vm2, %v6036_v52, %v6038_v59 }
 0x757   : > { %8318 = vmatmul.mubr.msk.f32.gmra.mrb[130].mxu0 %vm562_vm4, %v16566_v25  ;;  %v9220_v47 = vpop.permute.xlu1 %9219  ;;  %v9383_v58 = vpack.i.bf16 %v16486_v38, %v16572_v63  ;;  %v9215_v60 = vpop.permute.xlu0 %9214  ;;  %7177 = vmatprep.mubr.f32.mxu1 %v6934_v2  ;;  %v6871_v56 = vsel %vm562_vm4, %v16172_v19, %v9211_v53  ;;  %v6775_v29 = vsel %vm562_vm4, %v16100_v43, %v9212_v41 }
 0x758   : > { %v9222_v3 = vunpack.i.h.bf16 %v9220_v47  ;;  %v9221_v17 = vunpack.i.l.bf16 %v9220_v47  ;;  %v9217_v0 = vunpack.i.h.bf16 %v9215_v60  ;;  %v9216_v42 = vunpack.i.l.bf16 %v9215_v60  ;;  %7178 = vmatmul.mubr.f32.gmra.mrb[72].mxu1 %v6838_v15 }
 0x759   : > { %9384 = vrot.lane.b32.xlu0 %v9383_v58, %s18776_s28  ;;  %v8269_v7 = vpop.f32.mrb[102].mxu0  ;;  %9389 = vrot.lane.b32.xlu1 %v9388_v50, %s18768_s15  ;;  %v9393_v5 = vpack.i.bf16 %v16447_v49, %v16548_v35  ;;  %v9398_v19 = vpack.i.bf16 %v16488_v28, %v16584_v22  ;;  %v9403_v43 = vpack.i.bf16 %v16516_v34, %v16563_v27 }
 0x75a   : > { %v5781_v33 = vadd.f32 %v16342_v8, %v8269_v7  ;;  %v5775_v38 = vpop.f32.mrb[103].mxu0  ;;  %v6903_v1 = vsel %vm3334_vm0, %v6871_v56, %v9216_v42  ;;  %v6807_v59 = vsel %vm3334_vm0, %v6775_v29, %v9217_v0 }
 0x75b   : > { %v5776_v11 = vadd.f32 %v16342_v8, %v5775_v38  ;;  %v6935_v52 = vsel %vm3367_vm1, %v6903_v1, %v9221_v17  ;;  %v6839_v10 = vsel %vm3367_vm1, %v6807_v59, %v9222_v3  ;;  %v9225_v49 = vpop.permute.xlu0 %9224  ;;  %v9418_v38 = vpack.i.bf16 %v16526_v39, %v16566_v25 }
 0x75c   : > { %v5831_v61 = vmax.f32 %v5781_v33, 0.0  ;;  %7182 = vmatprep.mubr.f32.mxu1 %v6935_v52  ;;  %v9226_v53 = vunpack.i.l.bf16 %v9225_v49  ;;  %v9227_v57 = vunpack.i.h.bf16 %v9225_v49 }
 0x75d   : > { %v5830_v32 = vmax.f32 %v5776_v11, 0.0  ;;  %9394 = vrot.lane.b32.xlu0 %v9393_v5, %s18774_s29  ;;  %7183 = vmatmul.mubr.f32.gmra.mrb[74].mxu1 %v6839_v10 }
 0x75e   : > { %5863 = vst.msk [vmem:[#allocation4 + $0x159] sm:$0xff] %vm562_vm4, %v5831_v61  ;;  %9399 = vrot.lane.b32.xlu1 %v9398_v19, %s18776_s28  ;;  %v6776_v61 = vsel %vm562_vm4, %v16147_v20, %v9227_v57 }
 0x75f   : > { %5862 = vst.msk [vmem:[#allocation4 + $0x151] sm:$0xff] %vm562_vm4, %v5830_v32 }
 0x761   : > { %9404 = vrot.lane.b32.xlu0 %v9403_v43, %s18768_s15 }
 0x763   : > { %v9230_v41 = vpop.permute.xlu1 %9229 }
 0x764   : > { %v9232_v2 = vunpack.i.h.bf16 %v9230_v41  ;;  %v9231_v47 = vunpack.i.l.bf16 %v9230_v41 }
 0x765   : > { %v5912_v28 = vld [vmem:[#allocation4 + $0x160] sm:$0x3] }
 0x766   : > { %v16608_v15 = vld [vmem:[#allocation4 + $0x150] sm:$0xff]  ;;  %v16610_v58 = vld [vmem:[#allocation4 + $0x158] sm:$0xff]  ;;  %v6123_v50 = vrot.slane %v5912_v28, 2  ;;  %v6043_v7 = vrot.slane %v5912_v28, 1 }
 0x767   : > { %v9240_v60 = vpop.permute.xlu1 %9239  ;;  %v9408_v3 = vpack.i.bf16 %v16501_v36, %v16608_v15  ;;  %v6120_v17 = vrot.slane %v16608_v15, 2  ;;  %v6121_v0 = vrot.slane %v16610_v58, 2  ;;  %v6040_v42 = vrot.slane %v16608_v15, 1 }
 0x768   : > { %v6041_v33 = vrot.slane %v16610_v58, 1  ;;  %v9235_v56 = vpop.permute.xlu0 %9234  ;;  %v6872_v36 = vsel %vm562_vm4, %v16210_v24, %v9226_v53  ;;  %v9242_v52 = vunpack.i.h.bf16 %v9240_v60  ;;  %v9241_v10 = vunpack.i.l.bf16 %v9240_v60 }
 0x769   : > { %9409 = vrot.lane.b32.xlu1 %v9408_v3, %s18774_s29  ;;  %v16622_v29 = vsel %vm866_vm3, %v6120_v17, %v6121_v0  ;;  %v16627_v11 = vsel %vm866_vm3, %v6121_v0, %v6123_v50  ;;  %v9237_v1 = vunpack.i.h.bf16 %v9235_v56  ;;  %v9236_v5 = vunpack.i.l.bf16 %v9235_v56 }
 0x76a   : > { %8320 = vmatprep.mubr.msk.f32.mxu0 %vm562_vm4, %v16622_v29  ;;  %v6904_v59 = vsel %vm3334_vm0, %v6872_v36, %v9231_v47  ;;  %v6808_v24 = vsel %vm3334_vm0, %v6776_v61, %v9232_v2  ;;  %v16638_v32 = vsel %vm785_vm2, %v6040_v42, %v6041_v33  ;;  %v16643_v41 = vsel %vm785_vm2, %v6041_v33, %v6043_v7  ;;  %v9667_v42 = vld [vmem:[#allocation4 + $0x98] sm:$0xff] }
 0x76b   : > { %8321 = vmatmul.mubr.msk.f32.gmra.mrb[132].mxu0 %vm562_vm4, %v16627_v11  ;;  %v9250_v19 = vpop.permute.xlu1 %9249  ;;  %v6936_v43 = vsel %vm3367_vm1, %v6904_v59, %v9236_v5  ;;  %v6840_v49 = vsel %vm3367_vm1, %v6808_v24, %v9237_v1  ;;  %v9413_v57 = vpack.i.bf16 %v16546_v31, %v16638_v32  ;;  %v6873_v0 = vsel %vm562_vm4, %v16215_v30, %v9241_v10 }
 0x76c   : > { %v9245_v53 = vpop.permute.xlu0 %9244  ;;  %7187 = vmatprep.mubr.f32.mxu1 %v6936_v43  ;;  %v9252_v20 = vunpack.i.h.bf16 %v9250_v19  ;;  %v9251_v28 = vunpack.i.l.bf16 %v9250_v19  ;;  %v6777_v7 = vsel %vm562_vm4, %v9667_v42, %v9242_v52  ;;  %v9428_v33 = vpack.i.bf16 %v16548_v35, %v16643_v41 }
 0x76d   : > { %v8272_v47 = vpop.f32.mrb[104].mxu0  ;;  %9419 = vrot.lane.b32.xlu1 %v9418_v38, %s18768_s15  ;;  %v9247_v2 = vunpack.i.h.bf16 %v9245_v53  ;;  %v9246_v50 = vunpack.i.l.bf16 %v9245_v53  ;;  %7188 = vmatmul.mubr.f32.gmra.mrb[76].mxu1 %v6840_v49  ;;  %v9423_v59 = vpack.i.bf16 %v16504_v18, %v16610_v58  ;;  %v9433_v30 = vpack.i.bf16 %v16572_v63, %v16622_v29 }
 0x76e   : > { %v5791_v60 = vadd.f32 %v16342_v8, %v8272_v47  ;;  %v5785_v3 = vpop.f32.mrb[105].mxu0  ;;  %9414 = vrot.lane.b32.xlu0 %v9413_v57, %s18776_s28 }
 0x76f   : > { %v5786_v17 = vadd.f32 %v16342_v8, %v5785_v3  ;;  %v6905_v56 = vsel %vm3334_vm0, %v6873_v0, %v9246_v50  ;;  %v6809_v36 = vsel %vm3334_vm0, %v6777_v7, %v9247_v2  ;;  %v9448_v3 = vpack.i.bf16 %v16584_v22, %v16627_v11 }
 0x770   : > { %v5833_v38 = vmax.f32 %v5791_v60, 0.0  ;;  %v6937_v5 = vsel %vm3367_vm1, %v6905_v56, %v9251_v28  ;;  %v6841_v61 = vsel %vm3367_vm1, %v6809_v36, %v9252_v20  ;;  %v9255_v52 = vpop.permute.xlu0 %9254 }
 0x771   : > { %v5832_v1 = vmax.f32 %v5786_v17, 0.0  ;;  %9429 = vrot.lane.b32.xlu1 %v9428_v33, %s18776_s28  ;;  %7192 = vmatprep.mubr.f32.mxu1 %v6937_v5  ;;  %v9256_v18 = vunpack.i.l.bf16 %v9255_v52  ;;  %v9257_v24 = vunpack.i.h.bf16 %v9255_v52 }
 0x772   : > { %5865 = vst.msk [vmem:[#allocation4 + $0x171] sm:$0xff] %vm562_vm4, %v5833_v38  ;;  %9424 = vrot.lane.b32.xlu0 %v9423_v59, %s18774_s29  ;;  %7193 = vmatmul.mubr.f32.gmra.mrb[78].mxu1 %v6841_v61 }
 0x773   : > { %5864 = vst.msk [vmem:[#allocation4 + $0x169] sm:$0xff] %vm562_vm4, %v5832_v1  ;;  %v9668_v1 = vld [vmem:[#allocation4 + $0xa8] sm:$0xff] }
 0x774   : > { %v6778_v5 = vsel %vm562_vm4, %v9668_v1, %v9257_v24 }
 0x776   : > { %9434 = vrot.lane.b32.xlu0 %v9433_v30, %s18768_s15 }
 0x777   : > { %v9260_v10 = vpop.permute.xlu1 %9259 }
 0x778   : > { %v9262_v43 = vunpack.i.h.bf16 %v9260_v10  ;;  %v9261_v49 = vunpack.i.l.bf16 %v9260_v10 }
 0x779   : > { %v5915_v19 = vld [vmem:[#allocation4 + $0x178] sm:$0x3] }
 0x77a   : > { %v16669_v53 = vld [vmem:[#allocation4 + $0x168] sm:$0xff]  ;;  %v16671_v20 = vld [vmem:[#allocation4 + $0x170] sm:$0xff]  ;;  %v6128_v28 = vrot.slane %v5915_v19, 2  ;;  %v6048_v7 = vrot.slane %v5915_v19, 1  ;;  %v6810_v30 = vsel %vm3334_vm0, %v6778_v5, %v9262_v43 }
 0x77b   : > { %v9270_v57 = vpop.permute.xlu1 %9269  ;;  %v9438_v47 = vpack.i.bf16 %v16563_v27, %v16669_v53  ;;  %v6125_v2 = vrot.slane %v16669_v53, 2  ;;  %v6126_v50 = vrot.slane %v16671_v20, 2  ;;  %v6045_v60 = vrot.slane %v16669_v53, 1 }
 0x77c   : > { %v6046_v17 = vrot.slane %v16671_v20, 1  ;;  %v9265_v0 = vpop.permute.xlu0 %9264  ;;  %v6874_v27 = vsel %vm562_vm4, %v16267_v54, %v9256_v18  ;;  %v9272_v59 = vunpack.i.h.bf16 %v9270_v57  ;;  %v9271_v61 = vunpack.i.l.bf16 %v9270_v57 }
 0x77d   : > { %9439 = vrot.lane.b32.xlu1 %v9438_v47, %s18774_s29  ;;  %v16683_v42 = vsel %vm866_vm3, %v6125_v2, %v6126_v50  ;;  %v16688_v33 = vsel %vm866_vm3, %v6126_v50, %v6128_v28  ;;  %v9267_v38 = vunpack.i.h.bf16 %v9265_v0  ;;  %v9266_v56 = vunpack.i.l.bf16 %v9265_v0 }
 0x77e   : > { %8323 = vmatprep.mubr.msk.f32.mxu0 %vm562_vm4, %v16683_v42  ;;  %v6906_v36 = vsel %vm3334_vm0, %v6874_v27, %v9261_v49  ;;  %v16698_v52 = vsel %vm785_vm2, %v6045_v60, %v6046_v17  ;;  %v16706_v47 = vsel %vm785_vm2, %v6046_v17, %v6048_v7  ;;  %v6875_v27 = vsel %vm562_vm4, %v16270_v46, %v9271_v61 }
 0x77f   : > { %8324 = vmatmul.mubr.msk.f32.gmra.mrb[134].mxu0 %vm562_vm4, %v16688_v33  ;;  %v9280_v54 = vpop.permute.xlu1 %9279  ;;  %v6938_v10 = vsel %vm3367_vm1, %v6906_v36, %v9266_v56  ;;  %v6842_v18 = vsel %vm3367_vm1, %v6810_v30, %v9267_v38  ;;  %v9443_v24 = vpack.i.bf16 %v16608_v15, %v16698_v52  ;;  %v9669_v38 = vld [vmem:[#allocation4 + $0xb0] sm:$0xff]  ;;  %v9463_v61 = vpack.i.bf16 %v16638_v32, %v16683_v42 }
 0x780   : > { %v9275_v19 = vpop.permute.xlu0 %9274  ;;  %7197 = vmatprep.mubr.f32.mxu1 %v6938_v10  ;;  %v9282_v49 = vunpack.i.h.bf16 %v9280_v54  ;;  %v9281_v28 = vunpack.i.l.bf16 %v9280_v54  ;;  %v6779_v56 = vsel %vm562_vm4, %v9669_v38, %v9272_v59 }
 0x781   : > { %v8275_v57 = vpop.f32.mrb[106].mxu0  ;;  %9449 = vrot.lane.b32.xlu1 %v9448_v3, %s18768_s15  ;;  %v9277_v43 = vunpack.i.h.bf16 %v9275_v19  ;;  %v9276_v2 = vunpack.i.l.bf16 %v9275_v19  ;;  %7198 = vmatmul.mubr.f32.gmra.mrb[80].mxu1 %v6842_v18  ;;  %v9458_v3 = vpack.i.bf16 %v16610_v58, %v16706_v47 }
 0x782   : > { %v5801_v50 = vadd.f32 %v16342_v8, %v8275_v57  ;;  %v5795_v60 = vpop.f32.mrb[107].mxu0  ;;  %9444 = vrot.lane.b32.xlu0 %v9443_v24, %s18776_s28 }
 0x783   : > { %v5796_v0 = vadd.f32 %v16342_v8, %v5795_v60  ;;  %v6907_v7 = vsel %vm3334_vm0, %v6875_v27, %v9276_v2  ;;  %v6811_v36 = vsel %vm3334_vm0, %v6779_v56, %v9277_v43  ;;  %v9453_v8 = vpack.i.bf16 %v16566_v25, %v16671_v20 }
 0x784   : > { %v5835_v17 = vmax.f32 %v5801_v50, 0.0  ;;  %v6939_v5 = vsel %vm3367_vm1, %v6907_v7, %v9281_v28  ;;  %v6843_v54 = vsel %vm3367_vm1, %v6811_v36, %v9282_v49  ;;  %v9285_v30 = vpop.permute.xlu0 %9284 }
 0x785   : > { %v5834_v1 = vmax.f32 %v5796_v0, 0.0  ;;  %v16722_v46 = vpop.f32.mrb[108].mxu0  ;;  %9459 = vrot.lane.b32.xlu1 %v9458_v3, %s18776_s28  ;;  %7202 = vmatprep.mubr.f32.mxu1 %v6939_v5  ;;  %v9286_v19 = vunpack.i.l.bf16 %v9285_v30  ;;  %v9287_v24 = vunpack.i.h.bf16 %v9285_v30 }
 0x786   : > { %5867 = vst.msk [vmem:[#allocation4 + $0x189] sm:$0xff] %vm562_vm4, %v5835_v17  ;;  %v16726_v59 = vpop.f32.mrb[109].mxu0  ;;  %9454 = vrot.lane.b32.xlu0 %v9453_v8, %s18774_s29  ;;  %7203 = vmatmul.mubr.f32.gmra.mrb[82].mxu1 %v6843_v54 }
 0x787   : > { %5866 = vst.msk [vmem:[#allocation4 + $0x181] sm:$0xff] %vm562_vm4, %v5834_v1  ;;  %v9478_v1 = vpack.i.bf16 %v16643_v41, %v16688_v33  ;;  %v6780_v48 = vsel %vm562_vm4, %v9670_v14, %v9287_v24 }
 0x789   : > { %v16732_v25 = vpop.f32.mrb[110].mxu0 }
 0x78a   : > { %v16734_v10 = vpop.f32.mrb[111].mxu0  ;;  %9464 = vrot.lane.b32.xlu0 %v9463_v61, %s18768_s15 }
 0x78b   : > { %v9290_v18 = vpop.permute.xlu1 %9289 }
 0x78c   : > { %v9292_v57 = vunpack.i.h.bf16 %v9290_v18  ;;  %v9291_v43 = vunpack.i.l.bf16 %v9290_v18 }
 0x78d   : > { %v16737_v49 = vpop.f32.mrb[112].mxu0  ;;  %v5918_v28 = vld [vmem:[#allocation4 + $0x190] sm:$0x3] }
 0x78e   : > { %v16739_v2 = vpop.f32.mrb[113].mxu0  ;;  %v16741_v50 = vld [vmem:[#allocation4 + $0x180] sm:$0xff]  ;;  %v16743_v60 = vld [vmem:[#allocation4 + $0x188] sm:$0xff]  ;;  %v6173_v0 = vrot.slane %v5918_v28, 2  ;;  %v6136_v7 = vrot.slane %v5918_v28, 1 }
 0x78f   : > { %v9300_v27 = vpop.permute.xlu1 %9299  ;;  %v9468_v38 = vpack.i.bf16 %v16622_v29, %v16741_v50  ;;  %v6170_v56 = vrot.slane %v16741_v50, 2  ;;  %v6171_v3 = vrot.slane %v16743_v60, 2  ;;  %v6133_v17 = vrot.slane %v16741_v50, 1 }
 0x790   : > { %v6134_v36 = vrot.slane %v16743_v60, 1  ;;  %v9295_v5 = vpop.permute.xlu0 %9294  ;;  %v6876_v29 = vsel %vm562_vm4, %v16329_v45, %v9286_v19  ;;  %v9301_v21 = vunpack.i.l.bf16 %v9300_v27  ;;  %v6812_v19 = vsel %vm3334_vm0, %v6780_v48, %v9292_v57 }
 0x791   : > { %v16753_v8 = vpop.f32.mrb[114].mxu0  ;;  %9469 = vrot.lane.b32.xlu1 %v9468_v38, %s18774_s29  ;;  %v6172_v54 = vsel %vm866_vm3, %v6170_v56, %v6171_v3  ;;  %v16760_v61 = vsel %vm866_vm3, %v6171_v3, %v6173_v0  ;;  %v9297_v30 = vunpack.i.h.bf16 %v9295_v5  ;;  %v9296_v18 = vunpack.i.l.bf16 %v9295_v5 }
 0x792   : > { %v16762_v28 = vpop.f32.mrb[115].mxu0  ;;  %8326 = vmatprep.mubr.msk.f32.mxu0 %vm562_vm4, %v6172_v54  ;;  %v6908_v37 = vsel %vm3334_vm0, %v6876_v29, %v9291_v43  ;;  %v9302_v38 = vunpack.i.h.bf16 %v9300_v27  ;;  %v16771_v0 = vsel %vm785_vm2, %v6133_v17, %v6134_v36  ;;  %v16776_v43 = vsel %vm785_vm2, %v6134_v36, %v6136_v7  ;;  %v9671_v17 = vld [vmem:[#allocation4 + $0xc8] sm:$0xff]  ;;  %v5919_v29 = vld [vmem:[#allocation4 + $0x198] sm:$0xff] }
 0x793   : > { %8327 = vmatmul.mubr.msk.f32.gmra.mrb[136].mxu0 %vm562_vm4, %v16760_v61  ;;  %v9310_v45 = vpop.permute.xlu1 %9309  ;;  %v6940_v56 = vsel %vm3367_vm1, %v6908_v37, %v9296_v18  ;;  %v6844_v3 = vsel %vm3367_vm1, %v6812_v19, %v9297_v30  ;;  %v9473_v27 = vpack.i.bf16 %v16669_v53, %v16771_v0  ;;  %v6877_v37 = vsel %vm562_vm4, %v16332_v55, %v9301_v21  ;;  %v5921_v21 = vld [vmem:[#allocation4 + $0x1a8] sm:$0x3] }
 0x794   : > { %v9305_v5 = vpop.permute.xlu0 %9304  ;;  %7207 = vmatprep.mubr.f32.mxu1 %v6940_v56  ;;  %v9312_v14 = vunpack.i.h.bf16 %v9310_v45  ;;  %v9311_v24 = vunpack.i.l.bf16 %v9310_v45  ;;  %v6781_v7 = vsel %vm562_vm4, %v9671_v17, %v9302_v38  ;;  %v9488_v36 = vpack.i.bf16 %v16671_v20, %v16776_v43 }
 0x795   : > { %9479 = vrot.lane.b32.xlu1 %v9478_v1, %s18768_s15  ;;  %v9307_v48 = vunpack.i.h.bf16 %v9305_v5  ;;  %v9306_v57 = vunpack.i.l.bf16 %v9305_v5  ;;  %7208 = vmatmul.mubr.f32.gmra.mrb[84].mxu1 %v6844_v3  ;;  %v5920_v1 = vld [vmem:[#allocation4 + $0x1a0] sm:$0xff]  ;;  %v9483_v19 = vpack.i.bf16 %v16627_v11, %v16743_v60  ;;  %v6178_v55 = vrot.slane %v5919_v29, 1 }
 0x796   : > { %9474 = vrot.lane.b32.xlu0 %v9473_v27, %s18776_s28  ;;  %v6179_v38 = vrot.slane %v5920_v1, 1  ;;  %v9498_v3 = vpack.i.bf16 %v16683_v42, %v5919_v29  ;;  %v6181_v5 = vrot.slane %v5921_v21, 1  ;;  %v9493_v27 = vpack.i.bf16 %v16698_v52, %v6172_v54 }
 0x797   : > { %v6909_v30 = vsel %vm3334_vm0, %v6877_v37, %v9306_v57  ;;  %v6813_v18 = vsel %vm3334_vm0, %v6781_v7, %v9307_v48  ;;  %v6183_v48 = vrot.slane %v5919_v29, 2  ;;  %v6184_v57 = vrot.slane %v5920_v1, 2 }
 0x798   : > { %v6941_v45 = vsel %vm3367_vm1, %v6909_v30, %v9311_v24  ;;  %v6845_v56 = vsel %vm3367_vm1, %v6813_v18, %v9312_v14  ;;  %v9315_v24 = vpop.permute.xlu0 %9314  ;;  %v6180_v14 = vsel %vm785_vm2, %v6178_v55, %v6179_v38  ;;  %v6186_v37 = vrot.slane %v5921_v21, 2 }
 0x799   : > { %9489 = vrot.lane.b32.xlu1 %v9488_v36, %s18776_s28  ;;  %7212 = vmatprep.mubr.f32.mxu1 %v6941_v45  ;;  %v9508_v17 = vpack.i.bf16 %v16706_v47, %v16760_v61  ;;  %v6182_v54 = vsel %vm785_vm2, %v6179_v38, %v6181_v5  ;;  %v6185_v36 = vsel %vm866_vm3, %v6183_v48, %v6184_v57  ;;  %v9317_v29 = vunpack.i.h.bf16 %v9315_v24 }
 0x79a   : > { %9484 = vrot.lane.b32.xlu0 %v9483_v19, %s18774_s29  ;;  %7213 = vmatmul.mubr.f32.gmra.mrb[86].mxu1 %v6845_v56  ;;  %v6187_v30 = vsel %vm866_vm3, %v6184_v57, %v6186_v37  ;;  %v9503_v18 = vpack.i.bf16 %v16741_v50, %v6180_v14  ;;  %v9316_v45 = vunpack.i.l.bf16 %v9315_v24  ;;  %v9518_v21 = vpack.i.bf16 %v16743_v60, %v6182_v54 }
 0x79b   : > { %8329 = vmatprep.mubr.msk.f32.mxu0 %vm562_vm4, %v6185_v36  ;;  %v9513_v55 = vpack.i.bf16 %v16688_v33, %v5920_v1 }
 0x79c   : > { %8330 = vmatmul.mubr.msk.f32.gmra.mrb[138].mxu0 %vm562_vm4, %v6187_v30  ;;  %v6878_v5 = vsel %vm562_vm4, %v16396_v13, %v9316_v45 }
 0x79d   : > { %9499 = vrot.lane.b32.xlu1 %v9498_v3, %s18774_s29 }
 0x79e   : > { %v16798_v11 = vpop.f32.mrb[116].mxu0  ;;  %9494 = vrot.lane.b32.xlu0 %v9493_v27, %s18768_s15  ;;  %v9672_v27 = vld [vmem:[#allocation4 + $0xd8] sm:$0xff] }
 0x79f   : > { %v16804_v42 = vpop.f32.mrb[117].mxu0  ;;  %v9320_v7 = vpop.permute.xlu1 %9319  ;;  %v6782_v24 = vsel %vm562_vm4, %v9672_v27, %v9317_v29 }
 0x7a0   : > { %v9322_v61 = vunpack.i.h.bf16 %v9320_v7  ;;  %v9321_v19 = vunpack.i.l.bf16 %v9320_v7 }
 0x7a1   : > { %9509 = vrot.lane.b32.xlu1 %v9508_v17, %s18768_s15  ;;  %s18802_s15 = sand.u32 1, %s9794_s22  }
 0x7a2   : > { %9504 = vrot.lane.b32.xlu0 %v9503_v18, %s18776_s28  ;;  %v6910_v57 = vsel %vm3334_vm0, %v6878_v5, %v9321_v19  ;;  %v6814_v33 = vsel %vm3334_vm0, %v6782_v24, %v9322_v61  ;;  %v9673_v18 = vld [vmem:[#allocation4 + $0xe0] sm:$0xff]  ;;  %s17119_s0 = scalar_lea.sflag [#allocation6], %s18802_s15 }
 0x7a3   : > { %v9330_v56 = vpop.permute.xlu1 %9329 }
 0x7a4   : > { %v9325_v38 = vpop.permute.xlu0 %9324  ;;  %v9332_v14 = vunpack.i.h.bf16 %v9330_v56  ;;  %v9331_v48 = vunpack.i.l.bf16 %v9330_v56 }
 0x7a5   : > { %9519 = vrot.lane.b32.xlu1 %v9518_v21, %s18776_s28  ;;  %v9327_v50 = vunpack.i.h.bf16 %v9325_v38  ;;  %v9326_v3 = vunpack.i.l.bf16 %v9325_v38 }
 0x7a6   : > { %9514 = vrot.lane.b32.xlu0 %v9513_v55, %s18774_s29  ;;  %v6879_v30 = vsel %vm562_vm4, %v16399_v9, %v9331_v48  ;;  %v6783_v29 = vsel %vm562_vm4, %v9673_v18, %v9332_v14  ;;  %s9823_s29 = smov [#allocation5]  }
 0x7a7   : > { %v9340_v60 = vpop.permute.xlu1 %9339  ;;  %v6942_v1 = vsel %vm3367_vm1, %v6910_v57, %v9326_v3  ;;  %v6846_v37 = vsel %vm3367_vm1, %v6814_v33, %v9327_v50  ;;  %v9674_v33 = vld [vmem:[#allocation4 + $0xf0] sm:$0xff]  ;;  %s9684_s28 = sshll.u32 %s9823_s29, 4  ;;  %s9685_s28 = int_to_ptr.vmem [resolvable:$false] %s9684_s28 }
 0x7a8   : > { %v9335_v17 = vpop.permute.xlu0 %9334  ;;  %7217 = vmatprep.mubr.f32.mxu1 %v6942_v1  ;;  %v9342_v7 = vunpack.i.h.bf16 %v9340_v60  ;;  %v9341_v13 = vunpack.i.l.bf16 %v9340_v60  ;;  %s9686_s2 = scalar_lea.vmem %s9685_s28, 8192  ;;  %p9687_p0 = scmp.lt.s32.totalorder %s17114_s20, %s9685_s28 }
 0x7a9   : > { %v9337_v54 = vunpack.i.h.bf16 %v9335_v17  ;;  %v9336_v36 = vunpack.i.l.bf16 %v9335_v17  ;;  %7218 = vmatmul.mubr.f32.gmra.mrb[88].mxu1 %v6846_v37  ;;  %p9688_p1 = scmp.lt.s32.totalorder %s9686_s2, %s9680_s1 }
 0x7ab   : > { %v6911_v45 = vsel %vm3334_vm0, %v6879_v30, %v9336_v36  ;;  %v6815_v61 = vsel %vm3334_vm0, %v6783_v29, %v9337_v54  ;;  %p9689_p2 = por %p9688_p1, %p9687_p0 }
 0x7ac   : > { %v6943_v19 = vsel %vm3367_vm1, %v6911_v45, %v9341_v13  ;;  %v6847_v56 = vsel %vm3367_vm1, %v6815_v61, %v9342_v7  ;;  %v9345_v21 = vpop.permute.xlu0 %9344 }
 0x7ad   : > { %7222 = vmatprep.mubr.f32.mxu1 %v6943_v19  ;;  %v9347_v9 = vunpack.i.h.bf16 %v9345_v21  ;;  %v9346_v3 = vunpack.i.l.bf16 %v9345_v21  ;;  %p9690_p3 = pnand %p9689_p2, %p9683_p13 }
 0x7ae   : > { %7223 = vmatmul.mubr.f32.gmra.mrb[90].mxu1 %v6847_v56  ;;  %v9675_v56 = vld [vmem:[#allocation4 + $0xf8] sm:$0xff] }
 0x7af   : > { %v6880_v60 = vsel %vm562_vm4, %v16458_v44, %v9346_v3  ;;  %v6784_v1 = vsel %vm562_vm4, %v9674_v33, %v9347_v9 }
 0x7b2   : > { %v16832_v55 = vpop.f32.mrb[118].mxu0 }
 0x7b3   : > { %v16834_v38 = vpop.f32.mrb[119].mxu0  ;;  %v9350_v50 = vpop.permute.xlu1 %9349 }
 0x7b4   : > { %v9352_v5 = vunpack.i.h.bf16 %v9350_v50  ;;  %v9351_v27 = vunpack.i.l.bf16 %v9350_v50 }
 0x7b6   : > { %v6912_v7 = vsel %vm3334_vm0, %v6880_v60, %v9351_v27  ;;  %v6816_v54 = vsel %vm3334_vm0, %v6784_v1, %v9352_v5 }
 0x7b7   : > { %v9360_v24 = vpop.permute.xlu1 %9359 }
 0x7b8   : > { %v9362_v37 = vunpack.i.h.bf16 %v9360_v24  ;;  %v9361_v17 = vunpack.i.l.bf16 %v9360_v24  ;;  %v16853_v24 = vld [vmem:[%s17341_s9] ss:$0 sm:$0xff] }
 0x7b9   : > { %v9355_v14 = vpop.permute.xlu0 %9354 }
 0x7ba   : > { %v9357_v48 = vunpack.i.h.bf16 %v9355_v14  ;;  %v9356_v57 = vunpack.i.l.bf16 %v9355_v14  ;;  %v6881_v19 = vsel %vm562_vm4, %v16461_v62, %v9361_v17  ;;  %v6785_v21 = vsel %vm562_vm4, %v9675_v56, %v9362_v37 }
 0x7bb   : > { %v9370_v13 = vpop.permute.xlu1 %9369 }
 0x7bc   : > { %v6944_v36 = vsel %vm3367_vm1, %v6912_v7, %v9356_v57  ;;  %v6848_v30 = vsel %vm3367_vm1, %v6816_v54, %v9357_v48  ;;  %v9372_v29 = vunpack.i.h.bf16 %v9370_v13  ;;  %v9371_v45 = vunpack.i.l.bf16 %v9370_v13 }
 0x7bd   : > { %v9365_v18 = vpop.permute.xlu0 %9364  ;;  %7227 = vmatprep.mubr.f32.mxu1 %v6944_v36 }
 0x7be   : > { %v9367_v61 = vunpack.i.h.bf16 %v9365_v18  ;;  %v9366_v44 = vunpack.i.l.bf16 %v9365_v18  ;;  %7228 = vmatmul.mubr.f32.gmra.mrb[92].mxu1 %v6848_v30 }
 0x7c0   : > { %v6913_v50 = vsel %vm3334_vm0, %v6881_v19, %v9366_v44  ;;  %v6817_v9 = vsel %vm3334_vm0, %v6785_v21, %v9367_v61  ;;  %v9676_v19 = vld [vmem:[#allocation4 + $0x108] sm:$0xff] }
 0x7c1   : > { %v6945_v3 = vsel %vm3367_vm1, %v6913_v50, %v9371_v45  ;;  %v6849_v5 = vsel %vm3367_vm1, %v6817_v9, %v9372_v29  ;;  %v9375_v27 = vpop.permute.xlu0 %9374 }
 0x7c2   : > { %7232 = vmatprep.mubr.f32.mxu1 %v6945_v3  ;;  %v9376_v14 = vunpack.i.l.bf16 %v9375_v27  ;;  %v9377_v33 = vunpack.i.h.bf16 %v9375_v27 }
 0x7c3   : > { %7233 = vmatmul.mubr.f32.gmra.mrb[94].mxu1 %v6849_v5 }
 0x7c4   : > { %v6882_v18 = vsel %vm562_vm4, %v16516_v34, %v9376_v14  ;;  %v6786_v56 = vsel %vm562_vm4, %v9676_v19, %v9377_v33 }
 0x7c6   : > { %v7129_v62 = vpop.f32.mrb[52].mxu1 }
 0x7c7   : > { %v7130_v48 = vadd.f32 %v16853_v24, %v7129_v62  ;;  %v16856_v57 = vpop.f32.mrb[120].mxu0  ;;  %v9380_v60 = vpop.permute.xlu1 %9379 }
 0x7c8   : > { %v16858_v1 = vpop.f32.mrb[121].mxu0  ;;  %v7131_v37 = vpop.f32.mrb[53].mxu1  ;;  %v9382_v7 = vunpack.i.h.bf16 %v9380_v60  ;;  %v9381_v13 = vunpack.i.l.bf16 %v9380_v60 }
 0x7c9   : > { %v7355_v17 = vadd.f32 %v16726_v59, %v7130_v48 }
 0x7ca   : > { %v6914_v50 = vsel %vm3334_vm0, %v6882_v18, %v9381_v13  ;;  %v6818_v34 = vsel %vm3334_vm0, %v6786_v56, %v9382_v7 }
 0x7cb   : > { %7513 = vst.msk [vmem:[%s16862_s18] sm:$0xff] %vm562_vm4, %v7355_v17  ;;  %v7545_v54 = vadd.f32 %v7355_v17, %v14978_v16  ;;  %v9385_v36 = vpop.permute.xlu0 %9384  ;;  %v7134_v30 = vpop.f32.mrb[54].mxu1  ;;  %v9677_v17 = vld [vmem:[#allocation4 + $0x110] sm:$0xff] }
 0x7cc   : > { %v9387_v29 = vunpack.i.h.bf16 %v9385_v36  ;;  %v9386_v45 = vunpack.i.l.bf16 %v9385_v36  ;;  %v9390_v61 = vpop.permute.xlu1 %9389  ;;  %v7135_v59 = vadd.f32 %v16853_v24, %v7134_v30  ;;  %v7136_v44 = vpop.f32.mrb[55].mxu1 }
 0x7cd   : > { %7577 = vst.msk [vmem:[%s16872_s19] sm:$0xff] %vm562_vm4, %v7545_v54  ;;  %v9392_v16 = vunpack.i.h.bf16 %v9390_v61  ;;  %v9391_v21 = vunpack.i.l.bf16 %v9390_v61 }
 0x7ce   : > { %v7360_v9 = vadd.f32 %v16722_v46, %v7135_v59  ;;  %v6946_v3 = vsel %vm3367_vm1, %v6914_v50, %v9386_v45  ;;  %v6850_v5 = vsel %vm3367_vm1, %v6818_v34, %v9387_v29 }
 0x7cf   : > { %v9395_v27 = vpop.permute.xlu0 %9394  ;;  %7237 = vmatprep.mubr.f32.mxu1 %v6946_v3  ;;  %v6883_v46 = vsel %vm562_vm4, %v16526_v39, %v9391_v21  ;;  %v6787_v7 = vsel %vm562_vm4, %v9677_v17, %v9392_v16 }
 0x7d0   : > { %7514 = vst.msk [vmem:[%s16862_s18 + $0x8] sm:$0xff] %vm562_vm4, %v7360_v9  ;;  %v7546_v62 = vadd.f32 %v7360_v9, %v14971_v26  ;;  %v9397_v14 = vunpack.i.h.bf16 %v9395_v27  ;;  %v9396_v48 = vunpack.i.l.bf16 %v9395_v27  ;;  %v9400_v60 = vpop.permute.xlu1 %9399  ;;  %7238 = vmatmul.mubr.f32.gmra.mrb[96].mxu1 %v6850_v5 }
 0x7d1   : > { %v9402_v33 = vunpack.i.h.bf16 %v9400_v60  ;;  %v9401_v37 = vunpack.i.l.bf16 %v9400_v60 }
 0x7d2   : > { %7578 = vst.msk [vmem:[%s16872_s19 + $0x8] sm:$0xff] %vm562_vm4, %v7546_v62  ;;  %v6915_v13 = vsel %vm3334_vm0, %v6883_v46, %v9396_v48  ;;  %v6819_v54 = vsel %vm3334_vm0, %v6787_v7, %v9397_v14  ;;  %v9678_v46 = vld [vmem:[#allocation4 + $0x120] sm:$0xff] }
 0x7d3   : > { %v6947_v26 = vsel %vm3367_vm1, %v6915_v13, %v9401_v37  ;;  %v6851_v36 = vsel %vm3367_vm1, %v6819_v54, %v9402_v33  ;;  %v9405_v30 = vpop.permute.xlu0 %9404 }
 0x7d4   : > { %7242 = vmatprep.mubr.f32.mxu1 %v6947_v26  ;;  %v9406_v19 = vunpack.i.l.bf16 %v9405_v30  ;;  %v9407_v56 = vunpack.i.h.bf16 %v9405_v30 }
 0x7d5   : > { %7243 = vmatmul.mubr.f32.gmra.mrb[98].mxu1 %v6851_v36 }
 0x7d6   : > { %v6884_v48 = vsel %vm562_vm4, %v16572_v63, %v9406_v19  ;;  %v6788_v17 = vsel %vm562_vm4, %v9678_v46, %v9407_v56 }
 0x7da   : > { %v7139_v18 = vpop.f32.mrb[56].mxu1 }
 0x7db   : > { %v7140_v39 = vadd.f32 %v16853_v24, %v7139_v18  ;;  %v16894_v29 = vpop.f32.mrb[122].mxu0  ;;  %v9410_v45 = vpop.permute.xlu1 %9409 }
 0x7dc   : > { %v16896_v61 = vpop.f32.mrb[123].mxu0  ;;  %v7141_v59 = vpop.f32.mrb[57].mxu1  ;;  %v9411_v21 = vunpack.i.l.bf16 %v9410_v45  ;;  %v9412_v9 = vunpack.i.h.bf16 %v9410_v45  ;;  %v9679_v45 = vld [vmem:[#allocation4 + $0x128] sm:$0xff] }
 0x7dd   : > { %v7365_v44 = vadd.f32 %v16734_v10, %v7140_v39 }
 0x7de   : > { %v6916_v33 = vsel %vm3334_vm0, %v6884_v48, %v9411_v21 }
 0x7df   : > { %7515 = vst.msk [vmem:[%s16862_s18 + $0x10] sm:$0xff] %vm562_vm4, %v7365_v44  ;;  %v7547_v16 = vadd.f32 %v7365_v44, %v15010_v6  ;;  %v9420_v50 = vpop.permute.xlu1 %9419  ;;  %v7144_v34 = vpop.f32.mrb[58].mxu1 }
 0x7e0   : > { %v7145_v3 = vadd.f32 %v16853_v24, %v7144_v34  ;;  %v7146_v5 = vpop.f32.mrb[59].mxu1  ;;  %v9415_v27 = vpop.permute.xlu0 %9414  ;;  %v9422_v6 = vunpack.i.h.bf16 %v9420_v50  ;;  %v9421_v60 = vunpack.i.l.bf16 %v9420_v50 }
 0x7e1   : > { %7579 = vst.msk [vmem:[%s16872_s19 + $0x10] sm:$0xff] %vm562_vm4, %v7547_v16  ;;  %v9417_v62 = vunpack.i.h.bf16 %v9415_v27  ;;  %v9416_v14 = vunpack.i.l.bf16 %v9415_v27 }
 0x7e2   : > { %v7370_v10 = vadd.f32 %v16732_v25, %v7145_v3  ;;  %v6820_v25 = vsel %vm3334_vm0, %v6788_v17, %v9412_v9  ;;  %v6885_v39 = vsel %vm562_vm4, %v16584_v22, %v9421_v60 }
 0x7e3   : > { %v9430_v37 = vpop.permute.xlu1 %9429  ;;  %v6948_v13 = vsel %vm3367_vm1, %v6916_v33, %v9416_v14  ;;  %v6852_v36 = vsel %vm3367_vm1, %v6820_v25, %v9417_v62 }
 0x7e4   : > { %7516 = vst.msk [vmem:[%s16862_s18 + $0x18] sm:$0xff] %vm562_vm4, %v7370_v10  ;;  %v7548_v7 = vadd.f32 %v7370_v10, %v15005_v23  ;;  %v9425_v54 = vpop.permute.xlu0 %9424  ;;  %7247 = vmatprep.mubr.f32.mxu1 %v6948_v13  ;;  %v9432_v63 = vunpack.i.h.bf16 %v9430_v37  ;;  %v9431_v26 = vunpack.i.l.bf16 %v9430_v37  ;;  %v6789_v23 = vsel %vm562_vm4, %v9679_v45, %v9422_v6 }
 0x7e5   : > { %v9427_v30 = vunpack.i.h.bf16 %v9425_v54  ;;  %v9426_v18 = vunpack.i.l.bf16 %v9425_v54  ;;  %7248 = vmatmul.mubr.f32.gmra.mrb[100].mxu1 %v6852_v36 }
 0x7e6   : > { %7580 = vst.msk [vmem:[%s16872_s19 + $0x18] sm:$0xff] %vm562_vm4, %v7548_v7 }
 0x7e7   : > { %v6917_v59 = vsel %vm3334_vm0, %v6885_v39, %v9426_v18  ;;  %v6821_v44 = vsel %vm3334_vm0, %v6789_v23, %v9427_v30 }
 0x7e8   : > { %v6949_v19 = vsel %vm3367_vm1, %v6917_v59, %v9431_v26  ;;  %v6853_v56 = vsel %vm3367_vm1, %v6821_v44, %v9432_v63  ;;  %v9435_v16 = vpop.permute.xlu0 %9434 }
 0x7e9   : > { %7252 = vmatprep.mubr.f32.mxu1 %v6949_v19  ;;  %v9436_v27 = vunpack.i.l.bf16 %v9435_v16  ;;  %v9437_v62 = vunpack.i.h.bf16 %v9435_v16 }
 0x7ea   : > { %7253 = vmatmul.mubr.f32.gmra.mrb[102].mxu1 %v6853_v56 }
 0x7eb   : > { %v6886_v13 = vsel %vm562_vm4, %v16638_v32, %v9436_v27  ;;  %v6790_v26 = vsel %vm562_vm4, %v16546_v31, %v9437_v62 }
 0x7ee   : > { %v7149_v21 = vpop.f32.mrb[60].mxu1 }
 0x7ef   : > { %v7150_v50 = vadd.f32 %v16853_v24, %v7149_v21  ;;  %v16926_v22 = vpop.f32.mrb[124].mxu0  ;;  %v9440_v34 = vpop.permute.xlu1 %9439 }
 0x7f0   : > { %v16928_v9 = vpop.f32.mrb[125].mxu0  ;;  %v7151_v3 = vpop.f32.mrb[61].mxu1  ;;  %v9441_v10 = vunpack.i.l.bf16 %v9440_v34  ;;  %v9442_v60 = vunpack.i.h.bf16 %v9440_v34 }
 0x7f1   : > { %v7375_v5 = vadd.f32 %v16739_v2, %v7150_v50 }
 0x7f2   : > { %v6918_v54 = vsel %vm3334_vm0, %v6886_v13, %v9441_v10 }
 0x7f3   : > { %7517 = vst.msk [vmem:[%s16862_s18 + $0x20] sm:$0xff] %vm562_vm4, %v7375_v5  ;;  %v7549_v14 = vadd.f32 %v7375_v5, %v15033_v12  ;;  %v9450_v48 = vpop.permute.xlu1 %9449  ;;  %v7154_v6 = vpop.f32.mrb[62].mxu1 }
 0x7f4   : > { %v7155_v33 = vadd.f32 %v16853_v24, %v7154_v6  ;;  %v7156_v37 = vpop.f32.mrb[63].mxu1  ;;  %v9445_v46 = vpop.permute.xlu0 %9444  ;;  %v9452_v12 = vunpack.i.h.bf16 %v9450_v48  ;;  %v9451_v25 = vunpack.i.l.bf16 %v9450_v48 }
 0x7f5   : > { %7581 = vst.msk [vmem:[%s16872_s19 + $0x20] sm:$0xff] %vm562_vm4, %v7549_v14  ;;  %v9447_v17 = vunpack.i.h.bf16 %v9445_v46  ;;  %v9446_v7 = vunpack.i.l.bf16 %v9445_v46 }
 0x7f6   : > { %v7380_v2 = vadd.f32 %v16737_v49, %v7155_v33  ;;  %v6822_v49 = vsel %vm3334_vm0, %v6790_v26, %v9442_v60  ;;  %v6887_v31 = vsel %vm562_vm4, %v16643_v41, %v9451_v25 }
 0x7f7   : > { %v9460_v63 = vpop.permute.xlu1 %9459  ;;  %v6950_v30 = vsel %vm3367_vm1, %v6918_v54, %v9446_v7  ;;  %v6854_v45 = vsel %vm3367_vm1, %v6822_v49, %v9447_v17 }
 0x7f8   : > { %7518 = vst.msk [vmem:[%s16862_s18 + $0x28] sm:$0xff] %vm562_vm4, %v7380_v2  ;;  %v7550_v36 = vadd.f32 %v7380_v2, %v15028_v40  ;;  %v9455_v18 = vpop.permute.xlu0 %9454  ;;  %7257 = vmatprep.mubr.f32.mxu1 %v6950_v30  ;;  %v9462_v39 = vunpack.i.h.bf16 %v9460_v63  ;;  %v9461_v32 = vunpack.i.l.bf16 %v9460_v63  ;;  %v6791_v40 = vsel %vm562_vm4, %v16548_v35, %v9452_v12 }
 0x7f9   : > { %v9457_v23 = vunpack.i.h.bf16 %v9455_v18  ;;  %v9456_v59 = vunpack.i.l.bf16 %v9455_v18  ;;  %7258 = vmatmul.mubr.f32.gmra.mrb[104].mxu1 %v6854_v45 }
 0x7fa   : > { %7582 = vst.msk [vmem:[%s16872_s19 + $0x28] sm:$0xff] %vm562_vm4, %v7550_v36 }
 0x7fb   : > { %v6919_v44 = vsel %vm3334_vm0, %v6887_v31, %v9456_v59  ;;  %v6823_v19 = vsel %vm3334_vm0, %v6791_v40, %v9457_v23 }
 0x7fc   : > { %v6951_v56 = vsel %vm3367_vm1, %v6919_v44, %v9461_v32  ;;  %v6855_v16 = vsel %vm3367_vm1, %v6823_v19, %v9462_v39  ;;  %v9465_v21 = vpop.permute.xlu0 %9464 }
 0x7fd   : > { %7262 = vmatprep.mubr.f32.mxu1 %v6951_v56  ;;  %v9466_v62 = vunpack.i.l.bf16 %v9465_v21  ;;  %v9467_v14 = vunpack.i.h.bf16 %v9465_v21 }
 0x7fe   : > { %7263 = vmatmul.mubr.f32.gmra.mrb[106].mxu1 %v6855_v16 }
 0x7ff   : > { %v6888_v13 = vsel %vm562_vm4, %v16698_v52, %v9466_v62  ;;  %v6792_v63 = vsel %vm562_vm4, %v16608_v15, %v9467_v14 }
 0x802   : > { %v7159_v50 = vpop.f32.mrb[64].mxu1 }
 0x803   : > { %v7160_v34 = vadd.f32 %v16853_v24, %v7159_v50  ;;  %v16960_v41 = vpop.f32.mrb[126].mxu0  ;;  %v9470_v3 = vpop.permute.xlu1 %9469 }
 0x804   : > { %v16962_v35 = vpop.f32.mrb[127].mxu0  ;;  %v7161_v5 = vpop.f32.mrb[65].mxu1  ;;  %v9471_v48 = vunpack.i.l.bf16 %v9470_v3  ;;  %v9472_v33 = vunpack.i.h.bf16 %v9470_v3 }
 0x805   : > { %v7385_v27 = vadd.f32 %v16762_v28, %v7160_v34 }
 0x806   : > { %v6920_v25 = vsel %vm3334_vm0, %v6888_v13, %v9471_v48 }
 0x807   : > { %7519 = vst.msk [vmem:[%s16862_s18 + $0x30] sm:$0xff] %vm562_vm4, %v7385_v27  ;;  %v7551_v10 = vadd.f32 %v7385_v27, %v15055_v4  ;;  %v9480_v6 = vpop.permute.xlu1 %9479  ;;  %v7164_v60 = vpop.f32.mrb[66].mxu1 }
 0x808   : > { %v7165_v37 = vadd.f32 %v16853_v24, %v7164_v60  ;;  %v7166_v46 = vpop.f32.mrb[67].mxu1  ;;  %v9475_v17 = vpop.permute.xlu0 %9474  ;;  %v9482_v4 = vunpack.i.h.bf16 %v9480_v6  ;;  %v9481_v12 = vunpack.i.l.bf16 %v9480_v6 }
 0x809   : > { %7583 = vst.msk [vmem:[%s16872_s19 + $0x30] sm:$0xff] %vm562_vm4, %v7551_v10  ;;  %v9477_v7 = vunpack.i.h.bf16 %v9475_v17  ;;  %v9476_v2 = vunpack.i.l.bf16 %v9475_v17 }
 0x80a   : > { %v7390_v28 = vadd.f32 %v16753_v8, %v7165_v37  ;;  %v6824_v8 = vsel %vm3334_vm0, %v6792_v63, %v9472_v33  ;;  %v6889_v45 = vsel %vm562_vm4, %v16706_v47, %v9481_v12 }
 0x80b   : > { %v9490_v54 = vpop.permute.xlu1 %9489  ;;  %v6952_v36 = vsel %vm3367_vm1, %v6920_v25, %v9476_v2  ;;  %v6856_v18 = vsel %vm3367_vm1, %v6824_v8, %v9477_v7 }
 0x80c   : > { %7520 = vst.msk [vmem:[%s16862_s18 + $0x38] sm:$0xff] %vm562_vm4, %v7390_v28  ;;  %v7552_v26 = vadd.f32 %v7390_v28, %v15049_v51  ;;  %v9485_v30 = vpop.permute.xlu0 %9484  ;;  %7267 = vmatprep.mubr.f32.mxu1 %v6952_v36  ;;  %v9492_v49 = vunpack.i.h.bf16 %v9490_v54  ;;  %v9491_v52 = vunpack.i.l.bf16 %v9490_v54  ;;  %v6793_v51 = vsel %vm562_vm4, %v16610_v58, %v9482_v4  ;;  %v18792_v54 = vld [vmem:[#allocation148_spill] sm:$0xff] }
 0x80d   : > { %v9487_v39 = vunpack.i.h.bf16 %v9485_v30  ;;  %v9486_v32 = vunpack.i.l.bf16 %v9485_v30  ;;  %7268 = vmatmul.mubr.f32.gmra.mrb[108].mxu1 %v6856_v18 }
 0x80e   : > { %7584 = vst.msk [vmem:[%s16872_s19 + $0x38] sm:$0xff] %vm562_vm4, %v7552_v26 }
 0x80f   : > { %v9500_v15 = vpop.permute.xlu1 %9499  ;;  %v6921_v23 = vsel %vm3334_vm0, %v6889_v45, %v9486_v32  ;;  %v6825_v59 = vsel %vm3334_vm0, %v6793_v51, %v9487_v39 }
 0x810   : > { %v9495_v31 = vpop.permute.xlu0 %9494  ;;  %v6953_v40 = vsel %vm3367_vm1, %v6921_v23, %v9491_v52  ;;  %v6857_v44 = vsel %vm3367_vm1, %v6825_v59, %v9492_v49  ;;  %v9502_v16 = vunpack.i.h.bf16 %v9500_v15  ;;  %v9501_v21 = vunpack.i.l.bf16 %v9500_v15  ;;  %v18793_v52 = vld [vmem:[#allocation104_spill] sm:$0xff] }
 0x811   : > { %v9497_v19 = vunpack.i.h.bf16 %v9495_v31  ;;  %v9496_v56 = vunpack.i.l.bf16 %v9495_v31  ;;  %7272 = vmatprep.mubr.f32.mxu1 %v6953_v40  ;;  %v18794_v23 = vld [vmem:[#allocation168_spill] sm:$0xff] }
 0x812   : > { %7273 = vmatmul.mubr.f32.gmra.mrb[110].mxu1 %v6857_v44 }
 0x813   : > { %v9510_v50 = vpop.permute.xlu1 %9509  ;;  %v6890_v47 = vsel %vm562_vm4, %v16771_v0, %v9496_v56  ;;  %v6794_v58 = vsel %vm562_vm4, %v16669_v53, %v9497_v19  ;;  %v18795_v56 = vld [vmem:[#allocation171_spill] sm:$0xff] }
 0x814   : > { %v9505_v34 = vpop.permute.xlu0 %9504  ;;  %v9512_v62 = vunpack.i.h.bf16 %v9510_v50  ;;  %v9511_v14 = vunpack.i.l.bf16 %v9510_v50  ;;  %v6922_v48 = vsel %vm3334_vm0, %v6890_v47, %v9501_v21  ;;  %v6826_v60 = vsel %vm3334_vm0, %v6794_v58, %v9502_v16 }
 0x815   : > { %v9507_v3 = vunpack.i.h.bf16 %v9505_v34  ;;  %v9506_v5 = vunpack.i.l.bf16 %v9505_v34 }
 0x816   : > { %v16997_v27 = vpop.f32.mrb[128].mxu0  ;;  %v6891_v12 = vsel %vm562_vm4, %v16776_v43, %v9511_v14  ;;  %v6795_v25 = vsel %vm562_vm4, %v16671_v20, %v9512_v62 }
 0x817   : > { %v7169_v10 = vpop.f32.mrb[68].mxu1  ;;  %v17000_v6 = vpop.f32.mrb[129].mxu0  ;;  %v6954_v33 = vsel %vm3367_vm1, %v6922_v48, %v9506_v5  ;;  %v6858_v46 = vsel %vm3367_vm1, %v6826_v60, %v9507_v3  ;;  %v18797_v48 = vld [vmem:[#allocation145_spill] sm:$0xff] }
 0x818   : > { %v7170_v0 = vadd.f32 %v16853_v24, %v7169_v10  ;;  %v9520_v53 = vpop.permute.xlu1 %9519  ;;  %v7171_v37 = vpop.f32.mrb[69].mxu1  ;;  %7277 = vmatprep.mubr.f32.mxu1 %v6954_v33 }
 0x819   : > { %v9515_v17 = vpop.permute.xlu0 %9514  ;;  %v9522_v7 = vunpack.i.h.bf16 %v9520_v53  ;;  %v9521_v2 = vunpack.i.l.bf16 %v9520_v53  ;;  %7278 = vmatmul.mubr.f32.gmra.mrb[112].mxu1 %v6858_v46 }
 0x81a   : > { %v9517_v28 = vunpack.i.h.bf16 %v9515_v17  ;;  %v9516_v13 = vunpack.i.l.bf16 %v9515_v17  ;;  %v7395_v4 = vadd.f32 %v16804_v42, %v7170_v0 }
 0x81c   : > { %7521 = vst.msk [vmem:[%s16862_s18 + $0x40] sm:$0xff] %vm562_vm4, %v7395_v4  ;;  %v7553_v63 = vadd.f32 %v7395_v4, %v18792_v54  ;;  %v7174_v26 = vpop.f32.mrb[70].mxu1  ;;  %v6923_v36 = vsel %vm3334_vm0, %v6891_v12, %v9516_v13  ;;  %v6827_v8 = vsel %vm3334_vm0, %v6795_v25, %v9517_v28  ;;  %v18799_v4 = vld [vmem:[#allocation131_spill] sm:$0xff] }
 0x81d   : > { %v7175_v42 = vadd.f32 %v16853_v24, %v7174_v26  ;;  %v6955_v30 = vsel %vm3367_vm1, %v6923_v36, %v9521_v2  ;;  %v7176_v49 = vpop.f32.mrb[71].mxu1  ;;  %v6859_v43 = vsel %vm3367_vm1, %v6827_v8, %v9522_v7 }
 0x81e   : > { %7585 = vst.msk [vmem:[%s16872_s19 + $0x40] sm:$0xff] %vm562_vm4, %v7553_v63  ;;  %7282 = vmatprep.mubr.f32.mxu1 %v6955_v30 }
 0x81f   : > { %v7400_v20 = vadd.f32 %v16798_v11, %v7175_v42  ;;  %7283 = vmatmul.mubr.f32.gmra.mrb[114].mxu1 %v6859_v43 }
 0x821   : > { %7522 = vst.msk [vmem:[%s16862_s18 + $0x48] sm:$0xff] %vm562_vm4, %v7400_v20  ;;  %v7554_v18 = vadd.f32 %v7400_v20, %v18793_v52  ;;  %v18801_v20 = vld [vmem:[#allocation147_spill] sm:$0xff] }
 0x823   : > { %7586 = vst.msk [vmem:[%s16872_s19 + $0x48] sm:$0xff] %vm562_vm4, %v7554_v18 }
 0x82a   : > { %v17027_v39 = vpop.f32.mrb[130].mxu0 }
 0x82b   : > { %v17029_v32 = vpop.f32.mrb[131].mxu0  ;;  %v7179_v15 = vpop.f32.mrb[72].mxu1 }
 0x82c   : > { %v7180_v45 = vadd.f32 %v16853_v24, %v7179_v15  ;;  %v7181_v51 = vpop.f32.mrb[73].mxu1 }
 0x82e   : > { %v7405_v11 = vadd.f32 %v16834_v38, %v7180_v45 }
 0x830   : > { %7523 = vst.msk [vmem:[%s16862_s18 + $0x50] sm:$0xff] %vm562_vm4, %v7405_v11  ;;  %v7555_v59 = vadd.f32 %v7405_v11, %v18794_v23  ;;  %v7184_v31 = vpop.f32.mrb[74].mxu1 }
 0x831   : > { %v7185_v40 = vadd.f32 %v16853_v24, %v7184_v31  ;;  %v7186_v44 = vpop.f32.mrb[75].mxu1 }
 0x832   : > { %7587 = vst.msk [vmem:[%s16872_s19 + $0x50] sm:$0xff] %vm562_vm4, %v7555_v59 }
 0x833   : > { %v7410_v19 = vadd.f32 %v16832_v55, %v7185_v40  ;;  %v18796_v55 = vld [vmem:[#allocation112_spill] sm:$0xff] }
 0x835   : > { %7524 = vst.msk [vmem:[%s16862_s18 + $0x58] sm:$0xff] %vm562_vm4, %v7410_v19  ;;  %v7556_v16 = vadd.f32 %v7410_v19, %v18795_v56 }
 0x837   : > { %7588 = vst.msk [vmem:[%s16872_s19 + $0x58] sm:$0xff] %vm562_vm4, %v7556_v16 }
 0x83e   : > { %v17045_v38 = vpop.f32.mrb[132].mxu0 }
 0x83f   : > { %v17047_v21 = vpop.f32.mrb[133].mxu0 }
 0x840   : > { %v7189_v50 = vpop.f32.mrb[76].mxu1 }
 0x841   : > { %v7190_v47 = vadd.f32 %v16853_v24, %v7189_v50  ;;  %v7191_v58 = vpop.f32.mrb[77].mxu1 }
 0x843   : > { %v7415_v34 = vadd.f32 %v16858_v1, %v7190_v47 }
 0x845   : > { %7525 = vst.msk [vmem:[%s16862_s18 + $0x60] sm:$0xff] %vm562_vm4, %v7415_v34  ;;  %v7557_v3 = vadd.f32 %v7415_v34, %v18796_v55  ;;  %v7194_v5 = vpop.f32.mrb[78].mxu1 }
 0x846   : > { %v7195_v62 = vadd.f32 %v16853_v24, %v7194_v5  ;;  %v7196_v14 = vpop.f32.mrb[79].mxu1 }
 0x847   : > { %7589 = vst.msk [vmem:[%s16872_s19 + $0x60] sm:$0xff] %vm562_vm4, %v7557_v3 }
 0x848   : > { %v7420_v10 = vadd.f32 %v16856_v57, %v7195_v62  ;;  %v18798_v57 = vld [vmem:[#allocation117_spill] sm:$0xff] }
 0x84a   : > { %7526 = vst.msk [vmem:[%s16862_s18 + $0x68] sm:$0xff] %vm562_vm4, %v7420_v10  ;;  %v7558_v60 = vadd.f32 %v7420_v10, %v18797_v48 }
 0x84c   : > { %7590 = vst.msk [vmem:[%s16872_s19 + $0x68] sm:$0xff] %vm562_vm4, %v7558_v60 }
 0x852   : > { %v17063_v1 = vpop.f32.mrb[134].mxu0 }
 0x853   : > { %v17065_v0 = vpop.f32.mrb[135].mxu0 }
 0x854   : > { %v7199_v33 = vpop.f32.mrb[80].mxu1 }
 0x855   : > { %v7200_v53 = vadd.f32 %v16853_v24, %v7199_v33  ;;  %v7201_v37 = vpop.f32.mrb[81].mxu1 }
 0x857   : > { %v7425_v46 = vadd.f32 %v16896_v61, %v7200_v53 }
 0x859   : > { %7527 = vst.msk [vmem:[%s16862_s18 + $0x70] sm:$0xff] %vm562_vm4, %v7425_v46  ;;  %v7559_v17 = vadd.f32 %v7425_v46, %v18798_v57  ;;  %v7204_v7 = vpop.f32.mrb[82].mxu1 }
 0x85a   : > { %v7205_v2 = vadd.f32 %v16853_v24, %v7204_v7  ;;  %v7206_v28 = vpop.f32.mrb[83].mxu1 }
 0x85b   : > { %7591 = vst.msk [vmem:[%s16872_s19 + $0x70] sm:$0xff] %vm562_vm4, %v7559_v17 }
 0x85c   : > { %v7430_v13 = vadd.f32 %v16894_v29, %v7205_v2  ;;  %v18800_v29 = vld [vmem:[#allocation66_spill] sm:$0xff] }
 0x85e   : > { %7528 = vst.msk [vmem:[%s16862_s18 + $0x78] sm:$0xff] %vm562_vm4, %v7430_v13  ;;  %v7560_v12 = vadd.f32 %v7430_v13, %v18799_v4 }
 0x860   : > { %7592 = vst.msk [vmem:[%s16872_s19 + $0x78] sm:$0xff] %vm562_vm4, %v7560_v12 }
 0x866   : > { %v17081_v61 = vpop.f32.mrb[136].mxu0 }
 0x867   : > { %v17083_v25 = vpop.f32.mrb[137].mxu0 }
 0x868   : > { %v7209_v54 = vpop.f32.mrb[84].mxu1 }
 0x869   : > { %v7210_v63 = vadd.f32 %v16853_v24, %v7209_v54  ;;  %v7211_v26 = vpop.f32.mrb[85].mxu1 }
 0x86b   : > { %v7435_v36 = vadd.f32 %v16928_v9, %v7210_v63 }
 0x86d   : > { %7529 = vst.msk [vmem:[%s16862_s18 + $0x80] sm:$0xff] %vm562_vm4, %v7435_v36  ;;  %v7561_v8 = vadd.f32 %v7435_v36, %v18800_v29  ;;  %v7214_v42 = vpop.f32.mrb[86].mxu1 }
 0x86e   : > { %v7215_v30 = vadd.f32 %v16853_v24, %v7214_v42  ;;  %v7216_v49 = vpop.f32.mrb[87].mxu1 }
 0x86f   : > { %7593 = vst.msk [vmem:[%s16872_s19 + $0x80] sm:$0xff] %vm562_vm4, %v7561_v8  ;;  %v17099_v9 = vpop.f32.mrb[138].mxu0 }
 0x870   : > { %v7440_v43 = vadd.f32 %v16926_v22, %v7215_v30  ;;  %v17101_v18 = vpop.f32.mrb[139].mxu0 }
 0x872   : > { %7530 = vst.msk [vmem:[%s16862_s18 + $0x88] sm:$0xff] %vm562_vm4, %v7440_v43  ;;  %v7562_v52 = vadd.f32 %v7440_v43, %v18801_v20 }
 0x874   : > { %7594 = vst.msk [vmem:[%s16872_s19 + $0x88] sm:$0xff] %vm562_vm4, %v7562_v52 }
 0x87c   : > { %v7219_v15 = vpop.f32.mrb[88].mxu1 }
 0x87d   : > { %v7220_v22 = vadd.f32 %v16853_v24, %v7219_v15  ;;  %v7221_v45 = vpop.f32.mrb[89].mxu1 }
 0x87f   : > { %v7445_v51 = vadd.f32 %v16962_v35, %v7220_v22 }
 0x880   : > { %9693 = shalt.err (!%p9690_p3)
}
 0x881   : > { %s9694_s26 = scalar_lea.hbm %s17110_s16, 4096  ;;  %s9698_s29 = scalar_lea.hbm %s17342_s10, 8192 }
 0x882   : > { %p9695_p4 = scmp.ne.s32.totalorder %s17110_s16, %s9694_s26  ;;  %p9699_p9 = scmp.lt.u32.totalorder %s17110_s16, %s17342_s10 }
 0x883   : > { %p9700_p10 = scmp.lt.u32.totalorder %s9698_s29, %s9694_s26  ;;  %p9702_p12 = scmp.lt.u32.totalorder %s9694_s26, %s17110_s16 }
 0x884   : > { %p9696_p7 = pnand %p9695_p4, %p9932_p5 }
 0x885   : > { %p9701_p11 = por %p9700_p10, %p9699_p9 }
 0x886   : > { %p9697_p8 = pneg %p9696_p7 }
 0x887   : > { %p9703_p13 = por %p9702_p12, %p9701_p11 }
 0x889   : > { %p9704_p0 = pnand %p9703_p13, %p9697_p8 }
 0x88b   : > { %9707 = shalt.err (!%p9704_p0)
}
 0x88c   : > { %s17726_s1 = smov 128   ;;  %s18803_s2 = smov 8   ;;  %7531 = vst.msk [vmem:[%s16862_s18 + $0x90] sm:$0xff] %vm562_vm4, %v7445_v51  ;;  %v18804_v35 = vld [vmem:[#allocation18_spill] sm:$0xff]  ;;  %v7224_v23 = vpop.f32.mrb[90].mxu1  ;;  %v18805_v44 = vld [vmem:[#allocation167_spill] sm:$0xff] }
 0x88d   : > { %8494 = dma.vmem_to_hbm [thread:$0]  (%p9932_p5), %s17114_s20, 4096, %s17110_s16, %s17119_s0, %s17726_s1, %s17726_s1, %s18803_s2   ;;  %v7563_v11 = vadd.f32 %v7445_v51, %v18804_v35  ;;  %v7225_v59 = vadd.f32 %v16853_v24, %v7224_v23  ;;  %v7226_v31 = vpop.f32.mrb[91].mxu1  ;;  %v18806_v58 = vld [vmem:[#allocation151_spill] sm:$0xff]  ;;  %v18807_v62 = vld [vmem:[#allocation77_spill] sm:$0xff]  ;;  %v18808_v33 = vld [vmem:[#allocation98_spill] sm:$0xff] }
 0x88e   : > { %v18809_v17 = vld [vmem:[#allocation49_spill] sm:$0xff]  ;;  %v18810_v4 = vld [vmem:[#allocation146_spill] sm:$0xff]  ;;  %v18811_v36 = vld [vmem:[#allocation55_spill] sm:$0xff]  ;;  %s7614_s3 = sand.u32 1, %s9913_s25   ;;  %s7649_s4 = sshll.u32 %s16862_s18, 4  ;;  %s17246_s4 = int_to_ptr.vmem [resolvable:$true] %s7649_s4 }
 0x88f   : > { %7595 = vst.msk [vmem:[%s16872_s19 + $0x90] sm:$0xff] %vm562_vm4, %v7563_v11  ;;  %v7450_v40 = vadd.f32 %v16960_v41, %v7225_v59  ;;  %v18812_v49 = vld [vmem:[#allocation16_spill] sm:$0xff]  ;;  %v18813_v22 = vld [vmem:[#allocation126_spill] sm:$0xff]  ;;  %s7665_s16 = sshll.u32 %s16872_s19, 4  ;;  %s17244_s26 = scalar_lea.hbm %s17343_s11, %s17104_s17  ;;  %s17257_s16 = int_to_ptr.vmem [resolvable:$true] %s7665_s16 }
 0x890   : > { %v18814_v23 = vld [vmem:[#allocation76_spill] sm:$0xff]  ;;  %s17255_s29 = scalar_lea.hbm %s17344_s12, %s17104_s17  ;;  %s17259_s28 = scalar_lea.sflag [#allocation8], %s7614_s3 }
 0x891   : > { %7532 = vst.msk [vmem:[%s16862_s18 + $0x98] sm:$0xff] %vm562_vm4, %v7450_v40  ;;  %v7564_v19 = vadd.f32 %v7450_v40, %v18805_v44  ;;  %v7229_v56 = vpop.f32.mrb[92].mxu1  ;;  %s9708_s20 = scalar_lea.vmem %s17246_s4, 4096  ;;  %s9825_s0 = smov [#allocation7]  }
 0x892   : > { %v7230_v16 = vadd.f32 %v16853_v24, %v7229_v56  ;;  %v7231_v50 = vpop.f32.mrb[93].mxu1  ;;  %p9709_p1 = scmp.ne.s32.totalorder %s17246_s4, %s9708_s20  ;;  %s9712_s1 = sshll.u32 %s9825_s0, 4  ;;  %s9713_s1 = int_to_ptr.vmem [resolvable:$false] %s9712_s1 }
 0x893   : > { %7596 = vst.msk [vmem:[%s16872_s19 + $0x98] sm:$0xff] %vm562_vm4, %v7564_v19  ;;  %v18815_v19 = vld [vmem:[#allocation78_spill] sm:$0xff]  ;;  %p9715_p4 = scmp.lt.s32.totalorder %s17246_s4, %s9713_s1 }
 0x894   : > { %v7455_v47 = vadd.f32 %v17000_v6, %v7230_v16  ;;  %p9710_p2 = pnand %p9709_p1, %p9932_p5 }
 0x896   : > { %7533 = vst.msk [vmem:[%s16862_s18 + $0xa0] sm:$0xff] %vm562_vm4, %v7455_v47  ;;  %v7565_v34 = vadd.f32 %v7455_v47, %v18806_v58  ;;  %v7234_v55 = vpop.f32.mrb[94].mxu1  ;;  %p9711_p3 = pneg %p9710_p2 }
 0x897   : > { %v7235_v41 = vadd.f32 %v16853_v24, %v7234_v55  ;;  %v7236_v3 = vpop.f32.mrb[95].mxu1 }
 0x898   : > { %7597 = vst.msk [vmem:[%s16872_s19 + $0xa0] sm:$0xff] %vm562_vm4, %v7565_v34 }
 0x899   : > { %v7460_v5 = vadd.f32 %v16997_v27, %v7235_v41 }
 0x89b   : > { %7534 = vst.msk [vmem:[%s16862_s18 + $0xa8] sm:$0xff] %vm562_vm4, %v7460_v5  ;;  %v7566_v14 = vadd.f32 %v7460_v5, %v18807_v62 }
 0x89d   : > { %7598 = vst.msk [vmem:[%s16872_s19 + $0xa8] sm:$0xff] %vm562_vm4, %v7566_v14 }
 0x8a3   : > { %v7239_v6 = vpop.f32.mrb[96].mxu1 }
 0x8a4   : > { %v7240_v10 = vadd.f32 %v16853_v24, %v7239_v6  ;;  %v7241_v48 = vpop.f32.mrb[97].mxu1 }
 0x8a6   : > { %v7465_v60 = vadd.f32 %v17029_v32, %v7240_v10 }
 0x8a8   : > { %7535 = vst.msk [vmem:[%s16862_s18 + $0xb0] sm:$0xff] %vm562_vm4, %v7465_v60  ;;  %v7567_v53 = vadd.f32 %v7465_v60, %v18808_v33  ;;  %v7244_v37 = vpop.f32.mrb[98].mxu1 }
 0x8a9   : > { %v7245_v27 = vadd.f32 %v16853_v24, %v7244_v37  ;;  %v7246_v46 = vpop.f32.mrb[99].mxu1 }
 0x8aa   : > { %7599 = vst.msk [vmem:[%s16872_s19 + $0xb0] sm:$0xff] %vm562_vm4, %v7567_v53 }
 0x8ab   : > { %v7470_v57 = vadd.f32 %v17027_v39, %v7245_v27 }
 0x8ad   : > { %7536 = vst.msk [vmem:[%s16862_s18 + $0xb8] sm:$0xff] %vm562_vm4, %v7470_v57  ;;  %v7568_v7 = vadd.f32 %v7470_v57, %v18809_v17 }
 0x8af   : > { %7600 = vst.msk [vmem:[%s16872_s19 + $0xb8] sm:$0xff] %vm562_vm4, %v7568_v7 }
 0x8b8   : > { %v7249_v32 = vpop.f32.mrb[100].mxu1 }
 0x8b9   : > { %v7250_v2 = vadd.f32 %v16853_v24, %v7249_v32  ;;  %v7251_v28 = vpop.f32.mrb[101].mxu1 }
 0x8bb   : > { %v7475_v13 = vadd.f32 %v17047_v21, %v7250_v2 }
 0x8bd   : > { %7537 = vst.msk [vmem:[%s16862_s18 + $0xc0] sm:$0xff] %vm562_vm4, %v7475_v13  ;;  %v7569_v12 = vadd.f32 %v7475_v13, %v18810_v4  ;;  %v7254_v54 = vpop.f32.mrb[102].mxu1 }
 0x8be   : > { %v7255_v39 = vadd.f32 %v16853_v24, %v7254_v54  ;;  %v7256_v63 = vpop.f32.mrb[103].mxu1 }
 0x8bf   : > { %7601 = vst.msk [vmem:[%s16872_s19 + $0xc0] sm:$0xff] %vm562_vm4, %v7569_v12 }
 0x8c0   : > { %v7480_v26 = vadd.f32 %v17045_v38, %v7255_v39 }
 0x8c2   : > { %7538 = vst.msk [vmem:[%s16862_s18 + $0xc8] sm:$0xff] %vm562_vm4, %v7480_v26  ;;  %v7570_v29 = vadd.f32 %v7480_v26, %v18811_v36 }
 0x8c4   : > { %7602 = vst.msk [vmem:[%s16872_s19 + $0xc8] sm:$0xff] %vm562_vm4, %v7570_v29 }
 0x8cc   : > { %v7259_v21 = vpop.f32.mrb[104].mxu1 }
 0x8cd   : > { %v7260_v8 = vadd.f32 %v16853_v24, %v7259_v21  ;;  %v7261_v42 = vpop.f32.mrb[105].mxu1 }
 0x8cf   : > { %v7485_v30 = vadd.f32 %v17065_v0, %v7260_v8 }
 0x8d1   : > { %7539 = vst.msk [vmem:[%s16862_s18 + $0xd0] sm:$0xff] %vm562_vm4, %v7485_v30  ;;  %v7571_v43 = vadd.f32 %v7485_v30, %v18812_v49  ;;  %v7264_v20 = vpop.f32.mrb[106].mxu1 }
 0x8d2   : > { %v7265_v38 = vadd.f32 %v16853_v24, %v7264_v20  ;;  %v7266_v52 = vpop.f32.mrb[107].mxu1 }
 0x8d3   : > { %7603 = vst.msk [vmem:[%s16872_s19 + $0xd0] sm:$0xff] %vm562_vm4, %v7571_v43 }
 0x8d4   : > { %v7490_v15 = vadd.f32 %v17063_v1, %v7265_v38 }
 0x8d6   : > { %7540 = vst.msk [vmem:[%s16862_s18 + $0xd8] sm:$0xff] %vm562_vm4, %v7490_v15  ;;  %v7572_v45 = vadd.f32 %v7490_v15, %v18813_v22 }
 0x8d8   : > { %7604 = vst.msk [vmem:[%s16872_s19 + $0xd8] sm:$0xff] %vm562_vm4, %v7572_v45 }
 0x8e0   : > { %v7269_v0 = vpop.f32.mrb[108].mxu1 }
 0x8e1   : > { %v7270_v51 = vadd.f32 %v16853_v24, %v7269_v0  ;;  %v7271_v35 = vpop.f32.mrb[109].mxu1 }
 0x8e3   : > { %v7495_v11 = vadd.f32 %v17083_v25, %v7270_v51 }
 0x8e5   : > { %7541 = vst.msk [vmem:[%s16862_s18 + $0xe0] sm:$0xff] %vm562_vm4, %v7495_v11  ;;  %v7573_v59 = vadd.f32 %v7495_v11, %v18814_v23  ;;  %v7274_v1 = vpop.f32.mrb[110].mxu1 }
 0x8e6   : > { %v7275_v31 = vadd.f32 %v16853_v24, %v7274_v1  ;;  %v7276_v40 = vpop.f32.mrb[111].mxu1 }
 0x8e7   : > { %7605 = vst.msk [vmem:[%s16872_s19 + $0xe0] sm:$0xff] %vm562_vm4, %v7573_v59 }
 0x8e8   : > { %v7500_v44 = vadd.f32 %v17081_v61, %v7275_v31  ;;  %v18816_v61 = vld [vmem:[#allocation20_spill] sm:$0xff] }
 0x8ea   : > { %7542 = vst.msk [vmem:[%s16862_s18 + $0xe8] sm:$0xff] %vm562_vm4, %v7500_v44  ;;  %v7574_v25 = vadd.f32 %v7500_v44, %v18815_v19 }
 0x8ec   : > { %7606 = vst.msk [vmem:[%s16872_s19 + $0xe8] sm:$0xff] %vm562_vm4, %v7574_v25  ;;  %v7279_v56 = vpop.f32.mrb[112].mxu1 }
 0x8ed   : > { %v7280_v16 = vadd.f32 %v16853_v24, %v7279_v56  ;;  %v7281_v50 = vpop.f32.mrb[113].mxu1 }
 0x8ef   : > { %v7505_v47 = vadd.f32 %v17101_v18, %v7280_v16  ;;  %v18817_v18 = vld [vmem:[#allocation15_spill] sm:$0xff] }
 0x8f1   : > { %7543 = vst.msk [vmem:[%s16862_s18 + $0xf0] sm:$0xff] %vm562_vm4, %v7505_v47  ;;  %v7575_v58 = vadd.f32 %v7505_v47, %v18816_v61 }
 0x8f2   : > { %v7284_v34 = vpop.f32.mrb[114].mxu1 }
 0x8f3   : > { %v7285_v55 = vadd.f32 %v16853_v24, %v7284_v34  ;;  %v7286_v41 = vpop.f32.mrb[115].mxu1  ;;  %7607 = vst.msk [vmem:[%s16872_s19 + $0xf0] sm:$0xff] %vm562_vm4, %v7575_v58 }
 0x8f5   : > { %v7510_v3 = vadd.f32 %v17099_v9, %v7285_v55 }
 0x8f7   : > { %7544 = vst.msk [vmem:[%s16862_s18 + $0xf8] sm:$0xff] %vm562_vm4, %v7510_v3  ;;  %v7576_v24 = vadd.f32 %v7510_v3, %v18817_v18  ;;  %s9714_s18 = scalar_lea.vmem %s9713_s1, 8192 }
 0x8f8   : > { %p9716_p7 = scmp.lt.s32.totalorder %s9714_s18, %s9708_s20 }
 0x8fa   : > { %p9717_p8 = por %p9716_p7, %p9715_p4 }
 0x8fc   : > { %p9718_p9 = pnand %p9717_p8, %p9711_p3 }
 0x8fe   : > { %9721 = shalt.err (!%p9718_p9)
}
 0x8ff   : > { %s9722_s17 = scalar_lea.hbm %s17244_s26, 4096  ;;  %s9726_s15 = scalar_lea.hbm %s17343_s11, 8192 }
 0x900   : > { %p9723_p10 = scmp.ne.s32.totalorder %s17244_s26, %s9722_s17  ;;  %p9727_p13 = scmp.lt.u32.totalorder %s17244_s26, %s17343_s11 }
 0x901   : > { %p9728_p0 = scmp.lt.u32.totalorder %s9726_s15, %s9722_s17  ;;  %p9730_p2 = scmp.lt.u32.totalorder %s9722_s17, %s17244_s26 }
 0x902   : > { %p9724_p11 = pnand %p9723_p10, %p9932_p5 }
 0x903   : > { %p9729_p1 = por %p9728_p0, %p9727_p13 }
 0x904   : > { %p9725_p12 = pneg %p9724_p11 }
 0x905   : > { %p9731_p3 = por %p9730_p2, %p9729_p1 }
 0x907   : > { %p9732_p4 = pnand %p9731_p3, %p9725_p12 }
 0x909   : > { %9735 = shalt.err (!%p9732_p4)
}
 0x90a   : > { %s18818_s20 = smov 128   ;;  %7608 = vst.msk [vmem:[%s16872_s19 + $0xf8] sm:$0xff] %vm562_vm4, %v7576_v24  ;;  %s9736_s18 = scalar_lea.vmem %s17257_s16, 4096 }
 0x90b   : > { %8495 = dma.vmem_to_hbm [thread:$0]  (%p9932_p5), %s17246_s4, 4096, %s17244_s26, %s17259_s28, %s18818_s20, %s18818_s20, %s18803_s2  }
 0x90c   : > { %p9737_p7 = scmp.ne.s32.totalorder %s17257_s16, %s9736_s18  ;;  %s9826_s17 = smov [#allocation9]  }
 0x90d   : > { %s9740_s3 = sshll.u32 %s9826_s17, 4  ;;  %s9741_s3 = int_to_ptr.vmem [resolvable:$false] %s9740_s3 }
 0x90e   : > { %p9738_p8 = pnand %p9737_p7, %p9932_p5  ;;  %s9742_s25 = scalar_lea.vmem %s9741_s3, 8192 }
 0x90f   : > { %p9743_p10 = scmp.lt.s32.totalorder %s17257_s16, %s9741_s3  ;;  %p9744_p11 = scmp.lt.s32.totalorder %s9742_s25, %s9736_s18 }
 0x910   : > { %p9739_p9 = pneg %p9738_p8 }
 0x911   : > { %p9745_p12 = por %p9744_p11, %p9743_p10 }
 0x913   : > { %p9746_p13 = pnand %p9745_p12, %p9739_p9 }
 0x915   : > { %9749 = shalt.err (!%p9746_p13)
}
 0x916   : > { %s9750_s19 = scalar_lea.hbm %s17255_s29, 4096  ;;  %s9754_s15 = scalar_lea.hbm %s17344_s12, 8192 }
 0x917   : > { %p9751_p0 = scmp.ne.s32.totalorder %s17255_s29, %s9750_s19  ;;  %p9755_p3 = scmp.lt.u32.totalorder %s17255_s29, %s17344_s12 }
 0x918   : > { %p9756_p4 = scmp.lt.u32.totalorder %s9754_s15, %s9750_s19  ;;  %p9758_p8 = scmp.lt.u32.totalorder %s9750_s19, %s17255_s29 }
 0x919   : > { %p9752_p1 = pnand %p9751_p0, %p9932_p5 }
 0x91a   : > { %p9757_p7 = por %p9756_p4, %p9755_p3 }
 0x91b   : > { %p9753_p2 = pneg %p9752_p1 }
 0x91c   : > { %p9759_p9 = por %p9758_p8, %p9757_p7 }
 0x91e   : > { %p9760_p10 = pnand %p9759_p9, %p9753_p2 }
 0x920   : > { %9763 = shalt.err (!%p9760_p10)
}
 0x921   : > { %8496 = dma.vmem_to_hbm [thread:$0]  (%p9932_p5), %s17257_s16, 4096, %s17255_s29, %s17259_s28, %s18818_s20, %s18818_s20, %s18803_s2  }
 0x922 PF: > { %p8510_p11 = scmp.ge.s32.totalorder %s9802_s24, 2  ;;  %s7680_s18 = sand.u32 1, %s9790_s21  }
 0x923   : > { %s7681_s17 = scalar_lea.sflag [#allocation6], %s7680_s18 }
 0x924   : > { %p8501_p12 = pnand %p8510_p11, %p9936_p6 }
 0x926   : > { %9781 = dma.done.wait (!%p8501_p12), %s7681_s17, 4096  }
 0x927   : > { %9783 = vsyncadd (!%p8501_p12), %s7681_s17, 4294963200  ;;  %s18819_s13 = sadd.s32 4294967294, %s9802_s24  }
 0x928   : > { %s7689_s3 = sand.u32 1, %s18819_s13  }
 0x929   : > { %s7690_s25 = scalar_lea.sflag [#allocation8], %s7689_s3 }
 0x92a   : > { %9785 = dma.done.wait (!%p8501_p12), %s7690_s25, 8192  }
 0x92b   : > { %9787 = vsyncadd (!%p8501_p12), %s7690_s25, 4294959104  ;;  %p26_p5 = scmp.ge.s32.totalorder %s9917_s27, 4   ;;  %s18820_s21 = smov %s9794_s22 }
 0x92c   : > { %s18821_s22 = smov %s9798_s23  ;;  %s18822_s23 = smov %s9930_s30 }
 0x92d   : > { %s18823_s24 = smov %s9917_s27  ;;  %28 = sbr.rel (!%p26_p5) target bundleno = 11 (0xb), region = 133 }
 0x934   :  { %7704 = vsyncpa [#allocation6], 1 }
 0x935   :  { %7706 = vsyncpa [#allocation6 + $0x1], 1 }
 0x936   :  { %7707 = vsyncpa [#allocation8], 1 }
 0x937   :  { %7709 = vsyncpa [#allocation8 + $0x1], 1 }

</bundles_post_ra>
